<compile_context>
chip_gen: v7x
topology: tpu7x:2x2x1
jax: 0.10.0
libtpu: 0.0.40
codegen_flags: <defaults>
</compile_context>

<pallas_src>
import functools

import jax
import jax.numpy as jnp
from jax import lax
from jax.experimental import pallas as pl
from jax.experimental.pallas import tpu as pltpu

NEG_SLOPE = 0.2      # F.leaky_relu negative slope
DROP_P = 0.3         # F.dropout p (training=True in the reference forward)
H1, H2, H3 = 1024, 512, 256
LANE = 128

# drop iff (hash bits & 0x7FFFFF) < DROP_THRESH   (23-bit uniform)
DROP_THRESH = int(DROP_P * (1 << 23))
INV_KEEP = 1.0 / (1.0 - DROP_P)                   # folded into w2/w3/w4


def _round_up(n, m):
    return (n + m - 1) // m * m


def _leaky_relu(v):
    return jnp.where(v >= 0.0, v, NEG_SLOPE * v)


def _hash32(x):
    """murmur3 fmix32-style mixer on int32 (wraparound mul, logical shifts)."""
    x = x ^ lax.shift_right_logical(x, jnp.int32(16))
    x = x * jnp.int32(-2048144789)   # 0x85ebca6b
    x = x ^ lax.shift_right_logical(x, jnp.int32(13))
    x = x * jnp.int32(-1028477387)   # 0xc2b2ae35
    x = x ^ lax.shift_right_logical(x, jnp.int32(16))
    return x


def _dropout(v, seed, layer_salt):
    """Training-mode dropout mask (keep w.p. 1-p).

    The 1/(1-p) rescale is NOT applied here: it is folded into the next
    layer's weights at init time (mathematically identical).
    """
    rows = lax.broadcasted_iota(jnp.int32, v.shape, 0)
    cols = lax.broadcasted_iota(jnp.int32, v.shape, 1)
    idx = rows * jnp.int32(v.shape[1]) + cols
    salt = (seed + jnp.int32(layer_salt)) * jnp.int32(-1640531535)  # golden ratio
    bits = _hash32(idx ^ salt)
    u = bits & jnp.int32(0x7FFFFF)            # 23 uniform bits, always >= 0
    keep = u >= jnp.int32(DROP_THRESH)        # P(keep) = 1 - p
    return jnp.where(keep, v, 0.0)


def discriminator_kernel(seed_ref, x_ref, w1_ref, b1_ref, w2_ref, b2_ref,
                         w3_ref, b3_ref, w4_ref, b4_ref, o_ref):
    # Independent dropout stream per row tile.
    seed = seed_ref[0] + pl.program_id(0) * jnp.int32(16777619)

    x = x_ref[...].astype(jnp.bfloat16)       # cast in-kernel, no HBM pad pass

    h = jnp.dot(x, w1_ref[...], preferred_element_type=jnp.float32)
    h = _dropout(_leaky_relu(h + b1_ref[...]), seed, 1).astype(jnp.bfloat16)

    h = jnp.dot(h, w2_ref[...], preferred_element_type=jnp.float32)
    h = _dropout(_leaky_relu(h + b2_ref[...]), seed, 2).astype(jnp.bfloat16)

    h = jnp.dot(h, w3_ref[...], preferred_element_type=jnp.float32)
    h = _dropout(_leaky_relu(h + b3_ref[...]), seed, 3).astype(jnp.bfloat16)

    z = jnp.dot(h, w4_ref[...], preferred_element_type=jnp.float32) + b4_ref[...]
    o_ref[...] = jax.nn.sigmoid(z)             # lane-dense (tb, 128) store


def discriminator_forward(x, params, output_size, seed=0, row_tile=256):
    """x: (B, input_size) f32  ->  (B, output_size) f32 in (0, 1)."""
    w1, b1 = params["w1"], params["b1"]
    w2, b2 = params["w2"], params["b2"]
    w3, b3 = params["w3"], params["b3"]
    w4, b4 = params["w4"], params["b4"]

    B, fin = x.shape
    out_pad = w4.shape[1]

    # Row tile: multiple of 16 (bf16 sublane packing), capped at padded batch.
    tb = min(row_tile, _round_up(B, 16))
    b_pad = _round_up(B, tb)
    nb = b_pad // tb

    if b_pad != B:                             # rows only; features untouched
        x = jnp.pad(x, ((0, b_pad - B), (0, 0)))

    # Small batch: don't shard the row grid across TensorCores (would duplicate
    # the constant-index weight DMA, which IS the per-call floor there).
    semantics = ("arbitrary",) if B <= 512 else ("parallel",)

    seed_arr = jnp.array([seed], jnp.int32)
    const = lambda i, s: (0, 0)

    out = pl.pallas_call(
        discriminator_kernel,
        out_shape=jax.ShapeDtypeStruct((b_pad, out_pad), jnp.float32),
        grid_spec=pltpu.PrefetchScalarGridSpec(
            num_scalar_prefetch=1,
            grid=(nb,),
            in_specs=[
                pl.BlockSpec((tb, fin), lambda i, s: (i, 0)),
                pl.BlockSpec((fin, H1), const),
                pl.BlockSpec((1, H1), const),
                pl.BlockSpec((H1, H2), const),
                pl.BlockSpec((1, H2), const),
                pl.BlockSpec((H2, H3), const),
                pl.BlockSpec((1, H3), const),
                pl.BlockSpec((H3, out_pad), const),
                pl.BlockSpec((1, out_pad), const),
            ],
            out_specs=pl.BlockSpec((tb, out_pad), lambda i, s: (i, 0)),
        ),
        compiler_params=pltpu.CompilerParams(dimension_semantics=semantics),
    )(seed_arr, x, w1, b1, w2, b2, w3, b3, w4, b4)

    return out[:B, :output_size]


def init_params(key, input_size, output_size):
    """PyTorch nn.Linear default init: U(-1/sqrt(fan_in), 1/sqrt(fan_in)).

    The dropout rescale 1/(1-p) is folded into w2/w3/w4 (dropout output feeds
    a linear layer, so this is mathematically identical to rescaling the
    activations).  w4/b4 are zero-padded to a lane multiple for a dense store.
    """
    def linear(k, fan_in, fan_out):
        kw, kb = jax.random.split(k)
        bound = 1.0 / (fan_in ** 0.5)
        w = jax.random.uniform(kw, (fan_in, fan_out), jnp.float32, -bound, bound)
        b = jax.random.uniform(kb, (1, fan_out), jnp.float32, -bound, bound)
        return w, b

    k1, k2, k3, k4 = jax.random.split(key, 4)
    w1, b1 = linear(k1, input_size, H1)
    w2, b2 = linear(k2, H1, H2)
    w3, b3 = linear(k3, H2, H3)
    w4, b4 = linear(k4, H3, output_size)

    out_pad = _round_up(output_size, LANE)
    w4p = jnp.zeros((H3, out_pad), jnp.float32).at[:, :output_size].set(w4)
    b4p = jnp.zeros((1, out_pad), jnp.float32).at[:, :output_size].set(b4)

    return {
        "w1": w1.astype(jnp.bfloat16), "b1": b1,
        "w2": (w2 * INV_KEEP).astype(jnp.bfloat16), "b2": b2,
        "w3": (w3 * INV_KEEP).astype(jnp.bfloat16), "b3": b3,
        "w4": (w4p * INV_KEEP).astype(jnp.bfloat16), "b4": b4p,
    }


if __name__ == "__main__":
    INPUT_SIZE = 784   # 28*28 flattened MNIST images (HW4 GAN discriminator)
    OUTPUT_SIZE = 1
    BATCH = 64

    key = jax.random.PRNGKey(0)
    kx, kp = jax.random.split(key)
    x = jax.random.normal(kx, (BATCH, INPUT_SIZE), jnp.float32)
    params = init_params(kp, INPUT_SIZE, OUTPUT_SIZE)

    # NOTE: in real training the caller must thread a fresh per-step seed,
    # otherwise the dropout mask is identical every call.
    fwd = jax.jit(functools.partial(discriminator_forward,
                                    output_size=OUTPUT_SIZE, seed=0))
    out = jax.block_until_ready(fwd(x, params))

    assert out.shape == (BATCH, OUTPUT_SIZE), out.shape
    assert bool(jnp.all(jnp.isfinite(out)))
    assert bool(jnp.all((out >= 0.0) & (out <= 1.0)))
    print("KERNEL_OK")
</pallas_src>

<mosaic_0001>
module attributes {stable_mosaic.version = 11 : i64} {
  func.func @discriminator_kernel(%arg0: i32, %arg1: memref<1xi32, #tpu.memory_space<smem>>, %arg2: memref<64x784xf32, #tpu.memory_space<vmem>>, %arg3: memref<784x1024xbf16, #tpu.memory_space<vmem>>, %arg4: memref<1x1024xf32, #tpu.memory_space<vmem>>, %arg5: memref<1024x512xbf16, #tpu.memory_space<vmem>>, %arg6: memref<1x512xf32, #tpu.memory_space<vmem>>, %arg7: memref<512x256xbf16, #tpu.memory_space<vmem>>, %arg8: memref<1x256xf32, #tpu.memory_space<vmem>>, %arg9: memref<256x128xbf16, #tpu.memory_space<vmem>>, %arg10: memref<1x128xf32, #tpu.memory_space<vmem>>, %arg11: memref<64x128xf32, #tpu.memory_space<vmem>>) attributes {dimension_semantics = [#tpu.dimension_semantics<arbitrary>], iteration_bounds = array<i64: 1>, scalar_prefetch = 1 : i64, scratch_operands = 0 : i64, tpu.core_type = #tpu.core_type<tc>, window_params = [{transform_indices = @transform_0, window_bounds = array<i64: 64, 784>}, {pipeline_mode = #tpu.pipeline_mode<synchronous>, transform_indices = @transform_1, window_bounds = array<i64: 784, 1024>}, {pipeline_mode = #tpu.pipeline_mode<synchronous>, transform_indices = @transform_2, window_bounds = array<i64: 1, 1024>}, {pipeline_mode = #tpu.pipeline_mode<synchronous>, transform_indices = @transform_3, window_bounds = array<i64: 1024, 512>}, {pipeline_mode = #tpu.pipeline_mode<synchronous>, transform_indices = @transform_4, window_bounds = array<i64: 1, 512>}, {pipeline_mode = #tpu.pipeline_mode<synchronous>, transform_indices = @transform_5, window_bounds = array<i64: 512, 256>}, {pipeline_mode = #tpu.pipeline_mode<synchronous>, transform_indices = @transform_6, window_bounds = array<i64: 1, 256>}, {pipeline_mode = #tpu.pipeline_mode<synchronous>, transform_indices = @transform_7, window_bounds = array<i64: 256, 128>}, {pipeline_mode = #tpu.pipeline_mode<synchronous>, transform_indices = @transform_8, window_bounds = array<i64: 1, 128>}, {transform_indices = @transform_9, window_bounds = array<i64: 64, 128>}]} {
    %c0 = arith.constant 0 : index
    %0 = memref.load %arg1[%c0] : memref<1xi32, #tpu.memory_space<smem>>
    %c16777619_i32 = arith.constant 16777619 : i32
    %1 = arith.muli %arg0, %c16777619_i32 : i32
    %2 = arith.addi %0, %1 : i32
    %c0_0 = arith.constant 0 : index
    %c0_1 = arith.constant 0 : index
    %3 = vector.load %arg2[%c0_0, %c0_1] : memref<64x784xf32, #tpu.memory_space<vmem>>, vector<64x784xf32>
    %4 = arith.truncf %3 : vector<64x784xf32> to vector<64x784xbf16>
    %c0_2 = arith.constant 0 : index
    %c0_3 = arith.constant 0 : index
    %5 = vector.load %arg3[%c0_2, %c0_3] : memref<784x1024xbf16, #tpu.memory_space<vmem>>, vector<784x1024xbf16>
    %cst = arith.constant dense<0.000000e+00> : vector<64x1024xf32>
    %6 = tpu.matmul %4, %5, %cst {dimension_numbers = #tpu.dot_dimension_numbers<[1], [0], [0], [1], [0, 0, 1, 1], [], []>} : vector<64x784xbf16>, vector<784x1024xbf16>, vector<64x1024xf32> -> vector<64x1024xf32>
    %c0_4 = arith.constant 0 : index
    %c0_5 = arith.constant 0 : index
    %7 = vector.load %arg4[%c0_4, %c0_5] : memref<1x1024xf32, #tpu.memory_space<vmem>>, vector<1x1024xf32>
    %8 = vector.broadcast %7 : vector<1x1024xf32> to vector<64x1024xf32>
    %9 = arith.addf %6, %8 : vector<64x1024xf32>
    %cst_6 = arith.constant 0.000000e+00 : f32
    %10 = vector.broadcast %cst_6 : f32 to vector<64x1024xf32>
    %11 = arith.cmpf oge, %9, %10 : vector<64x1024xf32>
    %cst_7 = arith.constant 2.000000e-01 : f32
    %12 = vector.broadcast %cst_7 : f32 to vector<64x1024xf32>
    %13 = arith.mulf %12, %9 : vector<64x1024xf32>
    %14 = arith.select %11, %9, %13 : vector<64x1024xi1>, vector<64x1024xf32>
    %15 = tpu.iota {dimensions = array<i32: 0>} : vector<64x1024xi32>
    %16 = tpu.iota {dimensions = array<i32: 1>} : vector<64x1024xi32>
    %c1024_i32 = arith.constant 1024 : i32
    %17 = vector.broadcast %c1024_i32 : i32 to vector<64x1024xi32>
    %18 = arith.muli %15, %17 : vector<64x1024xi32>
    %19 = arith.addi %18, %16 : vector<64x1024xi32>
    %c1_i32 = arith.constant 1 : i32
    %20 = arith.addi %2, %c1_i32 : i32
    %c-1640531535_i32 = arith.constant -1640531535 : i32
    %21 = arith.muli %20, %c-1640531535_i32 : i32
    %22 = vector.broadcast %21 : i32 to vector<64x1024xi32>
    %23 = arith.xori %19, %22 : vector<64x1024xi32>
    %c16_i32 = arith.constant 16 : i32
    %24 = vector.broadcast %c16_i32 : i32 to vector<64x1024xi32>
    %25 = arith.shrui %23, %24 : vector<64x1024xi32>
    %26 = arith.xori %23, %25 : vector<64x1024xi32>
    %c-2048144789_i32 = arith.constant -2048144789 : i32
    %27 = vector.broadcast %c-2048144789_i32 : i32 to vector<64x1024xi32>
    %28 = arith.muli %26, %27 : vector<64x1024xi32>
    %c13_i32 = arith.constant 13 : i32
    %29 = vector.broadcast %c13_i32 : i32 to vector<64x1024xi32>
    %30 = arith.shrui %28, %29 : vector<64x1024xi32>
    %31 = arith.xori %28, %30 : vector<64x1024xi32>
    %c-1028477387_i32 = arith.constant -1028477387 : i32
    %32 = vector.broadcast %c-1028477387_i32 : i32 to vector<64x1024xi32>
    %33 = arith.muli %31, %32 : vector<64x1024xi32>
    %c16_i32_8 = arith.constant 16 : i32
    %34 = vector.broadcast %c16_i32_8 : i32 to vector<64x1024xi32>
    %35 = arith.shrui %33, %34 : vector<64x1024xi32>
    %36 = arith.xori %33, %35 : vector<64x1024xi32>
    %c8388607_i32 = arith.constant 8388607 : i32
    %37 = vector.broadcast %c8388607_i32 : i32 to vector<64x1024xi32>
    %38 = arith.andi %36, %37 : vector<64x1024xi32>
    %c2516582_i32 = arith.constant 2516582 : i32
    %39 = vector.broadcast %c2516582_i32 : i32 to vector<64x1024xi32>
    %40 = arith.cmpi sge, %38, %39 : vector<64x1024xi32>
    %cst_9 = arith.constant 0.000000e+00 : f32
    %41 = vector.broadcast %cst_9 : f32 to vector<64x1024xf32>
    %42 = arith.select %40, %14, %41 : vector<64x1024xi1>, vector<64x1024xf32>
    %43 = arith.truncf %42 : vector<64x1024xf32> to vector<64x1024xbf16>
    %c0_10 = arith.constant 0 : index
    %c0_11 = arith.constant 0 : index
    %44 = vector.load %arg5[%c0_10, %c0_11] : memref<1024x512xbf16, #tpu.memory_space<vmem>>, vector<1024x512xbf16>
    %cst_12 = arith.constant dense<0.000000e+00> : vector<64x512xf32>
    %45 = tpu.matmul %43, %44, %cst_12 {dimension_numbers = #tpu.dot_dimension_numbers<[1], [0], [0], [1], [0, 0, 1, 1], [], []>} : vector<64x1024xbf16>, vector<1024x512xbf16>, vector<64x512xf32> -> vector<64x512xf32>
    %c0_13 = arith.constant 0 : index
    %c0_14 = arith.constant 0 : index
    %46 = vector.load %arg6[%c0_13, %c0_14] : memref<1x512xf32, #tpu.memory_space<vmem>>, vector<1x512xf32>
    %47 = vector.broadcast %46 : vector<1x512xf32> to vector<64x512xf32>
    %48 = arith.addf %45, %47 : vector<64x512xf32>
    %cst_15 = arith.constant 0.000000e+00 : f32
    %49 = vector.broadcast %cst_15 : f32 to vector<64x512xf32>
    %50 = arith.cmpf oge, %48, %49 : vector<64x512xf32>
    %cst_16 = arith.constant 2.000000e-01 : f32
    %51 = vector.broadcast %cst_16 : f32 to vector<64x512xf32>
    %52 = arith.mulf %51, %48 : vector<64x512xf32>
    %53 = arith.select %50, %48, %52 : vector<64x512xi1>, vector<64x512xf32>
    %54 = tpu.iota {dimensions = array<i32: 0>} : vector<64x512xi32>
    %55 = tpu.iota {dimensions = array<i32: 1>} : vector<64x512xi32>
    %c512_i32 = arith.constant 512 : i32
    %56 = vector.broadcast %c512_i32 : i32 to vector<64x512xi32>
    %57 = arith.muli %54, %56 : vector<64x512xi32>
    %58 = arith.addi %57, %55 : vector<64x512xi32>
    %c2_i32 = arith.constant 2 : i32
    %59 = arith.addi %2, %c2_i32 : i32
    %c-1640531535_i32_17 = arith.constant -1640531535 : i32
    %60 = arith.muli %59, %c-1640531535_i32_17 : i32
    %61 = vector.broadcast %60 : i32 to vector<64x512xi32>
    %62 = arith.xori %58, %61 : vector<64x512xi32>
    %c16_i32_18 = arith.constant 16 : i32
    %63 = vector.broadcast %c16_i32_18 : i32 to vector<64x512xi32>
    %64 = arith.shrui %62, %63 : vector<64x512xi32>
    %65 = arith.xori %62, %64 : vector<64x512xi32>
    %c-2048144789_i32_19 = arith.constant -2048144789 : i32
    %66 = vector.broadcast %c-2048144789_i32_19 : i32 to vector<64x512xi32>
    %67 = arith.muli %65, %66 : vector<64x512xi32>
    %c13_i32_20 = arith.constant 13 : i32
    %68 = vector.broadcast %c13_i32_20 : i32 to vector<64x512xi32>
    %69 = arith.shrui %67, %68 : vector<64x512xi32>
    %70 = arith.xori %67, %69 : vector<64x512xi32>
    %c-1028477387_i32_21 = arith.constant -1028477387 : i32
    %71 = vector.broadcast %c-1028477387_i32_21 : i32 to vector<64x512xi32>
    %72 = arith.muli %70, %71 : vector<64x512xi32>
    %c16_i32_22 = arith.constant 16 : i32
    %73 = vector.broadcast %c16_i32_22 : i32 to vector<64x512xi32>
    %74 = arith.shrui %72, %73 : vector<64x512xi32>
    %75 = arith.xori %72, %74 : vector<64x512xi32>
    %c8388607_i32_23 = arith.constant 8388607 : i32
    %76 = vector.broadcast %c8388607_i32_23 : i32 to vector<64x512xi32>
    %77 = arith.andi %75, %76 : vector<64x512xi32>
    %c2516582_i32_24 = arith.constant 2516582 : i32
    %78 = vector.broadcast %c2516582_i32_24 : i32 to vector<64x512xi32>
    %79 = arith.cmpi sge, %77, %78 : vector<64x512xi32>
    %cst_25 = arith.constant 0.000000e+00 : f32
    %80 = vector.broadcast %cst_25 : f32 to vector<64x512xf32>
    %81 = arith.select %79, %53, %80 : vector<64x512xi1>, vector<64x512xf32>
    %82 = arith.truncf %81 : vector<64x512xf32> to vector<64x512xbf16>
    %c0_26 = arith.constant 0 : index
    %c0_27 = arith.constant 0 : index
    %83 = vector.load %arg7[%c0_26, %c0_27] : memref<512x256xbf16, #tpu.memory_space<vmem>>, vector<512x256xbf16>
    %cst_28 = arith.constant dense<0.000000e+00> : vector<64x256xf32>
    %84 = tpu.matmul %82, %83, %cst_28 {dimension_numbers = #tpu.dot_dimension_numbers<[1], [0], [0], [1], [0, 0, 1, 1], [], []>} : vector<64x512xbf16>, vector<512x256xbf16>, vector<64x256xf32> -> vector<64x256xf32>
    %c0_29 = arith.constant 0 : index
    %c0_30 = arith.constant 0 : index
    %85 = vector.load %arg8[%c0_29, %c0_30] : memref<1x256xf32, #tpu.memory_space<vmem>>, vector<1x256xf32>
    %86 = vector.broadcast %85 : vector<1x256xf32> to vector<64x256xf32>
    %87 = arith.addf %84, %86 : vector<64x256xf32>
    %cst_31 = arith.constant 0.000000e+00 : f32
    %88 = vector.broadcast %cst_31 : f32 to vector<64x256xf32>
    %89 = arith.cmpf oge, %87, %88 : vector<64x256xf32>
    %cst_32 = arith.constant 2.000000e-01 : f32
    %90 = vector.broadcast %cst_32 : f32 to vector<64x256xf32>
    %91 = arith.mulf %90, %87 : vector<64x256xf32>
    %92 = arith.select %89, %87, %91 : vector<64x256xi1>, vector<64x256xf32>
    %93 = tpu.iota {dimensions = array<i32: 0>} : vector<64x256xi32>
    %94 = tpu.iota {dimensions = array<i32: 1>} : vector<64x256xi32>
    %c256_i32 = arith.constant 256 : i32
    %95 = vector.broadcast %c256_i32 : i32 to vector<64x256xi32>
    %96 = arith.muli %93, %95 : vector<64x256xi32>
    %97 = arith.addi %96, %94 : vector<64x256xi32>
    %c3_i32 = arith.constant 3 : i32
    %98 = arith.addi %2, %c3_i32 : i32
    %c-1640531535_i32_33 = arith.constant -1640531535 : i32
    %99 = arith.muli %98, %c-1640531535_i32_33 : i32
    %100 = vector.broadcast %99 : i32 to vector<64x256xi32>
    %101 = arith.xori %97, %100 : vector<64x256xi32>
    %c16_i32_34 = arith.constant 16 : i32
    %102 = vector.broadcast %c16_i32_34 : i32 to vector<64x256xi32>
    %103 = arith.shrui %101, %102 : vector<64x256xi32>
    %104 = arith.xori %101, %103 : vector<64x256xi32>
    %c-2048144789_i32_35 = arith.constant -2048144789 : i32
    %105 = vector.broadcast %c-2048144789_i32_35 : i32 to vector<64x256xi32>
    %106 = arith.muli %104, %105 : vector<64x256xi32>
    %c13_i32_36 = arith.constant 13 : i32
    %107 = vector.broadcast %c13_i32_36 : i32 to vector<64x256xi32>
    %108 = arith.shrui %106, %107 : vector<64x256xi32>
    %109 = arith.xori %106, %108 : vector<64x256xi32>
    %c-1028477387_i32_37 = arith.constant -1028477387 : i32
    %110 = vector.broadcast %c-1028477387_i32_37 : i32 to vector<64x256xi32>
    %111 = arith.muli %109, %110 : vector<64x256xi32>
    %c16_i32_38 = arith.constant 16 : i32
    %112 = vector.broadcast %c16_i32_38 : i32 to vector<64x256xi32>
    %113 = arith.shrui %111, %112 : vector<64x256xi32>
    %114 = arith.xori %111, %113 : vector<64x256xi32>
    %c8388607_i32_39 = arith.constant 8388607 : i32
    %115 = vector.broadcast %c8388607_i32_39 : i32 to vector<64x256xi32>
    %116 = arith.andi %114, %115 : vector<64x256xi32>
    %c2516582_i32_40 = arith.constant 2516582 : i32
    %117 = vector.broadcast %c2516582_i32_40 : i32 to vector<64x256xi32>
    %118 = arith.cmpi sge, %116, %117 : vector<64x256xi32>
    %cst_41 = arith.constant 0.000000e+00 : f32
    %119 = vector.broadcast %cst_41 : f32 to vector<64x256xf32>
    %120 = arith.select %118, %92, %119 : vector<64x256xi1>, vector<64x256xf32>
    %121 = arith.truncf %120 : vector<64x256xf32> to vector<64x256xbf16>
    %c0_42 = arith.constant 0 : index
    %c0_43 = arith.constant 0 : index
    %122 = vector.load %arg9[%c0_42, %c0_43] : memref<256x128xbf16, #tpu.memory_space<vmem>>, vector<256x128xbf16>
    %cst_44 = arith.constant dense<0.000000e+00> : vector<64x128xf32>
    %123 = tpu.matmul %121, %122, %cst_44 {dimension_numbers = #tpu.dot_dimension_numbers<[1], [0], [0], [1], [0, 0, 1, 1], [], []>} : vector<64x256xbf16>, vector<256x128xbf16>, vector<64x128xf32> -> vector<64x128xf32>
    %c0_45 = arith.constant 0 : index
    %c0_46 = arith.constant 0 : index
    %124 = vector.load %arg10[%c0_45, %c0_46] : memref<1x128xf32, #tpu.memory_space<vmem>>, vector<1x128xf32>
    %125 = vector.broadcast %124 : vector<1x128xf32> to vector<64x128xf32>
    %126 = arith.addf %123, %125 : vector<64x128xf32>
    %127 = arith.negf %126 : vector<64x128xf32>
    %128 = math.exp %127 : vector<64x128xf32>
    %cst_47 = arith.constant 1.000000e+00 : f32
    %129 = vector.broadcast %cst_47 : f32 to vector<64x128xf32>
    %130 = arith.addf %129, %128 : vector<64x128xf32>
    %131 = arith.divf %129, %130 : vector<64x128xf32>
    %c0_48 = arith.constant 0 : index
    %c0_49 = arith.constant 0 : index
    %132 = vector.load %arg11[%c0_48, %c0_49] : memref<64x128xf32, #tpu.memory_space<vmem>>, vector<64x128xf32>
    tpu.vector_store %arg11[%c0_48, %c0_49], %131 {strides = array<i32>} : memref<64x128xf32, #tpu.memory_space<vmem>>, vector<64x128xf32>,
    return
  }
  func.func @transform_0(%arg0: i32, %arg1: memref<1xi32, #tpu.memory_space<smem>>) -> (i32, i32) {
    %c0_i32 = arith.constant 0 : i32
    %c0_i32_0 = arith.constant 0 : i32
    return %arg0, %c0_i32 : i32, i32
  }
  func.func @transform_1(%arg0: i32, %arg1: memref<1xi32, #tpu.memory_space<smem>>) -> (i32, i32) {
    %c0_i32 = arith.constant 0 : i32
    %c0_i32_0 = arith.constant 0 : i32
    %c0_i32_1 = arith.constant 0 : i32
    return %c0_i32, %c0_i32_0 : i32, i32
  }
  func.func @transform_2(%arg0: i32, %arg1: memref<1xi32, #tpu.memory_space<smem>>) -> (i32, i32) {
    %c0_i32 = arith.constant 0 : i32
    %c0_i32_0 = arith.constant 0 : i32
    %c0_i32_1 = arith.constant 0 : i32
    return %c0_i32, %c0_i32_0 : i32, i32
  }
  func.func @transform_3(%arg0: i32, %arg1: memref<1xi32, #tpu.memory_space<smem>>) -> (i32, i32) {
    %c0_i32 = arith.constant 0 : i32
    %c0_i32_0 = arith.constant 0 : i32
    %c0_i32_1 = arith.constant 0 : i32
    return %c0_i32, %c0_i32_0 : i32, i32
  }
  func.func @transform_4(%arg0: i32, %arg1: memref<1xi32, #tpu.memory_space<smem>>) -> (i32, i32) {
    %c0_i32 = arith.constant 0 : i32
    %c0_i32_0 = arith.constant 0 : i32
    %c0_i32_1 = arith.constant 0 : i32
    return %c0_i32, %c0_i32_0 : i32, i32
  }
  func.func @transform_5(%arg0: i32, %arg1: memref<1xi32, #tpu.memory_space<smem>>) -> (i32, i32) {
    %c0_i32 = arith.constant 0 : i32
    %c0_i32_0 = arith.constant 0 : i32
    %c0_i32_1 = arith.constant 0 : i32
    return %c0_i32, %c0_i32_0 : i32, i32
  }
  func.func @transform_6(%arg0: i32, %arg1: memref<1xi32, #tpu.memory_space<smem>>) -> (i32, i32) {
    %c0_i32 = arith.constant 0 : i32
    %c0_i32_0 = arith.constant 0 : i32
    %c0_i32_1 = arith.constant 0 : i32
    return %c0_i32, %c0_i32_0 : i32, i32
  }
  func.func @transform_7(%arg0: i32, %arg1: memref<1xi32, #tpu.memory_space<smem>>) -> (i32, i32) {
    %c0_i32 = arith.constant 0 : i32
    %c0_i32_0 = arith.constant 0 : i32
    %c0_i32_1 = arith.constant 0 : i32
    return %c0_i32, %c0_i32_0 : i32, i32
  }
  func.func @transform_8(%arg0: i32, %arg1: memref<1xi32, #tpu.memory_space<smem>>) -> (i32, i32) {
    %c0_i32 = arith.constant 0 : i32
    %c0_i32_0 = arith.constant 0 : i32
    %c0_i32_1 = arith.constant 0 : i32
    return %c0_i32, %c0_i32_0 : i32, i32
  }
  func.func @transform_9(%arg0: i32, %arg1: memref<1xi32, #tpu.memory_space<smem>>) -> (i32, i32) {
    %c0_i32 = arith.constant 0 : i32
    %c0_i32_0 = arith.constant 0 : i32
    return %arg0, %c0_i32 : i32, i32
  }
}

</mosaic_0001>

<bundles_post_ra>
// kernel: discriminator_forward.1
= control target key start
LH: loop header
LB: loop body
LE: loop exit
PB: predicated region body
PF: predicated region fallthrough
CT: control target
= control target key end

     0   :  { %16 = vsyncpa [#allocation5], 0  ;;  %s13946_s0 = inlined_call_operand.<no memory space> [shape: s32[1], index: 0, kind: input, shape index: {}]   ;;  %s13947_s1 = inlined_call_operand.hbm [shape: f32[64,784], index: 1, kind: input, shape index: {}]   ;;  %s13948_s2 = inlined_call_operand.hbm [shape: bf16[784,1024], index: 2, kind: input, shape index: {}]   ;;  %s13949_s3 = inlined_call_operand.hbm [shape: f32[1,1024], index: 3, kind: input, shape index: {}]   ;;  %s13950_s4 = inlined_call_operand.hbm [shape: bf16[1024,512], index: 4, kind: input, shape index: {}]   ;;  %s13951_s5 = inlined_call_operand.hbm [shape: f32[1,512], index: 5, kind: input, shape index: {}]   ;;  %s13952_s6 = inlined_call_operand.hbm [shape: bf16[512,256], index: 6, kind: input, shape index: {}]   ;;  %s13953_s7 = inlined_call_operand.hbm [shape: f32[1,256], index: 7, kind: input, shape index: {}]   ;;  %s13954_s8 = inlined_call_operand.hbm [shape: bf16[256,128], index: 8, kind: input, shape index: {}]   ;;  %s13955_s9 = inlined_call_operand.hbm [shape: f32[1,128], index: 9, kind: input, shape index: {}]   ;;  %s13956_s10 = inlined_call_operand.vmem [shape: f32[64,128], index: 10, kind: output, shape index: {}]  }
   0x1   :  { %17 = vsyncpa [#allocation7], 0 }
   0x2   :  { %18 = vsyncpa [#allocation10], 0 }
   0x3   :  { %19 = vsyncpa [#allocation13], 0 }
   0x4   :  { %20 = vsyncpa [#allocation16], 0  ;;  %s10909_s13 = smov [#allocation6]   ;;  %s10701_s17 = scalar_lea.hbm %s13948_s2, 50176 }
   0x5   :  { %s38_s14 = sshll.u32 %s10909_s13, 4  ;;  %p10702_p0 = scmp.ne.s32.totalorder %s13948_s2, %s10701_s17  ;;  %s39_s14 = int_to_ptr.vmem [resolvable:$true] %s38_s14 }
   0x6   :  { %p10705_p1 = scmp.lt.u32.totalorder %s10701_s17, %s13948_s2 }
   0x8   :  { %p10707_p2 = pnand %p10705_p1, %p10702_p0 }
   0xa   :  { %10710 = shalt.err (!%p10707_p2)
}
   0xb   :  { %s10711_s22 = scalar_lea.vmem %s39_s14, 50176  ;;  %p10716_p4 = scmp.lt.s32.totalorder %s39_s14, %s39_s14 }
   0xc   :  { %p10712_p3 = scmp.ne.s32.totalorder %s39_s14, %s10711_s22  ;;  %p10717_p5 = scmp.lt.s32.totalorder %s10711_s22, %s10711_s22 }
   0xe   :  { %p10718_p6 = por %p10717_p5, %p10716_p4 }
  0x10   :  { %p10719_p7 = pnand %p10718_p6, %p10712_p3 }
  0x12   :  { %10722 = shalt.err (!%p10719_p7)
}
  0x13   :  { %s10910_s23 = smov 512   ;;  %s10911_s24 = smov 32  }
  0x14   :  { %44 = dma.hbm_to_vmem [thread:$0]  %s13948_s2, 50176, %s39_s14, [#allocation7], %s10910_s23, %s10910_s23, %s10911_s24  }
  0x15   :  { %s10912_s27 = smov [#allocation9]   ;;  %s10723_s11 = scalar_lea.hbm %s13950_s4, 32768 }
  0x16   :  { %s60_s28 = sshll.u32 %s10912_s27, 4  ;;  %p10724_p8 = scmp.ne.s32.totalorder %s13950_s4, %s10723_s11  ;;  %s61_s28 = int_to_ptr.vmem [resolvable:$true] %s60_s28 }
  0x17   :  { %p10727_p9 = scmp.lt.u32.totalorder %s10723_s11, %s13950_s4 }
  0x19   :  { %p10729_p10 = pnand %p10727_p9, %p10724_p8 }
  0x1b   :  { %10732 = shalt.err (!%p10729_p10)
}
  0x1c   :  { %s10733_s17 = scalar_lea.vmem %s61_s28, 32768  ;;  %p10738_p12 = scmp.lt.s32.totalorder %s61_s28, %s61_s28 }
  0x1d   :  { %p10734_p11 = scmp.ne.s32.totalorder %s61_s28, %s10733_s17  ;;  %p10739_p13 = scmp.lt.s32.totalorder %s10733_s17, %s10733_s17 }
  0x1f   :  { %p10740_p0 = por %p10739_p13, %p10738_p12 }
  0x21   :  { %p10741_p1 = pnand %p10740_p0, %p10734_p11 }
  0x23   :  { %10744 = shalt.err (!%p10741_p1)
}
  0x24   :  { %s10913_s2 = smov 256   ;;  %s10914_s14 = smov 16  }
  0x25   :  { %66 = dma.hbm_to_vmem [thread:$0]  %s13950_s4, 32768, %s61_s28, [#allocation10], %s10913_s2, %s10913_s2, %s10914_s14  }
  0x26   :  { %s10915_s20 = smov [#allocation12]   ;;  %s10745_s24 = scalar_lea.hbm %s13952_s6, 8192 }
  0x27   :  { %s82_s21 = sshll.u32 %s10915_s20, 4  ;;  %p10746_p2 = scmp.ne.s32.totalorder %s13952_s6, %s10745_s24  ;;  %s83_s21 = int_to_ptr.vmem [resolvable:$true] %s82_s21 }
  0x28   :  { %p10749_p3 = scmp.lt.u32.totalorder %s10745_s24, %s13952_s6 }
  0x2a   :  { %p10751_p4 = pnand %p10749_p3, %p10746_p2 }
  0x2c   :  { %10754 = shalt.err (!%p10751_p4)
}
  0x2d   :  { %s10755_s30 = scalar_lea.vmem %s83_s21, 8192  ;;  %p10760_p6 = scmp.lt.s32.totalorder %s83_s21, %s83_s21 }
  0x2e   :  { %p10756_p5 = scmp.ne.s32.totalorder %s83_s21, %s10755_s30  ;;  %p10761_p7 = scmp.lt.s32.totalorder %s10755_s30, %s10755_s30 }
  0x30   :  { %p10762_p8 = por %p10761_p7, %p10760_p6 }
  0x32   :  { %p10763_p9 = pnand %p10762_p8, %p10756_p5 }
  0x34   :  { %10766 = shalt.err (!%p10763_p9)
}
  0x35   :  { %s10916_s4 = smov 128   ;;  %s10917_s28 = smov 8  }
  0x36   :  { %88 = dma.hbm_to_vmem [thread:$0]  %s13952_s6, 8192, %s83_s21, [#allocation13], %s10916_s4, %s10916_s4, %s10917_s28  }
  0x37   :  { %s10918_s13 = smov [#allocation15]   ;;  %s10767_s2 = scalar_lea.hbm %s13954_s8, 2048 }
  0x38   :  { %s104_s15 = sshll.u32 %s10918_s13, 4  ;;  %p10768_p10 = scmp.ne.s32.totalorder %s13954_s8, %s10767_s2  ;;  %s105_s15 = int_to_ptr.vmem [resolvable:$true] %s104_s15 }
  0x39   :  { %p10771_p11 = scmp.lt.u32.totalorder %s10767_s2, %s13954_s8 }
  0x3b   :  { %p10773_p12 = pnand %p10771_p11, %p10768_p10 }
  0x3d   :  { %10776 = shalt.err (!%p10773_p12)
}
  0x3e   :  { %s10777_s22 = scalar_lea.vmem %s105_s15, 2048  ;;  %p10782_p0 = scmp.lt.s32.totalorder %s105_s15, %s105_s15 }
  0x3f   :  { %p10778_p13 = scmp.ne.s32.totalorder %s105_s15, %s10777_s22  ;;  %p10783_p1 = scmp.lt.s32.totalorder %s10777_s22, %s10777_s22 }
  0x41   :  { %p10784_p2 = por %p10783_p1, %p10782_p0 }
  0x43   :  { %p10785_p3 = pnand %p10784_p2, %p10778_p13 }
  0x45   :  { %10788 = shalt.err (!%p10785_p3)
}
  0x46   :  { %s10919_s6 = smov 64   ;;  %s10920_s21 = smov 4  }
  0x47   :  { %110 = dma.hbm_to_vmem [thread:$0]  %s13954_s8, 2048, %s105_s15, [#allocation16], %s10919_s6, %s10919_s6, %s10920_s21  }
  0x48   :  { %s10921_s25 = smov [#allocation4]   ;;  %s10789_s30 = scalar_lea.hbm %s13947_s1, 7168 }
  0x49   :  { %s26_s26 = sshll.u32 %s10921_s25, 4  ;;  %p10790_p4 = scmp.ne.s32.totalorder %s13947_s1, %s10789_s30  ;;  %s27_s26 = int_to_ptr.vmem [resolvable:$true] %s26_s26 }
  0x4a   :  { %p10793_p5 = scmp.lt.u32.totalorder %s10789_s30, %s13947_s1 }
  0x4c   :  { %p10795_p6 = pnand %p10793_p5, %p10790_p4 }
  0x4e   :  { %10798 = shalt.err (!%p10795_p6)
}
  0x4f   :  { %s10799_s13 = scalar_lea.vmem %s27_s26, 7168  ;;  %p10804_p8 = scmp.lt.s32.totalorder %s27_s26, %s27_s26 }
  0x50   :  { %p10800_p7 = scmp.ne.s32.totalorder %s27_s26, %s10799_s13  ;;  %p10805_p9 = scmp.lt.s32.totalorder %s10799_s13, %s10799_s13 }
  0x52   :  { %p10806_p10 = por %p10805_p9, %p10804_p8 }
  0x54   :  { %p10807_p11 = pnand %p10806_p10, %p10800_p7 }
  0x56   :  { %10810 = shalt.err (!%p10807_p11)
}
  0x57   :  { %s10922_s8 = smov 896   ;;  %s10923_s15 = smov 56  }
  0x58   :  { %32 = dma.hbm_to_vmem [thread:$0]  %s13947_s1, 7168, %s27_s26, [#allocation5], %s10922_s8, %s10922_s8, %s10923_s15  }
  0x59   :  { %s10924_s2 = smov [#allocation8]   ;;  %s10925_s18 = smov [#allocation11]  }
  0x5a   :  { %s51_s14 = sshll.u32 %s10924_s2, 4  ;;  %s73_s19 = sshll.u32 %s10925_s18, 4  ;;  %s52_s14 = int_to_ptr.vmem [resolvable:$true] %s51_s14  ;;  %s74_s19 = int_to_ptr.vmem [resolvable:$true] %s73_s19 }
  0x5b   :  { %s10811_s6 = scalar_lea.hbm %s13949_s3, 128 }
  0x5c   :  { %p10812_p12 = scmp.ne.s32.totalorder %s13949_s3, %s10811_s6  ;;  %p10815_p13 = scmp.lt.u32.totalorder %s10811_s6, %s13949_s3 }
  0x5e   :  { %p10817_p0 = pnand %p10815_p13, %p10812_p12 }
  0x60   :  { %10820 = shalt.err (!%p10817_p0)
}
  0x61   :  { %s10821_s1 = scalar_lea.vmem %s52_s14, 128  ;;  %p10826_p2 = scmp.lt.s32.totalorder %s52_s14, %s52_s14 }
  0x62   :  { %p10822_p1 = scmp.ne.s32.totalorder %s52_s14, %s10821_s1  ;;  %p10827_p3 = scmp.lt.s32.totalorder %s10821_s1, %s10821_s1 }
  0x64   :  { %p10828_p4 = por %p10827_p3, %p10826_p2 }
  0x66   :  { %p10829_p5 = pnand %p10828_p4, %p10822_p1 }
  0x68   :  { %10832 = shalt.err (!%p10829_p5)
}
  0x69   :  { %54 = dma.hbm_to_vmem [thread:$0]  %s13949_s3, 128, %s52_s14, [#allocation7]  }
  0x6a   :  { %s10833_s4 = scalar_lea.hbm %s13951_s5, 64 }
  0x6b   :  { %p10834_p6 = scmp.ne.s32.totalorder %s13951_s5, %s10833_s4  ;;  %p10837_p7 = scmp.lt.u32.totalorder %s10833_s4, %s13951_s5 }
  0x6d   :  { %p10839_p8 = pnand %p10837_p7, %p10834_p6 }
  0x6f   :  { %10842 = shalt.err (!%p10839_p8)
}
  0x70   :  { %s10843_s8 = scalar_lea.vmem %s74_s19, 64  ;;  %p10848_p10 = scmp.lt.s32.totalorder %s74_s19, %s74_s19 }
  0x71   :  { %p10844_p9 = scmp.ne.s32.totalorder %s74_s19, %s10843_s8  ;;  %p10849_p11 = scmp.lt.s32.totalorder %s10843_s8, %s10843_s8 }
  0x73   :  { %p10850_p12 = por %p10849_p11, %p10848_p10 }
  0x75   :  { %p10851_p13 = pnand %p10850_p12, %p10844_p9 }
  0x77   :  { %10854 = shalt.err (!%p10851_p13)
}
  0x78   :  { %76 = dma.hbm_to_vmem [thread:$0]  %s13951_s5, 64, %s74_s19, [#allocation10]  }
  0x79   :  { %s10926_s16 = smov [#allocation14]   ;;  %s10927_s2 = smov [#allocation17]  }
  0x7a   :  { %s95_s17 = sshll.u32 %s10926_s16, 4  ;;  %s117_s14 = sshll.u32 %s10927_s2, 4  ;;  %s96_s17 = int_to_ptr.vmem [resolvable:$true] %s95_s17  ;;  %s118_s14 = int_to_ptr.vmem [resolvable:$true] %s117_s14 }
  0x7b   :  { %s10855_s22 = scalar_lea.hbm %s13953_s7, 32 }
  0x7c   :  { %p10856_p0 = scmp.ne.s32.totalorder %s13953_s7, %s10855_s22  ;;  %p10859_p1 = scmp.lt.u32.totalorder %s10855_s22, %s13953_s7 }
  0x7e   :  { %p10861_p2 = pnand %p10859_p1, %p10856_p0 }
  0x80   :  { %10864 = shalt.err (!%p10861_p2)
}
  0x81   :  { %s10865_s5 = scalar_lea.vmem %s96_s17, 32  ;;  %p10870_p4 = scmp.lt.s32.totalorder %s96_s17, %s96_s17 }
  0x82   :  { %p10866_p3 = scmp.ne.s32.totalorder %s96_s17, %s10865_s5  ;;  %p10871_p5 = scmp.lt.s32.totalorder %s10865_s5, %s10865_s5 }
  0x84   :  { %p10872_p6 = por %p10871_p5, %p10870_p4 }
  0x86   :  { %p10873_p7 = pnand %p10872_p6, %p10866_p3 }
  0x88   :  { %10876 = shalt.err (!%p10873_p7)
}
  0x89   :  { %98 = dma.hbm_to_vmem [thread:$0]  %s13953_s7, 32, %s96_s17, [#allocation13]  }
  0x8a   :  { %s10877_s27 = scalar_lea.hbm %s13955_s9, 16 }
  0x8b   :  { %p10878_p8 = scmp.ne.s32.totalorder %s13955_s9, %s10877_s27  ;;  %p10881_p9 = scmp.lt.u32.totalorder %s10877_s27, %s13955_s9 }
  0x8d   :  { %p10883_p10 = pnand %p10881_p9, %p10878_p8 }
  0x8f   :  { %10886 = shalt.err (!%p10883_p10)
}
  0x90   :  { %s10887_s11 = scalar_lea.vmem %s118_s14, 16  ;;  %s10891_s12 = scalar_lea.vmem %s118_s14, 32 }
  0x91   :  { %p10888_p11 = scmp.ne.s32.totalorder %s118_s14, %s10887_s11  ;;  %p10892_p12 = scmp.lt.s32.totalorder %s118_s14, %s118_s14 }
  0x92   :  { %p10893_p13 = scmp.lt.s32.totalorder %s10891_s12, %s10887_s11 }
  0x94   :  { %p10894_p0 = por %p10893_p13, %p10892_p12 }
  0x96   :  { %p10895_p1 = pnand %p10894_p0, %p10888_p11 }
  0x98   :  { %10898 = shalt.err (!%p10895_p1)
}
  0x99   :  { %120 = dma.hbm_to_vmem [thread:$0]  %s13955_s9, 16, %s118_s14, [#allocation16]  }
  0x9a   :  { %10899 = dma.done.wait [#allocation5], 7168  }
  0x9b   :  { %10900 = vsyncadd [#allocation5], 4294960128 }
  0x9c   :  { %10901 = dma.done.wait [#allocation7], 50304  }
  0x9d   :  { %10902 = vsyncadd [#allocation7], 4294916992 }
  0x9e   :  { %10903 = dma.done.wait [#allocation10], 32832  }
  0x9f   :  { %10904 = vsyncadd [#allocation10], 4294934464 }
  0xa0   :  { %10905 = dma.done.wait [#allocation13], 8224  }
  0xa1   :  { %10906 = vsyncadd [#allocation13], 4294959072 }
  0xa2   :  { %10907 = dma.done.wait [#allocation16], 2064  }
  0xa3   :  { %10908 = vsyncadd [#allocation16], 4294965232  ;;  %v236_v0 = vld [vmem:[#allocation6] sm:$0xff]  ;;  %v153_v53 = vld [vmem:[#allocation4 + $0x8] sm:$0xff]  ;;  %vm14000_vm0 = vcmask 130048   ;;  %s4093_s3 = sadd.s32 1, %s13946_s0 }
  0xa4   :  { %v240_v1 = vld [vmem:[#allocation6 + $0x20] sm:$0xff]  ;;  %v155_v59 = vld [vmem:[#allocation4 + $0x18] sm:$0xff]  ;;  %v162_v62 = vld [vmem:[#allocation4 + $0x50] sm:$0xff]  ;;  %s4094_s15 = smul.u32 2654435761, %s4093_s3  ;;  %s7174_s2 = sadd.s32 2, %s13946_s0 }
  0xa5   :  { %v364_v2 = vld [vmem:[#allocation6 + $0x400] sm:$0xff]  ;;  %v8660_v3 = vcombine.high %v236_v0, %v240_v1  ;;  %v8659_v5 = vcombine.low %v236_v0, %v240_v1  ;;  %v11095_v0 = vpack.c.bf16 %v162_v62, %v155_v59  ;;  %s7175_s14 = smul.u32 2654435761, %s7174_s2  ;;  %s8191_s22 = sadd.s32 3, %s13946_s0 }
  0xa6   :  { %v368_v4 = vld [vmem:[#allocation6 + $0x420] sm:$0xff]  ;;  %s8192_s6 = smul.u32 2654435761, %s8191_s22 }
  0xa7   :  { %v244_v6 = vld [vmem:[#allocation6 + $0x40] sm:$0xff]  ;;  %v8788_v8 = vcombine.high %v364_v2, %v368_v4  ;;  %v8787_v9 = vcombine.low %v364_v2, %v368_v4  ;;  %2643 = vmatprep.subr.bf16.mxu1 %v8660_v3  ;;  %2748 = vmatprep.mubr.bf16.mxu0 %v11095_v0 }
  0xa8   :  { %v248_v7 = vld [vmem:[#allocation6 + $0x60] sm:$0xff]  ;;  %2644 = vmatpush1.bf16.msra.mxu1 %v8659_v5 }
  0xa9   :  { %v8668_v10 = vcombine.high %v244_v6, %v248_v7  ;;  %v372_v11 = vld [vmem:[#allocation6 + $0x440] sm:$0xff]  ;;  %2716 = vmatprep.subr.bf16.mxu0 %v8788_v8  ;;  %v8667_v18 = vcombine.low %v244_v6, %v248_v7 }
  0xaa   :  { %v376_v12 = vld [vmem:[#allocation6 + $0x460] sm:$0xff]  ;;  %2717 = vmatpush1.bf16.msra.mxu0 %v8787_v9 }
  0xab   :  { %v252_v13 = vld [vmem:[#allocation6 + $0x80] sm:$0xff]  ;;  %v8796_v14 = vcombine.high %v372_v11, %v376_v12  ;;  %2645 = vmatprep.subr.bf16.mxu1 %v8668_v10  ;;  %v8795_v19 = vcombine.low %v372_v11, %v376_v12 }
  0xac   :  { %v256_v15 = vld [vmem:[#allocation6 + $0xa0] sm:$0xff]  ;;  %2646 = vmatpush1.bf16.msra.mxu1 %v8667_v18 }
  0xad   :  { %v380_v16 = vld [vmem:[#allocation6 + $0x480] sm:$0xff]  ;;  %v8676_v20 = vcombine.high %v252_v13, %v256_v15  ;;  %2718 = vmatprep.subr.bf16.mxu0 %v8796_v14  ;;  %v8675_v26 = vcombine.low %v252_v13, %v256_v15 }
  0xae   :  { %v384_v17 = vld [vmem:[#allocation6 + $0x4a0] sm:$0xff]  ;;  %2719 = vmatpush1.bf16.msra.mxu0 %v8795_v19 }
  0xaf   :  { %v8804_v21 = vcombine.high %v380_v16, %v384_v17  ;;  %v260_v22 = vld [vmem:[#allocation6 + $0xc0] sm:$0xff]  ;;  %2647 = vmatprep.subr.bf16.mxu1 %v8676_v20  ;;  %v8803_v27 = vcombine.low %v380_v16, %v384_v17 }
  0xb0   :  { %v264_v23 = vld [vmem:[#allocation6 + $0xe0] sm:$0xff]  ;;  %2648 = vmatpush1.bf16.msra.mxu1 %v8675_v26 }
  0xb1   :  { %v388_v24 = vld [vmem:[#allocation6 + $0x4c0] sm:$0xff]  ;;  %v8684_v28 = vcombine.high %v260_v22, %v264_v23  ;;  %2720 = vmatprep.subr.bf16.mxu0 %v8804_v21  ;;  %v8683_v34 = vcombine.low %v260_v22, %v264_v23 }
  0xb2   :  { %v392_v25 = vld [vmem:[#allocation6 + $0x4e0] sm:$0xff]  ;;  %2721 = vmatpush1.bf16.msra.mxu0 %v8803_v27 }
  0xb3   :  { %v8812_v29 = vcombine.high %v388_v24, %v392_v25  ;;  %v268_v30 = vld [vmem:[#allocation6 + $0x100] sm:$0xff]  ;;  %2649 = vmatprep.subr.bf16.mxu1 %v8684_v28  ;;  %v8811_v35 = vcombine.low %v388_v24, %v392_v25 }
  0xb4   :  { %v272_v31 = vld [vmem:[#allocation6 + $0x120] sm:$0xff]  ;;  %2650 = vmatpush1.bf16.msra.mxu1 %v8683_v34 }
  0xb5   :  { %v396_v32 = vld [vmem:[#allocation6 + $0x500] sm:$0xff]  ;;  %v8692_v36 = vcombine.high %v268_v30, %v272_v31  ;;  %2722 = vmatprep.subr.bf16.mxu0 %v8812_v29  ;;  %v8691_v42 = vcombine.low %v268_v30, %v272_v31 }
  0xb6   :  { %v400_v33 = vld [vmem:[#allocation6 + $0x520] sm:$0xff]  ;;  %2723 = vmatpush1.bf16.msra.mxu0 %v8811_v35 }
  0xb7   :  { %v8820_v37 = vcombine.high %v396_v32, %v400_v33  ;;  %v276_v38 = vld [vmem:[#allocation6 + $0x140] sm:$0xff]  ;;  %2651 = vmatprep.subr.bf16.mxu1 %v8692_v36  ;;  %v8819_v43 = vcombine.low %v396_v32, %v400_v33 }
  0xb8   :  { %v280_v39 = vld [vmem:[#allocation6 + $0x160] sm:$0xff]  ;;  %2652 = vmatpush1.bf16.msra.mxu1 %v8691_v42 }
  0xb9   :  { %v404_v40 = vld [vmem:[#allocation6 + $0x540] sm:$0xff]  ;;  %v8700_v44 = vcombine.high %v276_v38, %v280_v39  ;;  %2724 = vmatprep.subr.bf16.mxu0 %v8820_v37  ;;  %v8699_v50 = vcombine.low %v276_v38, %v280_v39 }
  0xba   :  { %v408_v41 = vld [vmem:[#allocation6 + $0x560] sm:$0xff]  ;;  %2725 = vmatpush1.bf16.msra.mxu0 %v8819_v43 }
  0xbb   :  { %v8828_v45 = vcombine.high %v404_v40, %v408_v41  ;;  %v284_v46 = vld [vmem:[#allocation6 + $0x180] sm:$0xff]  ;;  %2653 = vmatprep.subr.bf16.mxu1 %v8700_v44  ;;  %v8827_v51 = vcombine.low %v404_v40, %v408_v41 }
  0xbc   :  { %v288_v47 = vld [vmem:[#allocation6 + $0x1a0] sm:$0xff]  ;;  %2654 = vmatpush1.bf16.msra.mxu1 %v8699_v50 }
  0xbd   :  { %v412_v48 = vld [vmem:[#allocation6 + $0x580] sm:$0xff]  ;;  %v8708_v52 = vcombine.high %v284_v46, %v288_v47  ;;  %2726 = vmatprep.subr.bf16.mxu0 %v8828_v45  ;;  %v8707_v63 = vcombine.low %v284_v46, %v288_v47 }
  0xbe   :  { %v416_v49 = vld [vmem:[#allocation6 + $0x5a0] sm:$0xff]  ;;  %2727 = vmatpush1.bf16.msra.mxu0 %v8827_v51 }
  0xbf   :  { %v160_v54 = vld [vmem:[#allocation4 + $0x40] sm:$0xff]  ;;  %v8836_v55 = vcombine.high %v412_v48, %v416_v49  ;;  %2655 = vmatprep.subr.bf16.mxu1 %v8708_v52  ;;  %v8835_v1 = vcombine.low %v412_v48, %v416_v49 }
  0xc0   :  { %v292_v56 = vld [vmem:[#allocation6 + $0x1c0] sm:$0xff]  ;;  %v11092_v58 = vpack.c.bf16 %v160_v54, %v153_v53  ;;  %2656 = vmatpush1.bf16.msra.mxu1 %v8707_v63 }
  0xc1   :  { %v296_v57 = vld [vmem:[#allocation6 + $0x1e0] sm:$0xff]  ;;  %2728 = vmatprep.subr.bf16.mxu0 %v8836_v55 }
  0xc2   :  { %v420_v60 = vld [vmem:[#allocation6 + $0x5c0] sm:$0xff]  ;;  %2675 = vmatprep.mubr.bf16.mxu1 %v11092_v58  ;;  %v8716_v2 = vcombine.high %v292_v56, %v296_v57  ;;  %v8715_v8 = vcombine.low %v292_v56, %v296_v57  ;;  %2729 = vmatpush1.bf16.msra.mxu0 %v8835_v1 }
  0xc3   :  { %v424_v61 = vld [vmem:[#allocation6 + $0x5e0] sm:$0xff] }
  0xc4   :  { %v8844_v3 = vcombine.high %v420_v60, %v424_v61  ;;  %v300_v4 = vld [vmem:[#allocation6 + $0x200] sm:$0xff]  ;;  %2657 = vmatprep.subr.bf16.mxu1 %v8716_v2  ;;  %v8843_v9 = vcombine.low %v420_v60, %v424_v61 }
  0xc5   :  { %v304_v5 = vld [vmem:[#allocation6 + $0x220] sm:$0xff]  ;;  %2658 = vmatpush1.bf16.msra.mxu1 %v8715_v8 }
  0xc6   :  { %v428_v6 = vld [vmem:[#allocation6 + $0x600] sm:$0xff]  ;;  %v8724_v10 = vcombine.high %v300_v4, %v304_v5  ;;  %2730 = vmatprep.subr.bf16.mxu0 %v8844_v3  ;;  %v8723_v16 = vcombine.low %v300_v4, %v304_v5 }
  0xc7   :  { %v432_v7 = vld [vmem:[#allocation6 + $0x620] sm:$0xff]  ;;  %2731 = vmatpush1.bf16.msra.mxu0 %v8843_v9 }
  0xc8   :  { %v8852_v11 = vcombine.high %v428_v6, %v432_v7  ;;  %v308_v12 = vld [vmem:[#allocation6 + $0x240] sm:$0xff]  ;;  %2659 = vmatprep.subr.bf16.mxu1 %v8724_v10  ;;  %v8851_v17 = vcombine.low %v428_v6, %v432_v7  ;;  %v237_v6 = vld [vmem:[#allocation6 + $0x8] sm:$0xff] }
  0xc9   :  { %v312_v13 = vld [vmem:[#allocation6 + $0x260] sm:$0xff]  ;;  %2660 = vmatpush1.bf16.msra.mxu1 %v8723_v16  ;;  %v241_v7 = vld [vmem:[#allocation6 + $0x28] sm:$0xff] }
  0xca   :  { %v436_v14 = vld [vmem:[#allocation6 + $0x640] sm:$0xff]  ;;  %v8732_v18 = vcombine.high %v308_v12, %v312_v13  ;;  %2732 = vmatprep.subr.bf16.mxu0 %v8852_v11  ;;  %v8731_v24 = vcombine.low %v308_v12, %v312_v13  ;;  %v159_v12 = vld [vmem:[#allocation4 + $0x38] sm:$0xff]  ;;  %v161_v16 = vld [vmem:[#allocation4 + $0x48] sm:$0xff] }
  0xcb   :  { %v440_v15 = vld [vmem:[#allocation6 + $0x660] sm:$0xff]  ;;  %2733 = vmatpush1.bf16.msra.mxu0 %v8851_v17 }
  0xcc   :  { %v8860_v19 = vcombine.high %v436_v14, %v440_v15  ;;  %v316_v20 = vld [vmem:[#allocation6 + $0x280] sm:$0xff]  ;;  %2661 = vmatprep.subr.bf16.mxu1 %v8732_v18  ;;  %v8859_v25 = vcombine.low %v436_v14, %v440_v15  ;;  %v8662_v14 = vcombine.high %v237_v6, %v241_v7  ;;  %v154_v15 = vld [vmem:[#allocation4 + $0x10] sm:$0xff] }
  0xcd   :  { %v320_v21 = vld [vmem:[#allocation6 + $0x2a0] sm:$0xff]  ;;  %2662 = vmatpush1.bf16.msra.mxu1 %v8731_v24  ;;  %v174_v24 = vld [vmem:[#allocation4 + $0xb0] sm:$0xff] }
  0xce   :  { %v444_v22 = vld [vmem:[#allocation6 + $0x680] sm:$0xff]  ;;  %v8740_v26 = vcombine.high %v316_v20, %v320_v21  ;;  %2734 = vmatprep.subr.bf16.mxu0 %v8860_v19  ;;  %v8739_v32 = vcombine.low %v316_v20, %v320_v21  ;;  %v245_v19 = vld [vmem:[#allocation6 + $0x48] sm:$0xff] }
  0xcf   :  { %v448_v23 = vld [vmem:[#allocation6 + $0x6a0] sm:$0xff]  ;;  %2735 = vmatpush1.bf16.msra.mxu0 %v8859_v25  ;;  %v249_v20 = vld [vmem:[#allocation6 + $0x68] sm:$0xff]  ;;  %v8661_v25 = vcombine.low %v237_v6, %v241_v7  ;;  %v187_v6 = vld [vmem:[#allocation4 + $0x118] sm:$0xff] }
  0xd0   :  { %v8868_v27 = vcombine.high %v444_v22, %v448_v23  ;;  %v324_v28 = vld [vmem:[#allocation6 + $0x2c0] sm:$0xff]  ;;  %2663 = vmatprep.subr.bf16.mxu1 %v8740_v26  ;;  %v8867_v33 = vcombine.low %v444_v22, %v448_v23  ;;  %v167_v23 = vld [vmem:[#allocation4 + $0x78] sm:$0xff]  ;;  %v11100_v26 = vpack.c.bf16 %v161_v16, %v154_v15 }
  0xd1   :  { %v328_v29 = vld [vmem:[#allocation6 + $0x2e0] sm:$0xff]  ;;  %2664 = vmatpush1.bf16.msra.mxu1 %v8739_v32  ;;  %v253_v32 = vld [vmem:[#allocation6 + $0x88] sm:$0xff] }
  0xd2   :  { %v452_v30 = vld [vmem:[#allocation6 + $0x6c0] sm:$0xff]  ;;  %v8748_v34 = vcombine.high %v324_v28, %v328_v29  ;;  %2736 = vmatprep.subr.bf16.mxu0 %v8868_v27  ;;  %v8747_v40 = vcombine.low %v324_v28, %v328_v29  ;;  %v169_v27 = vld [vmem:[#allocation4 + $0x88] sm:$0xff] }
  0xd3   :  { %v456_v31 = vld [vmem:[#allocation6 + $0x6e0] sm:$0xff]  ;;  %2737 = vmatpush1.bf16.msra.mxu0 %v8867_v33  ;;  %v257_v33 = vld [vmem:[#allocation6 + $0xa8] sm:$0xff] }
  0xd4   :  { %v8876_v35 = vcombine.high %v452_v30, %v456_v31  ;;  %v332_v36 = vld [vmem:[#allocation6 + $0x300] sm:$0xff]  ;;  %2665 = vmatprep.subr.bf16.mxu1 %v8748_v34  ;;  %v8875_v41 = vcombine.low %v452_v30, %v456_v31  ;;  %v8670_v30 = vcombine.high %v245_v19, %v249_v20  ;;  %v11102_v34 = vpack.c.bf16 %v174_v24, %v167_v23 }
  0xd5   :  { %v336_v37 = vld [vmem:[#allocation6 + $0x320] sm:$0xff]  ;;  %2666 = vmatpush1.bf16.msra.mxu1 %v8747_v40  ;;  %v173_v40 = vld [vmem:[#allocation4 + $0xa8] sm:$0xff] }
  0xd6   :  { %v460_v38 = vld [vmem:[#allocation6 + $0x700] sm:$0xff]  ;;  %v8756_v42 = vcombine.high %v332_v36, %v336_v37  ;;  %2738 = vmatprep.subr.bf16.mxu0 %v8876_v35  ;;  %v8755_v48 = vcombine.low %v332_v36, %v336_v37 }
  0xd7   :  { %v464_v39 = vld [vmem:[#allocation6 + $0x720] sm:$0xff]  ;;  %2739 = vmatpush1.bf16.msra.mxu0 %v8875_v41 }
  0xd8   :  { %v8884_v43 = vcombine.high %v460_v38, %v464_v39  ;;  %v340_v44 = vld [vmem:[#allocation6 + $0x340] sm:$0xff]  ;;  %2667 = vmatprep.subr.bf16.mxu1 %v8756_v42  ;;  %v8883_v49 = vcombine.low %v460_v38, %v464_v39  ;;  %v8669_v38 = vcombine.low %v245_v19, %v249_v20  ;;  %v166_v39 = vld [vmem:[#allocation4 + $0x70] sm:$0xff]  ;;  %v8678_v42 = vcombine.high %v253_v32, %v257_v33 }
  0xd9   :  { %v344_v45 = vld [vmem:[#allocation6 + $0x360] sm:$0xff]  ;;  %2668 = vmatpush1.bf16.msra.mxu1 %v8755_v48  ;;  %v265_v48 = vld [vmem:[#allocation6 + $0xe8] sm:$0xff] }
  0xda   :  { %v468_v46 = vld [vmem:[#allocation6 + $0x740] sm:$0xff]  ;;  %v8764_v50 = vcombine.high %v340_v44, %v344_v45  ;;  %2740 = vmatprep.subr.bf16.mxu0 %v8884_v43  ;;  %v8763_v56 = vcombine.low %v340_v44, %v344_v45  ;;  %v175_v44 = vld [vmem:[#allocation4 + $0xb8] sm:$0xff] }
  0xdb   :  { %v472_v47 = vld [vmem:[#allocation6 + $0x760] sm:$0xff]  ;;  %2741 = vmatpush1.bf16.msra.mxu0 %v8883_v49 }
  0xdc   :  { %v8892_v51 = vcombine.high %v468_v46, %v472_v47  ;;  %v348_v52 = vld [vmem:[#allocation6 + $0x380] sm:$0xff]  ;;  %2669 = vmatprep.subr.bf16.mxu1 %v8764_v50  ;;  %v8891_v57 = vcombine.low %v468_v46, %v472_v47  ;;  %v261_v47 = vld [vmem:[#allocation6 + $0xc8] sm:$0xff]  ;;  %v11109_v50 = vpack.c.bf16 %v173_v40, %v166_v39  ;;  %v194_v39 = vld [vmem:[#allocation4 + $0x150] sm:$0xff] }
  0xdd   :  { %v352_v53 = vld [vmem:[#allocation6 + $0x3a0] sm:$0xff]  ;;  %2670 = vmatpush1.bf16.msra.mxu1 %v8763_v56  ;;  %v190_v56 = vld [vmem:[#allocation4 + $0x130] sm:$0xff]  ;;  %v201_v40 = vld [vmem:[#allocation4 + $0x188] sm:$0xff] }
  0xde   :  { %v476_v54 = vld [vmem:[#allocation6 + $0x780] sm:$0xff]  ;;  %v8772_v59 = vcombine.high %v348_v52, %v352_v53  ;;  %2742 = vmatprep.subr.bf16.mxu0 %v8892_v51  ;;  %v8771_v2 = vcombine.low %v348_v52, %v352_v53  ;;  %v181_v51 = vld [vmem:[#allocation4 + $0xe8] sm:$0xff]  ;;  %v8677_v53 = vcombine.low %v253_v32, %v257_v33 }
  0xdf   :  { %v480_v55 = vld [vmem:[#allocation6 + $0x7a0] sm:$0xff]  ;;  %2743 = vmatpush1.bf16.msra.mxu0 %v8891_v57 }
  0xe0   :  { %v8900_v60 = vcombine.high %v476_v54, %v480_v55  ;;  %v356_v61 = vld [vmem:[#allocation6 + $0x3c0] sm:$0xff]  ;;  %2671 = vmatprep.subr.bf16.mxu1 %v8772_v59  ;;  %v8899_v3 = vcombine.low %v476_v54, %v480_v55  ;;  %v183_v55 = vld [vmem:[#allocation4 + $0xf8] sm:$0xff]  ;;  %v8686_v59 = vcombine.high %v261_v47, %v265_v48 }
  0xe1   :  { %v360_v62 = vld [vmem:[#allocation6 + $0x3e0] sm:$0xff]  ;;  %2672 = vmatpush1.bf16.msra.mxu1 %v8771_v2 }
  0xe2   :  { %v484_v63 = vld [vmem:[#allocation6 + $0x7c0] sm:$0xff]  ;;  %v8780_v4 = vcombine.high %v356_v61, %v360_v62  ;;  %2744 = vmatprep.subr.bf16.mxu0 %v8900_v60  ;;  %v8779_v10 = vcombine.low %v356_v61, %v360_v62  ;;  %v269_v61 = vld [vmem:[#allocation6 + $0x108] sm:$0xff] }
  0xe3   :  { %v488_v1 = vld [vmem:[#allocation6 + $0x7e0] sm:$0xff]  ;;  %2745 = vmatpush1.bf16.msra.mxu0 %v8899_v3  ;;  %v273_v62 = vld [vmem:[#allocation6 + $0x128] sm:$0xff]  ;;  %v11117_v3 = vpack.c.bf16 %v190_v56, %v183_v55 }
  0xe4   :  { %v8908_v5 = vcombine.high %v484_v63, %v488_v1  ;;  %v492_v8 = vld [vmem:[#allocation6 + $0x800] sm:$0xff]  ;;  %2673 = vmatprep.subr.bf16.mxu1 %v8780_v4  ;;  %v8907_v13 = vcombine.low %v484_v63, %v488_v1  ;;  %v8685_v4 = vcombine.low %v261_v47, %v265_v48  ;;  %v8693_v19 = vcombine.low %v269_v61, %v273_v62  ;;  %v157_v48 = vld [vmem:[#allocation4 + $0x28] sm:$0xff] }
  0xe5   :  { %v496_v9 = vld [vmem:[#allocation6 + $0x820] sm:$0xff]  ;;  %2674 = vmatpush1.bf16.msra.mxu1 %v8779_v10  ;;  %14109 = vst [vmem:[#allocation24_spill] sm:$0xff] %v11117_v3  ;;  %v189_v10 = vld [vmem:[#allocation4 + $0x128] sm:$0xff] }
  0xe6   :  { %v152_v11 = vld [vmem:[#allocation4] sm:$0xff]  ;;  %2746 = vmatprep.subr.bf16.mxu0 %v8908_v5  ;;  %v8916_v17 = vcombine.high %v492_v8, %v496_v9  ;;  %v8915_v29 = vcombine.low %v492_v8, %v496_v9  ;;  %2935 = vmatprep.subr.bf16.mxu1 %v8662_v14  ;;  %v8694_v8 = vcombine.high %v269_v61, %v273_v62  ;;  %v182_v9 = vld [vmem:[#allocation4 + $0xf0] sm:$0xff]  ;;  %v281_v14 = vld [vmem:[#allocation6 + $0x168] sm:$0xff] }
  0xe7   :  { %v500_v18 = vld [vmem:[#allocation6 + $0x840] sm:$0xff]  ;;  %v11098_v21 = vpack.c.bf16 %v159_v12, %v152_v11  ;;  %2747 = vmatpush1.bf16.msra.mxu0 %v8907_v13  ;;  %v277_v13 = vld [vmem:[#allocation6 + $0x148] sm:$0xff]  ;;  %v11124_v20 = vpack.c.bf16 %v189_v10, %v182_v9 }
  0xe8   :  { %v504_v22 = vld [vmem:[#allocation6 + $0x860] sm:$0xff]  ;;  %2789 = vmatprep.subr.bf16.mxu0 %v8916_v17  ;;  %v195_v17 = vld [vmem:[#allocation4 + $0x158] sm:$0xff]  ;;  %v301_v61 = vld [vmem:[#allocation6 + $0x208] sm:$0xff] }
  0xe9   :  { %v176_v28 = vld [vmem:[#allocation4 + $0xc0] sm:$0xff]  ;;  %v8924_v31 = vcombine.high %v500_v18, %v504_v22  ;;  %2676 = vmatmul.mubr.bf16.vlgmr.msra.gmra.mrb[0].mxu1 %v11098_v21  ;;  %v8923_v41 = vcombine.low %v500_v18, %v504_v22  ;;  %v202_v18 = vld [vmem:[#allocation4 + $0x190] sm:$0xff]  ;;  %v197_v22 = vld [vmem:[#allocation4 + $0x168] sm:$0xff] }
  0xea   :  { %v508_v35 = vld [vmem:[#allocation6 + $0x880] sm:$0xff]  ;;  %v11105_v37 = vpack.c.bf16 %v176_v28, %v169_v27  ;;  %2749 = vmatmul.mubr.bf16.vlgmr.msra.gmra.mrb[0].mxu0 %v11100_v26  ;;  %2936 = vmatpush1.bf16.msra.mxu1 %v8661_v25  ;;  %v8702_v25 = vcombine.high %v277_v13, %v281_v14  ;;  %v285_v28 = vld [vmem:[#allocation6 + $0x188] sm:$0xff] }
  0xeb   :  { %v512_v36 = vld [vmem:[#allocation6 + $0x8a0] sm:$0xff]  ;;  %2790 = vmatpush1.bf16.msra.mxu0 %v8915_v29  ;;  %2937 = vmatprep.subr.bf16.mxu1 %v8670_v30  ;;  %v289_v29 = vld [vmem:[#allocation6 + $0x1a8] sm:$0xff]  ;;  %v11126_v30 = vpack.c.bf16 %v202_v18, %v195_v17 }
  0xec   :  { %v168_v43 = vld [vmem:[#allocation4 + $0x80] sm:$0xff]  ;;  %2791 = vmatprep.subr.bf16.mxu0 %v8924_v31  ;;  %v8932_v45 = vcombine.high %v508_v35, %v512_v36  ;;  %2685 = vmatprep.mubr.bf16.mxu1 %v11102_v34  ;;  %v8931_v57 = vcombine.low %v508_v35, %v512_v36  ;;  %v8701_v35 = vcombine.low %v277_v13, %v281_v14  ;;  %v293_v36 = vld [vmem:[#allocation6 + $0x1c8] sm:$0xff] }
  0xed   :  { %v516_v46 = vld [vmem:[#allocation6 + $0x8c0] sm:$0xff]  ;;  %2758 = vmatprep.mubr.bf16.mxu0 %v11105_v37  ;;  %v11112_v54 = vpack.c.bf16 %v175_v44, %v168_v43  ;;  %v305_v62 = vld [vmem:[#allocation6 + $0x228] sm:$0xff] }
  0xee   :  { %v520_v49 = vld [vmem:[#allocation6 + $0x8e0] sm:$0xff]  ;;  %2938 = vmatpush1.bf16.msra.mxu1 %v8669_v38  ;;  %v297_v38 = vld [vmem:[#allocation6 + $0x1e8] sm:$0xff] }
  0xef   :  { %v188_v52 = vld [vmem:[#allocation4 + $0x120] sm:$0xff]  ;;  %14108 = vst [vmem:[#allocation23_spill] sm:$0xff] %v11112_v54  ;;  %2792 = vmatpush1.bf16.msra.mxu0 %v8923_v41  ;;  %2939 = vmatprep.subr.bf16.mxu1 %v8678_v42  ;;  %v8940_v60 = vcombine.high %v516_v46, %v520_v49  ;;  %v8939_v7 = vcombine.low %v516_v46, %v520_v49  ;;  %v203_v46 = vld [vmem:[#allocation4 + $0x198] sm:$0xff]  ;;  %v309_v9 = vld [vmem:[#allocation6 + $0x248] sm:$0xff] }
  0xf0   :  { %2793 = vmatprep.subr.bf16.mxu0 %v8932_v45  ;;  %v11114_v63 = vpack.c.bf16 %v188_v52, %v181_v51  ;;  %v524_v1 = vld [vmem:[#allocation6 + $0x900] sm:$0xff]  ;;  %v8710_v42 = vcombine.high %v285_v28, %v289_v29  ;;  %v11133_v51 = vpack.c.bf16 %v201_v40, %v194_v39  ;;  %v8709_v52 = vcombine.low %v285_v28, %v289_v29  ;;  %v313_v10 = vld [vmem:[#allocation6 + $0x268] sm:$0xff] }
  0xf1   :  { %v528_v2 = vld [vmem:[#allocation6 + $0x920] sm:$0xff]  ;;  %2686 = vmatmul.mubr.bf16.gmra.mrb[4].mxu1 %v11109_v50  ;;  %v8718_v56 = vcombine.high %v293_v36, %v297_v38  ;;  %v8734_v13 = vcombine.high %v309_v9, %v313_v10  ;;  %v317_v18 = vld [vmem:[#allocation6 + $0x288] sm:$0xff] }
  0xf2   :  { %2940 = vmatpush1.bf16.msra.mxu1 %v8677_v53  ;;  %2759 = vmatmul.mubr.bf16.gmra.mrb[4].mxu0 %v11112_v54  ;;  %v180_v5 = vld [vmem:[#allocation4 + $0xe0] sm:$0xff]  ;;  %v8948_v11 = vcombine.high %v524_v1, %v528_v2  ;;  %v8947_v24 = vcombine.low %v524_v1, %v528_v2  ;;  %v8717_v2 = vcombine.low %v293_v36, %v297_v38  ;;  %v325_v29 = vld [vmem:[#allocation6 + $0x2c8] sm:$0xff] }
  0xf3   :  { %2794 = vmatpush1.bf16.msra.mxu0 %v8931_v57  ;;  %2941 = vmatprep.subr.bf16.mxu1 %v8686_v59  ;;  %v532_v12 = vld [vmem:[#allocation6 + $0x940] sm:$0xff]  ;;  %v11121_v16 = vpack.c.bf16 %v187_v6, %v180_v5  ;;  %v8726_v5 = vcombine.high %v301_v61, %v305_v62 }
  0xf4   :  { %2795 = vmatprep.subr.bf16.mxu0 %v8940_v60  ;;  %2695 = vmatprep.mubr.bf16.mxu1 %v11114_v63  ;;  %v536_v15 = vld [vmem:[#allocation6 + $0x960] sm:$0xff] }
  0xf5   :  { %2768 = vmatprep.mubr.bf16.mxu0 %v11117_v3  ;;  %v204_v23 = vld [vmem:[#allocation4 + $0x1a0] sm:$0xff]  ;;  %v8956_v27 = vcombine.high %v532_v12, %v536_v15  ;;  %v8955_v41 = vcombine.low %v532_v12, %v536_v15 }
  0xf6   :  { %2942 = vmatpush1.bf16.msra.mxu1 %v8685_v4  ;;  %v540_v31 = vld [vmem:[#allocation6 + $0x980] sm:$0xff]  ;;  %v11129_v33 = vpack.c.bf16 %v204_v23, %v197_v22  ;;  %v8733_v22 = vcombine.low %v309_v9, %v313_v10  ;;  %v357_v10 = vld [vmem:[#allocation6 + $0x3c8] sm:$0xff] }
  0xf7   :  { %2796 = vmatpush1.bf16.msra.mxu0 %v8939_v7  ;;  %2943 = vmatprep.subr.bf16.mxu1 %v8694_v8  ;;  %v544_v32 = vld [vmem:[#allocation6 + $0x9a0] sm:$0xff] }
  0xf8   :  { %2797 = vmatprep.subr.bf16.mxu0 %v8948_v11  ;;  %14110 = vst [vmem:[#allocation25_spill] sm:$0xff] %v11129_v33  ;;  %v548_v43 = vld [vmem:[#allocation6 + $0x9c0] sm:$0xff]  ;;  %v8964_v47 = vcombine.high %v540_v31, %v544_v32  ;;  %v8963_v55 = vcombine.low %v540_v31, %v544_v32  ;;  %v8725_v11 = vcombine.low %v301_v61, %v305_v62  ;;  %v329_v31 = vld [vmem:[#allocation6 + $0x2e8] sm:$0xff] }
  0xf9   :  { %2696 = vmatmul.mubr.bf16.gmra.mrb[8].mxu1 %v11121_v16  ;;  %v552_v44 = vld [vmem:[#allocation6 + $0x9e0] sm:$0xff]  ;;  %v8750_v36 = vcombine.high %v325_v29, %v329_v31  ;;  %v349_v62 = vld [vmem:[#allocation6 + $0x388] sm:$0xff] }
  0xfa   :  { %2944 = vmatpush1.bf16.msra.mxu1 %v8693_v19  ;;  %2769 = vmatmul.mubr.bf16.gmra.mrb[8].mxu0 %v11124_v20  ;;  %v196_v45 = vld [vmem:[#allocation4 + $0x160] sm:$0xff]  ;;  %v8972_v60 = vcombine.high %v548_v43, %v552_v44  ;;  %v8971_v4 = vcombine.low %v548_v43, %v552_v44  ;;  %v321_v19 = vld [vmem:[#allocation6 + $0x2a8] sm:$0xff]  ;;  %v8749_v43 = vcombine.low %v325_v29, %v329_v31 }
  0xfb   :  { %2798 = vmatpush1.bf16.msra.mxu0 %v8947_v24  ;;  %2945 = vmatprep.subr.bf16.mxu1 %v8702_v25  ;;  %v164_v49 = vld [vmem:[#allocation4 + $0x60] sm:$0xff]  ;;  %v11136_v53 = vpack.c.bf16 %v203_v46, %v196_v45  ;;  %v8742_v24 = vcombine.high %v317_v18, %v321_v19  ;;  %v8741_v32 = vcombine.low %v317_v18, %v321_v19 }
  0xfc   :  { %2799 = vmatprep.subr.bf16.mxu0 %v8956_v27  ;;  %2705 = vmatprep.mubr.bf16.mxu1 %v11126_v30  ;;  %v556_v57 = vld [vmem:[#allocation6 + $0xa00] sm:$0xff]  ;;  %v11138_v1 = vpack.c.bf16 %v164_v49, %v157_v48  ;;  %v341_v49 = vld [vmem:[#allocation6 + $0x348] sm:$0xff] }
  0xfd   :  { %2778 = vmatprep.mubr.bf16.mxu0 %v11129_v33  ;;  %14111 = vst [vmem:[#allocation26_spill] sm:$0xff] %v11136_v53  ;;  %v560_v59 = vld [vmem:[#allocation6 + $0xa20] sm:$0xff] }
  0xfe   :  { %2946 = vmatpush1.bf16.msra.mxu1 %v8701_v35  ;;  %14112 = vst [vmem:[#allocation27_spill] sm:$0xff] %v11138_v1  ;;  %v564_v6 = vld [vmem:[#allocation6 + $0xa40] sm:$0xff]  ;;  %v8980_v8 = vcombine.high %v556_v57, %v560_v59  ;;  %v8979_v12 = vcombine.low %v556_v57, %v560_v59 }
  0xff   :  { %2800 = vmatpush1.bf16.msra.mxu0 %v8955_v41  ;;  %2947 = vmatprep.subr.bf16.mxu1 %v8710_v42  ;;  %v568_v7 = vld [vmem:[#allocation6 + $0xa60] sm:$0xff]  ;;  %v333_v41 = vld [vmem:[#allocation6 + $0x308] sm:$0xff] }
 0x100   :  { %2801 = vmatprep.subr.bf16.mxu0 %v8964_v47  ;;  %v572_v14 = vld [vmem:[#allocation6 + $0xa80] sm:$0xff]  ;;  %v8988_v17 = vcombine.high %v564_v6, %v568_v7  ;;  %v8987_v23 = vcombine.low %v564_v6, %v568_v7  ;;  %v337_v42 = vld [vmem:[#allocation6 + $0x328] sm:$0xff] }
 0x101   :  { %2706 = vmatmul.mubr.bf16.gmra.mrb[12].mxu1 %v11133_v51  ;;  %v576_v15 = vld [vmem:[#allocation6 + $0xaa0] sm:$0xff]  ;;  %v8758_v45 = vcombine.high %v333_v41, %v337_v42 }
 0x102   :  { %2948 = vmatpush1.bf16.msra.mxu1 %v8709_v52  ;;  %2779 = vmatmul.mubr.bf16.gmra.mrb[12].mxu0 %v11136_v53  ;;  %v580_v25 = vld [vmem:[#allocation6 + $0xac0] sm:$0xff]  ;;  %v8996_v28 = vcombine.high %v572_v14, %v576_v15  ;;  %v8995_v35 = vcombine.low %v572_v14, %v576_v15  ;;  %v345_v52 = vld [vmem:[#allocation6 + $0x368] sm:$0xff] }
 0x103   :  { %2802 = vmatpush1.bf16.msra.mxu0 %v8963_v55  ;;  %2949 = vmatprep.subr.bf16.mxu1 %v8718_v56  ;;  %v584_v27 = vld [vmem:[#allocation6 + $0xae0] sm:$0xff]  ;;  %v8757_v55 = vcombine.low %v333_v41, %v337_v42  ;;  %v8766_v57 = vcombine.high %v341_v49, %v345_v52  ;;  %v365_v15 = vld [vmem:[#allocation6 + $0x408] sm:$0xff] }
 0x104   :  { %2803 = vmatprep.subr.bf16.mxu0 %v8972_v60  ;;  %2821 = vmatprep.mubr.bf16.mxu0 %v11138_v1  ;;  %v588_v38 = vld [vmem:[#allocation6 + $0xb00] sm:$0xff]  ;;  %v9004_v40 = vcombine.high %v580_v25, %v584_v27  ;;  %v9003_v44 = vcombine.low %v580_v25, %v584_v27  ;;  %v373_v27 = vld [vmem:[#allocation6 + $0x448] sm:$0xff] }
 0x105   :  { %2967 = vmatprep.mubr.bf16.mxu1 %v11092_v58  ;;  %v592_v39 = vld [vmem:[#allocation6 + $0xb20] sm:$0xff] }
 0x106   :  { %2950 = vmatpush1.bf16.msra.mxu1 %v8717_v2  ;;  %v596_v46 = vld [vmem:[#allocation6 + $0xb40] sm:$0xff]  ;;  %v9012_v48 = vcombine.high %v588_v38, %v592_v39  ;;  %v9011_v56 = vcombine.low %v588_v38, %v592_v39  ;;  %v353_v2 = vld [vmem:[#allocation6 + $0x3a8] sm:$0xff]  ;;  %v11144_v38 = vld [vmem:[#allocation6 + $0x10] sm:$0xff] }
 0x107   :  { %2804 = vmatpush1.bf16.msra.mxu0 %v8971_v4  ;;  %2951 = vmatprep.subr.bf16.mxu1 %v8726_v5  ;;  %v600_v47 = vld [vmem:[#allocation6 + $0xb60] sm:$0xff]  ;;  %v8765_v4 = vcombine.low %v341_v49, %v345_v52  ;;  %v8774_v6 = vcombine.high %v349_v62, %v353_v2  ;;  %v11146_v39 = vld [vmem:[#allocation6 + $0x30] sm:$0xff] }
 0x108   :  { %2805 = vmatprep.subr.bf16.mxu0 %v8980_v8  ;;  %v604_v59 = vld [vmem:[#allocation6 + $0xb80] sm:$0xff]  ;;  %v9020_v61 = vcombine.high %v596_v46, %v600_v47  ;;  %v9019_v5 = vcombine.low %v596_v46, %v600_v47  ;;  %v170_v47 = vld [vmem:[#allocation4 + $0x90] sm:$0xff]  ;;  %v8664_v49 = vcombine.high %v11144_v38, %v11146_v39 }
 0x109   :  { %v608_v60 = vld [vmem:[#allocation6 + $0xba0] sm:$0xff] }
 0x10a   :  { %2952 = vmatpush1.bf16.msra.mxu1 %v8725_v11  ;;  %v612_v7 = vld [vmem:[#allocation6 + $0xbc0] sm:$0xff]  ;;  %v9028_v9 = vcombine.high %v604_v59, %v608_v60  ;;  %v361_v11 = vld [vmem:[#allocation6 + $0x3e8] sm:$0xff] }
 0x10b   :  { %2806 = vmatpush1.bf16.msra.mxu0 %v8979_v12  ;;  %2953 = vmatprep.subr.bf16.mxu1 %v8734_v13  ;;  %v616_v8 = vld [vmem:[#allocation6 + $0xbe0] sm:$0xff]  ;;  %v8773_v12 = vcombine.low %v349_v62, %v353_v2  ;;  %v9027_v13 = vcombine.low %v604_v59, %v608_v60  ;;  %v8782_v14 = vcombine.high %v357_v10, %v361_v11  ;;  %v185_v59 = vld [vmem:[#allocation4 + $0x108] sm:$0xff] }
 0x10c   :  { %2807 = vmatprep.subr.bf16.mxu0 %v8988_v17  ;;  %v369_v17 = vld [vmem:[#allocation6 + $0x428] sm:$0xff]  ;;  %v9036_v18 = vcombine.high %v612_v7, %v616_v8  ;;  %v620_v19 = vld [vmem:[#allocation6 + $0xc00] sm:$0xff]  ;;  %v8781_v25 = vcombine.low %v357_v10, %v361_v11  ;;  %v9035_v29 = vcombine.low %v612_v7, %v616_v8  ;;  %v191_v8 = vld [vmem:[#allocation4 + $0x138] sm:$0xff] }
 0x10d   :  { %v8790_v31 = vcombine.high %v365_v15, %v369_v17  ;;  %v8789_v41 = vcombine.low %v365_v15, %v369_v17  ;;  %v192_v60 = vld [vmem:[#allocation4 + $0x140] sm:$0xff]  ;;  %v405_v10 = vld [vmem:[#allocation6 + $0x548] sm:$0xff] }
 0x10e   :  { %2954 = vmatpush1.bf16.msra.mxu1 %v8733_v22  ;;  %v624_v22 = vld [vmem:[#allocation6 + $0xc20] sm:$0xff]  ;;  %v409_v11 = vld [vmem:[#allocation6 + $0x568] sm:$0xff] }
 0x10f   :  { %2808 = vmatpush1.bf16.msra.mxu0 %v8987_v23  ;;  %2955 = vmatprep.subr.bf16.mxu1 %v8742_v24  ;;  %v156_v23 = vld [vmem:[#allocation4 + $0x20] sm:$0xff]  ;;  %v163_v24 = vld [vmem:[#allocation4 + $0x58] sm:$0xff]  ;;  %v9043_v46 = vcombine.low %v620_v19, %v624_v22 }
 0x110   :  { %2809 = vmatprep.subr.bf16.mxu0 %v8996_v28  ;;  %v377_v28 = vld [vmem:[#allocation6 + $0x468] sm:$0xff]  ;;  %v184_v7 = vld [vmem:[#allocation4 + $0x100] sm:$0xff] }
 0x111   :  { %v8798_v42 = vcombine.high %v373_v27, %v377_v28  ;;  %v8797_v52 = vcombine.low %v373_v27, %v377_v28  ;;  %v11166_v15 = vpack.c.bf16 %v191_v8, %v184_v7  ;;  %v205_v27 = vld [vmem:[#allocation4 + $0x1a8] sm:$0xff] }
 0x112   :  { %2956 = vmatpush1.bf16.msra.mxu1 %v8741_v32  ;;  %v171_v32 = vld [vmem:[#allocation4 + $0x98] sm:$0xff]  ;;  %v449_v8 = vld [vmem:[#allocation6 + $0x6a8] sm:$0xff] }
 0x113   :  { %2810 = vmatpush1.bf16.msra.mxu0 %v8995_v35  ;;  %2957 = vmatprep.subr.bf16.mxu1 %v8750_v36  ;;  %v178_v35 = vld [vmem:[#allocation4 + $0xd0] sm:$0xff]  ;;  %v9044_v36 = vcombine.high %v620_v19, %v624_v22  ;;  %14114 = vst [vmem:[#allocation29_spill] sm:$0xff] %v11166_v15  ;;  %v413_v22 = vld [vmem:[#allocation6 + $0x588] sm:$0xff] }
 0x114   :  { %2811 = vmatprep.subr.bf16.mxu0 %v9004_v40  ;;  %v11148_v40 = vpack.c.bf16 %v163_v24, %v156_v23  ;;  %v417_v23 = vld [vmem:[#allocation6 + $0x5a8] sm:$0xff]  ;;  %v198_v24 = vld [vmem:[#allocation4 + $0x170] sm:$0xff] }
 0x115   :  { %v8838_v28 = vcombine.high %v413_v22, %v417_v23 }
 0x116   :  { %2958 = vmatpush1.bf16.msra.mxu1 %v8749_v43  ;;  %v11150_v43 = vpack.c.bf16 %v178_v35, %v171_v32  ;;  %v11174_v32 = vpack.c.bf16 %v205_v27, %v198_v24  ;;  %v8837_v35 = vcombine.low %v413_v22, %v417_v23  ;;  %v270_v27 = vld [vmem:[#allocation6 + $0x110] sm:$0xff] }
 0x117   :  { %2812 = vmatpush1.bf16.msra.mxu0 %v9003_v44  ;;  %2959 = vmatprep.subr.bf16.mxu1 %v8758_v45  ;;  %v381_v44 = vld [vmem:[#allocation6 + $0x488] sm:$0xff] }
 0x118   :  { %2813 = vmatprep.subr.bf16.mxu0 %v9012_v48  ;;  %v385_v45 = vld [vmem:[#allocation6 + $0x4a8] sm:$0xff] }
 0x119   :  { %v177_v48 = vld [vmem:[#allocation4 + $0xc8] sm:$0xff]  ;;  %v8805_v62 = vcombine.low %v381_v44, %v385_v45 }
 0x11a   :  { %2960 = vmatpush1.bf16.msra.mxu1 %v8757_v55  ;;  %v389_v55 = vld [vmem:[#allocation6 + $0x4c8] sm:$0xff] }
 0x11b   :  { %2814 = vmatpush1.bf16.msra.mxu0 %v9011_v56  ;;  %2961 = vmatprep.subr.bf16.mxu1 %v8766_v57  ;;  %v393_v56 = vld [vmem:[#allocation6 + $0x4e8] sm:$0xff]  ;;  %v8806_v57 = vcombine.high %v381_v44, %v385_v45  ;;  %v158_v44 = vld [vmem:[#allocation4 + $0x30] sm:$0xff] }
 0x11c   :  { %2815 = vmatprep.subr.bf16.mxu0 %v9020_v61  ;;  %v11158_v61 = vpack.c.bf16 %v177_v48, %v170_v47  ;;  %v8814_v2 = vcombine.high %v389_v55, %v393_v56  ;;  %v165_v45 = vld [vmem:[#allocation4 + $0x68] sm:$0xff]  ;;  %v13957_v47 = vmov 0  }
 0x11e   :  { %2962 = vmatpush1.bf16.msra.mxu1 %v8765_v4  ;;  %v11160_v4 = vpack.c.bf16 %v192_v60, %v185_v59  ;;  %v8663_v60 = vcombine.low %v11144_v38, %v11146_v39  ;;  %v262_v38 = vld [vmem:[#allocation6 + $0xd0] sm:$0xff] }
 0x11f   :  { %2816 = vmatpush1.bf16.msra.mxu0 %v9019_v5  ;;  %2963 = vmatprep.subr.bf16.mxu1 %v8774_v6  ;;  %v397_v5 = vld [vmem:[#allocation6 + $0x508] sm:$0xff]  ;;  %v266_v39 = vld [vmem:[#allocation6 + $0xf0] sm:$0xff] }
 0x120   :  { %2817 = vmatprep.subr.bf16.mxu0 %v9028_v9  ;;  %14113 = vst [vmem:[#allocation28_spill] sm:$0xff] %v11160_v4  ;;  %v401_v6 = vld [vmem:[#allocation6 + $0x528] sm:$0xff]  ;;  %v8813_v9 = vcombine.low %v389_v55, %v393_v56 }
 0x121   :  { %v8821_v17 = vcombine.low %v397_v5, %v401_v6  ;;  %v437_v55 = vld [vmem:[#allocation6 + $0x648] sm:$0xff] }
 0x122   :  { %2964 = vmatpush1.bf16.msra.mxu1 %v8773_v12  ;;  %v8822_v12 = vcombine.high %v397_v5, %v401_v6  ;;  %v441_v56 = vld [vmem:[#allocation6 + $0x668] sm:$0xff]  ;;  %v258_v5 = vld [vmem:[#allocation6 + $0xb0] sm:$0xff] }
 0x123   :  { %2818 = vmatpush1.bf16.msra.mxu0 %v9027_v13  ;;  %2965 = vmatprep.subr.bf16.mxu1 %v8782_v14  ;;  %v199_v13 = vld [vmem:[#allocation4 + $0x178] sm:$0xff]  ;;  %v206_v14 = vld [vmem:[#allocation4 + $0x1b0] sm:$0xff]  ;;  %v445_v6 = vld [vmem:[#allocation6 + $0x688] sm:$0xff] }
 0x124   :  { %2819 = vmatprep.subr.bf16.mxu0 %v9036_v18  ;;  %v8830_v18 = vcombine.high %v405_v10, %v409_v11  ;;  %v11168_v19 = vpack.c.bf16 %v206_v14, %v199_v13  ;;  %v8870_v13 = vcombine.high %v445_v6, %v449_v8  ;;  %v453_v14 = vld [vmem:[#allocation6 + $0x6c8] sm:$0xff]  ;;  %v8869_v23 = vcombine.low %v445_v6, %v449_v8 }
 0x125   :  { %v477_v6 = vld [vmem:[#allocation6 + $0x788] sm:$0xff] }
 0x126   :  { %2966 = vmatpush1.bf16.msra.mxu1 %v8781_v25  ;;  %14115 = vst [vmem:[#allocation30_spill] sm:$0xff] %v11168_v19  ;;  %v8829_v25 = vcombine.low %v405_v10, %v409_v11  ;;  %v179_v10 = vld [vmem:[#allocation4 + $0xd8] sm:$0xff]  ;;  %v8861_v11 = vcombine.low %v437_v55, %v441_v56  ;;  %v481_v8 = vld [vmem:[#allocation6 + $0x7a8] sm:$0xff] }
 0x127   :  { %2820 = vmatpush1.bf16.msra.mxu0 %v9035_v29  ;;  %3008 = vmatprep.subr.bf16.mxu1 %v8790_v31  ;;  %v421_v29 = vld [vmem:[#allocation6 + $0x5c8] sm:$0xff] }
 0x128   :  { %2862 = vmatprep.subr.bf16.mxu0 %v9044_v36  ;;  %v425_v31 = vld [vmem:[#allocation6 + $0x5e8] sm:$0xff] }
 0x129   :  { %2968 = vmatmul.mubr.bf16.vlgmr.msra.gmra.mrb[16].mxu1 %v11098_v21  ;;  %v8846_v36 = vcombine.high %v421_v29, %v425_v31 }
 0x12a   :  { %2822 = vmatmul.mubr.bf16.vlgmr.msra.gmra.mrb[0].mxu0 %v11148_v40  ;;  %3009 = vmatpush1.bf16.msra.mxu1 %v8789_v41  ;;  %v429_v41 = vld [vmem:[#allocation6 + $0x608] sm:$0xff] }
 0x12b   :  { %3010 = vmatprep.subr.bf16.mxu1 %v8798_v42  ;;  %2831 = vmatprep.mubr.bf16.mxu0 %v11150_v43  ;;  %v433_v42 = vld [vmem:[#allocation6 + $0x628] sm:$0xff] }
 0x12c   :  { %2863 = vmatpush1.bf16.msra.mxu0 %v9043_v46  ;;  %2977 = vmatprep.mubr.bf16.mxu1 %v11102_v34  ;;  %v8845_v46 = vcombine.low %v421_v29, %v425_v31  ;;  %v8854_v48 = vcombine.high %v429_v41, %v433_v42  ;;  %v8853_v59 = vcombine.low %v429_v41, %v433_v42  ;;  %v461_v29 = vld [vmem:[#allocation6 + $0x708] sm:$0xff] }
 0x12d   :  { %3227 = vmatprep.subr.bf16.mxu0 %v8664_v49  ;;  %v246_v49 = vld [vmem:[#allocation6 + $0x50] sm:$0xff]  ;;  %v8688_v31 = vcombine.high %v262_v38, %v266_v39  ;;  %v193_v41 = vld [vmem:[#allocation4 + $0x148] sm:$0xff] }
 0x12e   :  { %3011 = vmatpush1.bf16.msra.mxu1 %v8797_v52  ;;  %v250_v52 = vld [vmem:[#allocation6 + $0x70] sm:$0xff] }
 0x12f   :  { %3012 = vmatprep.subr.bf16.mxu1 %v8806_v57  ;;  %v11180_v57 = vpack.c.bf16 %v165_v45, %v158_v44  ;;  %v8672_v7 = vcombine.high %v246_v49, %v250_v52  ;;  %v8687_v44 = vcombine.low %v262_v38, %v266_v39  ;;  %v294_v38 = vld [vmem:[#allocation6 + $0x1d0] sm:$0xff] }
 0x130   :  { %v298_v39 = vld [vmem:[#allocation6 + $0x1f0] sm:$0xff] }
 0x131   :  { %2978 = vmatmul.mubr.bf16.gmra.mrb[20].mxu1 %v11109_v50  ;;  %14116 = vst [vmem:[#allocation31_spill] sm:$0xff] %v11180_v57 }
 0x132   :  { %2832 = vmatmul.mubr.bf16.gmra.mrb[4].mxu0 %v11158_v61  ;;  %3013 = vmatpush1.bf16.msra.mxu1 %v8805_v62  ;;  %v8862_v62 = vcombine.high %v437_v55, %v441_v56  ;;  %v473_v55 = vld [vmem:[#allocation6 + $0x768] sm:$0xff] }
 0x133   :  { %3014 = vmatprep.subr.bf16.mxu1 %v8814_v2  ;;  %2841 = vmatprep.mubr.bf16.mxu0 %v11160_v4  ;;  %v254_v2 = vld [vmem:[#allocation6 + $0x90] sm:$0xff] }
 0x134   :  { %2987 = vmatprep.mubr.bf16.mxu1 %v11114_v63  ;;  %v8679_v24 = vcombine.low %v254_v2, %v258_v5 }
 0x136   :  { %3015 = vmatpush1.bf16.msra.mxu1 %v8813_v9  ;;  %v172_v9 = vld [vmem:[#allocation4 + $0xa0] sm:$0xff] }
 0x137   :  { %3016 = vmatprep.subr.bf16.mxu1 %v8822_v12  ;;  %v8671_v12 = vcombine.low %v246_v49, %v250_v52  ;;  %v11187_v22 = vpack.c.bf16 %v179_v10, %v172_v9  ;;  %v469_v49 = vld [vmem:[#allocation6 + $0x748] sm:$0xff]  ;;  %v200_v9 = vld [vmem:[#allocation4 + $0x180] sm:$0xff]  ;;  %v207_v10 = vld [vmem:[#allocation4 + $0x1b8] sm:$0xff] }
 0x139   :  { %2988 = vmatmul.mubr.bf16.gmra.mrb[24].mxu1 %v11121_v16  ;;  %14117 = vst [vmem:[#allocation32_spill] sm:$0xff] %v11187_v22 }
 0x13a   :  { %2842 = vmatmul.mubr.bf16.gmra.mrb[8].mxu0 %v11166_v15  ;;  %3017 = vmatpush1.bf16.msra.mxu1 %v8821_v17  ;;  %v8680_v17 = vcombine.high %v254_v2, %v258_v5  ;;  %v286_v2 = vld [vmem:[#allocation6 + $0x190] sm:$0xff] }
 0x13b   :  { %3018 = vmatprep.subr.bf16.mxu1 %v8830_v18  ;;  %2851 = vmatprep.mubr.bf16.mxu0 %v11168_v19  ;;  %v457_v18 = vld [vmem:[#allocation6 + $0x6e8] sm:$0xff]  ;;  %v290_v5 = vld [vmem:[#allocation6 + $0x1b0] sm:$0xff] }
 0x13c   :  { %2997 = vmatprep.mubr.bf16.mxu1 %v11126_v30  ;;  %v8877_v42 = vcombine.low %v453_v14, %v457_v18 }
 0x13e   :  { %3019 = vmatpush1.bf16.msra.mxu1 %v8829_v25  ;;  %v8878_v25 = vcombine.high %v453_v14, %v457_v18  ;;  %v485_v14 = vld [vmem:[#allocation6 + $0x7c8] sm:$0xff] }
 0x13f   :  { %3020 = vmatprep.subr.bf16.mxu1 %v8838_v28  ;;  %v274_v28 = vld [vmem:[#allocation6 + $0x130] sm:$0xff]  ;;  %v489_v18 = vld [vmem:[#allocation6 + $0x7e8] sm:$0xff] }
 0x140   :  { %v8696_v52 = vcombine.high %v270_v27, %v274_v28 }
 0x141   :  { %2998 = vmatmul.mubr.bf16.gmra.mrb[28].mxu1 %v11133_v51 }
 0x142   :  { %2852 = vmatmul.mubr.bf16.gmra.mrb[12].mxu0 %v11174_v32  ;;  %3021 = vmatpush1.bf16.msra.mxu1 %v8837_v35  ;;  %v465_v35 = vld [vmem:[#allocation6 + $0x728] sm:$0xff] }
 0x143   :  { %3022 = vmatprep.subr.bf16.mxu1 %v8846_v36  ;;  %2894 = vmatprep.mubr.bf16.mxu0 %v13957_v47  ;;  %v186_v36 = vld [vmem:[#allocation4 + $0x110] sm:$0xff]  ;;  %v8886_v45 = vcombine.high %v461_v29, %v465_v35 }
 0x144   :  { %3040 = vmatprep.mubr.bf16.mxu1 %v11095_v0  ;;  %v11192_v56 = vpack.c.bf16 %v193_v41, %v186_v36  ;;  %v497_v36 = vld [vmem:[#allocation6 + $0x828] sm:$0xff]  ;;  %v8909_v41 = vcombine.low %v485_v14, %v489_v18 }
 0x146   :  { %3023 = vmatpush1.bf16.msra.mxu1 %v8845_v46  ;;  %v278_v46 = vld [vmem:[#allocation6 + $0x150] sm:$0xff]  ;;  %14118 = vst [vmem:[#allocation33_spill] sm:$0xff] %v11192_v56 }
 0x147   :  { %3024 = vmatprep.subr.bf16.mxu1 %v8854_v48  ;;  %v282_v48 = vld [vmem:[#allocation6 + $0x170] sm:$0xff] }
 0x14a   :  { %9051 = vmatmul.mubr.msk.bf16.vlgmr.msra.gmra.mrb[0].mxu0 %vm14000_vm0, %v11180_v57  ;;  %3025 = vmatpush1.bf16.msra.mxu1 %v8853_v59  ;;  %v8885_v59 = vcombine.low %v461_v29, %v465_v35  ;;  %v306_v29 = vld [vmem:[#allocation6 + $0x230] sm:$0xff]  ;;  %v8720_v35 = vcombine.high %v294_v38, %v298_v39 }
 0x14b   :  { %3228 = vmatpush1.bf16.msra.mxu0 %v8663_v60  ;;  %3026 = vmatprep.subr.bf16.mxu1 %v8862_v62  ;;  %v8695_v60 = vcombine.low %v270_v27, %v274_v28  ;;  %v8894_v62 = vcombine.high %v469_v49, %v473_v55  ;;  %v8910_v27 = vcombine.high %v485_v14, %v489_v18  ;;  %v302_v28 = vld [vmem:[#allocation6 + $0x210] sm:$0xff] }
 0x14c   :  { %3229 = vmatprep.subr.bf16.mxu0 %v8672_v7  ;;  %2904 = vmatprep.mubr.bf16.mxu0 %v13957_v47  ;;  %v8704_v7 = vcombine.high %v278_v46, %v282_v48 }
 0x14e   :  { %3027 = vmatpush1.bf16.msra.mxu1 %v8861_v11  ;;  %v8893_v11 = vcombine.low %v469_v49, %v473_v55  ;;  %v8728_v49 = vcombine.high %v302_v28, %v306_v29 }
 0x14f   :  { %3230 = vmatpush1.bf16.msra.mxu0 %v8671_v12  ;;  %3028 = vmatprep.subr.bf16.mxu1 %v8870_v13  ;;  %v8703_v12 = vcombine.low %v278_v46, %v282_v48  ;;  %v8902_v13 = vcombine.high %v477_v6, %v481_v8  ;;  %v314_v46 = vld [vmem:[#allocation6 + $0x270] sm:$0xff]  ;;  %v501_v48 = vld [vmem:[#allocation6 + $0x848] sm:$0xff] }
 0x150   :  { %3231 = vmatprep.subr.bf16.mxu0 %v8680_v17  ;;  %v8712_v17 = vcombine.high %v286_v2, %v290_v5 }
 0x152   :  { %9052 = vmatmul.mubr.msk.bf16.gmra.mrb[4].mxu0 %vm14000_vm0, %v11187_v22  ;;  %3029 = vmatpush1.bf16.msra.mxu1 %v8869_v23  ;;  %v11197_v23 = vpack.c.bf16 %v207_v10, %v200_v9 }
 0x153   :  { %3232 = vmatpush1.bf16.msra.mxu0 %v8679_v24  ;;  %3030 = vmatprep.subr.bf16.mxu1 %v8878_v25  ;;  %v8901_v24 = vcombine.low %v477_v6, %v481_v8  ;;  %v8711_v25 = vcombine.low %v286_v2, %v290_v5  ;;  %v322_v2 = vld [vmem:[#allocation6 + $0x2b0] sm:$0xff]  ;;  %v509_v5 = vld [vmem:[#allocation6 + $0x888] sm:$0xff] }
 0x154   :  { %3233 = vmatprep.subr.bf16.mxu0 %v8688_v31  ;;  %2914 = vmatprep.mubr.bf16.mxu0 %v13957_v47  ;;  %14119 = vst [vmem:[#allocation34_spill] sm:$0xff] %v11197_v23  ;;  %v493_v31 = vld [vmem:[#allocation6 + $0x808] sm:$0xff] }
 0x155   :  { %v8917_v55 = vcombine.low %v493_v31, %v497_v36 }
 0x156   :  { %3031 = vmatpush1.bf16.msra.mxu1 %v8877_v42  ;;  %v8719_v42 = vcombine.low %v294_v38, %v298_v39  ;;  %v521_v39 = vld [vmem:[#allocation6 + $0x8e8] sm:$0xff] }
 0x157   :  { %3234 = vmatpush1.bf16.msra.mxu0 %v8687_v44  ;;  %3032 = vmatprep.subr.bf16.mxu1 %v8886_v45  ;;  %v8918_v44 = vcombine.high %v493_v31, %v497_v36  ;;  %v310_v45 = vld [vmem:[#allocation6 + $0x250] sm:$0xff] }
 0x158   :  { %3235 = vmatprep.subr.bf16.mxu0 %v8696_v52  ;;  %v505_v52 = vld [vmem:[#allocation6 + $0x868] sm:$0xff]  ;;  %v8736_v6 = vcombine.high %v310_v45, %v314_v46  ;;  %v8735_v9 = vcombine.low %v310_v45, %v314_v46 }
 0x159   :  { %v8925_v8 = vcombine.low %v501_v48, %v505_v52  ;;  %v537_v46 = vld [vmem:[#allocation6 + $0x968] sm:$0xff] }
 0x15a   :  { %9053 = vmatmul.mubr.msk.bf16.gmra.mrb[8].mxu0 %vm14000_vm0, %v11192_v56  ;;  %3033 = vmatpush1.bf16.msra.mxu1 %v8885_v59  ;;  %v8727_v59 = vcombine.low %v302_v28, %v306_v29  ;;  %v529_v29 = vld [vmem:[#allocation6 + $0x928] sm:$0xff] }
 0x15b   :  { %3236 = vmatpush1.bf16.msra.mxu0 %v8695_v60  ;;  %3034 = vmatprep.subr.bf16.mxu1 %v8894_v62  ;;  %v8926_v60 = vcombine.high %v501_v48, %v505_v52  ;;  %v318_v62 = vld [vmem:[#allocation6 + $0x290] sm:$0xff] }
 0x15c   :  { %3237 = vmatprep.subr.bf16.mxu0 %v8704_v7  ;;  %2924 = vmatprep.mubr.bf16.mxu0 %v13957_v47  ;;  %v513_v7 = vld [vmem:[#allocation6 + $0x8a8] sm:$0xff]  ;;  %v8744_v38 = vcombine.high %v318_v62, %v322_v2 }
 0x15d   :  { %v8934_v10 = vcombine.high %v509_v5, %v513_v7  ;;  %v8933_v14 = vcombine.low %v509_v5, %v513_v7 }
 0x15e   :  { %3035 = vmatpush1.bf16.msra.mxu1 %v8893_v11  ;;  %v326_v11 = vld [vmem:[#allocation6 + $0x2d0] sm:$0xff] }
 0x15f   :  { %3238 = vmatpush1.bf16.msra.mxu0 %v8703_v12  ;;  %3036 = vmatprep.subr.bf16.mxu1 %v8902_v13  ;;  %v330_v12 = vld [vmem:[#allocation6 + $0x2f0] sm:$0xff]  ;;  %v517_v13 = vld [vmem:[#allocation6 + $0x8c8] sm:$0xff] }
 0x160   :  { %3239 = vmatprep.subr.bf16.mxu0 %v8712_v17  ;;  %v8743_v17 = vcombine.low %v318_v62, %v322_v2  ;;  %v8942_v18 = vcombine.high %v517_v13, %v521_v39  ;;  %v8752_v28 = vcombine.high %v326_v11, %v330_v12  ;;  %v8941_v31 = vcombine.low %v517_v13, %v521_v39  ;;  %v545_v2 = vld [vmem:[#allocation6 + $0x9a8] sm:$0xff] }
 0x162   :  { %9054 = vmatmul.mubr.msk.bf16.gmra.mrb[12].mxu0 %vm14000_vm0, %v11197_v23  ;;  %3037 = vmatpush1.bf16.msra.mxu1 %v8901_v24  ;;  %v334_v24 = vld [vmem:[#allocation6 + $0x310] sm:$0xff] }
 0x163   :  { %3240 = vmatpush1.bf16.msra.mxu0 %v8711_v25  ;;  %3038 = vmatprep.subr.bf16.mxu1 %v8910_v27  ;;  %v338_v25 = vld [vmem:[#allocation6 + $0x330] sm:$0xff]  ;;  %v525_v27 = vld [vmem:[#allocation6 + $0x908] sm:$0xff] }
 0x164   :  { %3241 = vmatprep.subr.bf16.mxu0 %v8720_v35  ;;  %3259 = vmatprep.mubr.bf16.mxu0 %v11092_v58  ;;  %v8751_v35 = vcombine.low %v326_v11, %v330_v12  ;;  %v8950_v36 = vcombine.high %v525_v27, %v529_v29  ;;  %v8760_v45 = vcombine.high %v334_v24, %v338_v25  ;;  %v553_v12 = vld [vmem:[#allocation6 + $0x9e8] sm:$0xff] }
 0x165   :  { %v8949_v48 = vcombine.low %v525_v27, %v529_v29 }
 0x166   :  { %3039 = vmatpush1.bf16.msra.mxu1 %v8909_v41  ;;  %v342_v41 = vld [vmem:[#allocation6 + $0x350] sm:$0xff] }
 0x167   :  { %3242 = vmatpush1.bf16.msra.mxu0 %v8719_v42  ;;  %3081 = vmatprep.subr.bf16.mxu1 %v8918_v44  ;;  %v346_v42 = vld [vmem:[#allocation6 + $0x370] sm:$0xff]  ;;  %v533_v44 = vld [vmem:[#allocation6 + $0x948] sm:$0xff] }
 0x168   :  { %3243 = vmatprep.subr.bf16.mxu0 %v8728_v49  ;;  %v8759_v49 = vcombine.low %v334_v24, %v338_v25  ;;  %v8958_v52 = vcombine.high %v533_v44, %v537_v46  ;;  %v8768_v62 = vcombine.high %v342_v41, %v346_v42  ;;  %v8957_v5 = vcombine.low %v533_v44, %v537_v46  ;;  %v561_v25 = vld [vmem:[#allocation6 + $0xa28] sm:$0xff] }
 0x169   :  { %3041 = vmatmul.mubr.bf16.vlgmr.msra.gmra.mrb[16].mxu1 %v11100_v26 }
 0x16a   :  { %3082 = vmatpush1.bf16.msra.mxu1 %v8917_v55  ;;  %3050 = vmatprep.mubr.bf16.mxu1 %v11105_v37  ;;  %v350_v55 = vld [vmem:[#allocation6 + $0x390] sm:$0xff] }
 0x16b   :  { %3244 = vmatpush1.bf16.msra.mxu0 %v8727_v59  ;;  %3083 = vmatprep.subr.bf16.mxu1 %v8926_v60  ;;  %v354_v59 = vld [vmem:[#allocation6 + $0x3b0] sm:$0xff]  ;;  %v541_v60 = vld [vmem:[#allocation6 + $0x988] sm:$0xff] }
 0x16c   :  { %3245 = vmatprep.subr.bf16.mxu0 %v8736_v6  ;;  %v8767_v6 = vcombine.low %v342_v41, %v346_v42  ;;  %v8966_v7 = vcombine.high %v541_v60, %v545_v2  ;;  %v8776_v11 = vcombine.high %v350_v55, %v354_v59  ;;  %v8965_v13 = vcombine.low %v541_v60, %v545_v2  ;;  %v569_v42 = vld [vmem:[#allocation6 + $0xa68] sm:$0xff] }
 0x16d   :  { %v585_v2 = vld [vmem:[#allocation6 + $0xae8] sm:$0xff] }
 0x16e   :  { %3084 = vmatpush1.bf16.msra.mxu1 %v8925_v8  ;;  %v358_v8 = vld [vmem:[#allocation6 + $0x3d0] sm:$0xff] }
 0x16f   :  { %3246 = vmatpush1.bf16.msra.mxu0 %v8735_v9  ;;  %3085 = vmatprep.subr.bf16.mxu1 %v8934_v10  ;;  %v362_v9 = vld [vmem:[#allocation6 + $0x3f0] sm:$0xff]  ;;  %v549_v10 = vld [vmem:[#allocation6 + $0x9c8] sm:$0xff] }
 0x170   :  { %3247 = vmatprep.subr.bf16.mxu0 %v8744_v38  ;;  %v8775_v38 = vcombine.low %v350_v55, %v354_v59  ;;  %v8974_v39 = vcombine.high %v549_v10, %v553_v12  ;;  %v8784_v24 = vcombine.high %v358_v8, %v362_v9  ;;  %v8973_v27 = vcombine.low %v549_v10, %v553_v12  ;;  %v577_v55 = vld [vmem:[#allocation6 + $0xaa8] sm:$0xff] }
 0x171   :  { %3051 = vmatmul.mubr.bf16.gmra.mrb[20].mxu1 %v11112_v54 }
 0x172   :  { %3086 = vmatpush1.bf16.msra.mxu1 %v8933_v14  ;;  %3060 = vmatprep.mubr.bf16.mxu1 %v11117_v3  ;;  %v366_v14 = vld [vmem:[#allocation6 + $0x410] sm:$0xff] }
 0x173   :  { %3248 = vmatpush1.bf16.msra.mxu0 %v8743_v17  ;;  %3087 = vmatprep.subr.bf16.mxu1 %v8942_v18  ;;  %v370_v17 = vld [vmem:[#allocation6 + $0x430] sm:$0xff]  ;;  %v557_v18 = vld [vmem:[#allocation6 + $0xa08] sm:$0xff] }
 0x174   :  { %3249 = vmatprep.subr.bf16.mxu0 %v8752_v28  ;;  %v8783_v28 = vcombine.low %v358_v8, %v362_v9  ;;  %v8982_v29 = vcombine.high %v557_v18, %v561_v25  ;;  %v8792_v41 = vcombine.high %v366_v14, %v370_v17  ;;  %v8981_v44 = vcombine.low %v557_v18, %v561_v25  ;;  %v394_v8 = vld [vmem:[#allocation6 + $0x4f0] sm:$0xff]  ;;  %v601_v25 = vld [vmem:[#allocation6 + $0xb68] sm:$0xff] }
 0x176   :  { %3088 = vmatpush1.bf16.msra.mxu1 %v8941_v31  ;;  %v374_v31 = vld [vmem:[#allocation6 + $0x450] sm:$0xff] }
 0x177   :  { %3250 = vmatpush1.bf16.msra.mxu0 %v8751_v35  ;;  %3089 = vmatprep.subr.bf16.mxu1 %v8950_v36  ;;  %v378_v35 = vld [vmem:[#allocation6 + $0x470] sm:$0xff]  ;;  %v565_v36 = vld [vmem:[#allocation6 + $0xa48] sm:$0xff] }
 0x178   :  { %3251 = vmatprep.subr.bf16.mxu0 %v8760_v45  ;;  %v8791_v45 = vcombine.low %v366_v14, %v370_v17  ;;  %v8990_v46 = vcombine.high %v565_v36, %v569_v42  ;;  %v8800_v59 = vcombine.high %v374_v31, %v378_v35  ;;  %v8989_v60 = vcombine.low %v565_v36, %v569_v42  ;;  %v593_v14 = vld [vmem:[#allocation6 + $0xb28] sm:$0xff] }
 0x179   :  { %3061 = vmatmul.mubr.bf16.gmra.mrb[24].mxu1 %v11124_v20 }
 0x17a   :  { %3090 = vmatpush1.bf16.msra.mxu1 %v8949_v48  ;;  %3070 = vmatprep.mubr.bf16.mxu1 %v11129_v33  ;;  %v382_v48 = vld [vmem:[#allocation6 + $0x490] sm:$0xff] }
 0x17b   :  { %3252 = vmatpush1.bf16.msra.mxu0 %v8759_v49  ;;  %3091 = vmatprep.subr.bf16.mxu1 %v8958_v52  ;;  %v386_v49 = vld [vmem:[#allocation6 + $0x4b0] sm:$0xff]  ;;  %v573_v52 = vld [vmem:[#allocation6 + $0xa88] sm:$0xff] }
 0x17c   :  { %3253 = vmatprep.subr.bf16.mxu0 %v8768_v62  ;;  %v581_v62 = vld [vmem:[#allocation6 + $0xac8] sm:$0xff]  ;;  %v8808_v9 = vcombine.high %v382_v48, %v386_v49  ;;  %v8997_v10 = vcombine.low %v573_v52, %v577_v55 }
 0x17d   :  { %v9006_v12 = vcombine.high %v581_v62, %v585_v2  ;;  %v9005_v18 = vcombine.low %v581_v62, %v585_v2  ;;  %v426_v62 = vld [vmem:[#allocation6 + $0x5f0] sm:$0xff]  ;;  %v613_v2 = vld [vmem:[#allocation6 + $0xbc8] sm:$0xff] }
 0x17e   :  { %3092 = vmatpush1.bf16.msra.mxu1 %v8957_v5  ;;  %v8799_v5 = vcombine.low %v374_v31, %v378_v35  ;;  %v410_v31 = vld [vmem:[#allocation6 + $0x570] sm:$0xff] }
 0x17f   :  { %3254 = vmatpush1.bf16.msra.mxu0 %v8767_v6  ;;  %3093 = vmatprep.subr.bf16.mxu1 %v8966_v7  ;;  %v8998_v6 = vcombine.high %v573_v52, %v577_v55  ;;  %v390_v7 = vld [vmem:[#allocation6 + $0x4d0] sm:$0xff] }
 0x180   :  { %3255 = vmatprep.subr.bf16.mxu0 %v8776_v11  ;;  %v8807_v11 = vcombine.low %v382_v48, %v386_v49  ;;  %v8816_v17 = vcombine.high %v390_v7, %v394_v8  ;;  %v609_v48 = vld [vmem:[#allocation6 + $0xba8] sm:$0xff] }
 0x181   :  { %3071 = vmatmul.mubr.bf16.gmra.mrb[28].mxu1 %v11136_v53 }
 0x182   :  { %3094 = vmatpush1.bf16.msra.mxu1 %v8965_v13  ;;  %3113 = vmatprep.mubr.bf16.mxu1 %v11138_v1  ;;  %v398_v13 = vld [vmem:[#allocation6 + $0x510] sm:$0xff] }
 0x183   :  { %3256 = vmatpush1.bf16.msra.mxu0 %v8775_v38  ;;  %3095 = vmatprep.subr.bf16.mxu1 %v8974_v39  ;;  %v402_v38 = vld [vmem:[#allocation6 + $0x530] sm:$0xff]  ;;  %v589_v39 = vld [vmem:[#allocation6 + $0xb08] sm:$0xff] }
 0x184   :  { %3257 = vmatprep.subr.bf16.mxu0 %v8784_v24  ;;  %v597_v24 = vld [vmem:[#allocation6 + $0xb48] sm:$0xff]  ;;  %v8824_v35 = vcombine.high %v398_v13, %v402_v38  ;;  %v9013_v36 = vcombine.low %v589_v39, %v593_v14 }
 0x185   :  { %v9022_v42 = vcombine.high %v597_v24, %v601_v25  ;;  %v9021_v52 = vcombine.low %v597_v24, %v601_v25  ;;  %v11218_v24 = vld [vmem:[#allocation6 + $0x18] sm:$0xff] }
 0x186   :  { %3096 = vmatpush1.bf16.msra.mxu1 %v8973_v27  ;;  %v8815_v27 = vcombine.low %v390_v7, %v394_v8  ;;  %v11220_v25 = vld [vmem:[#allocation6 + $0x38] sm:$0xff] }
 0x187   :  { %3258 = vmatpush1.bf16.msra.mxu0 %v8783_v28  ;;  %3097 = vmatprep.subr.bf16.mxu1 %v8982_v29  ;;  %v9014_v28 = vcombine.high %v589_v39, %v593_v14  ;;  %v406_v29 = vld [vmem:[#allocation6 + $0x550] sm:$0xff] }
 0x188   :  { %3300 = vmatprep.subr.bf16.mxu0 %v8792_v41  ;;  %v8823_v41 = vcombine.low %v398_v13, %v402_v38  ;;  %v8832_v49 = vcombine.high %v406_v29, %v410_v31  ;;  %v8831_v55 = vcombine.low %v406_v29, %v410_v31  ;;  %v430_v13 = vld [vmem:[#allocation6 + $0x610] sm:$0xff] }
 0x189   :  { %v434_v38 = vld [vmem:[#allocation6 + $0x630] sm:$0xff] }
 0x18a   :  { %3260 = vmatmul.mubr.bf16.vlgmr.msra.gmra.mrb[16].mxu0 %v11098_v21  ;;  %3098 = vmatpush1.bf16.msra.mxu1 %v8981_v44  ;;  %v414_v44 = vld [vmem:[#allocation6 + $0x590] sm:$0xff]  ;;  %v8855_v31 = vcombine.low %v430_v13, %v434_v38 }
 0x18b   :  { %3301 = vmatpush1.bf16.msra.mxu0 %v8791_v45  ;;  %3099 = vmatprep.subr.bf16.mxu1 %v8990_v46  ;;  %v418_v45 = vld [vmem:[#allocation6 + $0x5b0] sm:$0xff]  ;;  %v605_v46 = vld [vmem:[#allocation6 + $0xb88] sm:$0xff] }
 0x18c   :  { %3302 = vmatprep.subr.bf16.mxu0 %v8800_v59  ;;  %3269 = vmatprep.mubr.bf16.mxu0 %v11102_v34  ;;  %v9030_v59 = vcombine.high %v605_v46, %v609_v48  ;;  %v9029_v7 = vcombine.low %v605_v46, %v609_v48  ;;  %v8839_v8 = vcombine.low %v414_v44, %v418_v45  ;;  %v454_v46 = vld [vmem:[#allocation6 + $0x6d0] sm:$0xff] }
 0x18d   :  { %v458_v48 = vld [vmem:[#allocation6 + $0x6f0] sm:$0xff] }
 0x18e   :  { %3100 = vmatpush1.bf16.msra.mxu1 %v8989_v60  ;;  %v422_v60 = vld [vmem:[#allocation6 + $0x5d0] sm:$0xff] }
 0x18f   :  { %3303 = vmatpush1.bf16.msra.mxu0 %v8799_v5  ;;  %3101 = vmatprep.subr.bf16.mxu1 %v8998_v6  ;;  %v617_v5 = vld [vmem:[#allocation6 + $0xbe8] sm:$0xff]  ;;  %v8840_v6 = vcombine.high %v414_v44, %v418_v45  ;;  %v8847_v14 = vcombine.low %v422_v60, %v426_v62 }
 0x190   :  { %3304 = vmatprep.subr.bf16.mxu0 %v8808_v9  ;;  %v9038_v9 = vcombine.high %v613_v2, %v617_v5  ;;  %v9037_v39 = vcombine.low %v613_v2, %v617_v5  ;;  %v470_v2 = vld [vmem:[#allocation6 + $0x750] sm:$0xff] }
 0x191   :  { %v474_v5 = vld [vmem:[#allocation6 + $0x770] sm:$0xff] }
 0x192   :  { %3102 = vmatpush1.bf16.msra.mxu1 %v8997_v10  ;;  %3270 = vmatmul.mubr.bf16.gmra.mrb[20].mxu0 %v11109_v50  ;;  %v8848_v10 = vcombine.high %v422_v60, %v426_v62  ;;  %v8879_v60 = vcombine.low %v454_v46, %v458_v48 }
 0x193   :  { %3305 = vmatpush1.bf16.msra.mxu0 %v8807_v11  ;;  %3103 = vmatprep.subr.bf16.mxu1 %v9006_v12  ;;  %v621_v11 = vld [vmem:[#allocation6 + $0xc08] sm:$0xff] }
 0x194   :  { %3306 = vmatprep.subr.bf16.mxu0 %v8816_v17  ;;  %3279 = vmatprep.mubr.bf16.mxu0 %v11114_v63  ;;  %v625_v12 = vld [vmem:[#allocation6 + $0xc28] sm:$0xff] }
 0x195   :  { %v9046_v17 = vcombine.high %v621_v11, %v625_v12  ;;  %v9045_v29 = vcombine.low %v621_v11, %v625_v12 }
 0x196   :  { %3104 = vmatpush1.bf16.msra.mxu1 %v9005_v18  ;;  %v8856_v18 = vcombine.high %v430_v13, %v434_v38  ;;  %v486_v38 = vld [vmem:[#allocation6 + $0x7d0] sm:$0xff] }
 0x197   :  { %3307 = vmatpush1.bf16.msra.mxu0 %v8815_v27  ;;  %3105 = vmatprep.subr.bf16.mxu1 %v9014_v28  ;;  %v438_v27 = vld [vmem:[#allocation6 + $0x650] sm:$0xff] }
 0x198   :  { %3308 = vmatprep.subr.bf16.mxu0 %v8824_v35  ;;  %v442_v28 = vld [vmem:[#allocation6 + $0x670] sm:$0xff]  ;;  %v8666_v35 = vcombine.high %v11218_v24, %v11220_v25 }
 0x199   :  { %v8863_v44 = vcombine.low %v438_v27, %v442_v28 }
 0x19a   :  { %3106 = vmatpush1.bf16.msra.mxu1 %v9013_v36  ;;  %3280 = vmatmul.mubr.bf16.gmra.mrb[24].mxu0 %v11121_v16  ;;  %v8864_v36 = vcombine.high %v438_v27, %v442_v28  ;;  %v494_v28 = vld [vmem:[#allocation6 + $0x810] sm:$0xff] }
 0x19b   :  { %3309 = vmatpush1.bf16.msra.mxu0 %v8823_v41  ;;  %3107 = vmatprep.subr.bf16.mxu1 %v9022_v42  ;;  %v446_v41 = vld [vmem:[#allocation6 + $0x690] sm:$0xff] }
 0x19c   :  { %3310 = vmatprep.subr.bf16.mxu0 %v8832_v49  ;;  %3289 = vmatprep.mubr.bf16.mxu0 %v11126_v30  ;;  %v450_v42 = vld [vmem:[#allocation6 + $0x6b0] sm:$0xff] }
 0x19d   :  { %v8872_v45 = vcombine.high %v446_v41, %v450_v42  ;;  %v8871_v49 = vcombine.low %v446_v41, %v450_v42  ;;  %v251_v41 = vld [vmem:[#allocation6 + $0x78] sm:$0xff] }
 0x19e   :  { %3108 = vmatpush1.bf16.msra.mxu1 %v9021_v52  ;;  %v8880_v52 = vcombine.high %v454_v46, %v458_v48  ;;  %v8665_v48 = vcombine.low %v11218_v24, %v11220_v25 }
 0x19f   :  { %3311 = vmatpush1.bf16.msra.mxu0 %v8831_v55  ;;  %3109 = vmatprep.subr.bf16.mxu1 %v9030_v59  ;;  %v462_v55 = vld [vmem:[#allocation6 + $0x710] sm:$0xff] }
 0x1a0   :  { %3312 = vmatprep.subr.bf16.mxu0 %v8840_v6  ;;  %v466_v59 = vld [vmem:[#allocation6 + $0x730] sm:$0xff] }
 0x1a1   :  { %v8888_v62 = vcombine.high %v462_v55, %v466_v59  ;;  %v8887_v6 = vcombine.low %v462_v55, %v466_v59 }
 0x1a2   :  { %3110 = vmatpush1.bf16.msra.mxu1 %v9029_v7  ;;  %3290 = vmatmul.mubr.bf16.gmra.mrb[28].mxu0 %v11133_v51  ;;  %v8896_v7 = vcombine.high %v470_v2, %v474_v5 }
 0x1a3   :  { %3313 = vmatpush1.bf16.msra.mxu0 %v8839_v8  ;;  %3111 = vmatprep.subr.bf16.mxu1 %v9038_v9  ;;  %v478_v8 = vld [vmem:[#allocation6 + $0x790] sm:$0xff] }
 0x1a4   :  { %3314 = vmatprep.subr.bf16.mxu0 %v8848_v10  ;;  %3332 = vmatprep.mubr.bf16.mxu0 %v11095_v0  ;;  %v482_v9 = vld [vmem:[#allocation6 + $0x7b0] sm:$0xff]  ;;  %v8895_v10 = vcombine.low %v470_v2, %v474_v5  ;;  %v259_v2 = vld [vmem:[#allocation6 + $0xb8] sm:$0xff] }
 0x1a5   :  { %v8904_v12 = vcombine.high %v478_v8, %v482_v9  ;;  %v510_v5 = vld [vmem:[#allocation6 + $0x890] sm:$0xff] }
 0x1a6   :  { %3112 = vmatpush1.bf16.msra.mxu1 %v9037_v39  ;;  %v490_v39 = vld [vmem:[#allocation6 + $0x7f0] sm:$0xff] }
 0x1a7   :  { %3315 = vmatpush1.bf16.msra.mxu0 %v8847_v14  ;;  %3154 = vmatprep.subr.bf16.mxu1 %v9046_v17  ;;  %v8912_v27 = vcombine.high %v486_v38, %v490_v39 }
 0x1a8   :  { %3316 = vmatprep.subr.bf16.mxu0 %v8856_v18  ;;  %v8903_v18 = vcombine.low %v478_v8, %v482_v9  ;;  %v263_v9 = vld [vmem:[#allocation6 + $0xd8] sm:$0xff] }
 0x1a9   :  { %3114 = vmatmul.mubr.bf16.vlgmr.msra.gmra.mrb[16].mxu1 %v11148_v40 }
 0x1aa   :  { %3155 = vmatpush1.bf16.msra.mxu1 %v9045_v29  ;;  %3123 = vmatprep.mubr.bf16.mxu1 %v11150_v43  ;;  %v498_v29 = vld [vmem:[#allocation6 + $0x830] sm:$0xff] }
 0x1ab   :  { %3317 = vmatpush1.bf16.msra.mxu0 %v8855_v31  ;;  %3519 = vmatprep.subr.bf16.mxu1 %v8666_v35  ;;  %v8911_v31 = vcombine.low %v486_v38, %v490_v39  ;;  %v8920_v35 = vcombine.high %v494_v28, %v498_v29  ;;  %v518_v38 = vld [vmem:[#allocation6 + $0x8d0] sm:$0xff] }
 0x1ac   :  { %3318 = vmatprep.subr.bf16.mxu0 %v8864_v36  ;;  %v247_v36 = vld [vmem:[#allocation6 + $0x58] sm:$0xff]  ;;  %v522_v39 = vld [vmem:[#allocation6 + $0x8f0] sm:$0xff] }
 0x1ad   :  { %v8674_v55 = vcombine.high %v247_v36, %v251_v41  ;;  %v8673_v24 = vcombine.low %v247_v36, %v251_v41  ;;  %v8944_v36 = vcombine.high %v518_v38, %v522_v39  ;;  %v271_v41 = vld [vmem:[#allocation6 + $0x118] sm:$0xff] }
 0x1af   :  { %3319 = vmatpush1.bf16.msra.mxu0 %v8863_v44  ;;  %v502_v44 = vld [vmem:[#allocation6 + $0x850] sm:$0xff] }
 0x1b0   :  { %3320 = vmatprep.subr.bf16.mxu0 %v8872_v45  ;;  %v506_v45 = vld [vmem:[#allocation6 + $0x870] sm:$0xff] }
 0x1b1   :  { %3124 = vmatmul.mubr.bf16.gmra.mrb[20].mxu1 %v11158_v61  ;;  %v8927_v25 = vcombine.low %v502_v44, %v506_v45 }
 0x1b2   :  { %3133 = vmatprep.mubr.bf16.mxu1 %v11160_v4 }
 0x1b3   :  { %3321 = vmatpush1.bf16.msra.mxu0 %v8871_v49 }
 0x1b4   :  { %3322 = vmatprep.subr.bf16.mxu0 %v8880_v52  ;;  %v8919_v52 = vcombine.low %v494_v28, %v498_v29 }
 0x1b7   :  { %3323 = vmatpush1.bf16.msra.mxu0 %v8879_v60  ;;  %v8928_v60 = vcombine.high %v502_v44, %v506_v45  ;;  %v275_v44 = vld [vmem:[#allocation6 + $0x138] sm:$0xff]  ;;  %v526_v45 = vld [vmem:[#allocation6 + $0x910] sm:$0xff] }
 0x1b8   :  { %3324 = vmatprep.subr.bf16.mxu0 %v8888_v62  ;;  %v255_v62 = vld [vmem:[#allocation6 + $0x98] sm:$0xff] }
 0x1b9   :  { %3134 = vmatmul.mubr.bf16.gmra.mrb[24].mxu1 %v11166_v15 }
 0x1ba   :  { %3143 = vmatprep.mubr.bf16.mxu1 %v11168_v19 }
 0x1bb   :  { %3325 = vmatpush1.bf16.msra.mxu0 %v8887_v6  ;;  %v514_v6 = vld [vmem:[#allocation6 + $0x8b0] sm:$0xff] }
 0x1bc   :  { %v11230_v11 = vpop.f32.mrb[0].mxu1  ;;  %3326 = vmatprep.subr.bf16.mxu0 %v8896_v7  ;;  %v8682_v7 = vcombine.high %v255_v62, %v259_v2  ;;  %v8936_v8 = vcombine.high %v510_v5, %v514_v6  ;;  %v8935_v29 = vcombine.low %v510_v5, %v514_v6  ;;  %v283_v5 = vld [vmem:[#allocation6 + $0x178] sm:$0xff] }
 0x1bd   :  { %v11232_v13 = vpop.f32.mrb[1].mxu1 }
 0x1be   :  { %v11234_v14 = vpop.f32.mrb[2].mxu1 }
 0x1bf   :  { %3327 = vmatpush1.bf16.msra.mxu0 %v8895_v10  ;;  %v11236_v17 = vpop.f32.mrb[3].mxu1  ;;  %v267_v10 = vld [vmem:[#allocation6 + $0xf8] sm:$0xff] }
 0x1c0   :  { %3328 = vmatprep.subr.bf16.mxu0 %v8904_v12 }
 0x1c1   :  { %3144 = vmatmul.mubr.bf16.gmra.mrb[28].mxu1 %v11174_v32 }
 0x1c2   :  { %3186 = vmatprep.mubr.bf16.mxu1 %v13957_v47 }
 0x1c3   :  { %3329 = vmatpush1.bf16.msra.mxu0 %v8903_v18 }
 0x1c4   :  { %3330 = vmatprep.subr.bf16.mxu0 %v8912_v27  ;;  %v11240_v42 = vpop.f32.mrb[4].mxu1  ;;  %v8681_v27 = vcombine.low %v255_v62, %v259_v2  ;;  %v279_v2 = vld [vmem:[#allocation6 + $0x158] sm:$0xff] }
 0x1c5   :  { %v11242_v46 = vpop.f32.mrb[5].mxu1 }
 0x1c6   :  { %v11246_v49 = vpop.f32.mrb[6].mxu1 }
 0x1c7   :  { %3331 = vmatpush1.bf16.msra.mxu0 %v8911_v31  ;;  %v11248_v59 = vpop.f32.mrb[7].mxu1  ;;  %v8690_v31 = vcombine.high %v263_v9, %v267_v10 }
 0x1c8   :  { %3373 = vmatprep.subr.bf16.mxu0 %v8920_v35 }
 0x1c9   :  { %9055 = vmatmul.mubr.msk.bf16.vlgmr.msra.gmra.mrb[16].mxu1 %vm14000_vm0, %v11180_v57 }
 0x1ca   :  { %3333 = vmatmul.mubr.bf16.vlgmr.msra.gmra.mrb[16].mxu0 %v11100_v26  ;;  %3520 = vmatpush1.bf16.msra.mxu1 %v8665_v48  ;;  %v530_v48 = vld [vmem:[#allocation6 + $0x930] sm:$0xff] }
 0x1cb   :  { %3374 = vmatpush1.bf16.msra.mxu0 %v8919_v52  ;;  %3521 = vmatprep.subr.bf16.mxu1 %v8674_v55  ;;  %v8689_v52 = vcombine.low %v263_v9, %v267_v10  ;;  %v8943_v55 = vcombine.low %v518_v38, %v522_v39  ;;  %v8952_v62 = vcombine.high %v526_v45, %v530_v48 }
 0x1cc   :  { %3375 = vmatprep.subr.bf16.mxu0 %v8928_v60  ;;  %3196 = vmatprep.mubr.bf16.mxu1 %v13957_v47  ;;  %v11254_v12 = vpop.f32.mrb[8].mxu1  ;;  %v8698_v60 = vcombine.high %v271_v41, %v275_v44  ;;  %v8951_v10 = vcombine.low %v526_v45, %v530_v48  ;;  %v8706_v38 = vcombine.high %v279_v2, %v283_v5 }
 0x1cd   :  { %v11256_v18 = vpop.f32.mrb[9].mxu1  ;;  %3342 = vmatprep.mubr.bf16.mxu0 %v11105_v37 }
 0x1ce   :  { %3522 = vmatpush1.bf16.msra.mxu1 %v8673_v24  ;;  %v11259_v28 = vpop.f32.mrb[10].mxu1  ;;  %v534_v24 = vld [vmem:[#allocation6 + $0x950] sm:$0xff] }
 0x1cf   :  { %3376 = vmatpush1.bf16.msra.mxu0 %v8927_v25  ;;  %3523 = vmatprep.subr.bf16.mxu1 %v8682_v7  ;;  %v11261_v35 = vpop.f32.mrb[11].mxu1  ;;  %v538_v25 = vld [vmem:[#allocation6 + $0x970] sm:$0xff] }
 0x1d0   :  { %3377 = vmatprep.subr.bf16.mxu0 %v8936_v8  ;;  %v8697_v8 = vcombine.low %v271_v41, %v275_v44  ;;  %v14120_v41 = vmov 0   ;;  %v8959_v44 = vcombine.low %v534_v24, %v538_v25 }
 0x1d1   :  { %9056 = vmatmul.mubr.msk.bf16.gmra.mrb[20].mxu1 %vm14000_vm0, %v11187_v22 }
 0x1d2   :  { %3524 = vmatpush1.bf16.msra.mxu1 %v8681_v27  ;;  %3206 = vmatprep.mubr.bf16.mxu1 %v13957_v47  ;;  %v8960_v27 = vcombine.high %v534_v24, %v538_v25  ;;  %v546_v47 = vld [vmem:[#allocation6 + $0x9b0] sm:$0xff]  ;;  %v303_v25 = vld [vmem:[#allocation6 + $0x218] sm:$0xff] }
 0x1d3   :  { %3378 = vmatpush1.bf16.msra.mxu0 %v8935_v29  ;;  %3525 = vmatprep.subr.bf16.mxu1 %v8690_v31  ;;  %v287_v29 = vld [vmem:[#allocation6 + $0x198] sm:$0xff] }
 0x1d4   :  { %3379 = vmatprep.subr.bf16.mxu0 %v8944_v36  ;;  %3343 = vmatmul.mubr.bf16.gmra.mrb[20].mxu0 %v11112_v54  ;;  %v11267_v6 = vpop.f32.mrb[12].mxu1  ;;  %v291_v31 = vld [vmem:[#allocation6 + $0x1b8] sm:$0xff]  ;;  %v542_v36 = vld [vmem:[#allocation6 + $0x990] sm:$0xff] }
 0x1d5   :  { %v11269_v7 = vpop.f32.mrb[13].mxu1  ;;  %3352 = vmatprep.mubr.bf16.mxu0 %v11117_v3  ;;  %v8714_v45 = vcombine.high %v287_v29, %v291_v31  ;;  %v8968_v48 = vcombine.high %v542_v36, %v546_v47  ;;  %v554_v3 = vld [vmem:[#allocation6 + $0x9f0] sm:$0xff]  ;;  %v8713_v54 = vcombine.low %v287_v29, %v291_v31  ;;  %v311_v31 = vld [vmem:[#allocation6 + $0x258] sm:$0xff] }
 0x1d6   :  { %3526 = vmatpush1.bf16.msra.mxu1 %v8689_v52  ;;  %v11272_v9 = vpop.f32.mrb[14].mxu1  ;;  %v8705_v52 = vcombine.low %v279_v2, %v283_v5  ;;  %v8967_v2 = vcombine.low %v542_v36, %v546_v47  ;;  %v315_v36 = vld [vmem:[#allocation6 + $0x278] sm:$0xff] }
 0x1d7   :  { %3380 = vmatpush1.bf16.msra.mxu0 %v8943_v55  ;;  %3527 = vmatprep.subr.bf16.mxu1 %v8698_v60  ;;  %v11274_v39 = vpop.f32.mrb[15].mxu1  ;;  %v295_v55 = vld [vmem:[#allocation6 + $0x1d8] sm:$0xff] }
 0x1d8   :  { %3381 = vmatprep.subr.bf16.mxu0 %v8952_v62  ;;  %v299_v60 = vld [vmem:[#allocation6 + $0x1f8] sm:$0xff]  ;;  %v550_v62 = vld [vmem:[#allocation6 + $0x9d0] sm:$0xff] }
 0x1d9   :  { %9057 = vmatmul.mubr.msk.bf16.gmra.mrb[24].mxu1 %vm14000_vm0, %v11192_v56  ;;  %v8722_v5 = vcombine.high %v295_v55, %v299_v60  ;;  %v8976_v24 = vcombine.high %v550_v62, %v554_v3 }
 0x1da   :  { %3528 = vmatpush1.bf16.msra.mxu1 %v8697_v8  ;;  %3216 = vmatprep.mubr.bf16.mxu1 %v14120_v41  ;;  %v307_v8 = vld [vmem:[#allocation6 + $0x238] sm:$0xff] }
 0x1db   :  { %3382 = vmatpush1.bf16.msra.mxu0 %v8951_v10  ;;  %3529 = vmatprep.subr.bf16.mxu1 %v8706_v38  ;;  %v558_v10 = vld [vmem:[#allocation6 + $0xa10] sm:$0xff]  ;;  %v8730_v29 = vcombine.high %v303_v25, %v307_v8 }
 0x1dc   :  { %3383 = vmatprep.subr.bf16.mxu0 %v8960_v27  ;;  %3353 = vmatmul.mubr.bf16.gmra.mrb[24].mxu0 %v11124_v20  ;;  %v562_v38 = vld [vmem:[#allocation6 + $0xa30] sm:$0xff]  ;;  %v8721_v27 = vcombine.low %v295_v55, %v299_v60  ;;  %v319_v55 = vld [vmem:[#allocation6 + $0x298] sm:$0xff] }
 0x1dd   :  { %3362 = vmatprep.mubr.bf16.mxu0 %v11129_v33  ;;  %v8984_v47 = vcombine.high %v558_v10, %v562_v38  ;;  %v323_v60 = vld [vmem:[#allocation6 + $0x2b8] sm:$0xff] }
 0x1de   :  { %3530 = vmatpush1.bf16.msra.mxu1 %v8705_v52  ;;  %v8975_v52 = vcombine.low %v550_v62, %v554_v3  ;;  %v574_v62 = vld [vmem:[#allocation6 + $0xa90] sm:$0xff] }
 0x1df   :  { %3384 = vmatpush1.bf16.msra.mxu0 %v8959_v44  ;;  %3531 = vmatprep.subr.bf16.mxu1 %v8714_v45  ;;  %v566_v44 = vld [vmem:[#allocation6 + $0xa50] sm:$0xff] }
 0x1e0   :  { %3385 = vmatprep.subr.bf16.mxu0 %v8968_v48  ;;  %v570_v45 = vld [vmem:[#allocation6 + $0xa70] sm:$0xff]  ;;  %v8729_v48 = vcombine.low %v303_v25, %v307_v8  ;;  %v331_v25 = vld [vmem:[#allocation6 + $0x2f8] sm:$0xff] }
 0x1e1   :  { %9058 = vmatmul.mubr.msk.bf16.gmra.mrb[28].mxu1 %vm14000_vm0, %v11197_v23  ;;  %v8992_v3 = vcombine.high %v566_v44, %v570_v45  ;;  %v582_v8 = vld [vmem:[#allocation6 + $0xad0] sm:$0xff] }
 0x1e2   :  { %3532 = vmatpush1.bf16.msra.mxu1 %v8713_v54  ;;  %3551 = vmatprep.mubr.bf16.mxu1 %v11092_v58  ;;  %v8983_v54 = vcombine.low %v558_v10, %v562_v38  ;;  %v8738_v58 = vcombine.high %v311_v31, %v315_v36  ;;  %v586_v10 = vld [vmem:[#allocation6 + $0xaf0] sm:$0xff]  ;;  %v8745_v38 = vcombine.low %v319_v55, %v323_v60 }
 0x1e3   :  { %3386 = vmatpush1.bf16.msra.mxu0 %v8967_v2  ;;  %3533 = vmatprep.subr.bf16.mxu1 %v8722_v5  ;;  %v578_v2 = vld [vmem:[#allocation6 + $0xab0] sm:$0xff]  ;;  %v8737_v5 = vcombine.low %v311_v31, %v315_v36  ;;  %v339_v31 = vld [vmem:[#allocation6 + $0x338] sm:$0xff] }
 0x1e4   :  { %3387 = vmatprep.subr.bf16.mxu0 %v8976_v24  ;;  %3363 = vmatmul.mubr.bf16.gmra.mrb[28].mxu0 %v11136_v53  ;;  %v8991_v24 = vcombine.low %v566_v44, %v570_v45  ;;  %v8746_v53 = vcombine.high %v319_v55, %v323_v60  ;;  %v590_v36 = vld [vmem:[#allocation6 + $0xb10] sm:$0xff]  ;;  %v347_v55 = vld [vmem:[#allocation6 + $0x378] sm:$0xff] }
 0x1e5   :  { %3405 = vmatprep.mubr.bf16.mxu0 %v11138_v1  ;;  %v9000_v1 = vcombine.high %v574_v62, %v578_v2  ;;  %v594_v44 = vld [vmem:[#allocation6 + $0xb30] sm:$0xff] }
 0x1e6   :  { %3534 = vmatpush1.bf16.msra.mxu1 %v8721_v27  ;;  %v327_v27 = vld [vmem:[#allocation6 + $0x2d8] sm:$0xff]  ;;  %v598_v60 = vld [vmem:[#allocation6 + $0xb50] sm:$0xff] }
 0x1e7   :  { %3388 = vmatpush1.bf16.msra.mxu0 %v8975_v52  ;;  %3535 = vmatprep.subr.bf16.mxu1 %v8730_v29  ;;  %v8999_v52 = vcombine.low %v574_v62, %v578_v2  ;;  %v8754_v29 = vcombine.high %v327_v27, %v331_v25  ;;  %v8753_v45 = vcombine.low %v327_v27, %v331_v25  ;;  %v602_v62 = vld [vmem:[#allocation6 + $0xb70] sm:$0xff]  ;;  %v355_v27 = vld [vmem:[#allocation6 + $0x3b8] sm:$0xff]  ;;  %v630_v25 = vlaneseq }
 0x1e8   :  { %3389 = vmatprep.subr.bf16.mxu0 %v8984_v47  ;;  %v9008_v47 = vcombine.high %v582_v8, %v586_v10 }
 0x1ea   :  { %3536 = vmatpush1.bf16.msra.mxu1 %v8729_v48  ;;  %v335_v48 = vld [vmem:[#allocation6 + $0x318] sm:$0xff] }
 0x1eb   :  { %3390 = vmatpush1.bf16.msra.mxu0 %v8983_v54  ;;  %3537 = vmatprep.subr.bf16.mxu1 %v8738_v58  ;;  %v9007_v54 = vcombine.low %v582_v8, %v586_v10  ;;  %v8762_v58 = vcombine.high %v335_v48, %v339_v31  ;;  %v606_v8 = vld [vmem:[#allocation6 + $0xb90] sm:$0xff] }
 0x1ec   :  { %3391 = vmatprep.subr.bf16.mxu0 %v8992_v3  ;;  %v9016_v3 = vcombine.high %v590_v36, %v594_v44  ;;  %v610_v10 = vld [vmem:[#allocation6 + $0xbb0] sm:$0xff] }
 0x1ed   :  { %v9031_v33 = vcombine.low %v606_v8, %v610_v10 }
 0x1ee   :  { %3538 = vmatpush1.bf16.msra.mxu1 %v8737_v5  ;;  %v343_v5 = vld [vmem:[#allocation6 + $0x358] sm:$0xff] }
 0x1ef   :  { %3392 = vmatpush1.bf16.msra.mxu0 %v8991_v24  ;;  %3539 = vmatprep.subr.bf16.mxu1 %v8746_v53  ;;  %v8761_v53 = vcombine.low %v335_v48, %v339_v31  ;;  %v8770_v2 = vcombine.high %v343_v5, %v347_v55  ;;  %v9024_v24 = vcombine.high %v598_v60, %v602_v62  ;;  %v359_v48 = vld [vmem:[#allocation6 + $0x3d8] sm:$0xff] }
 0x1f0   :  { %3393 = vmatprep.subr.bf16.mxu0 %v9000_v1  ;;  %v9015_v1 = vcombine.low %v590_v36, %v594_v44  ;;  %v363_v31 = vld [vmem:[#allocation6 + $0x3f8] sm:$0xff]  ;;  %v11286_v36 = vshrl.u32 %v630_v25, 7  ;;  %v614_v44 = vld [vmem:[#allocation6 + $0xbd0] sm:$0xff] }
 0x1f2   :  { %3540 = vmatpush1.bf16.msra.mxu1 %v8745_v38  ;;  %v351_v38 = vld [vmem:[#allocation6 + $0x398] sm:$0xff]  ;;  %14121 = vst [vmem:[#allocation35_spill] sm:$0xff] %v11286_v36 }
 0x1f3   :  { %3394 = vmatpush1.bf16.msra.mxu0 %v8999_v52  ;;  %3541 = vmatprep.subr.bf16.mxu1 %v8754_v29  ;;  %v8769_v52 = vcombine.low %v343_v5, %v347_v55  ;;  %v9023_v29 = vcombine.low %v598_v60, %v602_v62  ;;  %v8786_v5 = vcombine.high %v359_v48, %v363_v31  ;;  %v11291_v55 = vadd.s32 8, %v11286_v36  ;;  %v367_v62 = vld [vmem:[#allocation6 + $0x418] sm:$0xff] }
 0x1f4   :  { %3395 = vmatprep.subr.bf16.mxu0 %v9008_v47  ;;  %v8778_v47 = vcombine.high %v351_v38, %v355_v27 }
 0x1f5   :  { %14123 = vst [vmem:[#allocation37_spill] sm:$0xff] %v11291_v55 }
 0x1f6   :  { %3542 = vmatpush1.bf16.msra.mxu1 %v8753_v45  ;;  %v9032_v45 = vcombine.high %v606_v8, %v610_v10  ;;  %v11303_v10 = vmul.u32 1024, %v11291_v55  ;;  %v395_v55 = vld [vmem:[#allocation6 + $0x4f8] sm:$0xff] }
 0x1f7   :  { %3396 = vmatpush1.bf16.msra.mxu0 %v9007_v54  ;;  %3543 = vmatprep.subr.bf16.mxu1 %v8762_v58  ;;  %v618_v54 = vld [vmem:[#allocation6 + $0xbf0] sm:$0xff]  ;;  %v8777_v58 = vcombine.low %v351_v38, %v355_v27  ;;  %v11300_v27 = vmul.u32 1024, %v11286_v36 }
 0x1f8   :  { %3397 = vmatprep.subr.bf16.mxu0 %v9016_v3  ;;  %v11288_v3 = vand.u32 127, %v630_v25  ;;  %v9040_v60 = vcombine.high %v614_v44, %v618_v54  ;;  %v9039_v25 = vcombine.low %v614_v44, %v618_v54  ;;  %14126 = vst [vmem:[#allocation40_spill] sm:$0xff] %v11303_v10  ;;  %v11309_v44 = vstv %s4094_s15  ;;  %v383_v54 = vld [vmem:[#allocation6 + $0x498] sm:$0xff] }
 0x1f9   :  { %14125 = vst [vmem:[#allocation39_spill] sm:$0xff] %v11300_v27 }
 0x1fa   :  { %3544 = vmatpush1.bf16.msra.mxu1 %v8761_v53  ;;  %14122 = vst [vmem:[#allocation36_spill] sm:$0xff] %v11288_v3  ;;  %v371_v53 = vld [vmem:[#allocation6 + $0x438] sm:$0xff]  ;;  %v11297_v38 = vadd.s32 128, %v11288_v3 }
 0x1fb   :  { %3398 = vmatpush1.bf16.msra.mxu0 %v9015_v1  ;;  %3545 = vmatprep.subr.bf16.mxu1 %v8770_v2  ;;  %v622_v1 = vld [vmem:[#allocation6 + $0xc10] sm:$0xff]  ;;  %v8794_v8 = vcombine.high %v367_v62, %v371_v53 }
 0x1fc   :  { %3399 = vmatprep.subr.bf16.mxu0 %v9024_v24  ;;  %v626_v2 = vld [vmem:[#allocation6 + $0xc30] sm:$0xff]  ;;  %v8785_v24 = vcombine.low %v359_v48, %v363_v31  ;;  %14124 = vst [vmem:[#allocation38_spill] sm:$0xff] %v11297_v38  ;;  %v4030_v48 = vadd.s32 %v11300_v27, %v11297_v38 }
 0x1fe   :  { %3546 = vmatpush1.bf16.msra.mxu1 %v8769_v52  ;;  %v375_v52 = vld [vmem:[#allocation6 + $0x458] sm:$0xff] }
 0x1ff   :  { %3400 = vmatpush1.bf16.msra.mxu0 %v9023_v29  ;;  %3547 = vmatprep.subr.bf16.mxu1 %v8778_v47  ;;  %v379_v29 = vld [vmem:[#allocation6 + $0x478] sm:$0xff]  ;;  %v9048_v47 = vcombine.high %v622_v1, %v626_v2 }
 0x200   :  { %3401 = vmatprep.subr.bf16.mxu0 %v9032_v45  ;;  %v8793_v45 = vcombine.low %v367_v62, %v371_v53  ;;  %v8802_v31 = vcombine.high %v375_v52, %v379_v29  ;;  %v8801_v62 = vcombine.low %v375_v52, %v379_v29  ;;  %v4097_v53 = vxor.u32 %v11309_v44, %v4030_v48  ;;  %v399_v29 = vld [vmem:[#allocation6 + $0x518] sm:$0xff] }
 0x202   :  { %3548 = vmatpush1.bf16.msra.mxu1 %v8777_v58  ;;  %v387_v58 = vld [vmem:[#allocation6 + $0x4b8] sm:$0xff] }
 0x203   :  { %3402 = vmatpush1.bf16.msra.mxu0 %v9031_v33  ;;  %3549 = vmatprep.subr.bf16.mxu1 %v8786_v5  ;;  %v4038_v33 = vadd.s32 %v11303_v10, %v11297_v38  ;;  %v9047_v5 = vcombine.low %v622_v1, %v626_v2  ;;  %v4161_v1 = vshrl.u32 %v4097_v53, 16 }
 0x204   :  { %3403 = vmatprep.subr.bf16.mxu0 %v9040_v60  ;;  %v10170_v60 = vld [vmem:[#allocation9 + $0x4] ss:$16 sps:$4 sm:$0xff]  }
 0x205   :  { %v4225_v48 = vxor.u32 %v4161_v1, %v4097_v53  ;;  %v11335_v1 = vld [vmem:[#allocation6 + $0x5d8] sm:$0xff] }
 0x206   :  { %3550 = vmatpush1.bf16.msra.mxu1 %v8785_v24  ;;  %v8810_v24 = vcombine.high %v383_v54, %v387_v58 }
 0x207   :  { %3404 = vmatpush1.bf16.msra.mxu0 %v9039_v25  ;;  %3592 = vmatprep.subr.bf16.mxu1 %v8794_v8  ;;  %v4105_v25 = vxor.u32 %v11309_v44, %v4038_v33  ;;  %v391_v8 = vld [vmem:[#allocation6 + $0x4d8] sm:$0xff]  ;;  %v11321_v33 = vsub.s32 0, %v11286_v36 }
 0x208   :  { %3446 = vmatprep.subr.bf16.mxu0 %v9048_v47  ;;  %v8818_v2 = vcombine.high %v391_v8, %v395_v55  ;;  %v403_v47 = vld [vmem:[#allocation6 + $0x538] sm:$0xff] }
 0x209   :  { %3552 = vmatmul.mubr.bf16.vlgmr.msra.gmra.mrb[32].mxu1 %v11098_v21  ;;  %v8809_v21 = vcombine.low %v383_v54, %v387_v58  ;;  %v4169_v52 = vshrl.u32 %v4105_v25, 16  ;;  %14127 = vst [vmem:[#allocation41_spill] sm:$0xff] %v11321_v33  ;;  %v407_v54 = vld [vmem:[#allocation6 + $0x558] sm:$0xff] }
 0x20a   :  { %3406 = vmatmul.mubr.bf16.vlgmr.msra.gmra.mrb[16].mxu0 %v11148_v40  ;;  %3593 = vmatpush1.bf16.msra.mxu1 %v8793_v45  ;;  %v8817_v45 = vcombine.low %v391_v8, %v395_v55  ;;  %v411_v58 = vld [vmem:[#allocation6 + $0x578] sm:$0xff]  ;;  %v4289_v55 = vmul.u32 2246822507, %v4225_v48 }
 0x20b   :  { %3594 = vmatprep.subr.bf16.mxu1 %v8802_v31  ;;  %3415 = vmatprep.mubr.bf16.mxu0 %v11150_v43  ;;  %v4233_v31 = vxor.u32 %v4169_v52, %v4105_v25  ;;  %v415_v25 = vld [vmem:[#allocation6 + $0x598] sm:$0xff] }
 0x20c   :  { %3447 = vmatpush1.bf16.msra.mxu0 %v9047_v5  ;;  %3561 = vmatprep.mubr.bf16.mxu1 %v11102_v34  ;;  %v8826_v34 = vcombine.high %v399_v29, %v403_v47  ;;  %v628_v5 = vld [vmem:[#allocation8] sm:$0xff]  ;;  %v419_v8 = vld [vmem:[#allocation6 + $0x5b8] sm:$0xff]  ;;  %v4353_v52 = vshrl.u32 %v4289_v55, 13 }
 0x20d   :  { %6454 = vmatprep.subr.bf16.mxu0 %v10170_v60  ;;  %v8825_v60 = vcombine.low %v399_v29, %v403_v47  ;;  %v4297_v53 = vmul.u32 2246822507, %v4233_v31  ;;  %v8842_v29 = vcombine.high %v415_v25, %v419_v8  ;;  %v11340_v47 = vld [vmem:[#allocation6 + $0x618] sm:$0xff] }
 0x20e   :  { %3595 = vmatpush1.bf16.msra.mxu1 %v8801_v62  ;;  %v8834_v62 = vcombine.high %v407_v54, %v411_v58 }
 0x20f   :  { %3596 = vmatprep.subr.bf16.mxu1 %v8810_v24  ;;  %v11328_v24 = vrot.slane %v628_v5, %v11321_v33  ;;  %v4361_v48 = vshrl.u32 %v4297_v53, 13  ;;  %v11365_v33 = vxor.u32 %v4353_v52, %v4289_v55  ;;  %v11401_v55 = vld [vmem:[#allocation6 + $0x718] sm:$0xff] }
 0x211   :  { %3562 = vmatmul.mubr.bf16.gmra.mrb[36].mxu1 %v11109_v50  ;;  %v11325_v50 = vsub.s32 1, %v11286_v36 }
 0x212   :  { %3416 = vmatmul.mubr.bf16.gmra.mrb[20].mxu0 %v11158_v61  ;;  %3597 = vmatpush1.bf16.msra.mxu1 %v8809_v21 }
 0x213   :  { %3598 = vmatprep.subr.bf16.mxu1 %v8818_v2  ;;  %3425 = vmatprep.mubr.bf16.mxu0 %v11160_v4  ;;  %14128 = vst [vmem:[#allocation42_spill] sm:$0xff] %v11325_v50  ;;  %v11331_v21 = vrot.slane %v628_v5, %v11325_v50  ;;  %v11337_v2 = vld [vmem:[#allocation6 + $0x5f8] sm:$0xff] }
 0x214   :  { %3571 = vmatprep.mubr.bf16.mxu1 %v11114_v63  ;;  %v8833_v63 = vcombine.low %v407_v54, %v411_v58  ;;  %v8841_v54 = vcombine.low %v415_v25, %v419_v8  ;;  %v8849_v58 = vcombine.low %v11335_v1, %v11337_v2  ;;  %v8850_v5 = vcombine.high %v11335_v1, %v11337_v2  ;;  %v11361_v25 = vld [vmem:[#allocation6 + $0x698] sm:$0xff] }
 0x215   :  { %v11363_v8 = vld [vmem:[#allocation6 + $0x6b8] sm:$0xff]  ;;  %v2684_v1 = vadd.f32 %v11236_v17, %v11331_v21 }
 0x216   :  { %3599 = vmatpush1.bf16.msra.mxu1 %v8817_v45  ;;  %v11342_v45 = vld [vmem:[#allocation6 + $0x638] sm:$0xff] }
 0x217   :  { %3600 = vmatprep.subr.bf16.mxu1 %v8826_v34  ;;  %v2680_v34 = vadd.f32 %v11232_v13, %v11331_v21  ;;  %v8858_v13 = vcombine.high %v11340_v47, %v11342_v45 }
 0x219   :  { %3572 = vmatmul.mubr.bf16.gmra.mrb[40].mxu1 %v11121_v16  ;;  %v2678_v16 = vadd.f32 %v11230_v11, %v11328_v24  ;;  %v2682_v11 = vadd.f32 %v11234_v14, %v11328_v24  ;;  %v8857_v14 = vcombine.low %v11340_v47, %v11342_v45 }
 0x21a   :  { %3426 = vmatmul.mubr.bf16.gmra.mrb[24].mxu0 %v11166_v15  ;;  %3601 = vmatpush1.bf16.msra.mxu1 %v8825_v60  ;;  %v11353_v60 = vld [vmem:[#allocation6 + $0x658] sm:$0xff] }
 0x21b   :  { %3602 = vmatprep.subr.bf16.mxu1 %v8834_v62  ;;  %3435 = vmatprep.mubr.bf16.mxu0 %v11168_v19  ;;  %v11355_v62 = vld [vmem:[#allocation6 + $0x678] sm:$0xff] }
 0x21c   :  { %3581 = vmatprep.mubr.bf16.mxu1 %v11126_v30 }
 0x21d   :  { %v2896_v31 = vpop.f32.mrb[0].mxu0 }
 0x21e   :  { %v9733_v50 = vadd.f32 %v2896_v31, %v2678_v16  ;;  %v2898_v30 = vpop.f32.mrb[1].mxu0  ;;  %3603 = vmatpush1.bf16.msra.mxu1 %v8833_v63  ;;  %v11371_v16 = vxor.u32 %v4361_v48, %v4297_v53  ;;  %v4481_v53 = vmul.u32 3266489909, %v11365_v33  ;;  %v2690_v33 = vadd.f32 %v11242_v46, %v11331_v21  ;;  %v11411_v46 = vld [vmem:[#allocation6 + $0x778] sm:$0xff] }
 0x21f   :  { %v9735_v2 = vadd.f32 %v2898_v30, %v2680_v34  ;;  %v2900_v19 = vpop.f32.mrb[2].mxu0  ;;  %3604 = vmatprep.subr.bf16.mxu1 %v8842_v29  ;;  %v11379_v34 = vld [vmem:[#allocation6 + $0x6d8] sm:$0xff] }
 0x220   :  { %v3875_v63 = vmul.f32 0.2, %v9733_v50  ;;  %v9737_v31 = vadd.f32 %v2900_v19, %v2682_v11  ;;  %v2902_v15 = vpop.f32.mrb[3].mxu0  ;;  %vm3811_vm1 = vcmp.ge.f32.partialorder %v9733_v50, 0.0  ;;  %v11381_v30 = vld [vmem:[#allocation6 + $0x6f8] sm:$0xff] }
 0x221   :  { %v3876_v52 = vmul.f32 0.2, %v9735_v2  ;;  %v9739_v17 = vadd.f32 %v2902_v15, %v2684_v1  ;;  %3582 = vmatmul.mubr.bf16.gmra.mrb[44].mxu1 %v11133_v51  ;;  %vm3812_vm2 = vcmp.ge.f32.partialorder %v9735_v2, 0.0  ;;  %v4489_v11 = vmul.u32 3266489909, %v11371_v16 }
 0x222   :  { %vm3819_vm3 = vcmp.ge.f32.partialorder %v9737_v31, 0.0  ;;  %v3883_v19 = vmul.f32 0.2, %v9737_v31  ;;  %3436 = vmatmul.mubr.bf16.gmra.mrb[28].mxu0 %v11174_v32  ;;  %3605 = vmatpush1.bf16.msra.mxu1 %v8841_v54  ;;  %v2688_v51 = vadd.f32 %v11240_v42, %v11328_v24  ;;  %v3939_v1 = vsel %vm3811_vm1, %v9733_v50, %v3875_v63  ;;  %v11403_v42 = vld [vmem:[#allocation6 + $0x738] sm:$0xff] }
 0x223   :  { %vm3820_vm4 = vcmp.ge.f32.partialorder %v9739_v17, 0.0  ;;  %v3884_v48 = vmul.f32 0.2, %v9739_v17  ;;  %3606 = vmatprep.subr.bf16.mxu1 %v8850_v5  ;;  %3478 = vmatprep.mubr.bf16.mxu0 %v14120_v41  ;;  %v3940_v5 = vsel %vm3812_vm2, %v9735_v2, %v3876_v52  ;;  %v2692_v50 = vadd.f32 %v11246_v49, %v11328_v24 }
 0x224   :  { %v3947_v29 = vsel %vm3819_vm3, %v9737_v31, %v3883_v19  ;;  %3624 = vmatprep.mubr.bf16.mxu1 %v11095_v0  ;;  %v11409_v19 = vld [vmem:[#allocation6 + $0x758] sm:$0xff]  ;;  %v4545_v2 = vshrl.u32 %v4481_v53, 16  ;;  %v2694_v52 = vadd.f32 %v11248_v59, %v11331_v21  ;;  %v8881_v49 = vcombine.low %v11379_v34, %v11381_v30 }
 0x225   :  { %v11399_v4 = vpack.c.bf16 %v3947_v29, %v3939_v1  ;;  %v3948_v15 = vsel %vm3820_vm4, %v9739_v17, %v3884_v48  ;;  %v2906_v16 = vpop.f32.mrb[4].mxu0  ;;  %v10168_v48 = vld [vmem:[#allocation9] ss:$16 sps:$4 sm:$0xff]   ;;  %v2698_v54 = vadd.f32 %v11254_v12, %v11328_v24 }
 0x226   :  { %v11407_v63 = vpack.c.bf16 %v3948_v15, %v3940_v5  ;;  %v9741_v31 = vadd.f32 %v2906_v16, %v2688_v51  ;;  %v2908_v0 = vpop.f32.mrb[5].mxu0  ;;  %3607 = vmatpush1.bf16.msra.mxu1 %v8849_v58  ;;  %v4553_v15 = vshrl.u32 %v4489_v11, 16  ;;  %v10173_v58 = vld [vmem:[#allocation9 + $0x24] ss:$16 sps:$4 sm:$0xff]   ;;  %v10171_v16 = vld [vmem:[#allocation9 + $0x20] ss:$16 sps:$4 sm:$0xff]  }
 0x227   :  { %v9743_v17 = vadd.f32 %v2908_v0, %v2690_v33  ;;  %v2910_v29 = vpop.f32.mrb[6].mxu0  ;;  %3608 = vmatprep.subr.bf16.mxu1 %v8858_v13  ;;  %v11436_v13 = vadd.s32 16, %v11286_v36  ;;  %v11450_v12 = vld [vmem:[#allocation6 + $0x7b8] sm:$0xff] }
 0x228   :  { %14129 = vst [vmem:[#allocation43_spill] sm:$0xff] %v11407_v63  ;;  %v3891_v1 = vmul.f32 0.2, %v9741_v31  ;;  %v9745_v51 = vadd.f32 %v2910_v29, %v2692_v50  ;;  %v2912_v5 = vpop.f32.mrb[7].mxu0  ;;  %vm3827_vm5 = vcmp.ge.f32.partialorder %v9741_v31, 0.0  ;;  %v11428_v50 = vxor.u32 %v4545_v2, %v4481_v53 }
 0x229   :  { %v3892_v59 = vmul.f32 0.2, %v9743_v17  ;;  %v9747_v33 = vadd.f32 %v2912_v5, %v2694_v52  ;;  %vm3828_vm6 = vcmp.ge.f32.partialorder %v9743_v17, 0.0  ;;  %v14130_v52 = vcombine.high %v11353_v60, %v11355_v62  ;;  %14131 = vst [vmem:[#allocation44_spill] sm:$0xff] %v11436_v13 }
 0x22a   :  { %vm3835_vm7 = vcmp.ge.f32.partialorder %v9745_v51, 0.0  ;;  %v3899_v0 = vmul.f32 0.2, %v9745_v51  ;;  %9059 = vmatmul.mubr.msk.bf16.vlgmr.msra.gmra.mrb[16].mxu0 %vm14000_vm0, %v11180_v57  ;;  %3609 = vmatpush1.bf16.msra.mxu1 %v8857_v14  ;;  %v11433_v5 = vxor.u32 %v4553_v15, %v4489_v11  ;;  %v3955_v47 = vsel %vm3827_vm5, %v9741_v31, %v3891_v1  ;;  %v10176_v14 = vld [vmem:[#allocation9 + $0x44] ss:$16 sps:$4 sm:$0xff]  }
 0x22b   :  { %vm3836_vm8 = vcmp.ge.f32.partialorder %v9747_v33, 0.0  ;;  %v3900_v29 = vmul.f32 0.2, %v9747_v33  ;;  %6455 = vmatpush1.bf16.msra.mxu0 %v10168_v48  ;;  %3610 = vmatprep.subr.bf16.mxu1 %v14130_v52  ;;  %v2700_v53 = vadd.f32 %v11256_v18, %v11331_v21  ;;  %v3956_v2 = vsel %vm3828_vm6, %v9743_v17, %v3892_v59  ;;  %v11448_v52 = vld [vmem:[#allocation6 + $0x798] sm:$0xff] }
 0x22c   :  { %v3963_v45 = vsel %vm3835_vm7, %v9745_v51, %v3899_v0  ;;  %6456 = vmatprep.subr.bf16.mxu0 %v10173_v58  ;;  %3488 = vmatprep.mubr.bf16.mxu0 %v14120_v41  ;;  %v2702_v31 = vadd.f32 %v11259_v28, %v11328_v24  ;;  %v14132_v18 = vcombine.low %v11353_v60, %v11355_v62 }
 0x22d   :  { %v11445_v11 = vpack.c.bf16 %v3963_v45, %v3955_v47  ;;  %v3964_v48 = vsel %vm3836_vm8, %v9747_v33, %v3900_v29  ;;  %v2916_v15 = vpop.f32.mrb[8].mxu0  ;;  %v2704_v59 = vadd.f32 %v11261_v35, %v11331_v21  ;;  %v10174_v29 = vld [vmem:[#allocation9 + $0x40] ss:$16 sps:$4 sm:$0xff]   ;;  %v14133_v28 = vcombine.high %v11361_v25, %v11363_v8 }
 0x22e   :  { %v11454_v1 = vpack.c.bf16 %v3964_v48, %v3956_v2  ;;  %v9749_v51 = vadd.f32 %v2916_v15, %v2698_v54  ;;  %v2918_v58 = vpop.f32.mrb[9].mxu0  ;;  %3611 = vmatpush1.bf16.msra.mxu1 %v14132_v18  ;;  %v4673_v54 = vand.u32 8388607, %v11428_v50  ;;  %v11468_v47 = vmul.u32 1024, %v11436_v13  ;;  %v10179_v2 = vld [vmem:[#allocation9 + $0x64] ss:$16 sps:$4 sm:$0xff]  }
 0x22f   :  { %6457 = vmatpush1.bf16.msra.mxu0 %v10171_v16  ;;  %v9751_v33 = vadd.f32 %v2918_v58, %v2700_v53  ;;  %v2920_v0 = vpop.f32.mrb[10].mxu0  ;;  %3612 = vmatprep.subr.bf16.mxu1 %v14133_v28  ;;  %v11473_v16 = vadd.s32 24, %v11286_v36  ;;  %v4681_v15 = vand.u32 8388607, %v11433_v5  ;;  %v10177_v18 = vld [vmem:[#allocation9 + $0x60] ss:$16 sps:$4 sm:$0xff]   ;;  %v14137_v5 = vcombine.high %v11379_v34, %v11381_v30 }
 0x230   :  { %14134 = vst [vmem:[#allocation45_spill] sm:$0xff] %v11468_v47  ;;  %v3907_v60 = vmul.f32 0.2, %v9749_v51  ;;  %v9753_v62 = vadd.f32 %v2920_v0, %v2702_v31  ;;  %v2922_v45 = vpop.f32.mrb[11].mxu0  ;;  %6458 = vmatprep.subr.bf16.mxu0 %v10176_v14  ;;  %vm3843_vm9 = vcmp.ge.f32.partialorder %v9749_v51, 0.0  ;;  %v14136_v14 = vcombine.low %v11361_v25, %v11363_v8 }
 0x231   :  { %14135 = vst [vmem:[#allocation46_spill] sm:$0xff] %v11473_v16  ;;  %v3908_v53 = vmul.f32 0.2, %v9751_v33  ;;  %v9755_v48 = vadd.f32 %v2922_v45, %v2704_v59  ;;  %vm3844_vm10 = vcmp.ge.f32.partialorder %v9751_v33, 0.0  ;;  %v4029_v31 = vadd.s32 %v11300_v27, %v11288_v3  ;;  %v10195_v13 = vld [vmem:[#allocation9 + $0x120] ss:$16 sps:$4 sm:$0xff]  }
 0x232   :  { %vm3851_vm11 = vcmp.ge.f32.partialorder %v9753_v62, 0.0  ;;  %v3915_v50 = vmul.f32 0.2, %v9753_v62  ;;  %9060 = vmatmul.mubr.msk.bf16.gmra.mrb[20].mxu0 %vm14000_vm0, %v11187_v22  ;;  %3613 = vmatpush1.bf16.msra.mxu1 %v14136_v14  ;;  %v4037_v59 = vadd.s32 %v11303_v10, %v11288_v3  ;;  %v4046_v0 = vadd.s32 %v11468_v47, %v11297_v38 }
 0x233   :  { %vm3852_vm12 = vcmp.ge.f32.partialorder %v9755_v48, 0.0  ;;  %v3916_v58 = vmul.f32 0.2, %v9755_v48  ;;  %6459 = vmatpush1.bf16.msra.mxu0 %v10174_v29  ;;  %3614 = vmatprep.subr.bf16.mxu1 %v14137_v5  ;;  %v2708_v25 = vadd.f32 %v11267_v6, %v11328_v24  ;;  %v3971_v8 = vsel %vm3843_vm9, %v9749_v51, %v3907_v60  ;;  %v10182_v29 = vld [vmem:[#allocation9 + $0x84] ss:$16 sps:$4 sm:$0xff]  }
 0x234   :  { %v3979_v28 = vsel %vm3851_vm11, %v9753_v62, %v3915_v50  ;;  %6460 = vmatprep.subr.bf16.mxu0 %v10179_v2  ;;  %3498 = vmatprep.mubr.bf16.mxu0 %v14120_v41  ;;  %v11495_v45 = vmul.u32 1024, %v11473_v16  ;;  %v2710_v14 = vadd.f32 %v11269_v7, %v11331_v21  ;;  %v3972_v5 = vsel %vm3844_vm10, %v9751_v33, %v3908_v53  ;;  %v10180_v50 = vld [vmem:[#allocation9 + $0x80] ss:$16 sps:$4 sm:$0xff]  }
 0x235   :  { %v11500_v35 = vpack.c.bf16 %v3979_v28, %v3971_v8  ;;  %v3980_v17 = vsel %vm3852_vm12, %v9755_v48, %v3916_v58  ;;  %v2926_v6 = vpop.f32.mrb[12].mxu0  ;;  %v2712_v51 = vadd.f32 %v11272_v9, %v11328_v24  ;;  %v4096_v7 = vxor.u32 %v11309_v44, %v4029_v31  ;;  %v10183_v8 = vld [vmem:[#allocation9 + $0xa0] ss:$16 sps:$4 sm:$0xff]  }
 0x236   :  { %14138 = vst [vmem:[#allocation47_spill] sm:$0xff] %v11495_v45  ;;  %v11505_v60 = vpack.c.bf16 %v3980_v17, %v3972_v5  ;;  %v9757_v62 = vadd.f32 %v2926_v6, %v2708_v25  ;;  %v2928_v2 = vpop.f32.mrb[13].mxu0  ;;  %3615 = vmatpush1.bf16.msra.mxu1 %v8881_v49  ;;  %v2714_v33 = vadd.f32 %v11274_v39, %v11331_v21  ;;  %vm11516_vm13 = vcmp.ge.s32.totalorder %v4673_v54, 2516582  ;;  %v10185_v39 = vld [vmem:[#allocation9 + $0xa4] ss:$16 sps:$4 sm:$0xff]  }
 0x237   :  { %14139 = vst [vmem:[#allocation48_spill] sm:$0xff] %v11500_v35  ;;  %6461 = vmatpush1.bf16.msra.mxu0 %v10177_v18  ;;  %v9759_v53 = vadd.f32 %v2928_v2, %v2710_v14  ;;  %v2930_v48 = vpop.f32.mrb[14].mxu0  ;;  %v14140_v9 = vcombine.high %v11401_v55, %v11403_v42  ;;  %v14141_v24 = vmov 0  ;;  %v11521_v34 = vxor.u32 %v11309_v44, %v4037_v59 }
 0x238   :  { %v14142_v24 = vsel %vm11516_vm13, 4294967295, %v14141_v24  ;;  %v3923_v30 = vmul.f32 0.2, %v9757_v62  ;;  %v9761_v49 = vadd.f32 %v2930_v48, %v2712_v51  ;;  %v2932_v17 = vpop.f32.mrb[15].mxu0  ;;  %6462 = vmatprep.subr.bf16.mxu0 %v10182_v29  ;;  %v4054_v21 = vadd.s32 %v11495_v45, %v11297_v38 }
 0x239   :  { %3616 = vmatprep.subr.bf16.mxu1 %v14140_v9  ;;  %14143 = vst [vmem:[#allocation49_spill] sm:$0xff] %v14142_v24  ;;  %v11526_v31 = vadd.s32 32, %v11286_v36  ;;  %vm3859_vm14 = vcmp.ge.f32.partialorder %v9757_v62, 0.0  ;;  %v3924_v58 = vmul.f32 0.2, %v9759_v53  ;;  %v9763_v54 = vadd.f32 %v2932_v17, %v2714_v33  ;;  %v491_v9 = vld [vmem:[#allocation6 + $0x7f8] sm:$0xff] }
 0x23a   :  { %v11529_v18 = vadd.s32 40, %v11286_v36  ;;  %vm3860_vm15 = vcmp.ge.f32.partialorder %v9759_v53, 0.0  ;;  %vm3867_vm1 = vcmp.ge.f32.partialorder %v9761_v49, 0.0  ;;  %v3931_v59 = vmul.f32 0.2, %v9761_v49  ;;  %9061 = vmatmul.mubr.msk.bf16.gmra.mrb[24].mxu0 %vm14000_vm0, %v11192_v56 }
 0x23b   :  { %14144 = vst [vmem:[#allocation50_spill] sm:$0xff] %v11526_v31  ;;  %v14146_v25 = vcombine.low %v11401_v55, %v11403_v42  ;;  %v4113_v28 = vxor.u32 %v11309_v44, %v4046_v0  ;;  %vm3868_vm2 = vcmp.ge.f32.partialorder %v9763_v54, 0.0  ;;  %v3932_v29 = vmul.f32 0.2, %v9763_v54  ;;  %6463 = vmatpush1.bf16.msra.mxu0 %v10180_v50  ;;  %3508 = vmatprep.mubr.bf16.mxu0 %v14120_v41  ;;  %v10188_v55 = vld [vmem:[#allocation9 + $0xc4] ss:$16 sps:$4 sm:$0xff]  }
 0x23c   :  { %14145 = vst [vmem:[#allocation51_spill] sm:$0xff] %v11529_v18  ;;  %v14147_v14 = vcombine.high %v11409_v19, %v11411_v46  ;;  %vm11540_vm3 = vcmp.ge.s32.totalorder %v4681_v15, 2516582  ;;  %v14148_v5 = vmov 0  ;;  %v4160_v6 = vshrl.u32 %v4096_v7, 16  ;;  %6464 = vmatprep.subr.bf16.mxu0 %v10185_v39  ;;  %v487_v50 = vld [vmem:[#allocation6 + $0x7d8] sm:$0xff] }
 0x23d   :  { %3617 = vmatpush1.bf16.msra.mxu1 %v14146_v25  ;;  %v14149_v5 = vsel %vm11540_vm3, 4294967295, %v14148_v5  ;;  %v3987_v51 = vsel %vm3859_vm14, %v9757_v62, %v3923_v30  ;;  %v3995_v2 = vsel %vm3867_vm1, %v9761_v49, %v3931_v59  ;;  %v4121_v42 = vxor.u32 %v11309_v44, %v4054_v21  ;;  %v10186_v21 = vld [vmem:[#allocation9 + $0xc0] ss:$16 sps:$4 sm:$0xff]   ;;  %vm13999_vm4 = vmpackc.low %vm11540_vm3, %vm11516_vm13  ;;  %v10206_v56 = vld [vmem:[#allocation9 + $0x184] ss:$16 sps:$4 sm:$0xff]  }
 0x23e   :  { %3618 = vmatprep.subr.bf16.mxu1 %v14147_v14  ;;  %14150 = vst [vmem:[#allocation52_spill] sm:$0xff] %v14149_v5  ;;  %v11548_v0 = vmul.u32 1024, %v11526_v31  ;;  %v3988_v33 = vsel %vm3860_vm15, %v9759_v53, %v3924_v58  ;;  %v11551_v48 = vpack.c.bf16 %v3995_v2, %v3987_v51  ;;  %v3996_v15 = vsel %vm3868_vm2, %v9763_v54, %v3932_v29  ;;  %v10191_v54 = vld [vmem:[#allocation9 + $0xe4] ss:$16 sps:$4 sm:$0xff]  }
 0x23f   :  { %v11554_v17 = vmul.u32 1024, %v11529_v18  ;;  %v11556_v62 = vpack.c.bf16 %v3996_v15, %v3988_v33  ;;  %v14154_v30 = vcombine.low %v11409_v19, %v11411_v46  ;;  %v8905_v49 = vcombine.low %v11448_v52, %v11450_v12  ;;  %6465 = vmatpush1.bf16.msra.mxu0 %v10183_v8  ;;  %v495_v25 = vld [vmem:[#allocation6 + $0x818] sm:$0xff] }
 0x240   :  { %14151 = vst [vmem:[#allocation53_spill] sm:$0xff] %v11548_v0  ;;  %v4168_v39 = vshrl.u32 %v11521_v34, 16  ;;  %v4177_v53 = vshrl.u32 %v4113_v28, 16  ;;  %v14155_v58 = vcombine.high %v11448_v52, %v11450_v12  ;;  %v4045_v59 = vadd.s32 %v11468_v47, %v11288_v3  ;;  %6466 = vmatprep.subr.bf16.mxu0 %v10188_v55  ;;  %v499_v8 = vld [vmem:[#allocation6 + $0x838] sm:$0xff] }
 0x241   :  { %14152 = vst [vmem:[#allocation54_spill] sm:$0xff] %v11554_v17  ;;  %14153 = vst [vmem:[#allocation55_spill] sm:$0xff] %v11556_v62  ;;  %3619 = vmatpush1.bf16.msra.mxu1 %v14154_v30  ;;  %v4053_v19 = vadd.s32 %v11495_v45, %v11288_v3  ;;  %v8914_v46 = vcombine.high %v487_v50, %v491_v9  ;;  %v11575_v29 = vxor.u32 %v4160_v6, %v4096_v7  ;;  %v10189_v33 = vld [vmem:[#allocation9 + $0xe0] ss:$16 sps:$4 sm:$0xff]  }
 0x242   :  { %3620 = vmatprep.subr.bf16.mxu1 %v14155_v58  ;;  %v4185_v52 = vshrl.u32 %v4121_v42, 16  ;;  %v4062_v12 = vadd.s32 %v11548_v0, %v11297_v38  ;;  %v4070_v14 = vadd.s32 %v11554_v17, %v11297_v38  ;;  %v11582_v51 = vadd.s32 48, %v11286_v36  ;;  %9062 = vmatmul.mubr.msk.bf16.gmra.mrb[28].mxu0 %vm14000_vm0, %v11197_v23 }
 0x243   :  { %v11585_v2 = vadd.s32 56, %v11286_v36  ;;  %v8913_v55 = vcombine.low %v487_v50, %v491_v9  ;;  %v11590_v7 = vxor.u32 %v4168_v39, %v11521_v34  ;;  %v11592_v6 = vxor.u32 %v4177_v53, %v4113_v28  ;;  %6467 = vmatpush1.bf16.msra.mxu0 %v10186_v21  ;;  %9325 = vmatprep.mubr.msk.bf16.mxu0 %vm13999_vm4, %v11407_v63  ;;  %v10194_v34 = vld [vmem:[#allocation9 + $0x104] ss:$16 sps:$4 sm:$0xff]  }
 0x244   :  { %14156 = vst [vmem:[#allocation56_spill] sm:$0xff] %v11582_v51  ;;  %v8922_v15 = vcombine.high %v495_v25, %v499_v8  ;;  %v4112_v30 = vxor.u32 %v11309_v44, %v4045_v59  ;;  %6468 = vmatprep.subr.bf16.mxu0 %v10191_v54  ;;  %v503_v50 = vld [vmem:[#allocation6 + $0x858] sm:$0xff]  ;;  %v4288_v9 = vmul.u32 2246822507, %v11575_v29  ;;  %v11603_v39 = vxor.u32 %v4185_v52, %v4121_v42 }
 0x245   :  { %14157 = vst [vmem:[#allocation57_spill] sm:$0xff] %v11585_v2  ;;  %3621 = vmatpush1.bf16.msra.mxu1 %v8905_v49  ;;  %v4120_v49 = vxor.u32 %v11309_v44, %v4053_v19  ;;  %v507_v28 = vld [vmem:[#allocation6 + $0x878] sm:$0xff]  ;;  %v4129_v53 = vxor.u32 %v11309_v44, %v4062_v12  ;;  %v4137_v21 = vxor.u32 %v11309_v44, %v4070_v14  ;;  %v11608_v58 = vmul.u32 1024, %v11582_v51 }
 0x246   :  { %3622 = vmatprep.subr.bf16.mxu1 %v8914_v46  ;;  %v11611_v59 = vmul.u32 1024, %v11585_v2  ;;  %v8921_v54 = vcombine.low %v495_v25, %v499_v8  ;;  %v4296_v19 = vmul.u32 2246822507, %v11590_v7  ;;  %v10192_v29 = vld [vmem:[#allocation9 + $0x100] ss:$16 sps:$4 sm:$0xff]   ;;  %v8930_v42 = vcombine.high %v503_v50, %v507_v28 }
 0x247   :  { %v4305_v46 = vmul.u32 2246822507, %v11592_v6  ;;  %6469 = vmatpush1.bf16.msra.mxu0 %v10189_v33  ;;  %v11615_v52 = vld [vmem:[#allocation6 + $0x898] sm:$0xff]  ;;  %v4176_v14 = vshrl.u32 %v4112_v30, 16  ;;  %v4184_v51 = vshrl.u32 %v4120_v49, 16  ;;  %v4061_v2 = vadd.s32 %v11548_v0, %v11288_v3 }
 0x248   :  { %v11617_v12 = vld [vmem:[#allocation6 + $0x8b8] sm:$0xff]  ;;  %6470 = vmatprep.subr.bf16.mxu0 %v10194_v34  ;;  %v8929_v25 = vcombine.low %v503_v50, %v507_v28  ;;  %v4313_v8 = vmul.u32 2246822507, %v11603_v39  ;;  %v4193_v7 = vshrl.u32 %v4129_v53, 16  ;;  %v4069_v6 = vadd.s32 %v11554_v17, %v11288_v3 }
 0x249   :  { %3623 = vmatpush1.bf16.msra.mxu1 %v8913_v55  ;;  %v10197_v55 = vld [vmem:[#allocation9 + $0x124] ss:$16 sps:$4 sm:$0xff]   ;;  %v4352_v18 = vshrl.u32 %v4288_v9, 13  ;;  %v4201_v31 = vshrl.u32 %v4137_v21, 16  ;;  %v4078_v16 = vadd.s32 %v11608_v58, %v11297_v38  ;;  %v4086_v34 = vadd.s32 %v11611_v59, %v11297_v38 }
 0x24a   :  { %3665 = vmatprep.subr.bf16.mxu1 %v8922_v15  ;;  %v11625_v33 = vld [vmem:[#allocation6 + $0x8d8] sm:$0xff]  ;;  %v8937_v50 = vcombine.low %v11615_v52, %v11617_v12  ;;  %v8938_v28 = vcombine.high %v11615_v52, %v11617_v12  ;;  %v4369_v39 = vshrl.u32 %v4305_v46, 13  ;;  %v11638_v24 = vxor.u32 %v4176_v14, %v4112_v30 }
 0x24b   :  { %v11627_v15 = vld [vmem:[#allocation6 + $0x8f8] sm:$0xff]  ;;  %6471 = vmatpush1.bf16.msra.mxu0 %v10192_v29  ;;  %v11640_v5 = vxor.u32 %v4184_v51, %v4120_v49  ;;  %v4128_v38 = vxor.u32 %v11309_v44, %v4061_v2  ;;  %v4377_v23 = vshrl.u32 %v4313_v8, 13  ;;  %v11645_v52 = vxor.u32 %v4193_v7, %v4129_v53 }
 0x24c   :  { %3625 = vmatmul.mubr.bf16.vlgmr.msra.gmra.mrb[32].mxu1 %v11100_v26  ;;  %v4360_v26 = vshrl.u32 %v4296_v19, 13  ;;  %6472 = vmatprep.subr.bf16.mxu0 %v10197_v55  ;;  %v8945_v63 = vcombine.low %v11625_v33, %v11627_v15  ;;  %v4136_v12 = vxor.u32 %v11309_v44, %v4069_v6  ;;  %v11650_v29 = vld [vmem:[#allocation6 + $0x938] sm:$0xff]  ;;  %v11652_v30 = vxor.u32 %v4352_v18, %v4288_v9 }
 0x24d   :  { %3666 = vmatpush1.bf16.msra.mxu1 %v8921_v54  ;;  %3634 = vmatprep.mubr.bf16.mxu1 %v11105_v37  ;;  %v10200_v54 = vld [vmem:[#allocation9 + $0x144] ss:$16 sps:$4 sm:$0xff]   ;;  %v11654_v51 = vxor.u32 %v4201_v31, %v4137_v21  ;;  %v4145_v2 = vxor.u32 %v11309_v44, %v4078_v16  ;;  %v4153_v49 = vxor.u32 %v11309_v44, %v4086_v34  ;;  %v4304_v31 = vmul.u32 2246822507, %v11638_v24 }
 0x24e   :  { %3667 = vmatprep.subr.bf16.mxu1 %v8930_v42  ;;  %v11648_v37 = vld [vmem:[#allocation6 + $0x918] sm:$0xff]  ;;  %v8946_v53 = vcombine.high %v11625_v33, %v11627_v15  ;;  %v11660_v55 = vxor.u32 %v4360_v26, %v4296_v19  ;;  %v11662_v7 = vxor.u32 %v4369_v39, %v4305_v46  ;;  %v4077_v18 = vadd.s32 %v11608_v58, %v11288_v3 }
 0x24f   :  { %v10198_v42 = vld [vmem:[#allocation9 + $0x140] ss:$16 sps:$4 sm:$0xff]   ;;  %v10203_v14 = vld [vmem:[#allocation9 + $0x164] ss:$16 sps:$4 sm:$0xff]   ;;  %6473 = vmatpush1.bf16.msra.mxu0 %v10195_v13  ;;  %v4312_v16 = vmul.u32 2246822507, %v11640_v5  ;;  %v4085_v21 = vadd.s32 %v11611_v59, %v11288_v3  ;;  %v8953_v19 = vcombine.low %v11648_v37, %v11650_v29  ;;  %v11676_v6 = vxor.u32 %v4377_v23, %v4313_v8 }
 0x250   :  { %v4192_v9 = vshrl.u32 %v4128_v38, 16  ;;  %6474 = vmatprep.subr.bf16.mxu0 %v10200_v54  ;;  %v11674_v46 = vld [vmem:[#allocation6 + $0x978] sm:$0xff]  ;;  %v4321_v13 = vmul.u32 2246822507, %v11645_v52  ;;  %v4200_v33 = vshrl.u32 %v4136_v12, 16  ;;  %v14158_v5 = vld [vmem:[#allocation23_spill] sm:$0xff]  ;;  %v8954_v26 = vcombine.high %v11648_v37, %v11650_v29 }
 0x251   :  { %3668 = vmatpush1.bf16.msra.mxu1 %v8929_v25  ;;  %v11672_v25 = vld [vmem:[#allocation6 + $0x958] sm:$0xff]  ;;  %v4480_v24 = vmul.u32 3266489909, %v11652_v30  ;;  %v4329_v15 = vmul.u32 2246822507, %v11654_v51  ;;  %v4209_v34 = vshrl.u32 %v4145_v2, 16  ;;  %v4144_v54 = vxor.u32 %v11309_v44, %v4077_v18 }
 0x252   :  { %3669 = vmatprep.subr.bf16.mxu1 %v8938_v28  ;;  %v4217_v28 = vshrl.u32 %v4153_v49, 16  ;;  %v4488_v39 = vmul.u32 3266489909, %v11660_v55  ;;  %v4497_v23 = vmul.u32 3266489909, %v11662_v7  ;;  %v14159_v8 = vld [vmem:[#allocation24_spill] sm:$0xff]  ;;  %v11688_v51 = vxor.u32 %v4192_v9, %v4128_v38 }
 0x253   :  { %6475 = vmatpush1.bf16.msra.mxu0 %v10198_v42  ;;  %v10201_v52 = vld [vmem:[#allocation9 + $0x160] ss:$16 sps:$4 sm:$0xff]   ;;  %v4368_v30 = vshrl.u32 %v4304_v31, 13  ;;  %v8961_v37 = vcombine.low %v11672_v25, %v11674_v46  ;;  %v4505_v29 = vmul.u32 3266489909, %v11676_v6  ;;  %v4385_v55 = vshrl.u32 %v4321_v13, 13 }
 0x254   :  { %3635 = vmatmul.mubr.bf16.gmra.mrb[36].mxu1 %v14158_v5  ;;  %v4376_v5 = vshrl.u32 %v4312_v16, 13  ;;  %6476 = vmatprep.subr.bf16.mxu0 %v10203_v14  ;;  %v11694_v7 = vxor.u32 %v4200_v33, %v4136_v12  ;;  %v11696_v18 = vld [vmem:[#allocation6 + $0x998] sm:$0xff]  ;;  %v11700_v38 = vxor.u32 %v4209_v34, %v4145_v2  ;;  %v11702_v9 = vxor.u32 %v4217_v28, %v4153_v49 }
 0x255   :  { %3670 = vmatpush1.bf16.msra.mxu1 %v8937_v50  ;;  %3644 = vmatprep.mubr.bf16.mxu1 %v14159_v8  ;;  %v4152_v50 = vxor.u32 %v11309_v44, %v4085_v21  ;;  %v11698_v42 = vld [vmem:[#allocation6 + $0x9b8] sm:$0xff]  ;;  %v4393_v8 = vshrl.u32 %v4329_v15, 13  ;;  %v8962_v14 = vcombine.high %v11672_v25, %v11674_v46  ;;  %v4552_v21 = vshrl.u32 %v4488_v39, 16 }
 0x256   :  { %3671 = vmatprep.subr.bf16.mxu1 %v8946_v53  ;;  %v4544_v53 = vshrl.u32 %v4480_v24, 16  ;;  %v4561_v22 = vshrl.u32 %v4497_v23, 16  ;;  %v4208_v6 = vshrl.u32 %v4144_v54, 16  ;;  %v10204_v12 = vld [vmem:[#allocation9 + $0x180] ss:$16 sps:$4 sm:$0xff]   ;;  %v11706_v33 = vxor.u32 %v4368_v30, %v4304_v31 }
 0x257   :  { %6477 = vmatpush1.bf16.msra.mxu0 %v10201_v52  ;;  %v11708_v57 = vxor.u32 %v4376_v5, %v4312_v16  ;;  %v4320_v41 = vmul.u32 2246822507, %v11688_v51  ;;  %v4216_v2 = vshrl.u32 %v4152_v50, 16  ;;  %v10209_v49 = vld [vmem:[#allocation9 + $0x1a4] ss:$16 sps:$4 sm:$0xff]   ;;  %v4569_v34 = vshrl.u32 %v4505_v29, 16 }
 0x258   :  { %6478 = vmatprep.subr.bf16.mxu0 %v10206_v56  ;;  %v11713_v25 = vxor.u32 %v4385_v55, %v4321_v13  ;;  %v4328_v46 = vmul.u32 2246822507, %v11694_v7  ;;  %v4608_v28 = vxor.u32 %v4544_v53, %v4480_v24  ;;  %v11716_v52 = vxor.u32 %v4393_v8, %v4329_v15  ;;  %v10207_v56 = vld [vmem:[#allocation9 + $0x1a0] ss:$16 sps:$4 sm:$0xff]   ;;  %v14160_v51 = vld [vmem:[#allocation25_spill] sm:$0xff] }
 0x259   :  { %3672 = vmatpush1.bf16.msra.mxu1 %v8945_v63  ;;  %v8970_v63 = vcombine.high %v11696_v18, %v11698_v42  ;;  %v4337_v31 = vmul.u32 2246822507, %v11700_v38  ;;  %v4345_v16 = vmul.u32 2246822507, %v11702_v9  ;;  %v4616_v30 = vxor.u32 %v4552_v21, %v4488_v39  ;;  %v11726_v24 = vld [vmem:[#allocation6 + $0x9f8] sm:$0xff] }
 0x25a   :  { %3673 = vmatprep.subr.bf16.mxu1 %v8954_v26  ;;  %v11721_v26 = vld [vmem:[#allocation6 + $0x9d8] sm:$0xff]  ;;  %v4625_v5 = vxor.u32 %v4561_v22, %v4497_v23  ;;  %v11724_v13 = vxor.u32 %v4208_v6, %v4144_v54  ;;  %v4504_v15 = vmul.u32 3266489909, %v11708_v57  ;;  %v4384_v55 = vshrl.u32 %v4320_v41, 13 }
 0x25b   :  { %6479 = vmatpush1.bf16.msra.mxu0 %v10204_v12  ;;  %v11730_v7 = vxor.u32 %v4216_v2, %v4152_v50  ;;  %v8969_v22 = vcombine.low %v11696_v18, %v11698_v42  ;;  %v4633_v39 = vxor.u32 %v4569_v34, %v4505_v29  ;;  %v4513_v23 = vmul.u32 3266489909, %v11713_v25  ;;  %v10210_v53 = vld [vmem:[#allocation9 + $0x1c0] ss:$16 sps:$4 sm:$0xff]  }
 0x25c   :  { %3645 = vmatmul.mubr.bf16.gmra.mrb[40].mxu1 %v11124_v20  ;;  %v4496_v20 = vmul.u32 3266489909, %v11706_v33  ;;  %6480 = vmatprep.subr.bf16.mxu0 %v10209_v49  ;;  %v4392_v54 = vshrl.u32 %v4328_v46, 13  ;;  %v4672_v8 = vand.u32 8388607, %v4608_v28  ;;  %v4401_v9 = vshrl.u32 %v4337_v31, 13 }
 0x25d   :  { %3674 = vmatpush1.bf16.msra.mxu1 %v8953_v19  ;;  %3654 = vmatprep.mubr.bf16.mxu1 %v14160_v51  ;;  %v10212_v19 = vld [vmem:[#allocation9 + $0x1c4] ss:$16 sps:$4 sm:$0xff]   ;;  %v4521_v38 = vmul.u32 3266489909, %v11716_v52  ;;  %v8978_v57 = vcombine.high %v11721_v26, %v11726_v24  ;;  %v4680_v50 = vand.u32 8388607, %v4616_v30  ;;  %v11743_v33 = vxor.u32 %v4384_v55, %v4320_v41 }
 0x25e   :  { %3675 = vmatprep.subr.bf16.mxu1 %v8962_v14  ;;  %v4409_v14 = vshrl.u32 %v4345_v16, 13  ;;  %v4689_v21 = vand.u32 8388607, %v4625_v5  ;;  %v4336_v6 = vmul.u32 2246822507, %v11724_v13  ;;  %v11739_v29 = vld [vmem:[#allocation6 + $0xa18] sm:$0xff]  ;;  %v8977_v49 = vcombine.low %v11721_v26, %v11726_v24 }
 0x25f   :  { %6481 = vmatpush1.bf16.msra.mxu0 %v10207_v56  ;;  %v11741_v18 = vld [vmem:[#allocation6 + $0xa38] sm:$0xff]  ;;  %v4560_v42 = vshrl.u32 %v4496_v20, 16  ;;  %v4568_v12 = vshrl.u32 %v4504_v15, 16  ;;  %v4344_v2 = vmul.u32 2246822507, %v11730_v7  ;;  %v4577_v25 = vshrl.u32 %v4513_v23, 16 }
 0x260   :  { %6482 = vmatprep.subr.bf16.mxu0 %v10212_v19  ;;  %v4697_v34 = vand.u32 8388607, %v4633_v39  ;;  %v11748_v28 = vxor.u32 %v4392_v54, %v4328_v46  ;;  %vm11750_vm5 = vcmp.ge.s32.totalorder %v4672_v8, 2516582  ;;  %v4585_v56 = vshrl.u32 %v4521_v38, 16  ;;  %v14163_v5 = vld [vmem:[#allocation26_spill] sm:$0xff] }
 0x261   :  { %3676 = vmatpush1.bf16.msra.mxu1 %v8961_v37  ;;  %v10215_v37 = vld [vmem:[#allocation9 + $0x1e4] ss:$16 sps:$4 sm:$0xff]   ;;  %v11754_v30 = vxor.u32 %v4401_v9, %v4337_v31  ;;  %v11756_v41 = vxor.u32 %v4409_v14, %v4345_v16  ;;  %vm11759_vm6 = vcmp.ge.s32.totalorder %v4680_v50, 2516582  ;;  %v8986_v46 = vcombine.high %v11739_v29, %v11741_v18  ;;  %v14168_v24 = vld [vmem:[#allocation27_spill] sm:$0xff] }
 0x262   :  { %3677 = vmatprep.subr.bf16.mxu1 %v8970_v63  ;;  %v10213_v63 = vld [vmem:[#allocation9 + $0x1e0] ss:$16 sps:$4 sm:$0xff]   ;;  %vm11765_vm7 = vcmp.ge.s32.totalorder %v4689_v21, 2516582  ;;  %v14166_v26 = vmov 0  ;;  %v4400_v13 = vshrl.u32 %v4336_v6, 13  ;;  %v4624_v16 = vxor.u32 %v4560_v42, %v4496_v20  ;;  %vm13998_vm9 = vmpackc.low %vm11759_vm6, %vm11750_vm5 }
 0x263   :  { %v14167_v26 = vsel %vm11765_vm7, 4294967295, %v14166_v26  ;;  %6483 = vmatpush1.bf16.msra.mxu0 %v10210_v53  ;;  %v10218_v31 = vld [vmem:[#allocation9 + $0x204] ss:$16 sps:$4 sm:$0xff]   ;;  %v4632_v55 = vxor.u32 %v4568_v12, %v4504_v15  ;;  %v4512_v7 = vmul.u32 3266489909, %v11743_v33  ;;  %v4408_v19 = vshrl.u32 %v4344_v2, 13 }
 0x264   :  { %3655 = vmatmul.mubr.bf16.gmra.mrb[44].mxu1 %v14163_v5  ;;  %6484 = vmatprep.subr.bf16.mxu0 %v10215_v37  ;;  %vm11771_vm8 = vcmp.ge.s32.totalorder %v4697_v34, 2516582  ;;  %v567_v39 = vld [vmem:[#allocation6 + $0xa58] sm:$0xff]  ;;  %v4641_v54 = vxor.u32 %v4577_v25, %v4513_v23  ;;  %v4520_v8 = vmul.u32 3266489909, %v11748_v28  ;;  %v4649_v14 = vxor.u32 %v4585_v56, %v4521_v38 }
 0x265   :  { %3678 = vmatpush1.bf16.msra.mxu1 %v8969_v22  ;;  %3697 = vmatprep.mubr.bf16.mxu1 %v14168_v24  ;;  %v14169_v22 = vmov 0  ;;  %v571_v9 = vld [vmem:[#allocation6 + $0xa78] sm:$0xff]  ;;  %v4529_v53 = vmul.u32 3266489909, %v11754_v30  ;;  %v11779_v20 = vadd.s32 384, %v11288_v3  ;;  %v8985_v15 = vcombine.low %v11739_v29, %v11741_v18  ;;  %vm13995_vm10 = vmpackc.low %vm11771_vm8, %vm11765_vm7 }
 0x266   :  { %3679 = vmatprep.subr.bf16.mxu1 %v8978_v57  ;;  %v14170_v22 = vsel %vm11771_vm8, 4294967295, %v14169_v22  ;;  %v4537_v57 = vmul.u32 3266489909, %v11756_v41  ;;  %v10216_v50 = vld [vmem:[#allocation9 + $0x200] ss:$16 sps:$4 sm:$0xff]   ;;  %v11783_v42 = vxor.u32 %v4400_v13, %v4336_v6  ;;  %v4576_v12 = vshrl.u32 %v4512_v7, 16 }
 0x267   :  { %14171 = vst [vmem:[#allocation23_spill] sm:$0xff] %v11779_v20  ;;  %v10221_v21 = vld [vmem:[#allocation9 + $0x224] ss:$16 sps:$4 sm:$0xff]   ;;  %6485 = vmatpush1.bf16.msra.mxu0 %v10213_v63  ;;  %v4688_v23 = vand.u32 8388607, %v4624_v16  ;;  %v11789_v33 = vxor.u32 %v4408_v19, %v4344_v2  ;;  %v8994_v6 = vcombine.high %v567_v39, %v571_v9  ;;  %v4593_v25 = vshrl.u32 %v4529_v53, 16 }
 0x268   :  { %v4696_v38 = vand.u32 8388607, %v4632_v55  ;;  %6527 = vmatprep.subr.bf16.mxu0 %v10218_v31  ;;  %v575_v29 = vld [vmem:[#allocation6 + $0xa98] sm:$0xff]  ;;  %v4705_v37 = vand.u32 8388607, %v4641_v54  ;;  %v4601_v28 = vshrl.u32 %v4537_v57, 16  ;;  %v4032_v63 = vadd.s32 %v11300_v27, %v11779_v20 }
 0x269   :  { %3680 = vmatpush1.bf16.msra.mxu1 %v8977_v49  ;;  %v579_v18 = vld [vmem:[#allocation6 + $0xab8] sm:$0xff]  ;;  %v4584_v49 = vshrl.u32 %v4520_v8, 16  ;;  %v4713_v34 = vand.u32 8388607, %v4649_v14  ;;  %v8993_v2 = vcombine.low %v567_v39, %v571_v9  ;;  %v4528_v30 = vmul.u32 3266489909, %v11783_v42 }
 0x26a   :  { %3681 = vmatprep.subr.bf16.mxu1 %v8986_v46  ;;  %9328 = vmatmul.mubr.msk.bf16.vlgmr.msra.gmra.mrb[32].mxu0 %vm13998_vm9, %v11399_v4  ;;  %v10219_v56 = vld [vmem:[#allocation9 + $0x220] ss:$16 sps:$4 sm:$0xff]   ;;  %v9002_v41 = vcombine.high %v575_v29, %v579_v18  ;;  %v10224_v5 = vld [vmem:[#allocation9 + $0x244] ss:$16 sps:$4 sm:$0xff]   ;;  %v4640_v46 = vxor.u32 %v4576_v12, %v4512_v7  ;;  %v4536_v13 = vmul.u32 3266489909, %v11789_v33  ;;  %v4657_v9 = vxor.u32 %v4593_v25, %v4529_v53 }
 0x26b   :  { %9331 = vmatprep.mubr.msk.bf16.mxu0 %vm13995_vm10, %v11454_v1  ;;  %6528 = vmatpush1.bf16.msra.mxu0 %v10216_v50  ;;  %v11812_v24 = vadd.s32 256, %v11288_v3  ;;  %vm11814_vm11 = vcmp.ge.s32.totalorder %v4688_v23, 2516582  ;;  %v14173_v31 = vmov 0  ;;  %vm11818_vm12 = vcmp.ge.s32.totalorder %v4696_v38, 2516582 }
 0x26c   :  { %6529 = vmatprep.subr.bf16.mxu0 %v10221_v21  ;;  %v14174_v31 = vsel %vm11814_vm11, 4294967295, %v14173_v31  ;;  %v14175_v16 = vmov 0  ;;  %vm11822_vm14 = vcmp.ge.s32.totalorder %v4705_v37, 2516582  ;;  %v14177_v55 = vmov 0  ;;  %v583_v39 = vld [vmem:[#allocation6 + $0xad8] sm:$0xff]  ;;  %vm13996_vm1 = vmpackc.low %vm11818_vm12, %vm11814_vm11 }
 0x26d   :  { %3682 = vmatpush1.bf16.msra.mxu1 %v8985_v15  ;;  %14172 = vst [vmem:[#allocation24_spill] sm:$0xff] %v11812_v24  ;;  %v14176_v16 = vsel %vm11818_vm12, 4294967295, %v14175_v16  ;;  %v14178_v55 = vsel %vm11822_vm14, 4294967295, %v14177_v55  ;;  %v4648_v7 = vxor.u32 %v4584_v49, %v4520_v8  ;;  %vm11826_vm15 = vcmp.ge.s32.totalorder %v4713_v34, 2516582  ;;  %v587_v54 = vld [vmem:[#allocation6 + $0xaf8] sm:$0xff] }
 0x26e   :  { %3683 = vmatprep.subr.bf16.mxu1 %v8994_v6  ;;  %14179 = vst [vmem:[#allocation25_spill] sm:$0xff] %v14178_v55  ;;  %v14180_v19 = vmov 0  ;;  %v4665_v14 = vxor.u32 %v4601_v28, %v4537_v57  ;;  %v4099_v15 = vxor.u32 %v11309_v44, %v4032_v63  ;;  %v9001_v50 = vcombine.low %v575_v29, %v579_v18  ;;  %v10222_v21 = vld [vmem:[#allocation9 + $0x240] ss:$16 sps:$4 sm:$0xff]   ;;  %vm13997_vm2 = vmpackc.low %vm11826_vm15, %vm11822_vm14  ;;  %v10227_v6 = vld [vmem:[#allocation9 + $0x264] ss:$16 sps:$4 sm:$0xff]  }
 0x26f   :  { %v14181_v19 = vsel %vm11826_vm15, 4294967295, %v14180_v19  ;;  %v4592_v42 = vshrl.u32 %v4528_v30, 16  ;;  %v4040_v23 = vadd.s32 %v11303_v10, %v11779_v20  ;;  %6530 = vmatpush1.bf16.msra.mxu0 %v10219_v56  ;;  %v4704_v8 = vand.u32 8388607, %v4640_v46  ;;  %v591_v38 = vld [vmem:[#allocation6 + $0xb18] sm:$0xff] }
 0x270   :  { %v595_v53 = vld [vmem:[#allocation6 + $0xb38] sm:$0xff]  ;;  %v4600_v57 = vshrl.u32 %v4536_v13, 16  ;;  %v4031_v12 = vadd.s32 %v11300_v27, %v11812_v24  ;;  %6531 = vmatprep.subr.bf16.mxu0 %v10224_v5  ;;  %v9010_v33 = vcombine.high %v583_v39, %v587_v54  ;;  %v4712_v29 = vand.u32 8388607, %v4648_v7  ;;  %v10345_v51 = vld [vmem:[#allocation9 + $0x228] ss:$16 sps:$4 sm:$0xff]  }
 0x271   :  { %3684 = vmatpush1.bf16.msra.mxu1 %v8993_v2  ;;  %v4039_v18 = vadd.s32 %v11303_v10, %v11812_v24  ;;  %v9009_v37 = vcombine.low %v583_v39, %v587_v54  ;;  %v4721_v49 = vand.u32 8388607, %v4657_v9  ;;  %v4729_v34 = vand.u32 8388607, %v4665_v14  ;;  %v10225_v56 = vld [vmem:[#allocation9 + $0x260] ss:$16 sps:$4 sm:$0xff]  }
 0x272   :  { %3685 = vmatprep.subr.bf16.mxu1 %v9002_v41  ;;  %v4163_v25 = vshrl.u32 %v4099_v15, 16  ;;  %9334 = vmatmul.mubr.msk.bf16.gmra.mrb[36].mxu0 %vm13996_vm1, %v11445_v11  ;;  %v9018_v28 = vcombine.high %v591_v38, %v595_v53  ;;  %v4656_v63 = vxor.u32 %v4592_v42, %v4528_v30  ;;  %v4107_v2 = vxor.u32 %v11309_v44, %v4040_v23  ;;  %v10230_v39 = vld [vmem:[#allocation9 + $0x284] ss:$16 sps:$4 sm:$0xff]  }
 0x273   :  { %9337 = vmatprep.mubr.msk.bf16.mxu0 %vm13997_vm2, %v11505_v60  ;;  %6532 = vmatpush1.bf16.msra.mxu0 %v10222_v21  ;;  %vm11858_vm10 = vcmp.ge.s32.totalorder %v4704_v8, 2516582  ;;  %v14182_v41 = vmov 0  ;;  %v4664_v5 = vxor.u32 %v4600_v57, %v4536_v13  ;;  %v4098_v46 = vxor.u32 %v11309_v44, %v4031_v12  ;;  %v599_v54 = vld [vmem:[#allocation6 + $0xb58] sm:$0xff] }
 0x274   :  { %v14183_v41 = vsel %vm11858_vm10, 4294967295, %v14182_v41  ;;  %v4048_v30 = vadd.s32 %v11468_v47, %v11779_v20  ;;  %6533 = vmatprep.subr.bf16.mxu0 %v10227_v6  ;;  %vm11865_vm1 = vcmp.ge.s32.totalorder %v4712_v29, 2516582  ;;  %v14185_v7 = vmov 0  ;;  %v603_v9 = vld [vmem:[#allocation6 + $0xb78] sm:$0xff] }
 0x275   :  { %3686 = vmatpush1.bf16.msra.mxu1 %v9001_v50  ;;  %14184 = vst [vmem:[#allocation26_spill] sm:$0xff] %v14183_v41  ;;  %v14186_v7 = vsel %vm11865_vm1, 4294967295, %v14185_v7  ;;  %v4106_v14 = vxor.u32 %v11309_v44, %v4039_v18  ;;  %v4056_v50 = vadd.s32 %v11495_v45, %v11779_v20  ;;  %v4047_v13 = vadd.s32 %v11468_v47, %v11812_v24  ;;  %v10228_v12 = vld [vmem:[#allocation9 + $0x280] ss:$16 sps:$4 sm:$0xff]   ;;  %vm14003_vm4 = vmpackc.low %vm11865_vm1, %vm11858_vm10 }
 0x276   :  { %3687 = vmatprep.subr.bf16.mxu1 %v9010_v33  ;;  %14187 = vst [vmem:[#allocation27_spill] sm:$0xff] %v14186_v7  ;;  %vm11874_vm2 = vcmp.ge.s32.totalorder %v4721_v49, 2516582  ;;  %v14188_v21 = vmov 0  ;;  %vm11878_vm9 = vcmp.ge.s32.totalorder %v4729_v34, 2516582  ;;  %v11882_v23 = vxor.u32 %v4163_v25, %v4099_v15 }
 0x277   :  { %v14189_v21 = vsel %vm11874_vm2, 4294967295, %v14188_v21  ;;  %v14191_v42 = vmov 0  ;;  %v4055_v8 = vadd.s32 %v11495_v45, %v11812_v24  ;;  %v9017_v57 = vcombine.low %v591_v38, %v595_v53  ;;  %6534 = vmatpush1.bf16.msra.mxu0 %v10225_v56  ;;  %v607_v18 = vld [vmem:[#allocation6 + $0xb98] sm:$0xff]  ;;  %vm14006_vm0 = vmpackc.low %vm11878_vm9, %vm11874_vm2 }
 0x278   :  { %14190 = vst [vmem:[#allocation58_spill] sm:$0xff] %v14189_v21  ;;  %v14192_v42 = vsel %vm11878_vm9, 4294967295, %v14191_v42  ;;  %v4171_v33 = vshrl.u32 %v4107_v2, 16  ;;  %v9026_v6 = vcombine.high %v599_v54, %v603_v9  ;;  %v4720_v29 = vand.u32 8388607, %v4656_v63  ;;  %v611_v49 = vld [vmem:[#allocation6 + $0xbb8] sm:$0xff]  ;;  %6535 = vmatprep.subr.bf16.mxu0 %v10230_v39 }
 0x279   :  { %14193 = vst [vmem:[#allocation59_spill] sm:$0xff] %v14192_v42  ;;  %3688 = vmatpush1.bf16.msra.mxu1 %v9009_v37  ;;  %v4162_v15 = vshrl.u32 %v4098_v46, 16  ;;  %v4115_v34 = vxor.u32 %v11309_v44, %v4048_v30  ;;  %v10233_v38 = vld [vmem:[#allocation9 + $0x2a4] ss:$16 sps:$4 sm:$0xff]   ;;  %v4728_v53 = vand.u32 8388607, %v4664_v5  ;;  %v4123_v25 = vxor.u32 %v11309_v44, %v4056_v50 }
 0x27a   :  { %3689 = vmatprep.subr.bf16.mxu1 %v9018_v28  ;;  %v4170_v37 = vshrl.u32 %v4106_v14, 16  ;;  %v4114_v28 = vxor.u32 %v11309_v44, %v4047_v13  ;;  %v4291_v63 = vmul.u32 2246822507, %v11882_v23  ;;  %v4122_v56 = vxor.u32 %v11309_v44, %v4055_v8  ;;  %9340 = vmatmul.mubr.msk.bf16.gmra.mrb[40].mxu0 %vm14003_vm4, %v11500_v35  ;;  %v10231_v39 = vld [vmem:[#allocation9 + $0x2a0] ss:$16 sps:$4 sm:$0xff]  }
 0x27b   :  { %v9025_v30 = vcombine.low %v599_v54, %v603_v9  ;;  %v9034_v5 = vcombine.high %v607_v18, %v611_v49  ;;  %v11905_v55 = vxor.u32 %v4171_v33, %v4107_v2  ;;  %9343 = vmatprep.mubr.msk.bf16.mxu0 %vm14006_vm0, %v11556_v62  ;;  %6536 = vmatpush1.bf16.msra.mxu0 %v10228_v12  ;;  %vm11913_vm14 = vcmp.ge.s32.totalorder %v4720_v29, 2516582  ;;  %v10236_v13 = vld [vmem:[#allocation9 + $0x2c4] ss:$16 sps:$4 sm:$0xff]  }
 0x27c   :  { %v14194_v50 = vmov 0  ;;  %v11917_v23 = vxor.u32 %v4162_v15, %v4098_v46  ;;  %v4179_v54 = vshrl.u32 %v4115_v34, 16  ;;  %v4064_v2 = vadd.s32 %v11548_v0, %v11779_v20  ;;  %6537 = vmatprep.subr.bf16.mxu0 %v10233_v38  ;;  %v615_v8 = vld [vmem:[#allocation6 + $0xbd8] sm:$0xff] }
 0x27d   :  { %3690 = vmatpush1.bf16.msra.mxu1 %v9017_v57  ;;  %v14195_v50 = vsel %vm11913_vm14, 4294967295, %v14194_v50  ;;  %vm11921_vm4 = vcmp.ge.s32.totalorder %v4728_v53, 2516582  ;;  %v14197_v9 = vmov 0  ;;  %v619_v57 = vld [vmem:[#allocation6 + $0xbf8] sm:$0xff]  ;;  %v11925_v12 = vxor.u32 %v4170_v37, %v4106_v14 }
 0x27e   :  { %14196 = vst [vmem:[#allocation60_spill] sm:$0xff] %v14195_v50  ;;  %3691 = vmatprep.subr.bf16.mxu1 %v9026_v6  ;;  %v14198_v9 = vsel %vm11921_vm4, 4294967295, %v14197_v9  ;;  %v4187_v33 = vshrl.u32 %v4123_v25, 16  ;;  %v4178_v29 = vshrl.u32 %v4114_v28, 16  ;;  %v4355_v21 = vshrl.u32 %v4291_v63, 13  ;;  %vm14018_vm0 = vmpackc.low %vm11921_vm4, %vm11913_vm14 }
 0x27f   :  { %14199 = vst [vmem:[#allocation61_spill] sm:$0xff] %v14198_v9  ;;  %v4186_v42 = vshrl.u32 %v4122_v56, 16  ;;  %v9033_v46 = vcombine.low %v607_v18, %v611_v49  ;;  %v4299_v15 = vmul.u32 2246822507, %v11905_v55  ;;  %v4072_v6 = vadd.s32 %v11554_v17, %v11779_v20  ;;  %6538 = vmatpush1.bf16.msra.mxu0 %v10231_v39  ;;  %v10234_v14 = vld [vmem:[#allocation9 + $0x2c0] ss:$16 sps:$4 sm:$0xff]  }
 0x280   :  { %v9042_v38 = vcombine.high %v615_v8, %v619_v57  ;;  %v4290_v53 = vmul.u32 2246822507, %v11917_v23  ;;  %v11935_v37 = vxor.u32 %v4179_v54, %v4115_v34  ;;  %v4131_v18 = vxor.u32 %v11309_v44, %v4064_v2  ;;  %6539 = vmatprep.subr.bf16.mxu0 %v10236_v13  ;;  %v10239_v55 = vld [vmem:[#allocation9 + $0x2e4] ss:$16 sps:$4 sm:$0xff]   ;;  %v10237_v34 = vld [vmem:[#allocation9 + $0x2e0] ss:$16 sps:$4 sm:$0xff]  }
 0x281   :  { %3692 = vmatpush1.bf16.msra.mxu1 %v9025_v30  ;;  %v623_v49 = vld [vmem:[#allocation6 + $0xc18] sm:$0xff]  ;;  %v4298_v39 = vmul.u32 2246822507, %v11925_v12  ;;  %v11939_v62 = vxor.u32 %v4187_v33, %v4123_v25  ;;  %v11941_v41 = vxor.u32 %v4178_v29, %v4114_v28  ;;  %v9041_v7 = vcombine.low %v615_v8, %v619_v57 }
 0x282   :  { %3693 = vmatprep.subr.bf16.mxu1 %v9034_v5  ;;  %v627_v30 = vld [vmem:[#allocation6 + $0xc38] sm:$0xff]  ;;  %v11943_v5 = vxor.u32 %v4355_v21, %v4291_v63  ;;  %v11945_v35 = vxor.u32 %v4186_v42, %v4122_v56  ;;  %9346 = vmatmul.mubr.msk.bf16.gmra.mrb[44].mxu0 %vm14018_vm0, %v11551_v48  ;;  %v4363_v13 = vshrl.u32 %v4299_v15, 13  ;;  %v4139_v25 = vxor.u32 %v11309_v44, %v4072_v6 }
 0x283   :  { %v4063_v28 = vadd.s32 %v11548_v0, %v11812_v24  ;;  %v4071_v21 = vadd.s32 %v11554_v17, %v11812_v24  ;;  %6540 = vmatpush1.bf16.msra.mxu0 %v10234_v14  ;;  %v9050_v42 = vcombine.high %v623_v49, %v627_v30  ;;  %v10242_v63 = vld [vmem:[#allocation9 + $0x304] ss:$16 sps:$4 sm:$0xff]   ;;  %v4354_v56 = vshrl.u32 %v4290_v53, 13 }
 0x284   :  { %v4307_v23 = vmul.u32 2246822507, %v11935_v37  ;;  %v4195_v54 = vshrl.u32 %v4131_v18, 16  ;;  %6541 = vmatprep.subr.bf16.mxu0 %v10239_v55  ;;  %v9049_v2 = vcombine.low %v623_v49, %v627_v30  ;;  %v4362_v8 = vshrl.u32 %v4298_v39, 13  ;;  %v10266_v55 = vld [vmem:[#allocation9 + $0xc] ss:$16 sps:$4 sm:$0xff]  }
 0x285   :  { %3694 = vmatpush1.bf16.msra.mxu1 %v9033_v46  ;;  %v4315_v57 = vmul.u32 2246822507, %v11939_v62  ;;  %v4306_v12 = vmul.u32 2246822507, %v11941_v41  ;;  %v4080_v46 = vadd.s32 %v11608_v58, %v11779_v20  ;;  %v4088_v6 = vadd.s32 %v11611_v59, %v11779_v20  ;;  %v10240_v41 = vld [vmem:[#allocation9 + $0x300] ss:$16 sps:$4 sm:$0xff]  }
 0x286   :  { %3695 = vmatprep.subr.bf16.mxu1 %v9042_v38  ;;  %v4483_v33 = vmul.u32 3266489909, %v11943_v5  ;;  %v4314_v29 = vmul.u32 2246822507, %v11945_v35  ;;  %v11967_v14 = vxor.u32 %v4363_v13, %v4299_v15  ;;  %v4203_v38 = vshrl.u32 %v4139_v25, 16 }
 0x287   :  { %v4130_v37 = vxor.u32 %v11309_v44, %v4063_v28  ;;  %v4138_v62 = vxor.u32 %v11309_v44, %v4071_v21  ;;  %6542 = vmatpush1.bf16.msra.mxu0 %v10237_v34  ;;  %v11971_v49 = vxor.u32 %v4354_v56, %v4290_v53  ;;  %v4371_v35 = vshrl.u32 %v4307_v23, 13  ;;  %v10245_v5 = vld [vmem:[#allocation9 + $0x324] ss:$16 sps:$4 sm:$0xff]   ;;  %v10243_v56 = vld [vmem:[#allocation9 + $0x320] ss:$16 sps:$4 sm:$0xff]  }
 0x288   :  { %v11973_v30 = vxor.u32 %v4195_v54, %v4131_v18  ;;  %6543 = vmatprep.subr.bf16.mxu0 %v10242_v63  ;;  %v11976_v15 = vxor.u32 %v4362_v8, %v4298_v39  ;;  %v4379_v13 = vshrl.u32 %v4315_v57, 13  ;;  %v4370_v20 = vshrl.u32 %v4306_v12, 13 }
 0x289   :  { %3696 = vmatpush1.bf16.msra.mxu1 %v9041_v7  ;;  %v14014_v7 = vsub.s32 2, %v11286_v36  ;;  %v4547_v28 = vshrl.u32 %v4483_v33, 16  ;;  %v4378_v34 = vshrl.u32 %v4314_v29, 13  ;;  %v4147_v21 = vxor.u32 %v11309_v44, %v4080_v46  ;;  %v10248_v46 = vld [vmem:[#allocation9 + $0x344] ss:$16 sps:$4 sm:$0xff]  }
 0x28a   :  { %3738 = vmatprep.subr.bf16.mxu1 %v9050_v42  ;;  %v4155_v53 = vxor.u32 %v11309_v44, %v4088_v6  ;;  %v4491_v18 = vmul.u32 3266489909, %v11967_v14  ;;  %v11983_v42 = vxor.u32 %v4203_v38, %v4139_v25  ;;  %v4194_v63 = vshrl.u32 %v4130_v37, 16 }
 0x28b   :  { %v4202_v39 = vshrl.u32 %v4138_v62, 16  ;;  %6544 = vmatpush1.bf16.msra.mxu0 %v10240_v41  ;;  %v11986_v54 = vxor.u32 %v4371_v35, %v4307_v23  ;;  %v4323_v8 = vmul.u32 2246822507, %v11973_v30  ;;  %v4490_v25 = vmul.u32 3266489909, %v11976_v15 }
 0x28c   :  { %3698 = vmatmul.mubr.bf16.vlgmr.msra.gmra.mrb[32].mxu1 %v11148_v40  ;;  %v4482_v40 = vmul.u32 3266489909, %v11971_v49  ;;  %6545 = vmatprep.subr.bf16.mxu0 %v10245_v5  ;;  %v4443_v6 = vxor.u32 %v4379_v13, %v4315_v57  ;;  %v4434_v14 = vxor.u32 %v4370_v20, %v4306_v12  ;;  %v11997_v38 = vxor.u32 %v4547_v28, %v4483_v33  ;;  %v10246_v49 = vld [vmem:[#allocation9 + $0x340] ss:$16 sps:$4 sm:$0xff]  }
 0x28d   :  { %3739 = vmatpush1.bf16.msra.mxu1 %v9049_v2  ;;  %3707 = vmatprep.mubr.bf16.mxu1 %v11150_v43  ;;  %v11989_v2 = vld [vmem:[#allocation8] sm:$0xff]  ;;  %v11999_v41 = vxor.u32 %v4378_v34, %v4314_v29  ;;  %v4211_v23 = vshrl.u32 %v4147_v21, 16  ;;  %v4555_v35 = vshrl.u32 %v4491_v18, 16  ;;  %v4331_v30 = vmul.u32 2246822507, %v11983_v42  ;;  %v14200_v42 = vld [vmem:[#allocation28_spill] sm:$0xff] }
 0x28e   :  { %6746 = vmatprep.subr.bf16.mxu1 %v10266_v55  ;;  %v11994_v43 = vrot.slane %v11989_v2, %v14014_v7  ;;  %v4219_v55 = vshrl.u32 %v4155_v53, 16  ;;  %v12002_v5 = vxor.u32 %v4194_v63, %v4130_v37  ;;  %v12004_v50 = vxor.u32 %v4202_v39, %v4138_v62  ;;  %v10251_v7 = vld [vmem:[#allocation9 + $0x364] ss:$16 sps:$4 sm:$0xff]  }
 0x28f   :  { %6546 = vmatpush1.bf16.msra.mxu0 %v10243_v56  ;;  %v4546_v9 = vshrl.u32 %v4482_v40, 16  ;;  %v4499_v57 = vmul.u32 3266489909, %v11986_v54  ;;  %v4387_v20 = vshrl.u32 %v4323_v8, 13  ;;  %v4079_v12 = vadd.s32 %v11608_v58, %v11812_v24 }
 0x290   :  { %6547 = vmatprep.subr.bf16.mxu0 %v10248_v46  ;;  %v4554_v33 = vshrl.u32 %v4490_v25, 16  ;;  %v4507_v29 = vmul.u32 3266489909, %v4443_v6  ;;  %v4498_v15 = vmul.u32 3266489909, %v4434_v14  ;;  %v4087_v13 = vadd.s32 %v11611_v59, %v11812_v24 }
 0x291   :  { %v4675_v37 = vand.u32 8388607, %v11997_v38  ;;  %v4506_v62 = vmul.u32 3266489909, %v11999_v41  ;;  %v12014_v28 = vxor.u32 %v4211_v23, %v4147_v21  ;;  %v12016_v34 = vxor.u32 %v4219_v55, %v4155_v53  ;;  %v10249_v46 = vld [vmem:[#allocation9 + $0x360] ss:$16 sps:$4 sm:$0xff]  }
 0x292   :  { %v4619_v63 = vxor.u32 %v4555_v35, %v4491_v18  ;;  %v4395_v39 = vshrl.u32 %v4331_v30, 13  ;;  %v4322_v56 = vmul.u32 2246822507, %v12002_v5  ;;  %v4330_v54 = vmul.u32 2246822507, %v12004_v50 }
 0x293   :  { %6548 = vmatpush1.bf16.msra.mxu0 %v10246_v49  ;;  %v4610_v6 = vxor.u32 %v4546_v9, %v4482_v40  ;;  %v12021_v14 = vxor.u32 %v4387_v20, %v4323_v8  ;;  %v4146_v38 = vxor.u32 %v11309_v44, %v4079_v12  ;;  %v10254_v21 = vld [vmem:[#allocation9 + $0x384] ss:$16 sps:$4 sm:$0xff]   ;;  %v4618_v53 = vxor.u32 %v4554_v33, %v4490_v25  ;;  %v10252_v9 = vld [vmem:[#allocation9 + $0x380] ss:$16 sps:$4 sm:$0xff]  }
 0x294   :  { %3708 = vmatmul.mubr.bf16.gmra.mrb[36].mxu1 %v11158_v61  ;;  %v4563_v61 = vshrl.u32 %v4499_v57, 16  ;;  %6549 = vmatprep.subr.bf16.mxu0 %v10251_v7  ;;  %v4571_v41 = vshrl.u32 %v4507_v29, 16  ;;  %v4562_v23 = vshrl.u32 %v4498_v15, 16  ;;  %v4154_v18 = vxor.u32 %v11309_v44, %v4087_v13  ;;  %v10257_v13 = vld [vmem:[#allocation9 + $0x3a4] ss:$16 sps:$4 sm:$0xff]  }
 0x295   :  { %3717 = vmatprep.mubr.bf16.mxu1 %v14200_v42  ;;  %v4570_v35 = vshrl.u32 %v4506_v62, 16  ;;  %v4339_v50 = vmul.u32 2246822507, %v12014_v28  ;;  %v4347_v49 = vmul.u32 2246822507, %v12016_v34  ;;  %v12028_v8 = vxor.u32 %v4395_v39, %v4331_v30  ;;  %v14201_v34 = vld [vmem:[#allocation29_spill] sm:$0xff] }
 0x296   :  { %v4683_v40 = vand.u32 8388607, %v4619_v63  ;;  %v4386_v5 = vshrl.u32 %v4322_v56, 13  ;;  %v4394_v20 = vshrl.u32 %v4330_v54, 13  ;;  %v4674_v7 = vand.u32 8388607, %v4610_v6 }
 0x297   :  { %6550 = vmatpush1.bf16.msra.mxu0 %v10249_v46  ;;  %v4627_v25 = vxor.u32 %v4563_v61, %v4499_v57  ;;  %v4515_v12 = vmul.u32 3266489909, %v12021_v14  ;;  %v4210_v33 = vshrl.u32 %v4146_v38, 16  ;;  %v4682_v42 = vand.u32 8388607, %v4618_v53  ;;  %v14203_v61 = vld [vmem:[#allocation30_spill] sm:$0xff] }
 0x298   :  { %6551 = vmatprep.subr.bf16.mxu0 %v10254_v21  ;;  %v4635_v55 = vxor.u32 %v4571_v41, %v4507_v29  ;;  %v12031_v24 = vxor.u32 %v4562_v23, %v4498_v15  ;;  %v4218_v28 = vshrl.u32 %v4154_v18, 16  ;;  %v10255_v63 = vld [vmem:[#allocation9 + $0x3a0] ss:$16 sps:$4 sm:$0xff]   ;;  %v14202_v30 = vsub.s32 3, %v11286_v36  ;;  %v10260_v14 = vld [vmem:[#allocation9 + $0x3c4] ss:$16 sps:$4 sm:$0xff]  }
 0x299   :  { %v12039_v46 = vxor.u32 %v4570_v35, %v4506_v62  ;;  %v4403_v57 = vshrl.u32 %v4339_v50, 13  ;;  %v4411_v6 = vshrl.u32 %v4347_v49, 13  ;;  %vm12042_vm0 = vcmp.ge.s32.totalorder %v4675_v37, 2516582 }
 0x29a   :  { %v12037_v39 = vrot.slane %v11989_v2, %v14202_v30  ;;  %v14204_v29 = vmov 0  ;;  %v4523_v15 = vmul.u32 3266489909, %v12028_v8  ;;  %v12047_v21 = vxor.u32 %v4386_v5, %v4322_v56 }
 0x29b   :  { %v14205_v29 = vsel %vm12042_vm0, 4294967295, %v14204_v29  ;;  %v12049_v53 = vxor.u32 %v4394_v20, %v4330_v54  ;;  %6552 = vmatpush1.bf16.msra.mxu0 %v10252_v9  ;;  %vm12051_vm14 = vcmp.ge.s32.totalorder %v4683_v40, 2516582  ;;  %v14207_v2 = vmov 0 }
 0x29c   :  { %3718 = vmatmul.mubr.bf16.gmra.mrb[40].mxu1 %v14201_v34  ;;  %14206 = vst [vmem:[#allocation28_spill] sm:$0xff] %v14205_v29  ;;  %v14208_v2 = vsel %vm12051_vm14, 4294967295, %v14207_v2  ;;  %v4691_v62 = vand.u32 8388607, %v4627_v25  ;;  %v4579_v41 = vshrl.u32 %v4515_v12, 16  ;;  %v12055_v23 = vxor.u32 %v4210_v33, %v4146_v38  ;;  %v3188_v35 = vpop.f32.mrb[16].mxu1  ;;  %6553 = vmatprep.subr.bf16.mxu0 %v10257_v13  ;;  %vm14034_vm7 = vmpackc.low %vm12051_vm14, %vm12042_vm0 }
 0x29d   :  { %3727 = vmatprep.mubr.bf16.mxu1 %v14203_v61  ;;  %14209 = vst [vmem:[#allocation29_spill] sm:$0xff] %v14208_v2  ;;  %vm12057_vm4 = vcmp.ge.s32.totalorder %v4674_v7, 2516582  ;;  %v14210_v37 = vmov 0  ;;  %vm12061_vm2 = vcmp.ge.s32.totalorder %v4682_v42, 2516582  ;;  %v12066_v40 = vxor.u32 %v4218_v28, %v4154_v18 }
 0x29e   :  { %v14211_v37 = vsel %vm12057_vm4, 4294967295, %v14210_v37  ;;  %v14213_v56 = vmov 0  ;;  %v4699_v54 = vand.u32 8388607, %v4635_v55  ;;  %v4690_v9 = vand.u32 8388607, %v12031_v24 }
 0x29f   :  { %14212 = vst [vmem:[#allocation30_spill] sm:$0xff] %v14211_v37  ;;  %v14214_v56 = vsel %vm12061_vm2, 4294967295, %v14213_v56  ;;  %v9764_v8 = vadd.f32 %v3188_v35, %v11994_v43  ;;  %v3190_v5 = vpop.f32.mrb[17].mxu1  ;;  %v10258_v38 = vld [vmem:[#allocation9 + $0x3c0] ss:$16 sps:$4 sm:$0xff]   ;;  %v12070_v25 = vxor.u32 %v4403_v57, %v4339_v50  ;;  %v12072_v7 = vxor.u32 %v4411_v6, %v4347_v49  ;;  %6554 = vmatpush1.bf16.msra.mxu0 %v10255_v63  ;;  %v14230_v2 = vld [vmem:[#allocation31_spill] sm:$0xff] }
 0x2a0   :  { %14215 = vst [vmem:[#allocation62_spill] sm:$0xff] %v14214_v56  ;;  %v4698_v20 = vand.u32 8388607, %v12039_v46  ;;  %v9765_v33 = vadd.f32 %v3190_v5, %v12037_v39  ;;  %v3192_v13 = vpop.f32.mrb[18].mxu1  ;;  %v10263_v42 = vld [vmem:[#allocation9 + $0x3e4] ss:$16 sps:$4 sm:$0xff]   ;;  %v12078_v61 = vxor.u32 %v4579_v41, %v4515_v12  ;;  %6555 = vmatprep.subr.bf16.mxu0 %v10260_v14 }
 0x2a1   :  { %v4587_v34 = vshrl.u32 %v4523_v15, 16  ;;  %v14030_v55 = vmul.u32 3266489909, %v12047_v21  ;;  %v3877_v18 = vmul.f32 0.2, %v9764_v8  ;;  %v9766_v28 = vadd.f32 %v3192_v13, %v11994_v43  ;;  %v3194_v30 = vpop.f32.mrb[19].mxu1 }
 0x2a2   :  { %v4338_v50 = vmul.u32 2246822507, %v12055_v23  ;;  %v3878_v49 = vmul.f32 0.2, %v9765_v33  ;;  %v9767_v46 = vadd.f32 %v3194_v30, %v12037_v39  ;;  %v4346_v57 = vmul.u32 2246822507, %v12066_v40 }
 0x2a3   :  { %vm3821_vm1 = vcmp.ge.f32.partialorder %v9766_v28, 0.0  ;;  %v3885_v6 = vmul.f32 0.2, %v9766_v28  ;;  %vm12084_vm15 = vcmp.ge.s32.totalorder %v4691_v62, 2516582  ;;  %v14216_v63 = vmov 0  ;;  %6556 = vmatpush1.bf16.msra.mxu0 %v10258_v38 }
 0x2a4   :  { %3728 = vmatmul.mubr.bf16.gmra.mrb[44].mxu1 %v11174_v32  ;;  %v14217_v63 = vsel %vm12084_vm15, 4294967295, %v14216_v63  ;;  %vm12088_vm11 = vcmp.ge.s32.totalorder %v4699_v54, 2516582  ;;  %v14218_v12 = vmov 0  ;;  %v4531_v41 = vmul.u32 3266489909, %v12070_v25  ;;  %6557 = vmatprep.subr.bf16.mxu0 %v10263_v42 }
 0x2a5   :  { %v14219_v12 = vsel %vm12088_vm11, 4294967295, %v14218_v12  ;;  %vm3822_vm9 = vcmp.ge.f32.partialorder %v9767_v46, 0.0  ;;  %v3886_v23 = vmul.f32 0.2, %v9767_v46  ;;  %v14220_v14 = vmov 0   ;;  %v3198_v25 = vpop.f32.mrb[20].mxu1 }
 0x2a6   :  { %3770 = vmatprep.mubr.bf16.mxu1 %v14220_v14  ;;  %v4539_v35 = vmul.u32 3266489909, %v12072_v7  ;;  %vm14221_vm10 = vcmp.ge.f32.partialorder %v9764_v8, 0.0  ;;  %v3949_v5 = vsel %vm3821_vm1, %v9766_v28, %v3885_v6  ;;  %v10261_v32 = vld [vmem:[#allocation9 + $0x3e0] ss:$16 sps:$4 sm:$0xff]   ;;  %v12096_v62 = vxor.u32 %v4587_v34, %v4523_v15  ;;  %v3200_v42 = vpop.f32.mrb[21].mxu1 }
 0x2a7   :  { %v3941_v40 = vsel %vm14221_vm10, %v9764_v8, %v3877_v18  ;;  %v4402_v13 = vshrl.u32 %v4338_v50, 13  ;;  %vm14222_vm12 = vcmp.ge.f32.partialorder %v9765_v33, 0.0  ;;  %v3950_v24 = vsel %vm3822_vm9, %v9767_v46, %v3886_v23  ;;  %v10290_v7 = vld [vmem:[#allocation9 + $0x404] ss:$16 sps:$4 sm:$0xff]   ;;  %v10264_v18 = vld [vmem:[#allocation9 + $0x8] ss:$16 sps:$4 sm:$0xff]   ;;  %6558 = vmatpush1.bf16.msra.mxu0 %v10261_v32  ;;  %vm14040_vm9 = vmpackc.low %vm12061_vm2, %vm12057_vm4 }
 0x2a8   :  { %v3942_v54 = vsel %vm14222_vm12, %v9765_v33, %v3878_v49  ;;  %v12099_v30 = vpack.c.bf16 %v3949_v5, %v3941_v40  ;;  %vm12105_vm8 = vcmp.ge.s32.totalorder %v4690_v9, 2516582  ;;  %v14224_v8 = vmov 0  ;;  %v3202_v46 = vpop.f32.mrb[22].mxu1  ;;  %6600 = vmatprep.subr.bf16.mxu0 %v10290_v7  ;;  %v10294_v56 = vld [vmem:[#allocation9 + $0x420] ss:$16 sps:$4 sm:$0xff]  }
 0x2a9   :  { %v14225_v8 = vsel %vm12105_vm8, 4294967295, %v14224_v8  ;;  %vm12109_vm10 = vcmp.ge.s32.totalorder %v4698_v20, 2516582  ;;  %v14226_v15 = vmov 0  ;;  %v4410_v38 = vshrl.u32 %v4346_v57, 13 }
 0x2aa   :  { %14223 = vst [vmem:[#allocation63_spill] sm:$0xff] %v12099_v30  ;;  %v14227_v15 = vsel %vm12109_vm10, 4294967295, %v14226_v15  ;;  %v12113_v33 = vpack.c.bf16 %v3950_v24, %v3942_v54  ;;  %v9768_v34 = vadd.f32 %v3198_v25, %v11994_v43  ;;  %v4707_v28 = vand.u32 8388607, %v12078_v61  ;;  %v10269_v20 = vld [vmem:[#allocation9 + $0x2c] ss:$16 sps:$4 sm:$0xff]  }
 0x2ab   :  { %v4578_v9 = vshrl.u32 %v14030_v55, 16  ;;  %v9769_v49 = vadd.f32 %v3200_v42, %v12037_v39  ;;  %v14229_v6 = vmul.u32 3266489909, %v12049_v53  ;;  %v4595_v40 = vshrl.u32 %v4531_v41, 16  ;;  %v3204_v25 = vpop.f32.mrb[23].mxu1 }
 0x2ac   :  { %14228 = vst [vmem:[#allocation64_spill] sm:$0xff] %v12113_v33  ;;  %v4603_v5 = vshrl.u32 %v4539_v35, 16  ;;  %v3893_v24 = vmul.f32 0.2, %v9768_v34  ;;  %v9770_v54 = vadd.f32 %v3202_v46, %v11994_v43  ;;  %9349 = vmatprep.mubr.msk.bf16.mxu0 %vm14034_vm7, %v12113_v33  ;;  %v4715_v61 = vand.u32 8388607, %v12096_v62 }
 0x2ad   :  { %v4586_v23 = vshrl.u32 %v14229_v6, 16  ;;  %v12134_v42 = vxor.u32 %v4402_v13, %v4338_v50  ;;  %v3894_v32 = vmul.f32 0.2, %v9769_v49  ;;  %v9771_v46 = vadd.f32 %v3204_v25, %v12037_v39  ;;  %v10288_v55 = vld [vmem:[#allocation9 + $0x400] ss:$16 sps:$4 sm:$0xff]   ;;  %9352 = vmatmul.mubr.msk.bf16.vlgmr.msra.gmra.mrb[32].mxu0 %vm14040_vm9, %v12099_v30 }
 0x2ae   :  { %v12137_v6 = vxor.u32 %v4410_v38, %v4346_v57  ;;  %vm3830_vm1 = vcmp.ge.f32.partialorder %v9769_v49, 0.0  ;;  %vm3837_vm0 = vcmp.ge.f32.partialorder %v9770_v54, 0.0  ;;  %v3901_v29 = vmul.f32 0.2, %v9770_v54  ;;  %v10296_v13 = vld [vmem:[#allocation9 + $0x424] ss:$16 sps:$4 sm:$0xff]   ;;  %6601 = vmatpush1.bf16.msra.mxu0 %v10288_v55 }
 0x2af   :  { %vm14231_vm7 = vcmask 130048   ;;  %vm12141_vm14 = vcmp.ge.s32.totalorder %v4707_v28, 2516582  ;;  %v14234_v50 = vmul.u32 3266489909, %v12047_v21  ;;  %vm3838_vm12 = vcmp.ge.f32.partialorder %v9771_v46, 0.0  ;;  %6602 = vmatprep.subr.bf16.mxu0 %v10296_v13 }
 0x2b0   :  { %9063 = vmatmul.mubr.msk.bf16.vlgmr.msra.gmra.mrb[32].mxu1 %vm14231_vm7, %v14230_v2  ;;  %v3902_v57 = vmul.f32 0.2, %v9771_v46  ;;  %v10267_v2 = vld [vmem:[#allocation9 + $0x28] ss:$16 sps:$4 sm:$0xff]   ;;  %v14235_v38 = vmul.u32 3266489909, %v12049_v53  ;;  %v12157_v28 = vxor.u32 %v4595_v40, %v4531_v41 }
 0x2b1   :  { %v12147_v62 = vxor.u32 %v4578_v9, %v14234_v50  ;;  %6747 = vmatpush1.bf16.msra.mxu1 %v10264_v18  ;;  %vm14236_vm7 = vcmp.ge.f32.partialorder %v9768_v34, 0.0  ;;  %v3965_v9 = vsel %vm3837_vm0, %v9770_v54, %v3901_v29  ;;  %3780 = vmatprep.mubr.bf16.mxu1 %v14220_v14  ;;  %v10272_v25 = vld [vmem:[#allocation9 + $0x4c] ss:$16 sps:$4 sm:$0xff]   ;;  %v12161_v50 = vxor.u32 %v4603_v5, %v4539_v35  ;;  %v3208_v41 = vpop.f32.mrb[24].mxu1  ;;  %vm14042_vm0 = vmpackc.low %vm12088_vm11, %vm12084_vm15  ;;  %v10270_v29 = vld [vmem:[#allocation9 + $0x48] ss:$16 sps:$4 sm:$0xff]  }
 0x2b2   :  { %v4650_v7 = vxor.u32 %v4586_v23, %v14235_v38  ;;  %v3957_v21 = vsel %vm14236_vm7, %v9768_v34, %v3893_v24  ;;  %6748 = vmatprep.subr.bf16.mxu1 %v10269_v20  ;;  %v4530_v37 = vmul.u32 3266489909, %v12134_v42  ;;  %v3958_v18 = vsel %vm3830_vm1, %v9769_v49, %v3894_v32  ;;  %v10302_v35 = vld [vmem:[#allocation9 + $0x444] ss:$16 sps:$4 sm:$0xff]   ;;  %v3210_v49 = vpop.f32.mrb[25].mxu1  ;;  %6603 = vmatpush1.bf16.msra.mxu0 %v10294_v56  ;;  %vm14241_vm7 = vmpackc.low %vm12109_vm10, %vm12105_vm8 }
 0x2b3   :  { %v12165_v30 = vpack.c.bf16 %v3965_v9, %v3957_v21  ;;  %v3966_v53 = vsel %vm3838_vm12, %v9771_v46, %v3902_v57  ;;  %v4538_v34 = vmul.u32 3266489909, %v12137_v6  ;;  %v9772_v23 = vadd.f32 %v3208_v41, %v11994_v43  ;;  %v10275_v40 = vld [vmem:[#allocation9 + $0x6c] ss:$16 sps:$4 sm:$0xff]   ;;  %v3212_v42 = vpop.f32.mrb[26].mxu1  ;;  %v14239_v9 = vld [vmem:[#allocation32_spill] sm:$0xff]  ;;  %6604 = vmatprep.subr.bf16.mxu0 %v10302_v35 }
 0x2b4   :  { %v12173_v20 = vpack.c.bf16 %v3966_v53, %v3958_v18  ;;  %vm12176_vm1 = vcmp.ge.s32.totalorder %v4715_v61, 2516582  ;;  %v4706_v24 = vand.u32 8388607, %v12147_v62  ;;  %v9773_v54 = vadd.f32 %v3210_v49, %v12037_v39  ;;  %v3214_v57 = vpop.f32.mrb[27].mxu1 }
 0x2b5   :  { %6749 = vmatpush1.bf16.msra.mxu1 %v10267_v2  ;;  %v4714_v32 = vand.u32 8388607, %v4650_v7  ;;  %v4723_v55 = vand.u32 8388607, %v12157_v28  ;;  %v3909_v46 = vmul.f32 0.2, %v9772_v23  ;;  %v9774_v6 = vadd.f32 %v3212_v42, %v11994_v43 }
 0x2b6   :  { %9355 = vmatprep.mubr.msk.bf16.mxu0 %vm14042_vm0, %v12173_v20  ;;  %6750 = vmatprep.subr.bf16.mxu1 %v10272_v25  ;;  %v4731_v61 = vand.u32 8388607, %v12161_v50  ;;  %v4594_v62 = vshrl.u32 %v4530_v37, 16  ;;  %v3910_v13 = vmul.f32 0.2, %v9773_v54  ;;  %v9775_v2 = vadd.f32 %v3214_v57, %v12037_v39 }
 0x2b7   :  { %v10273_v38 = vld [vmem:[#allocation9 + $0x68] ss:$16 sps:$4 sm:$0xff]   ;;  %v4602_v7 = vshrl.u32 %v4538_v34, 16  ;;  %v10300_v28 = vld [vmem:[#allocation9 + $0x440] ss:$16 sps:$4 sm:$0xff]   ;;  %vm3853_vm15 = vcmp.ge.f32.partialorder %v9774_v6, 0.0  ;;  %9358 = vmatmul.mubr.msk.bf16.gmra.mrb[36].mxu0 %vm14241_vm7, %v12165_v30 }
 0x2b8   :  { %v3917_v21 = vmul.f32 0.2, %v9774_v6  ;;  %vm14240_vm0 = vcmask 130048   ;;  %v10308_v25 = vld [vmem:[#allocation9 + $0x464] ss:$16 sps:$4 sm:$0xff]   ;;  %vm3854_vm12 = vcmp.ge.f32.partialorder %v9775_v2, 0.0  ;;  %v4658_v49 = vxor.u32 %v4594_v62, %v4530_v37  ;;  %6605 = vmatpush1.bf16.msra.mxu0 %v10300_v28 }
 0x2b9   :  { %9064 = vmatmul.mubr.msk.bf16.gmra.mrb[36].mxu1 %vm14240_vm0, %v14239_v9  ;;  %v3918_v18 = vmul.f32 0.2, %v9775_v2  ;;  %vm12204_vm11 = vcmp.ge.s32.totalorder %v4706_v24, 2516582  ;;  %v14242_v56 = vmov 0  ;;  %vm14244_vm9 = vcmp.ge.f32.partialorder %v9772_v23, 0.0  ;;  %6606 = vmatprep.subr.bf16.mxu0 %v10308_v25 }
 0x2ba   :  { %6751 = vmatpush1.bf16.msra.mxu1 %v10270_v29  ;;  %v14243_v56 = vsel %vm12204_vm11, 4294967295, %v14242_v56  ;;  %v3973_v50 = vsel %vm14244_vm9, %v9772_v23, %v3909_v46  ;;  %v3981_v53 = vsel %vm3853_vm15, %v9774_v6, %v3917_v21  ;;  %3790 = vmatprep.mubr.bf16.mxu1 %v14220_v14  ;;  %v10278_v41 = vld [vmem:[#allocation9 + $0x8c] ss:$16 sps:$4 sm:$0xff]   ;;  %vm12210_vm0 = vcmp.ge.s32.totalorder %v4714_v32, 2516582  ;;  %v3218_v24 = vpop.f32.mrb[28].mxu1  ;;  %vm14048_vm15 = vmpackc.low %vm12176_vm1, %vm12141_vm14 }
 0x2bb   :  { %6752 = vmatprep.subr.bf16.mxu1 %v10275_v40  ;;  %vm14247_vm4 = vcmp.ge.f32.partialorder %v9773_v54, 0.0  ;;  %v12215_v57 = vpack.c.bf16 %v3981_v53, %v3973_v50  ;;  %v3982_v29 = vsel %vm3854_vm12, %v9775_v2, %v3918_v18  ;;  %v10276_v23 = vld [vmem:[#allocation9 + $0x88] ss:$16 sps:$4 sm:$0xff]   ;;  %v4666_v40 = vxor.u32 %v4602_v7, %v4538_v34  ;;  %v10306_v46 = vld [vmem:[#allocation9 + $0x460] ss:$16 sps:$4 sm:$0xff]   ;;  %v3220_v37 = vpop.f32.mrb[29].mxu1  ;;  %vm14049_vm12 = vmpackc.low %vm12210_vm0, %vm12204_vm11 }
 0x2bc   :  { %v3974_v42 = vsel %vm14247_vm4, %v9773_v54, %v3910_v13  ;;  %v9776_v6 = vadd.f32 %v3218_v24, %v11994_v43  ;;  %v10281_v62 = vld [vmem:[#allocation9 + $0xac] ss:$16 sps:$4 sm:$0xff]   ;;  %vm12224_vm4 = vcmp.ge.s32.totalorder %v4723_v55, 2516582  ;;  %v14248_v54 = vmov 0  ;;  %v3222_v21 = vpop.f32.mrb[30].mxu1  ;;  %6607 = vmatpush1.bf16.msra.mxu0 %v10306_v46 }
 0x2bd   :  { %v12221_v32 = vpack.c.bf16 %v3982_v29, %v3974_v42  ;;  %v14249_v54 = vsel %vm12224_vm4, 4294967295, %v14248_v54  ;;  %v10314_v13 = vld [vmem:[#allocation9 + $0x484] ss:$16 sps:$4 sm:$0xff]   ;;  %v9777_v2 = vadd.f32 %v3220_v37, %v12037_v39  ;;  %vm12229_vm9 = vcmp.ge.s32.totalorder %v4731_v61, 2516582  ;;  %v3224_v18 = vpop.f32.mrb[31].mxu1 }
 0x2be   :  { %14250 = vst [vmem:[#allocation31_spill] sm:$0xff] %v14249_v54  ;;  %6753 = vmatpush1.bf16.msra.mxu1 %v10273_v38  ;;  %v14251_v34 = vmov 0  ;;  %v10312_v7 = vld [vmem:[#allocation9 + $0x480] ss:$16 sps:$4 sm:$0xff]   ;;  %v3925_v28 = vmul.f32 0.2, %v9776_v6  ;;  %v9778_v9 = vadd.f32 %v3222_v21, %v11994_v43  ;;  %v9779_v38 = vadd.f32 %v3224_v18, %v12037_v39  ;;  %6608 = vmatprep.subr.bf16.mxu0 %v10314_v13 }
 0x2bf   :  { %v14252_v34 = vsel %vm12229_vm9, 4294967295, %v14251_v34  ;;  %9361 = vmatprep.mubr.msk.bf16.mxu0 %vm14048_vm15, %v12221_v32  ;;  %6754 = vmatprep.subr.bf16.mxu1 %v10278_v41  ;;  %v4722_v55 = vand.u32 8388607, %v4658_v49  ;;  %vm3861_vm7 = vcmp.ge.f32.partialorder %v9776_v6, 0.0  ;;  %v3926_v61 = vmul.f32 0.2, %v9777_v2 }
 0x2c0   :  { %14253 = vst [vmem:[#allocation32_spill] sm:$0xff] %v14252_v34  ;;  %v4730_v43 = vand.u32 8388607, %v4666_v40  ;;  %vm3862_vm8 = vcmp.ge.f32.partialorder %v9777_v2, 0.0  ;;  %vm3869_vm10 = vcmp.ge.f32.partialorder %v9778_v9, 0.0  ;;  %v14254_v50 = vld [vmem:[#allocation33_spill] sm:$0xff]  ;;  %9364 = vmatmul.mubr.msk.bf16.gmra.mrb[40].mxu0 %vm14049_vm12, %v12215_v57  ;;  %v3989_v49 = vsel %vm3861_vm7, %v9776_v6, %v3925_v28  ;;  %vm14070_vm12 = vmpackc.low %vm12229_vm9, %vm12224_vm4 }
 0x2c1   :  { %v3933_v25 = vmul.f32 0.2, %v9778_v9  ;;  %vm14255_vm2 = vcmask 130048   ;;  %v10320_v53 = vld [vmem:[#allocation9 + $0x4a4] ss:$16 sps:$4 sm:$0xff]   ;;  %vm3870_vm15 = vcmp.ge.f32.partialorder %v9779_v38, 0.0  ;;  %v3990_v40 = vsel %vm3862_vm8, %v9777_v2, %v3926_v61  ;;  %6609 = vmatpush1.bf16.msra.mxu0 %v10312_v7 }
 0x2c2   :  { %9065 = vmatmul.mubr.msk.bf16.gmra.mrb[40].mxu1 %vm14255_vm2, %v14254_v50  ;;  %v3934_v41 = vmul.f32 0.2, %v9779_v38  ;;  %v10279_v39 = vld [vmem:[#allocation9 + $0xa8] ss:$16 sps:$4 sm:$0xff]   ;;  %v10284_v29 = vld [vmem:[#allocation9 + $0xcc] ss:$16 sps:$4 sm:$0xff]   ;;  %6610 = vmatprep.subr.bf16.mxu0 %v10320_v53 }
 0x2c3   :  { %6755 = vmatpush1.bf16.msra.mxu1 %v10276_v23  ;;  %v3997_v42 = vsel %vm3869_vm10, %v9778_v9, %v3933_v25  ;;  %3800 = vmatprep.mubr.bf16.mxu1 %v14220_v14  ;;  %vm12255_vm2 = vcmp.ge.s32.totalorder %v4722_v55, 2516582  ;;  %v14256_v24 = vmov 0  ;;  %vm12266_vm7 = vcmp.ge.s32.totalorder %v4730_v43, 2516582  ;;  %v14263_v7 = vld [vmem:[#allocation34_spill] sm:$0xff] }
 0x2c4   :  { %6756 = vmatprep.subr.bf16.mxu1 %v10281_v62  ;;  %v14257_v24 = vsel %vm12255_vm2, 4294967295, %v14256_v24  ;;  %v12260_v46 = vpack.c.bf16 %v3997_v42, %v3989_v49  ;;  %v3998_v37 = vsel %vm3870_vm15, %v9779_v38, %v3934_v41  ;;  %v14260_v23 = vmov 0  ;;  %v10318_v14 = vld [vmem:[#allocation9 + $0x4a0] ss:$16 sps:$4 sm:$0xff]   ;;  %v10326_v62 = vld [vmem:[#allocation9 + $0x4c4] ss:$16 sps:$4 sm:$0xff]   ;;  %vm14069_vm8 = vmpackc.low %vm12266_vm7, %vm12255_vm2 }
 0x2c5   :  { %14258 = vst [vmem:[#allocation33_spill] sm:$0xff] %v14257_v24  ;;  %v14261_v23 = vsel %vm12266_vm7, 4294967295, %v14260_v23  ;;  %v12270_v6 = vpack.c.bf16 %v3998_v37, %v3990_v40  ;;  %v10282_v13 = vld [vmem:[#allocation9 + $0xc8] ss:$16 sps:$4 sm:$0xff]   ;;  %v10287_v2 = vld [vmem:[#allocation9 + $0xec] ss:$16 sps:$4 sm:$0xff]   ;;  %6611 = vmatpush1.bf16.msra.mxu0 %v10318_v14  ;;  %vm14268_vm15 = vmpackc.low %vm11540_vm3, %vm11516_vm13  ;;  %vm14270_vm3 = vnez %v14170_v22 }
 0x2c6   :  { %14259 = vst [vmem:[#allocation65_spill] sm:$0xff] %v12260_v46  ;;  %14262 = vst [vmem:[#allocation66_spill] sm:$0xff] %v14261_v23  ;;  %v10324_v21 = vld [vmem:[#allocation9 + $0x4c0] ss:$16 sps:$4 sm:$0xff]   ;;  %vm14264_vm10 = vcmask 130048   ;;  %6612 = vmatprep.subr.bf16.mxu0 %v10326_v62  ;;  %v14265_v18 = vld [vmem:[#allocation43_spill] sm:$0xff] }
 0x2c7   :  { %6757 = vmatpush1.bf16.msra.mxu1 %v10279_v39  ;;  %9367 = vmatprep.mubr.msk.bf16.mxu0 %vm14070_vm12, %v12270_v6  ;;  %v10332_v28 = vld [vmem:[#allocation9 + $0x4e4] ss:$16 sps:$4 sm:$0xff]   ;;  %v10285_v9 = vld [vmem:[#allocation9 + $0xe8] ss:$16 sps:$4 sm:$0xff]   ;;  %v10293_v38 = vld [vmem:[#allocation9 + $0x10c] ss:$16 sps:$4 sm:$0xff]  }
 0x2c8   :  { %6758 = vmatprep.subr.bf16.mxu1 %v10284_v29  ;;  %9370 = vmatmul.mubr.msk.bf16.gmra.mrb[44].mxu0 %vm14069_vm8, %v12260_v46  ;;  %v10330_v43 = vld [vmem:[#allocation9 + $0x4e0] ss:$16 sps:$4 sm:$0xff]   ;;  %v10338_v25 = vld [vmem:[#allocation9 + $0x504] ss:$16 sps:$4 sm:$0xff]   ;;  %v10291_v50 = vld [vmem:[#allocation9 + $0x108] ss:$16 sps:$4 sm:$0xff]  }
 0x2c9   :  { %6613 = vmatpush1.bf16.msra.mxu0 %v10324_v21  ;;  %v10299_v53 = vld [vmem:[#allocation9 + $0x12c] ss:$16 sps:$4 sm:$0xff]   ;;  %v12297_v41 = vadd.s32 640, %v11288_v3  ;;  %v10336_v39 = vld [vmem:[#allocation9 + $0x500] ss:$16 sps:$4 sm:$0xff]   ;;  %v12300_v42 = vadd.s32 512, %v11288_v3  ;;  %vm14269_vm13 = vmpackc.low %vm11759_vm6, %vm11750_vm5  ;;  %vm14273_vm5 = vnez %v14176_v16  ;;  %vm14274_vm6 = vnez %v14174_v31 }
 0x2ca   :  { %9066 = vmatmul.mubr.msk.bf16.gmra.mrb[44].mxu1 %vm14264_vm10, %v14263_v7  ;;  %6614 = vmatprep.subr.bf16.mxu0 %v10332_v28  ;;  %v10344_v49 = vld [vmem:[#allocation9 + $0x524] ss:$16 sps:$4 sm:$0xff]   ;;  %v10297_v29 = vld [vmem:[#allocation9 + $0x128] ss:$16 sps:$4 sm:$0xff]   ;;  %v10305_v40 = vld [vmem:[#allocation9 + $0x14c] ss:$16 sps:$4 sm:$0xff]   ;;  %vm14271_vm10 = vnez %v14167_v26 }
 0x2cb   :  { %6759 = vmatpush1.bf16.msra.mxu1 %v10282_v13  ;;  %9421 = vmatprep.mubr.msk.bf16.mxu1 %vm14268_vm15, %v14265_v18  ;;  %v4034_v37 = vadd.s32 %v11300_v27, %v12297_v41  ;;  %v10342_v14 = vld [vmem:[#allocation9 + $0x520] ss:$16 sps:$4 sm:$0xff]   ;;  %v4042_v62 = vadd.s32 %v11303_v10, %v12297_v41  ;;  %v10350_v13 = vld [vmem:[#allocation9 + $0x544] ss:$16 sps:$4 sm:$0xff]   ;;  %v10303_v21 = vld [vmem:[#allocation9 + $0x148] ss:$16 sps:$4 sm:$0xff]   ;;  %v4041_v7 = vadd.s32 %v11303_v10, %v12300_v42 }
 0x2cc   :  { %6760 = vmatprep.subr.bf16.mxu1 %v10287_v2  ;;  %v4033_v2 = vadd.s32 %v11300_v27, %v12300_v42  ;;  %v10311_v28 = vld [vmem:[#allocation9 + $0x16c] ss:$16 sps:$4 sm:$0xff]   ;;  %v10348_v18 = vld [vmem:[#allocation9 + $0x540] ss:$16 sps:$4 sm:$0xff]   ;;  %v10356_v61 = vld [vmem:[#allocation9 + $0x564] ss:$16 sps:$4 sm:$0xff]   ;;  %v4074_v10 = vadd.s32 %v11554_v17, %v12297_v41 }
 0x2cd   :  { %6615 = vmatpush1.bf16.msra.mxu0 %v10330_v43  ;;  %v4109_v55 = vxor.u32 %v11309_v44, %v4042_v62  ;;  %v10309_v43 = vld [vmem:[#allocation9 + $0x168] ss:$16 sps:$4 sm:$0xff]   ;;  %v4049_v62 = vadd.s32 %v11468_v47, %v12300_v42  ;;  %v10368_v3 = vld [vmem:[#allocation9 + $0x5a4] ss:$16 sps:$4 sm:$0xff]   ;;  %vm14272_vm15 = vmpackc.low %vm14270_vm3, %vm14271_vm10  ;;  %vm14276_vm3 = vnez %v14181_v19 }
 0x2ce   :  { %6616 = vmatprep.subr.bf16.mxu0 %v10338_v25  ;;  %v4108_v25 = vxor.u32 %v11309_v44, %v4041_v7  ;;  %v4066_v7 = vadd.s32 %v11548_v0, %v12297_v41  ;;  %v10512_v5 = vld [vmem:[#allocation9 + $0x7a4] ss:$16 sps:$4 sm:$0xff]   ;;  %v10426_v35 = vld [vmem:[#allocation9 + $0x4c8] ss:$16 sps:$4 sm:$0xff]  }
 0x2cf   :  { %6761 = vmatpush1.bf16.msra.mxu1 %v10285_v9  ;;  %v4101_v9 = vxor.u32 %v11309_v44, %v4034_v37  ;;  %v10362_v37 = vld [vmem:[#allocation9 + $0x584] ss:$16 sps:$4 sm:$0xff]   ;;  %v4116_v24 = vxor.u32 %v11309_v44, %v4049_v62 }
 0x2d0   :  { %6762 = vmatprep.subr.bf16.mxu1 %v10293_v38  ;;  %v4100_v38 = vxor.u32 %v11309_v44, %v4033_v2  ;;  %v4172_v2 = vshrl.u32 %v4108_v25, 16  ;;  %v14356_v33 = vld [vmem:[#allocation32_spill] sm:$0xff] }
 0x2d1   :  { %6617 = vmatpush1.bf16.msra.mxu0 %v10336_v39  ;;  %v4050_v39 = vadd.s32 %v11468_v47, %v12297_v41  ;;  %v10360_v47 = vld [vmem:[#allocation9 + $0x580] ss:$16 sps:$4 sm:$0xff]   ;;  %v4180_v62 = vshrl.u32 %v4116_v24, 16 }
 0x2d2   :  { %6618 = vmatprep.subr.bf16.mxu0 %v10344_v49  ;;  %v10354_v49 = vld [vmem:[#allocation9 + $0x560] ss:$16 sps:$4 sm:$0xff]   ;;  %v4236_v23 = vxor.u32 %v4172_v2, %v4108_v25  ;;  %v10327_v25 = vld [vmem:[#allocation9 + $0x1c8] ss:$16 sps:$4 sm:$0xff]  }
 0x2d3   :  { %6763 = vmatpush1.bf16.msra.mxu1 %v10291_v50  ;;  %v10317_v50 = vld [vmem:[#allocation9 + $0x18c] ss:$16 sps:$4 sm:$0xff]   ;;  %v12343_v34 = vxor.u32 %v4180_v62, %v4116_v24  ;;  %v10378_v24 = vld [vmem:[#allocation9 + $0x5e0] ss:$16 sps:$4 sm:$0xff]  }
 0x2d4   :  { %6764 = vmatprep.subr.bf16.mxu1 %v10299_v53  ;;  %v4165_v53 = vshrl.u32 %v4101_v9, 16 }
 0x2d5   :  { %6619 = vmatpush1.bf16.msra.mxu0 %v10342_v14  ;;  %v4164_v14 = vshrl.u32 %v4100_v38, 16 }
 0x2d6   :  { %6620 = vmatprep.subr.bf16.mxu0 %v10350_v13  ;;  %v10315_v13 = vld [vmem:[#allocation9 + $0x188] ss:$16 sps:$4 sm:$0xff]  }
 0x2d7   :  { %6765 = vmatpush1.bf16.msra.mxu1 %v10297_v29  ;;  %v4173_v29 = vshrl.u32 %v4109_v55, 16 }
 0x2d8   :  { %6766 = vmatprep.subr.bf16.mxu1 %v10305_v40  ;;  %v4058_v40 = vadd.s32 %v11495_v45, %v12297_v41 }
 0x2d9   :  { %6621 = vmatpush1.bf16.msra.mxu0 %v10348_v18  ;;  %v12324_v18 = vxor.u32 %v4165_v53, %v4101_v9  ;;  %v4133_v53 = vxor.u32 %v11309_v44, %v4066_v7  ;;  %v4065_v7 = vadd.s32 %v11548_v0, %v12300_v42 }
 0x2da   :  { %6622 = vmatprep.subr.bf16.mxu0 %v10356_v61  ;;  %v4117_v61 = vxor.u32 %v11309_v44, %v4050_v39  ;;  %v4125_v27 = vxor.u32 %v11309_v44, %v4058_v40  ;;  %v10329_v39 = vld [vmem:[#allocation9 + $0x1cc] ss:$16 sps:$4 sm:$0xff]  }
 0x2db   :  { %6767 = vmatpush1.bf16.msra.mxu1 %v10303_v21  ;;  %v4057_v21 = vadd.s32 %v11495_v45, %v12300_v42  ;;  %v4228_v45 = vxor.u32 %v4164_v14, %v4100_v38 }
 0x2dc   :  { %6768 = vmatprep.subr.bf16.mxu1 %v10311_v28  ;;  %v10323_v28 = vld [vmem:[#allocation9 + $0x1ac] ss:$16 sps:$4 sm:$0xff]   ;;  %v4181_v46 = vshrl.u32 %v4117_v61, 16  ;;  %v4189_v38 = vshrl.u32 %v4125_v27, 16 }
 0x2dd   :  { %6623 = vmatpush1.bf16.msra.mxu0 %v10354_v49  ;;  %v4124_v9 = vxor.u32 %v11309_v44, %v4057_v21  ;;  %v4293_v49 = vmul.u32 2246822507, %v12324_v18  ;;  %v4292_v14 = vmul.u32 2246822507, %v4228_v45  ;;  %v4197_v21 = vshrl.u32 %v4133_v53, 16 }
 0x2de   :  { %6624 = vmatprep.subr.bf16.mxu0 %v10362_v37  ;;  %v10374_v37 = vld [vmem:[#allocation9 + $0x5c4] ss:$16 sps:$4 sm:$0xff]   ;;  %v12337_v18 = vxor.u32 %v4181_v46, %v4117_v61 }
 0x2df   :  { %6769 = vmatpush1.bf16.msra.mxu1 %v10309_v43  ;;  %v4237_v43 = vxor.u32 %v4173_v29, %v4109_v55  ;;  %v4141_v55 = vxor.u32 %v11309_v44, %v4074_v10  ;;  %v10366_v29 = vld [vmem:[#allocation9 + $0x5a0] ss:$16 sps:$4 sm:$0xff]   ;;  %v4188_v2 = vshrl.u32 %v4124_v9, 16  ;;  %v4357_v45 = vshrl.u32 %v4293_v49, 13 }
 0x2e0   :  { %6770 = vmatprep.subr.bf16.mxu1 %v10317_v50  ;;  %v10321_v50 = vld [vmem:[#allocation9 + $0x1a8] ss:$16 sps:$4 sm:$0xff]   ;;  %v4356_v54 = vshrl.u32 %v4292_v14, 13  ;;  %v12347_v61 = vxor.u32 %v4197_v21, %v4133_v53  ;;  %v4308_v21 = vmul.u32 2246822507, %v12343_v34  ;;  %v648_v34 = vsub.s32 4, %v11286_v36 }
 0x2e1   :  { %6625 = vmatpush1.bf16.msra.mxu0 %v10360_v47  ;;  %v4301_v40 = vmul.u32 2246822507, %v4237_v43  ;;  %v4205_v10 = vshrl.u32 %v4141_v55, 16  ;;  %v4073_v47 = vadd.s32 %v11554_v17, %v12300_v42  ;;  %v12341_v43 = vxor.u32 %v4189_v38, %v4125_v27 }
 0x2e2   :  { %6626 = vmatprep.subr.bf16.mxu0 %v10368_v3  ;;  %v10372_v3 = vld [vmem:[#allocation9 + $0x5c0] ss:$16 sps:$4 sm:$0xff]   ;;  %v12345_v46 = vxor.u32 %v4188_v2, %v4124_v9  ;;  %v4132_v17 = vxor.u32 %v11309_v44, %v4065_v7  ;;  %v4309_v27 = vmul.u32 2246822507, %v12337_v18  ;;  %v12354_v62 = vxor.u32 %v4357_v45, %v4293_v49  ;;  %v10339_v9 = vld [vmem:[#allocation9 + $0x208] ss:$16 sps:$4 sm:$0xff]  }
 0x2e3   :  { %6771 = vmatpush1.bf16.msra.mxu1 %v10315_v13  ;;  %v4300_v13 = vmul.u32 2246822507, %v4236_v23  ;;  %v10380_v23 = vld [vmem:[#allocation9 + $0x5e4] ss:$16 sps:$4 sm:$0xff]   ;;  %v12351_v38 = vxor.u32 %v4205_v10, %v4141_v55  ;;  %v12359_v2 = vxor.u32 %v4356_v54, %v4292_v14  ;;  %v4325_v18 = vmul.u32 2246822507, %v12347_v61 }
 0x2e4   :  { %6772 = vmatprep.subr.bf16.mxu1 %v10323_v28  ;;  %v10335_v28 = vld [vmem:[#allocation9 + $0x1ec] ss:$16 sps:$4 sm:$0xff]   ;;  %v10434_v7 = vld [vmem:[#allocation9 + $0x604] ss:$16 sps:$4 sm:$0xff]   ;;  %v4196_v49 = vshrl.u32 %v4132_v17, 16  ;;  %v4082_v54 = vadd.s32 %v11608_v58, %v12297_v41  ;;  %v652_v45 = vsub.s32 5, %v11286_v36 }
 0x2e5   :  { %6627 = vmatpush1.bf16.msra.mxu0 %v10366_v29  ;;  %v4364_v0 = vshrl.u32 %v4300_v13, 13  ;;  %v10341_v29 = vld [vmem:[#allocation9 + $0x20c] ss:$16 sps:$4 sm:$0xff]  }
 0x2e6   :  { %6628 = vmatprep.subr.bf16.mxu0 %v10374_v37  ;;  %v4140_v37 = vxor.u32 %v11309_v44, %v4073_v47  ;;  %v10347_v10 = vld [vmem:[#allocation9 + $0x22c] ss:$16 sps:$4 sm:$0xff]   ;;  %v4373_v47 = vshrl.u32 %v4309_v27, 13  ;;  %v4149_v22 = vxor.u32 %v11309_v44, %v4082_v54 }
 0x2e7   :  { %6773 = vmatpush1.bf16.msra.mxu1 %v10321_v50  ;;  %v4365_v50 = vshrl.u32 %v4301_v40, 13  ;;  %v12362_v55 = vxor.u32 %v4364_v0, %v4300_v13  ;;  %v4485_v0 = vmul.u32 3266489909, %v12354_v62  ;;  %v4090_v13 = vadd.s32 %v11611_v59, %v12297_v41 }
 0x2e8   :  { %6774 = vmatprep.subr.bf16.mxu1 %v10329_v39  ;;  %v10333_v39 = vld [vmem:[#allocation9 + $0x1e8] ss:$16 sps:$4 sm:$0xff]   ;;  %v4389_v41 = vshrl.u32 %v4325_v18, 13  ;;  %v12391_v61 = vxor.u32 %v4373_v47, %v4309_v27  ;;  %v4081_v62 = vadd.s32 %v11608_v58, %v12300_v42  ;;  %v4089_v27 = vadd.s32 %v11611_v59, %v12300_v42 }
 0x2e9   :  { %6629 = vmatpush1.bf16.msra.mxu0 %v10372_v3  ;;  %v12357_v53 = vxor.u32 %v4365_v50, %v4301_v40  ;;  %v4333_v3 = vmul.u32 2246822507, %v12351_v38  ;;  %v4204_v40 = vshrl.u32 %v4140_v37, 16  ;;  %v4372_v50 = vshrl.u32 %v4308_v21, 13 }
 0x2ea   :  { %6630 = vmatprep.subr.bf16.mxu0 %v10380_v23  ;;  %v4484_v23 = vmul.u32 3266489909, %v12359_v2  ;;  %v4492_v52 = vmul.u32 3266489909, %v12362_v55  ;;  %v4549_v26 = vshrl.u32 %v4485_v0, 16 }
 0x2eb   :  { %6775 = vmatpush1.bf16.msra.mxu1 %v10327_v25  ;;  %v4317_v25 = vmul.u32 2246822507, %v12341_v43  ;;  %v4493_v43 = vmul.u32 3266489909, %v12357_v53  ;;  %v12393_v38 = vxor.u32 %v4204_v40, %v4140_v37  ;;  %v12399_v2 = vxor.u32 %v4372_v50, %v4308_v21  ;;  %v10359_v37 = vld [vmem:[#allocation9 + $0x26c] ss:$16 sps:$4 sm:$0xff]  }
 0x2ec   :  { %6776 = vmatprep.subr.bf16.mxu1 %v10335_v28  ;;  %v4316_v28 = vmul.u32 2246822507, %v12345_v46  ;;  %v10353_v46 = vld [vmem:[#allocation9 + $0x24c] ss:$16 sps:$4 sm:$0xff]   ;;  %v4213_v40 = vshrl.u32 %v4149_v22, 16  ;;  %v4613_v54 = vxor.u32 %v4549_v26, %v4485_v0 }
 0x2ed   :  { %6631 = vmatpush1.bf16.msra.mxu0 %v10378_v24  ;;  %v4381_v14 = vshrl.u32 %v4317_v25, 13  ;;  %v4557_v53 = vshrl.u32 %v4493_v43, 16  ;;  %v4332_v21 = vmul.u32 2246822507, %v12393_v38  ;;  %v14277_v0 = vld [vmem:[#allocation25_spill] sm:$0xff] }
 0x2ee   :  { %6673 = vmatprep.subr.bf16.mxu0 %v10434_v7  ;;  %v4556_v7 = vshrl.u32 %v4492_v52, 16  ;;  %vm14278_vm10 = vnez %v14277_v0  ;;  %v4677_v19 = vand.u32 8388607, %v4613_v54  ;;  %v14281_v54 = vld [vmem:[#allocation27_spill] sm:$0xff]  ;;  %v14289_v0 = vld [vmem:[#allocation58_spill] sm:$0xff] }
 0x2ef   :  { %6777 = vmatpush1.bf16.msra.mxu1 %v10333_v39  ;;  %v12389_v39 = vxor.u32 %v4196_v49, %v4132_v17  ;;  %v4445_v24 = vxor.u32 %v4381_v14, %v4317_v25  ;;  %v4548_v17 = vshrl.u32 %v4484_v23, 16  ;;  %v12405_v49 = vxor.u32 %v4389_v41, %v4325_v18 }
 0x2f0   :  { %6819 = vmatprep.subr.bf16.mxu1 %v10341_v29  ;;  %v4397_v29 = vshrl.u32 %v4333_v3, 13  ;;  %v4621_v18 = vxor.u32 %v4557_v53, %v4493_v43  ;;  %v4620_v16 = vxor.u32 %v4556_v7, %v4492_v52  ;;  %v10365_v43 = vld [vmem:[#allocation9 + $0x28c] ss:$16 sps:$4 sm:$0xff]  }
 0x2f1   :  { %v4324_v25 = vmul.u32 2246822507, %v12389_v39  ;;  %v4509_v14 = vmul.u32 3266489909, %v4445_v24  ;;  %v4612_v50 = vxor.u32 %v4548_v17, %v4484_v23  ;;  %v4396_v39 = vshrl.u32 %v4332_v21, 13 }
 0x2f2   :  { %9424 = vmatmul.mubr.msk.bf16.vlgmr.msra.gmra.mrb[48].mxu1 %vm14269_vm13, %v11399_v4  ;;  %v4380_v4 = vshrl.u32 %v4316_v28, 13  ;;  %v12409_v47 = vxor.u32 %v4397_v29, %v4333_v3  ;;  %vm14275_vm13 = vmpackc.low %vm14273_vm5, %vm14274_vm6  ;;  %v4500_v3 = vmul.u32 3266489909, %v12399_v2  ;;  %v4685_v38 = vand.u32 8388607, %v4621_v18  ;;  %v14286_v18 = vld [vmem:[#allocation55_spill] sm:$0xff] }
 0x2f3   :  { %9427 = vmatprep.mubr.msk.bf16.mxu1 %vm14272_vm15, %v11454_v1  ;;  %6820 = vmatpush1.bf16.msra.mxu1 %v10339_v9  ;;  %v4157_v1 = vxor.u32 %v11309_v44, %v4090_v13  ;;  %v10351_v9 = vld [vmem:[#allocation9 + $0x248] ss:$16 sps:$4 sm:$0xff]   ;;  %v4148_v13 = vxor.u32 %v11309_v44, %v4081_v62  ;;  %vm14279_vm15 = vmpackc.low %vm14276_vm3, %vm14278_vm10  ;;  %v4676_v52 = vand.u32 8388607, %v4612_v50  ;;  %v12438_v7 = vxor.u32 %v4396_v39, %v4332_v21 }
 0x2f4   :  { %6821 = vmatprep.subr.bf16.mxu1 %v10347_v10  ;;  %v12403_v55 = vxor.u32 %v4380_v4, %v4316_v28  ;;  %v4501_v10 = vmul.u32 3266489909, %v12391_v61  ;;  %v10357_v28 = vld [vmem:[#allocation9 + $0x268] ss:$16 sps:$4 sm:$0xff]   ;;  %v4388_v4 = vshrl.u32 %v4324_v25, 13  ;;  %v4573_v61 = vshrl.u32 %v4509_v14, 16 }
 0x2f5   :  { %v4221_v42 = vshrl.u32 %v4157_v1, 16  ;;  %v4525_v41 = vmul.u32 3266489909, %v12409_v47  ;;  %v4564_v26 = vshrl.u32 %v4500_v3, 16  ;;  %v10363_v62 = vld [vmem:[#allocation9 + $0x288] ss:$16 sps:$4 sm:$0xff]   ;;  %vm14282_vm5 = vnez %v14281_v54 }
 0x2f6   :  { %v4508_v31 = vmul.u32 3266489909, %v12403_v55  ;;  %v4565_v23 = vshrl.u32 %v4501_v10, 16  ;;  %v12434_v2 = vxor.u32 %v4388_v4, %v4324_v25  ;;  %v12441_v55 = vxor.u32 %v4573_v61, %v4509_v14  ;;  %v14283_v25 = vld [vmem:[#allocation26_spill] sm:$0xff]  ;;  %v10369_v14 = vld [vmem:[#allocation9 + $0x2a8] ss:$16 sps:$4 sm:$0xff]  }
 0x2f7   :  { %6822 = vmatpush1.bf16.msra.mxu1 %v10345_v51  ;;  %v4156_v51 = vxor.u32 %v11309_v44, %v4089_v27  ;;  %v12432_v29 = vxor.u32 %v4221_v42, %v4157_v1  ;;  %v10371_v27 = vld [vmem:[#allocation9 + $0x2ac] ss:$16 sps:$4 sm:$0xff]   ;;  %vm14284_vm6 = vnez %v14283_v25  ;;  %vm14290_vm10 = vnez %v14289_v0  ;;  %v10441_v4 = vld [vmem:[#allocation9 + $0x528] ss:$16 sps:$4 sm:$0xff]  }
 0x2f8   :  { %6823 = vmatprep.subr.bf16.mxu1 %v10353_v46  ;;  %v12430_v46 = vxor.u32 %v4213_v40, %v4149_v22  ;;  %v4572_v53 = vshrl.u32 %v4508_v31, 16  ;;  %v12436_v22 = vxor.u32 %v4565_v23, %v4501_v10  ;;  %v14280_v40 = vld [vmem:[#allocation48_spill] sm:$0xff]  ;;  %v12452_v10 = vld [vmem:[#allocation8] sm:$0xff]  ;;  %v14287_v50 = vld [vmem:[#allocation59_spill] sm:$0xff]  ;;  %v14298_v23 = vmov 0 }
 0x2f9   :  { %v4220_v24 = vshrl.u32 %v4156_v51, 16  ;;  %v12457_v21 = vrot.slane %v12452_v10, %v648_v34  ;;  %v12462_v42 = vrot.slane %v12452_v10, %v652_v45  ;;  %vm14288_vm3 = vnez %v14287_v50 }
 0x2fa   :  { %9430 = vmatmul.mubr.msk.bf16.gmra.mrb[52].mxu1 %vm14275_vm13, %v11445_v11  ;;  %v4517_v11 = vmul.u32 3266489909, %v12405_v49  ;;  %v4341_v1 = vmul.u32 2246822507, %v12430_v46  ;;  %vm14285_vm13 = vmpackc.low %vm14282_vm5, %vm14284_vm6  ;;  %vm12472_vm5 = vcmp.ge.s32.totalorder %v4677_v19, 2516582  ;;  %v4636_v45 = vxor.u32 %v4572_v53, %v4508_v31 }
 0x2fb   :  { %9433 = vmatprep.mubr.msk.bf16.mxu1 %vm14279_vm15, %v11505_v60  ;;  %6824 = vmatpush1.bf16.msra.mxu1 %v10351_v9  ;;  %v4212_v60 = vshrl.u32 %v4148_v13, 16  ;;  %v4684_v9 = vand.u32 8388607, %v4620_v16  ;;  %v4349_v49 = vmul.u32 2246822507, %v12432_v29  ;;  %vm14291_vm15 = vmpackc.low %vm14288_vm3, %vm14290_vm10  ;;  %v14292_v34 = vmov 0 }
 0x2fc   :  { %6825 = vmatprep.subr.bf16.mxu1 %v10359_v37  ;;  %v4581_v17 = vshrl.u32 %v4517_v11, 16  ;;  %v4589_v37 = vshrl.u32 %v4525_v41, 16  ;;  %v10377_v16 = vld [vmem:[#allocation9 + $0x2cc] ss:$16 sps:$4 sm:$0xff]   ;;  %v14293_v34 = vsel %vm12472_vm5, 4294967295, %v14292_v34  ;;  %v4405_v31 = vshrl.u32 %v4341_v1, 13 }
 0x2fd   :  { %v12444_v47 = vxor.u32 %v4212_v60, %v4148_v13  ;;  %v4628_v13 = vxor.u32 %v4564_v26, %v4500_v3  ;;  %vm12476_vm6 = vcmp.ge.s32.totalorder %v4685_v38, 2516582  ;;  %vm12487_vm3 = vcmp.ge.s32.totalorder %v4684_v9, 2516582  ;;  %v3480_v38 = vpop.f32.mrb[16].mxu0 }
 0x2fe   :  { %v12480_v3 = vxor.u32 %v4581_v17, %v4517_v11  ;;  %v14299_v23 = vsel %vm12487_vm3, 4294967295, %v14298_v23  ;;  %v4693_v39 = vand.u32 8388607, %v12436_v22  ;;  %v12492_v46 = vxor.u32 %v4589_v37, %v4525_v41  ;;  %v10375_v11 = vld [vmem:[#allocation9 + $0x2c8] ss:$16 sps:$4 sm:$0xff]  }
 0x2ff   :  { %6826 = vmatpush1.bf16.msra.mxu1 %v10357_v28  ;;  %v12464_v28 = vxor.u32 %v4220_v24, %v4156_v51  ;;  %v4516_v51 = vmul.u32 3266489909, %v12434_v2  ;;  %v4524_v19 = vmul.u32 3266489909, %v12438_v7  ;;  %v4701_v61 = vand.u32 8388607, %v12441_v55 }
 0x300   :  { %6827 = vmatprep.subr.bf16.mxu1 %v10365_v43  ;;  %v14296_v43 = vmov 0  ;;  %v4413_v29 = vshrl.u32 %v4349_v49, 13  ;;  %v4340_v60 = vmul.u32 2246822507, %v12444_v47  ;;  %v9780_v24 = vadd.f32 %v3480_v38, %v12457_v21 }
 0x301   :  { %v4348_v26 = vmul.u32 2246822507, %v12464_v28  ;;  %v4700_v9 = vand.u32 8388607, %v4636_v45  ;;  %v4709_v41 = vand.u32 8388607, %v12480_v3  ;;  %v12502_v7 = vxor.u32 %v4405_v31, %v4341_v1 }
 0x302   :  { %9436 = vmatmul.mubr.msk.bf16.gmra.mrb[56].mxu1 %vm14285_vm13, %v14280_v40  ;;  %vm12483_vm13 = vcmp.ge.s32.totalorder %v4676_v52, 2516582  ;;  %v4692_v52 = vand.u32 8388607, %v4628_v13  ;;  %v4580_v53 = vshrl.u32 %v4516_v51, 16  ;;  %v4588_v37 = vshrl.u32 %v4524_v19, 16 }
 0x303   :  { %9439 = vmatprep.mubr.msk.bf16.mxu1 %vm14291_vm15, %v14286_v18  ;;  %6828 = vmatpush1.bf16.msra.mxu1 %v10363_v62  ;;  %v14297_v43 = vsel %vm12483_vm13, 4294967295, %v14296_v43  ;;  %v3482_v62 = vpop.f32.mrb[17].mxu0  ;;  %v4717_v22 = vand.u32 8388607, %v12492_v46  ;;  %v3879_v55 = vmul.f32 0.2, %v9780_v24  ;;  %v12505_v54 = vxor.u32 %v4413_v29, %v4349_v49 }
 0x304   :  { %6829 = vmatprep.subr.bf16.mxu1 %v10371_v27  ;;  %v9781_v17 = vadd.f32 %v3482_v62, %v12462_v42  ;;  %v3484_v2 = vpop.f32.mrb[18].mxu0  ;;  %v10383_v27 = vld [vmem:[#allocation9 + $0x2ec] ss:$16 sps:$4 sm:$0xff]   ;;  %v4404_v25 = vshrl.u32 %v4340_v60, 13  ;;  %v14302_v18 = vld [vmem:[#allocation60_spill] sm:$0xff]  ;;  %v4412_v50 = vshrl.u32 %v4348_v26, 13  ;;  %v4644_v38 = vxor.u32 %v4580_v53, %v4516_v51 }
 0x305   :  { %v9782_v47 = vadd.f32 %v3484_v2, %v12457_v21  ;;  %v3486_v40 = vpop.f32.mrb[19].mxu0  ;;  %v14300_v28 = vld [vmem:[#allocation61_spill] sm:$0xff]  ;;  %vm14303_vm8 = vnez %v14302_v18  ;;  %v14305_v49 = vld [vmem:[#allocation64_spill] sm:$0xff]  ;;  %vm12520_vm11 = vcmp.ge.s32.totalorder %v4693_v39, 2516582  ;;  %v14311_v29 = vmov 0 }
 0x306   :  { %v9783_v13 = vadd.f32 %v3486_v40, %v12462_v42  ;;  %vm14301_vm15 = vnez %v14300_v28  ;;  %v10381_v1 = vld [vmem:[#allocation9 + $0x2e8] ss:$16 sps:$4 sm:$0xff]   ;;  %v14308_v45 = vld [vmem:[#allocation28_spill] sm:$0xff]  ;;  %v10386_v31 = vld [vmem:[#allocation9 + $0x30c] ss:$16 sps:$4 sm:$0xff]   ;;  %v14312_v29 = vsel %vm12520_vm11, 4294967295, %v14311_v29  ;;  %v12536_v39 = vxor.u32 %v4588_v37, %v4524_v19 }
 0x307   :  { %6830 = vmatpush1.bf16.msra.mxu1 %v10369_v14  ;;  %v3880_v14 = vmul.f32 0.2, %v9781_v17  ;;  %vm14304_vm12 = vmpackc.low %vm14301_vm15, %vm14303_vm8  ;;  %vm3823_vm7 = vcmp.ge.f32.partialorder %v9782_v47, 0.0  ;;  %v3887_v0 = vmul.f32 0.2, %v9782_v47  ;;  %vm14309_vm10 = vnez %v14308_v45  ;;  %v3490_v18 = vpop.f32.mrb[20].mxu0 }
 0x308   :  { %6831 = vmatprep.subr.bf16.mxu1 %v10377_v16  ;;  %v14306_v16 = vld [vmem:[#allocation29_spill] sm:$0xff]  ;;  %vm12524_vm8 = vcmp.ge.s32.totalorder %v4701_v61, 2516582  ;;  %v3888_v62 = vmul.f32 0.2, %v9783_v13  ;;  %v14317_v2 = vmov 0  ;;  %v12542_v53 = vxor.u32 %v4404_v25, %v4340_v60 }
 0x309   :  { %vm14307_vm4 = vnez %v14306_v16  ;;  %vm12528_vm15 = vcmp.ge.s32.totalorder %v4692_v52, 2516582  ;;  %vm12532_vm2 = vcmp.ge.s32.totalorder %v4700_v9, 2516582  ;;  %v4533_v40 = vmul.u32 3266489909, %v12502_v7 }
 0x30a   :  { %9442 = vmatmul.mubr.msk.bf16.gmra.mrb[60].mxu1 %vm14304_vm12, %v11551_v48  ;;  %vm14310_vm9 = vmpackc.low %vm14307_vm4, %vm14309_vm10  ;;  %vm3824_vm12 = vcmp.ge.f32.partialorder %v9783_v13, 0.0  ;;  %v14318_v2 = vsel %vm12532_vm2, 4294967295, %v14317_v2  ;;  %vm14319_vm4 = vcmp.ge.f32.partialorder %v9780_v24, 0.0  ;;  %v3951_v28 = vsel %vm3823_vm7, %v9782_v47, %v3887_v0  ;;  %v10384_v19 = vld [vmem:[#allocation9 + $0x308] ss:$16 sps:$4 sm:$0xff]  }
 0x30b   :  { %6832 = vmatpush1.bf16.msra.mxu1 %v10375_v11  ;;  %9445 = vmatprep.mubr.msk.bf16.mxu1 %vm14310_vm9, %v14305_v49  ;;  %v14315_v11 = vmov 0  ;;  %v3943_v61 = vsel %vm14319_vm4, %v9780_v24, %v3879_v55  ;;  %v4541_v51 = vmul.u32 3266489909, %v12505_v54  ;;  %vm14320_vm9 = vcmp.ge.f32.partialorder %v9781_v17, 0.0  ;;  %vm14076_vm10 = vmpackc.low %vm12476_vm6, %vm12472_vm5  ;;  %v10389_v37 = vld [vmem:[#allocation9 + $0x32c] ss:$16 sps:$4 sm:$0xff]  }
 0x30c   :  { %6833 = vmatprep.subr.bf16.mxu1 %v10383_v27  ;;  %v14316_v11 = vsel %vm12528_vm15, 4294967295, %v14315_v11  ;;  %v3944_v52 = vsel %vm14320_vm9, %v9781_v17, %v3880_v14  ;;  %v12545_v27 = vpack.c.bf16 %v3951_v28, %v3943_v61  ;;  %v3952_v9 = vsel %vm3824_vm12, %v9783_v13, %v3888_v62  ;;  %v3492_v55 = vpop.f32.mrb[21].mxu0  ;;  %vm14077_vm7 = vmpackc.low %vm12487_vm3, %vm12483_vm13  ;;  %v10432_v47 = vld [vmem:[#allocation9 + $0x600] ss:$16 sps:$4 sm:$0xff]   ;;  %v10440_v13 = vld [vmem:[#allocation9 + $0x624] ss:$16 sps:$4 sm:$0xff]  }
 0x30d   :  { %v12551_v24 = vxor.u32 %v4412_v50, %v4348_v26  ;;  %v12553_v7 = vpack.c.bf16 %v3952_v9, %v3944_v52  ;;  %v9784_v60 = vadd.f32 %v3490_v18, %v12457_v21  ;;  %v4708_v17 = vand.u32 8388607, %v4644_v38  ;;  %v3494_v25 = vpop.f32.mrb[22].mxu0  ;;  %v10392_v62 = vld [vmem:[#allocation9 + $0x34c] ss:$16 sps:$4 sm:$0xff]   ;;  %vm14082_vm5 = vmpackc.low %vm12524_vm8, %vm12520_vm11 }
 0x30e   :  { %v9785_v54 = vadd.f32 %v3492_v55, %v12462_v42  ;;  %v4716_v26 = vand.u32 8388607, %v12536_v39  ;;  %v4597_v14 = vshrl.u32 %v4533_v40, 16  ;;  %v9786_v0 = vadd.f32 %v3494_v25, %v12457_v21  ;;  %v3496_v49 = vpop.f32.mrb[23].mxu0  ;;  %v10438_v52 = vld [vmem:[#allocation9 + $0x620] ss:$16 sps:$4 sm:$0xff]  }
 0x30f   :  { %6834 = vmatpush1.bf16.msra.mxu1 %v10381_v1  ;;  %v3895_v50 = vmul.f32 0.2, %v9784_v60  ;;  %9373 = vmatprep.mubr.msk.bf16.mxu0 %vm14076_vm10, %v12553_v7  ;;  %v10387_v1 = vld [vmem:[#allocation9 + $0x328] ss:$16 sps:$4 sm:$0xff]   ;;  %v4605_v16 = vshrl.u32 %v4541_v51, 16  ;;  %v9787_v38 = vadd.f32 %v3496_v49, %v12462_v42  ;;  %v14321_v28 = vmov 0 }
 0x310   :  { %6835 = vmatprep.subr.bf16.mxu1 %v10386_v31  ;;  %v4532_v45 = vmul.u32 3266489909, %v12542_v53  ;;  %v3896_v31 = vmul.f32 0.2, %v9785_v54  ;;  %9376 = vmatmul.mubr.msk.bf16.vlgmr.msra.gmra.mrb[32].mxu0 %vm14077_vm7, %v12545_v27  ;;  %v4540_v39 = vmul.u32 3266489909, %v12551_v24  ;;  %v12594_v3 = vxor.u32 %v4597_v14, %v4533_v40 }
 0x311   :  { %vm3839_vm9 = vcmp.ge.f32.partialorder %v9786_v0, 0.0  ;;  %v3903_v61 = vmul.f32 0.2, %v9786_v0  ;;  %vm12580_vm10 = vcmp.ge.s32.totalorder %v4709_v41, 2516582  ;;  %v14323_v53 = vmov 0  ;;  %6674 = vmatpush1.bf16.msra.mxu0 %v10432_v47 }
 0x312   :  { %v14322_v28 = vsel %vm12580_vm10, 4294967295, %v14321_v28  ;;  %vm12586_vm12 = vcmp.ge.s32.totalorder %v4717_v22, 2516582  ;;  %vm3840_vm7 = vcmp.ge.f32.partialorder %v9787_v38, 0.0  ;;  %v3904_v9 = vmul.f32 0.2, %v9787_v38  ;;  %6675 = vmatprep.subr.bf16.mxu0 %v10440_v13 }
 0x313   :  { %6836 = vmatpush1.bf16.msra.mxu1 %v10384_v19  ;;  %v14324_v53 = vsel %vm12586_vm12, 4294967295, %v14323_v53  ;;  %vm12590_vm4 = vcmp.ge.s32.totalorder %v4708_v17, 2516582  ;;  %v14325_v18 = vmov 0  ;;  %v10446_v41 = vld [vmem:[#allocation9 + $0x644] ss:$16 sps:$4 sm:$0xff]   ;;  %v3967_v46 = vsel %vm3839_vm9, %v9786_v0, %v3903_v61 }
 0x314   :  { %6837 = vmatprep.subr.bf16.mxu1 %v10389_v37  ;;  %v14326_v18 = vsel %vm12590_vm4, 4294967295, %v14325_v18  ;;  %vm14327_vm13 = vcmp.ge.f32.partialorder %v9784_v60, 0.0  ;;  %v12597_v22 = vxor.u32 %v4605_v16, %v4541_v51  ;;  %v4596_v24 = vshrl.u32 %v4532_v45, 16  ;;  %v3500_v37 = vpop.f32.mrb[24].mxu0  ;;  %v10390_v40 = vld [vmem:[#allocation9 + $0x348] ss:$16 sps:$4 sm:$0xff]  }
 0x315   :  { %v3959_v19 = vsel %vm14327_vm13, %v9784_v60, %v3895_v50  ;;  %vm14328_vm3 = vcmp.ge.f32.partialorder %v9785_v54, 0.0  ;;  %v3968_v25 = vsel %vm3840_vm7, %v9787_v38, %v3904_v9  ;;  %v10395_v17 = vld [vmem:[#allocation9 + $0x36c] ss:$16 sps:$4 sm:$0xff]   ;;  %v4604_v14 = vshrl.u32 %v4540_v39, 16  ;;  %v3502_v60 = vpop.f32.mrb[25].mxu0  ;;  %vm14083_vm13 = vmpackc.low %vm12532_vm2, %vm12528_vm15  ;;  %6676 = vmatpush1.bf16.msra.mxu0 %v10438_v52 }
 0x316   :  { %v3960_v55 = vsel %vm14328_vm3, %v9785_v54, %v3896_v31  ;;  %v12600_v47 = vpack.c.bf16 %v3967_v46, %v3959_v19  ;;  %v9788_v51 = vadd.f32 %v3500_v37, %v12457_v21  ;;  %vm12613_vm3 = vcmp.ge.s32.totalorder %v4716_v26, 2516582  ;;  %v10444_v50 = vld [vmem:[#allocation9 + $0x640] ss:$16 sps:$4 sm:$0xff]   ;;  %v3504_v49 = vpop.f32.mrb[26].mxu0  ;;  %6677 = vmatprep.subr.bf16.mxu0 %v10446_v41 }
 0x317   :  { %v12606_v13 = vpack.c.bf16 %v3968_v25, %v3960_v55  ;;  %6838 = vmatpush1.bf16.msra.mxu1 %v10387_v1  ;;  %v9789_v0 = vadd.f32 %v3502_v60, %v12462_v42  ;;  %v4725_v16 = vand.u32 8388607, %v12594_v3  ;;  %v10452_v31 = vld [vmem:[#allocation9 + $0x664] ss:$16 sps:$4 sm:$0xff]   ;;  %v9790_v38 = vadd.f32 %v3504_v49, %v12457_v21  ;;  %v3506_v61 = vpop.f32.mrb[27].mxu0  ;;  %vm14337_vm15 = vmpackc.low %vm12613_vm3, %vm12590_vm4 }
 0x318   :  { %6839 = vmatprep.subr.bf16.mxu1 %v10392_v62  ;;  %v3911_v1 = vmul.f32 0.2, %v9788_v51  ;;  %v10393_v26 = vld [vmem:[#allocation9 + $0x368] ss:$16 sps:$4 sm:$0xff]   ;;  %v4733_v52 = vand.u32 8388607, %v12597_v22  ;;  %v4660_v9 = vxor.u32 %v4596_v24, %v4532_v45  ;;  %v9791_v3 = vadd.f32 %v3506_v61, %v12462_v42 }
 0x319   :  { %9379 = vmatprep.mubr.msk.bf16.mxu0 %vm14082_vm5, %v12606_v13  ;;  %vm3847_vm7 = vcmp.ge.f32.partialorder %v9788_v51, 0.0  ;;  %v3912_v62 = vmul.f32 0.2, %v9789_v0  ;;  %v10398_v41 = vld [vmem:[#allocation9 + $0x38c] ss:$16 sps:$4 sm:$0xff]   ;;  %v4668_v19 = vxor.u32 %v4604_v14, %v4540_v39  ;;  %vm3848_vm9 = vcmp.ge.f32.partialorder %v9789_v0, 0.0  ;;  %6678 = vmatpush1.bf16.msra.mxu0 %v10444_v50 }
 0x31a   :  { %9382 = vmatmul.mubr.msk.bf16.gmra.mrb[36].mxu0 %vm14083_vm13, %v12600_v47  ;;  %vm3855_vm11 = vcmp.ge.f32.partialorder %v9790_v38, 0.0  ;;  %v3919_v46 = vmul.f32 0.2, %v9790_v38  ;;  %v10450_v22 = vld [vmem:[#allocation9 + $0x660] ss:$16 sps:$4 sm:$0xff]   ;;  %vm3856_vm5 = vcmp.ge.f32.partialorder %v9791_v3, 0.0  ;;  %6679 = vmatprep.subr.bf16.mxu0 %v10452_v31  ;;  %v3975_v55 = vsel %vm3847_vm7, %v9788_v51, %v3911_v1  ;;  %vm14086_vm13 = vmpackc.low %vm12586_vm12, %vm12580_vm10 }
 0x31b   :  { %6840 = vmatpush1.bf16.msra.mxu1 %v10390_v40  ;;  %v3920_v45 = vmul.f32 0.2, %v9791_v3  ;;  %v10458_v24 = vld [vmem:[#allocation9 + $0x684] ss:$16 sps:$4 sm:$0xff]   ;;  %v10396_v37 = vld [vmem:[#allocation9 + $0x388] ss:$16 sps:$4 sm:$0xff]   ;;  %v3976_v49 = vsel %vm3848_vm9, %v9789_v0, %v3912_v62 }
 0x31c   :  { %6841 = vmatprep.subr.bf16.mxu1 %v10395_v17  ;;  %v3983_v25 = vsel %vm3855_vm11, %v9790_v38, %v3919_v46  ;;  %v4724_v60 = vand.u32 8388607, %v4660_v9  ;;  %v3510_v14 = vpop.f32.mrb[28].mxu0  ;;  %v10401_v40 = vld [vmem:[#allocation9 + $0x3ac] ss:$16 sps:$4 sm:$0xff]  }
 0x31d   :  { %v12635_v61 = vpack.c.bf16 %v3983_v25, %v3975_v55  ;;  %v3984_v39 = vsel %vm3856_vm5, %v9791_v3, %v3920_v45  ;;  %v4732_v50 = vand.u32 8388607, %v4668_v19  ;;  %v9792_v31 = vadd.f32 %v3510_v14, %v12457_v21  ;;  %v3512_v51 = vpop.f32.mrb[29].mxu0  ;;  %6680 = vmatpush1.bf16.msra.mxu0 %v10450_v22  ;;  %v10456_v1 = vld [vmem:[#allocation9 + $0x680] ss:$16 sps:$4 sm:$0xff]  }
 0x31e   :  { %v12641_v17 = vpack.c.bf16 %v3984_v39, %v3976_v49  ;;  %vm12648_vm5 = vcmp.ge.s32.totalorder %v4725_v16, 2516582  ;;  %v9793_v38 = vadd.f32 %v3512_v51, %v12462_v42  ;;  %v3514_v9 = vpop.f32.mrb[30].mxu0  ;;  %vm12653_vm7 = vcmp.ge.s32.totalorder %v4733_v52, 2516582  ;;  %6681 = vmatprep.subr.bf16.mxu0 %v10458_v24 }
 0x31f   :  { %6842 = vmatpush1.bf16.msra.mxu1 %v10393_v26  ;;  %v10464_v26 = vld [vmem:[#allocation9 + $0x6a4] ss:$16 sps:$4 sm:$0xff]   ;;  %v3927_v3 = vmul.f32 0.2, %v9792_v31  ;;  %v9794_v19 = vadd.f32 %v3514_v9, %v12457_v21  ;;  %v3516_v46 = vpop.f32.mrb[31].mxu0  ;;  %vm14340_vm12 = vcmp.ge.f32.partialorder %v9792_v31, 0.0 }
 0x320   :  { %6843 = vmatprep.subr.bf16.mxu1 %v10398_v41  ;;  %9385 = vmatprep.mubr.msk.bf16.mxu0 %vm14086_vm13, %v12641_v17  ;;  %v10399_v16 = vld [vmem:[#allocation9 + $0x3a8] ss:$16 sps:$4 sm:$0xff]   ;;  %vm12664_vm9 = vcmp.ge.s32.totalorder %v4724_v60, 2516582  ;;  %v3928_v52 = vmul.f32 0.2, %v9793_v38  ;;  %v9795_v22 = vadd.f32 %v3516_v46, %v12462_v42 }
 0x321   :  { %vm12675_vm2 = vcmp.ge.s32.totalorder %v4732_v50, 2516582  ;;  %v10404_v45 = vld [vmem:[#allocation9 + $0x3cc] ss:$16 sps:$4 sm:$0xff]   ;;  %vm3864_vm13 = vcmp.ge.f32.partialorder %v9793_v38, 0.0  ;;  %vm3871_vm10 = vcmp.ge.f32.partialorder %v9794_v19, 0.0  ;;  %6682 = vmatpush1.bf16.msra.mxu0 %v10456_v1  ;;  %v3991_v60 = vsel %vm14340_vm12, %v9792_v31, %v3927_v3 }
 0x322   :  { %9388 = vmatmul.mubr.msk.bf16.gmra.mrb[40].mxu0 %vm14337_vm15, %v12635_v61  ;;  %v3935_v24 = vmul.f32 0.2, %v9794_v19  ;;  %v10462_v55 = vld [vmem:[#allocation9 + $0x6a0] ss:$16 sps:$4 sm:$0xff]   ;;  %vm3872_vm11 = vcmp.ge.f32.partialorder %v9795_v22, 0.0  ;;  %6683 = vmatprep.subr.bf16.mxu0 %v10464_v26  ;;  %v3992_v39 = vsel %vm3864_vm13, %v9793_v38, %v3928_v52  ;;  %vm14091_vm15 = vmpackc.low %vm12653_vm7, %vm12648_vm5  ;;  %v14403_v21 = vmov 0 }
 0x323   :  { %6844 = vmatpush1.bf16.msra.mxu1 %v10396_v37  ;;  %v3936_v42 = vmul.f32 0.2, %v9795_v22  ;;  %v10470_v25 = vld [vmem:[#allocation9 + $0x6c4] ss:$16 sps:$4 sm:$0xff]   ;;  %vm14090_vm4 = vmpackc.low %vm12675_vm2, %vm12664_vm9  ;;  %v10468_v31 = vld [vmem:[#allocation9 + $0x6c0] ss:$16 sps:$4 sm:$0xff]  }
 0x324   :  { %6845 = vmatprep.subr.bf16.mxu1 %v10401_v40  ;;  %v3999_v49 = vsel %vm3871_vm10, %v9794_v19, %v3935_v24  ;;  %v10402_v40 = vld [vmem:[#allocation9 + $0x3c8] ss:$16 sps:$4 sm:$0xff]   ;;  %v10407_v51 = vld [vmem:[#allocation9 + $0x3ec] ss:$16 sps:$4 sm:$0xff]   ;;  %v10476_v1 = vld [vmem:[#allocation9 + $0x6e4] ss:$16 sps:$4 sm:$0xff]  }
 0x325   :  { %v12680_v14 = vpack.c.bf16 %v3999_v49, %v3991_v60  ;;  %v4000_v50 = vsel %vm3872_vm11, %v9795_v22, %v3936_v42  ;;  %6684 = vmatpush1.bf16.msra.mxu0 %v10462_v55  ;;  %v10405_v38 = vld [vmem:[#allocation9 + $0x3e8] ss:$16 sps:$4 sm:$0xff]   ;;  %v10474_v9 = vld [vmem:[#allocation9 + $0x6e0] ss:$16 sps:$4 sm:$0xff]   ;;  %v10410_v26 = vld [vmem:[#allocation9 + $0x40c] ss:$16 sps:$4 sm:$0xff]   ;;  %vm14347_vm11 = vnez %v14219_v12 }
 0x326   :  { %v12686_v37 = vpack.c.bf16 %v4000_v50, %v3992_v39  ;;  %6685 = vmatprep.subr.bf16.mxu0 %v10470_v25  ;;  %v10482_v3 = vld [vmem:[#allocation9 + $0x704] ss:$16 sps:$4 sm:$0xff]   ;;  %v10408_v19 = vld [vmem:[#allocation9 + $0x408] ss:$16 sps:$4 sm:$0xff]   ;;  %v10413_v46 = vld [vmem:[#allocation9 + $0x42c] ss:$16 sps:$4 sm:$0xff]  }
 0x327   :  { %6846 = vmatpush1.bf16.msra.mxu1 %v10399_v16  ;;  %v10480_v16 = vld [vmem:[#allocation9 + $0x700] ss:$16 sps:$4 sm:$0xff]   ;;  %v10488_v52 = vld [vmem:[#allocation9 + $0x724] ss:$16 sps:$4 sm:$0xff]   ;;  %v14341_v22 = vld [vmem:[#allocation63_spill] sm:$0xff] }
 0x328   :  { %6847 = vmatprep.subr.bf16.mxu1 %v10404_v45  ;;  %9391 = vmatprep.mubr.msk.bf16.mxu0 %vm14091_vm15, %v12686_v37  ;;  %v14342_v45 = vld [vmem:[#allocation62_spill] sm:$0xff]  ;;  %v10411_v55 = vld [vmem:[#allocation9 + $0x428] ss:$16 sps:$4 sm:$0xff]   ;;  %v10416_v42 = vld [vmem:[#allocation9 + $0x44c] ss:$16 sps:$4 sm:$0xff]  }
 0x329   :  { %6686 = vmatpush1.bf16.msra.mxu0 %v10468_v31  ;;  %vm14343_vm10 = vnez %v14342_v45  ;;  %v14344_v24 = vld [vmem:[#allocation30_spill] sm:$0xff]  ;;  %v10414_v49 = vld [vmem:[#allocation9 + $0x448] ss:$16 sps:$4 sm:$0xff]   ;;  %v10419_v39 = vld [vmem:[#allocation9 + $0x46c] ss:$16 sps:$4 sm:$0xff]  }
 0x32a   :  { %9394 = vmatmul.mubr.msk.bf16.gmra.mrb[44].mxu0 %vm14090_vm4, %v12680_v14  ;;  %6687 = vmatprep.subr.bf16.mxu0 %v10476_v1  ;;  %vm14345_vm12 = vnez %v14344_v24  ;;  %vm14348_vm4 = vnez %v14217_v63  ;;  %v10486_v25 = vld [vmem:[#allocation9 + $0x720] ss:$16 sps:$4 sm:$0xff]   ;;  %v10494_v60 = vld [vmem:[#allocation9 + $0x744] ss:$16 sps:$4 sm:$0xff]   ;;  %v10417_v63 = vld [vmem:[#allocation9 + $0x468] ss:$16 sps:$4 sm:$0xff]  }
 0x32b   :  { %6848 = vmatpush1.bf16.msra.mxu1 %v10402_v40  ;;  %vm14346_vm13 = vmpackc.low %vm14343_vm10, %vm14345_vm12  ;;  %v10492_v50 = vld [vmem:[#allocation9 + $0x740] ss:$16 sps:$4 sm:$0xff]   ;;  %v10500_v12 = vld [vmem:[#allocation9 + $0x764] ss:$16 sps:$4 sm:$0xff]  }
 0x32c   :  { %6849 = vmatprep.subr.bf16.mxu1 %v10407_v51  ;;  %vm14349_vm15 = vmpackc.low %vm14347_vm11, %vm14348_vm4  ;;  %vm14350_vm4 = vnez %v14227_v15  ;;  %v10498_v40 = vld [vmem:[#allocation9 + $0x760] ss:$16 sps:$4 sm:$0xff]   ;;  %v10506_v31 = vld [vmem:[#allocation9 + $0x784] ss:$16 sps:$4 sm:$0xff]  }
 0x32d   :  { %6688 = vmatpush1.bf16.msra.mxu0 %v10474_v9  ;;  %vm14353_vm12 = vmpackc.low %vm12176_vm1, %vm12141_vm14  ;;  %v10420_v15 = vld [vmem:[#allocation9 + $0x488] ss:$16 sps:$4 sm:$0xff]   ;;  %vm14354_vm14 = vnez %v14243_v56  ;;  %v10428_v1 = vld [vmem:[#allocation9 + $0x4cc] ss:$16 sps:$4 sm:$0xff]  }
 0x32e   :  { %6689 = vmatprep.subr.bf16.mxu0 %v10482_v3  ;;  %vm14355_vm1 = vmpackc.low %vm12210_vm0, %vm14354_vm14  ;;  %v10423_v51 = vld [vmem:[#allocation9 + $0x4a8] ss:$16 sps:$4 sm:$0xff]   ;;  %v10518_v9 = vld [vmem:[#allocation9 + $0x7c4] ss:$16 sps:$4 sm:$0xff]  }
 0x32f   :  { %6850 = vmatpush1.bf16.msra.mxu1 %v10405_v38  ;;  %v10510_v38 = vld [vmem:[#allocation9 + $0x7a0] ss:$16 sps:$4 sm:$0xff]   ;;  %v10431_v56 = vld [vmem:[#allocation9 + $0x4ec] ss:$16 sps:$4 sm:$0xff]   ;;  %v10435_v45 = vld [vmem:[#allocation9 + $0x508] ss:$16 sps:$4 sm:$0xff]  }
 0x330   :  { %6892 = vmatprep.subr.bf16.mxu1 %v10410_v26  ;;  %v10524_v26 = vld [vmem:[#allocation9 + $0x7e4] ss:$16 sps:$4 sm:$0xff]   ;;  %v14361_v3 = vld [vmem:[#allocation65_spill] sm:$0xff]  ;;  %v10590_v54 = vld [vmem:[#allocation12 + $0xc4] ss:$8 sps:$4 sm:$0xff]  }
 0x331   :  { %6690 = vmatpush1.bf16.msra.mxu0 %v10480_v16  ;;  %v10437_v16 = vld [vmem:[#allocation9 + $0x50c] ss:$16 sps:$4 sm:$0xff]   ;;  %v10596_v41 = vld [vmem:[#allocation12 + $0xe4] ss:$8 sps:$4 sm:$0xff]  }
 0x332   :  { %9448 = vmatmul.mubr.msk.bf16.vlgmr.msra.gmra.mrb[48].mxu1 %vm14346_vm13, %v14341_v22  ;;  %6691 = vmatprep.subr.bf16.mxu0 %v10488_v52  ;;  %vm14357_vm13 = vnez %v14356_v33  ;;  %v10522_v52 = vld [vmem:[#allocation9 + $0x7e0] ss:$16 sps:$4 sm:$0xff]   ;;  %v10443_v24 = vld [vmem:[#allocation9 + $0x52c] ss:$16 sps:$4 sm:$0xff]  }
 0x333   :  { %9451 = vmatprep.mubr.msk.bf16.mxu1 %vm14349_vm15, %v12173_v20  ;;  %6893 = vmatpush1.bf16.msra.mxu1 %v10408_v19  ;;  %vm14351_vm15 = vnez %v14225_v8  ;;  %v10422_v20 = vld [vmem:[#allocation9 + $0x48c] ss:$16 sps:$4 sm:$0xff]   ;;  %v14362_v19 = vld [vmem:[#allocation66_spill] sm:$0xff]  ;;  %v10554_v22 = vld [vmem:[#allocation12 + $0x4] ss:$8 sps:$4 sm:$0xff]  }
 0x334   :  { %6894 = vmatprep.subr.bf16.mxu1 %v10413_v46  ;;  %vm14352_vm10 = vmpackc.low %vm14350_vm4, %vm14351_vm15  ;;  %v10425_v8 = vld [vmem:[#allocation9 + $0x4ac] ss:$16 sps:$4 sm:$0xff]   ;;  %vm14363_vm0 = vnez %v14362_v19  ;;  %v10429_v46 = vld [vmem:[#allocation9 + $0x4e8] ss:$16 sps:$4 sm:$0xff]  }
 0x335   :  { %6692 = vmatpush1.bf16.msra.mxu0 %v10486_v25  ;;  %v14370_v25 = vld [vmem:[#allocation39_spill] sm:$0xff]  ;;  %v14372_v33 = vld [vmem:[#allocation45_spill] sm:$0xff] }
 0x336   :  { %6693 = vmatprep.subr.bf16.mxu0 %v10494_v60  ;;  %v14374_v19 = vld [vmem:[#allocation53_spill] sm:$0xff] }
 0x337   :  { %6895 = vmatpush1.bf16.msra.mxu1 %v10411_v55  ;;  %v14369_v55 = vld [vmem:[#allocation36_spill] sm:$0xff] }
 0x338   :  { %6896 = vmatprep.subr.bf16.mxu1 %v10416_v42  ;;  %v12753_v42 = vadd.s32 896, %v14369_v55 }
 0x339   :  { %6694 = vmatpush1.bf16.msra.mxu0 %v10492_v50 }
 0x33a   :  { %9454 = vmatmul.mubr.msk.bf16.gmra.mrb[52].mxu1 %vm14352_vm10, %v12165_v30  ;;  %6695 = vmatprep.subr.bf16.mxu0 %v10500_v12  ;;  %v10504_v30 = vld [vmem:[#allocation9 + $0x780] ss:$16 sps:$4 sm:$0xff]   ;;  %v4036_v60 = vadd.s32 %v14370_v25, %v12753_v42  ;;  %v10447_v12 = vld [vmem:[#allocation9 + $0x548] ss:$16 sps:$4 sm:$0xff]  }
 0x33b   :  { %9457 = vmatprep.mubr.msk.bf16.mxu1 %vm14353_vm12, %v12221_v32  ;;  %6897 = vmatpush1.bf16.msra.mxu1 %v10414_v49  ;;  %v14358_v32 = vld [vmem:[#allocation31_spill] sm:$0xff]  ;;  %vm14367_vm12 = vnez %v14293_v34  ;;  %v12756_v34 = vadd.s32 768, %v14369_v55  ;;  %v14371_v49 = vld [vmem:[#allocation40_spill] sm:$0xff] }
 0x33c   :  { %6898 = vmatprep.subr.bf16.mxu1 %v10419_v39  ;;  %vm14359_vm11 = vnez %v14358_v32  ;;  %vm14368_vm14 = vmpackc.low %vm12476_vm6, %vm14367_vm12  ;;  %v4044_v39 = vadd.s32 %v14371_v49, %v12753_v42  ;;  %v4052_v32 = vadd.s32 %v14372_v33, %v12753_v42  ;;  %vm14376_vm6 = vnez %v14299_v23  ;;  %v10489_v23 = vld [vmem:[#allocation9 + $0x628] ss:$16 sps:$4 sm:$0xff]  }
 0x33d   :  { %6696 = vmatpush1.bf16.msra.mxu0 %v10498_v40  ;;  %vm14360_vm4 = vmpackc.low %vm14357_vm13, %vm14359_vm11  ;;  %v4035_v50 = vadd.s32 %v14370_v25, %v12756_v34  ;;  %v4103_v40 = vxor.u32 %v11309_v44, %v4036_v60  ;;  %v14375_v25 = vld [vmem:[#allocation54_spill] sm:$0xff]  ;;  %vm14379_vm11 = vnez %v14312_v29  ;;  %v4083_v29 = vadd.s32 %v11608_v58, %v12756_v34 }
 0x33e   :  { %6697 = vmatprep.subr.bf16.mxu0 %v10506_v31  ;;  %v4111_v31 = vxor.u32 %v11309_v44, %v4044_v39  ;;  %v4076_v60 = vadd.s32 %v14375_v25, %v12753_v42  ;;  %vm14385_vm12 = vnez %v14322_v28 }
 0x33f   :  { %6899 = vmatpush1.bf16.msra.mxu1 %v10417_v63  ;;  %v4043_v63 = vadd.s32 %v14371_v49, %v12756_v34  ;;  %v10465_v49 = vld [vmem:[#allocation9 + $0x5a8] ss:$16 sps:$4 sm:$0xff]  }
 0x340   :  { %6900 = vmatprep.subr.bf16.mxu1 %v10422_v20  ;;  %v10455_v20 = vld [vmem:[#allocation9 + $0x56c] ss:$16 sps:$4 sm:$0xff]  }
 0x341   :  { %6698 = vmatpush1.bf16.msra.mxu0 %v10504_v30  ;;  %v4110_v30 = vxor.u32 %v11309_v44, %v4043_v63 }
 0x342   :  { %9460 = vmatmul.mubr.msk.bf16.gmra.mrb[56].mxu1 %vm14355_vm1, %v12215_v57  ;;  %6699 = vmatprep.subr.bf16.mxu0 %v10512_v5  ;;  %v10516_v57 = vld [vmem:[#allocation9 + $0x7c0] ss:$16 sps:$4 sm:$0xff]   ;;  %v10461_v5 = vld [vmem:[#allocation9 + $0x58c] ss:$16 sps:$4 sm:$0xff]   ;;  %vm14377_vm1 = vnez %v14297_v43 }
 0x343   :  { %9463 = vmatprep.mubr.msk.bf16.mxu1 %vm14360_vm4, %v12270_v6  ;;  %6901 = vmatpush1.bf16.msra.mxu1 %v10420_v15  ;;  %v14364_v6 = vld [vmem:[#allocation33_spill] sm:$0xff]  ;;  %v4102_v15 = vxor.u32 %v11309_v44, %v4035_v50  ;;  %vm14378_vm13 = vmpackc.low %vm14376_vm6, %vm14377_vm1  ;;  %vm14387_vm6 = vnez %v14326_v18 }
 0x344   :  { %6902 = vmatprep.subr.bf16.mxu1 %v10425_v8  ;;  %vm14365_vm15 = vnez %v14364_v6  ;;  %v10453_v8 = vld [vmem:[#allocation9 + $0x568] ss:$16 sps:$4 sm:$0xff]   ;;  %v4068_v6 = vadd.s32 %v14374_v19, %v12753_v42  ;;  %vm14380_vm4 = vmpackc.low %vm12524_vm8, %vm14379_vm11  ;;  %vm14381_vm8 = vnez %v14318_v2  ;;  %v10585_v18 = vld [vmem:[#allocation12 + $0xb0] ss:$8 sps:$4 sm:$0xff]  }
 0x345   :  { %6700 = vmatpush1.bf16.msra.mxu0 %v10510_v38  ;;  %vm14366_vm10 = vmpackc.low %vm14363_vm0, %vm14365_vm15  ;;  %v4167_v38 = vshrl.u32 %v4103_v40, 16  ;;  %vm14382_vm0 = vnez %v14316_v11 }
 0x346   :  { %6701 = vmatprep.subr.bf16.mxu0 %v10518_v9  ;;  %v4175_v9 = vshrl.u32 %v4111_v31, 16  ;;  %v4135_v50 = vxor.u32 %v11309_v44, %v4068_v6  ;;  %vm14383_vm15 = vmpackc.low %vm14381_vm8, %vm14382_vm0 }
 0x347   :  { %6903 = vmatpush1.bf16.msra.mxu1 %v10423_v51  ;;  %v14373_v51 = vld [vmem:[#allocation47_spill] sm:$0xff]  ;;  %vm14388_vm1 = vmpackc.low %vm12613_vm3, %vm14387_vm6 }
 0x348   :  { %6904 = vmatprep.subr.bf16.mxu1 %v10428_v1  ;;  %v4060_v1 = vadd.s32 %v14373_v51, %v12753_v42  ;;  %vm14393_vm3 = vmpackc.low %vm12653_vm7, %vm12648_vm5 }
 0x349   :  { %6702 = vmatpush1.bf16.msra.mxu0 %v10516_v57  ;;  %v4059_v57 = vadd.s32 %v14373_v51, %v12756_v34  ;;  %v10471_v51 = vld [vmem:[#allocation9 + $0x5c8] ss:$16 sps:$4 sm:$0xff]  }
 0x34a   :  { %9466 = vmatmul.mubr.msk.bf16.gmra.mrb[60].mxu1 %vm14366_vm10, %v14361_v3  ;;  %6703 = vmatprep.subr.bf16.mxu0 %v10524_v26  ;;  %v10459_v26 = vld [vmem:[#allocation9 + $0x588] ss:$16 sps:$4 sm:$0xff]   ;;  %v4174_v3 = vshrl.u32 %v4110_v30, 16  ;;  %vm14384_vm10 = vnez %v14324_v53 }
 0x34b   :  { %6905 = vmatpush1.bf16.msra.mxu1 %v10426_v35  ;;  %9469 = vmatprep.mubr.msk.bf16.mxu1 %vm14368_vm14, %v12553_v7  ;;  %v10449_v7 = vld [vmem:[#allocation9 + $0x54c] ss:$16 sps:$4 sm:$0xff]   ;;  %v4051_v35 = vadd.s32 %v14372_v33, %v12756_v34  ;;  %vm14386_vm14 = vmpackc.low %vm14384_vm10, %vm14385_vm12 }
 0x34c   :  { %6906 = vmatprep.subr.bf16.mxu1 %v10431_v56  ;;  %v4166_v56 = vshrl.u32 %v4102_v15, 16  ;;  %v4238_v39 = vxor.u32 %v4174_v3, %v4110_v30  ;;  %v4199_v30 = vshrl.u32 %v4135_v50, 16 }
 0x34d   :  { %6704 = vmatpush1.bf16.msra.mxu0 %v10522_v52  ;;  %v4127_v52 = vxor.u32 %v11309_v44, %v4060_v1 }
 0x34e   :  { %7973 = vmatprep.subr.bf16.mxu0 %v10554_v22  ;;  %v4231_v22 = vxor.u32 %v4167_v38, %v4103_v40  ;;  %v4302_v1 = vmul.u32 2246822507, %v4238_v39  ;;  %v4075_v38 = vadd.s32 %v14375_v25, %v12756_v34  ;;  %v10485_v25 = vld [vmem:[#allocation9 + $0x60c] ss:$16 sps:$4 sm:$0xff]  }
 0x34f   :  { %6907 = vmatpush1.bf16.msra.mxu1 %v10429_v46  ;;  %v10467_v46 = vld [vmem:[#allocation9 + $0x5ac] ss:$16 sps:$4 sm:$0xff]  }
 0x350   :  { %6908 = vmatprep.subr.bf16.mxu1 %v10437_v16  ;;  %v4119_v16 = vxor.u32 %v11309_v44, %v4052_v32  ;;  %v4067_v32 = vadd.s32 %v14374_v19, %v12756_v34  ;;  %v10477_v19 = vld [vmem:[#allocation9 + $0x5e8] ss:$16 sps:$4 sm:$0xff]  }
 0x352   :  { %v4183_v63 = vshrl.u32 %v4119_v16, 16 }
 0x353   :  { %6909 = vmatpush1.bf16.msra.mxu1 %v10435_v45  ;;  %v4239_v45 = vxor.u32 %v4175_v9, %v4111_v31  ;;  %v10479_v9 = vld [vmem:[#allocation9 + $0x5ec] ss:$16 sps:$4 sm:$0xff]  }
 0x354   :  { %6910 = vmatprep.subr.bf16.mxu1 %v10443_v24  ;;  %v4118_v24 = vxor.u32 %v11309_v44, %v4051_v35  ;;  %v4247_v35 = vxor.u32 %v4183_v63, %v4119_v16  ;;  %v4084_v16 = vadd.s32 %v11608_v58, %v12753_v42 }
 0x355   :  { %v4303_v40 = vmul.u32 2246822507, %v4239_v45  ;;  %v4134_v45 = vxor.u32 %v11309_v44, %v4067_v32 }
 0x356   :  { %v4182_v31 = vshrl.u32 %v4118_v24, 16  ;;  %v4311_v39 = vmul.u32 2246822507, %v4247_v35  ;;  %v4151_v35 = vxor.u32 %v11309_v44, %v4084_v16 }
 0x357   :  { %6911 = vmatpush1.bf16.msra.mxu1 %v10441_v4  ;;  %v4230_v4 = vxor.u32 %v4166_v56, %v4102_v15  ;;  %v4143_v15 = vxor.u32 %v11309_v44, %v4076_v60  ;;  %v4263_v60 = vxor.u32 %v4199_v30, %v4135_v50  ;;  %v10483_v50 = vld [vmem:[#allocation9 + $0x608] ss:$16 sps:$4 sm:$0xff]  }
 0x358   :  { %6912 = vmatprep.subr.bf16.mxu1 %v10449_v7  ;;  %v4126_v7 = vxor.u32 %v11309_v44, %v4059_v57  ;;  %v4246_v3 = vxor.u32 %v4182_v31, %v4118_v24  ;;  %v4215_v48 = vshrl.u32 %v4151_v35, 16 }
 0x35a   :  { %v4190_v33 = vshrl.u32 %v4126_v7, 16  ;;  %v4310_v63 = vmul.u32 2246822507, %v4246_v3 }
 0x35b   :  { %6913 = vmatpush1.bf16.msra.mxu1 %v10447_v12  ;;  %v10473_v12 = vld [vmem:[#allocation9 + $0x5cc] ss:$16 sps:$4 sm:$0xff]  }
 0x35c   :  { %6914 = vmatprep.subr.bf16.mxu1 %v10455_v20  ;;  %v4191_v20 = vshrl.u32 %v4127_v52, 16 }
 0x35e   :  { %v4255_v56 = vxor.u32 %v4191_v20, %v4127_v52 }
 0x35f   :  { %6915 = vmatpush1.bf16.msra.mxu1 %v10453_v8  ;;  %v4295_v8 = vmul.u32 2246822507, %v4231_v22  ;;  %v4207_v22 = vshrl.u32 %v4143_v15, 16 }
 0x360   :  { %6916 = vmatprep.subr.bf16.mxu1 %v10461_v5  ;;  %v4294_v5 = vmul.u32 2246822507, %v4230_v4  ;;  %v4366_v4 = vshrl.u32 %v4302_v1, 13 }
 0x361   :  { %v4359_v57 = vshrl.u32 %v4295_v8, 13  ;;  %v12798_v31 = vxor.u32 %v4207_v22, %v4143_v15  ;;  %v660_v15 = vsub.s32 7, %v11286_v36 }
 0x362   :  { %v4358_v6 = vshrl.u32 %v4294_v5, 13  ;;  %v12800_v32 = vxor.u32 %v4366_v4, %v4302_v1 }
 0x363   :  { %6917 = vmatpush1.bf16.msra.mxu1 %v10459_v26  ;;  %v4367_v26 = vshrl.u32 %v4303_v40, 13  ;;  %v4423_v52 = vxor.u32 %v4359_v57, %v4295_v8  ;;  %v656_v8 = vsub.s32 6, %v11286_v36  ;;  %v4335_v3 = vmul.u32 2246822507, %v12798_v31 }
 0x364   :  { %6918 = vmatprep.subr.bf16.mxu1 %v10467_v46  ;;  %v4254_v46 = vxor.u32 %v4190_v33, %v4126_v7  ;;  %v12796_v7 = vxor.u32 %v4358_v6, %v4294_v5  ;;  %v4198_v33 = vshrl.u32 %v4134_v45, 16  ;;  %v4494_v43 = vmul.u32 3266489909, %v12800_v32 }
 0x365   :  { %v4431_v24 = vxor.u32 %v4367_v26, %v4303_v40  ;;  %v4375_v40 = vshrl.u32 %v4311_v39, 13  ;;  %v4374_v26 = vshrl.u32 %v4310_v63, 13 }
 0x366   :  { %v4318_v20 = vmul.u32 2246822507, %v4254_v46  ;;  %v12815_v6 = vxor.u32 %v4198_v33, %v4134_v45 }
 0x367   :  { %6919 = vmatpush1.bf16.msra.mxu1 %v10465_v49  ;;  %v4142_v49 = vxor.u32 %v11309_v44, %v4075_v38  ;;  %v4092_v38 = vadd.s32 %v11611_v59, %v12753_v42  ;;  %v4495_v57 = vmul.u32 3266489909, %v4431_v24  ;;  %v4486_v42 = vmul.u32 3266489909, %v12796_v7 }
 0x368   :  { %6920 = vmatprep.subr.bf16.mxu1 %v10473_v12  ;;  %v4319_v12 = vmul.u32 2246822507, %v4255_v56  ;;  %v4487_v56 = vmul.u32 3266489909, %v4423_v52  ;;  %v4382_v1 = vshrl.u32 %v4318_v20, 13  ;;  %v12827_v45 = vxor.u32 %v4375_v40, %v4311_v39 }
 0x369   :  { %v4206_v30 = vshrl.u32 %v4142_v49, 16  ;;  %v4159_v22 = vxor.u32 %v11309_v44, %v4092_v38  ;;  %v4550_v16 = vshrl.u32 %v4486_v42, 16  ;;  %v4399_v24 = vshrl.u32 %v4335_v3, 13 }
 0x36a   :  { %v4383_v5 = vshrl.u32 %v4319_v12, 13  ;;  %v12837_v52 = vxor.u32 %v4382_v1, %v4318_v20  ;;  %v4326_v39 = vmul.u32 2246822507, %v12815_v6  ;;  %v4558_v7 = vshrl.u32 %v4494_v43, 16  ;;  %v10507_v6 = vld [vmem:[#allocation9 + $0x688] ss:$16 sps:$4 sm:$0xff]  }
 0x36b   :  { %6921 = vmatpush1.bf16.msra.mxu1 %v10471_v51  ;;  %v4327_v51 = vmul.u32 2246822507, %v4263_v60  ;;  %v4559_v60 = vshrl.u32 %v4495_v57, 16  ;;  %v4223_v33 = vshrl.u32 %v4159_v22, 16  ;;  %v4150_v20 = vxor.u32 %v11309_v44, %v4083_v29  ;;  %v10515_v29 = vld [vmem:[#allocation9 + $0x6ac] ss:$16 sps:$4 sm:$0xff]  }
 0x36c   :  { %6922 = vmatprep.subr.bf16.mxu1 %v10479_v9  ;;  %v10491_v9 = vld [vmem:[#allocation9 + $0x62c] ss:$16 sps:$4 sm:$0xff]   ;;  %v12829_v4 = vxor.u32 %v4383_v5, %v4319_v12  ;;  %v10495_v12 = vld [vmem:[#allocation9 + $0x648] ss:$16 sps:$4 sm:$0xff]   ;;  %v4614_v40 = vxor.u32 %v4550_v16, %v4486_v42  ;;  %v4510_v5 = vmul.u32 3266489909, %v12837_v52  ;;  %v4622_v2 = vxor.u32 %v4558_v7, %v4494_v43 }
 0x36d   :  { %v4391_v46 = vshrl.u32 %v4327_v51, 13  ;;  %v12880_v16 = vrot.slane %v12452_v10, %v656_v8  ;;  %v10513_v52 = vld [vmem:[#allocation9 + $0x6a8] ss:$16 sps:$4 sm:$0xff]   ;;  %v10521_v7 = vld [vmem:[#allocation9 + $0x6cc] ss:$16 sps:$4 sm:$0xff]  }
 0x36f   :  { %6923 = vmatpush1.bf16.msra.mxu1 %v10477_v19  ;;  %v10497_v19 = vld [vmem:[#allocation9 + $0x64c] ss:$16 sps:$4 sm:$0xff]   ;;  %v12840_v31 = vxor.u32 %v4391_v46, %v4327_v51 }
 0x370   :  { %6965 = vmatprep.subr.bf16.mxu1 %v10485_v25  ;;  %v12833_v25 = vxor.u32 %v4374_v26, %v4310_v63  ;;  %v10503_v63 = vld [vmem:[#allocation9 + $0x66c] ss:$16 sps:$4 sm:$0xff]   ;;  %v4390_v26 = vshrl.u32 %v4326_v39, 13 }
 0x371   :  { %v4519_v11 = vmul.u32 3266489909, %v12840_v31 }
 0x372   :  { %9472 = vmatmul.mubr.msk.bf16.vlgmr.msra.gmra.mrb[48].mxu1 %vm14378_vm13, %v12545_v27  ;;  %v12824_v27 = vxor.u32 %v4206_v30, %v4142_v49  ;;  %v4091_v49 = vadd.s32 %v11611_v59, %v12756_v34  ;;  %v4511_v59 = vmul.u32 3266489909, %v12829_v4  ;;  %v12845_v34 = vxor.u32 %v4215_v48, %v4151_v35 }
 0x373   :  { %9475 = vmatprep.mubr.msk.bf16.mxu1 %vm14380_vm4, %v12606_v13  ;;  %6966 = vmatpush1.bf16.msra.mxu1 %v10483_v50  ;;  %v4551_v13 = vshrl.u32 %v4487_v56, 16  ;;  %v4503_v50 = vmul.u32 3266489909, %v12827_v45  ;;  %v4623_v30 = vxor.u32 %v4559_v60, %v4495_v57  ;;  %v4502_v38 = vmul.u32 3266489909, %v12833_v25 }
 0x374   :  { %6967 = vmatprep.subr.bf16.mxu1 %v10491_v9  ;;  %v4334_v58 = vmul.u32 2246822507, %v12824_v27  ;;  %v4158_v51 = vxor.u32 %v11309_v44, %v4091_v49  ;;  %v10501_v9 = vld [vmem:[#allocation9 + $0x668] ss:$16 sps:$4 sm:$0xff]   ;;  %v12857_v35 = vxor.u32 %v4399_v24, %v4335_v3  ;;  %v10509_v44 = vld [vmem:[#allocation9 + $0x68c] ss:$16 sps:$4 sm:$0xff]   ;;  %v12885_v24 = vrot.slane %v12452_v10, %v660_v15 }
 0x375   :  { %v4615_v32 = vxor.u32 %v4551_v13, %v4487_v56  ;;  %v12866_v56 = vxor.u32 %v4223_v33, %v4159_v22  ;;  %v4567_v57 = vshrl.u32 %v4503_v50, 16  ;;  %v4575_v42 = vshrl.u32 %v4511_v59, 16 }
 0x376   :  { %v4343_v1 = vmul.u32 2246822507, %v12845_v34  ;;  %v4214_v3 = vshrl.u32 %v4150_v20, 16  ;;  %v4566_v28 = vshrl.u32 %v4502_v38, 16  ;;  %v4222_v46 = vshrl.u32 %v4158_v51, 16 }
 0x377   :  { %6968 = vmatpush1.bf16.msra.mxu1 %v10489_v23  ;;  %v4679_v53 = vand.u32 8388607, %v4615_v32  ;;  %v4687_v23 = vand.u32 8388607, %v4623_v30  ;;  %v4574_v27 = vshrl.u32 %v4510_v5, 16  ;;  %v4583_v45 = vshrl.u32 %v4519_v11, 16 }
 0x378   :  { %6969 = vmatprep.subr.bf16.mxu1 %v10497_v19  ;;  %v4527_v43 = vmul.u32 3266489909, %v12857_v35  ;;  %v12870_v19 = vxor.u32 %v4390_v26, %v4326_v39  ;;  %v4686_v22 = vand.u32 8388607, %v4622_v2  ;;  %v4351_v48 = vmul.u32 2246822507, %v12866_v56 }
 0x379   :  { %v4631_v13 = vxor.u32 %v4567_v57, %v4503_v50  ;;  %v4639_v60 = vxor.u32 %v4575_v42, %v4511_v59  ;;  %v4407_v25 = vshrl.u32 %v4343_v1, 13  ;;  %v12875_v49 = vxor.u32 %v4214_v3, %v4150_v20  ;;  %v10527_v26 = vld [vmem:[#allocation9 + $0x6ec] ss:$16 sps:$4 sm:$0xff]  }
 0x37a   :  { %9478 = vmatmul.mubr.msk.bf16.gmra.mrb[52].mxu1 %vm14383_vm15, %v12600_v47  ;;  %v4398_v47 = vshrl.u32 %v4334_v58, 13  ;;  %v4630_v39 = vxor.u32 %v4566_v28, %v4502_v38  ;;  %vm12895_vm13 = vcmp.ge.s32.totalorder %v4679_v53, 2516582  ;;  %vm12899_vm11 = vcmp.ge.s32.totalorder %v4687_v23, 2516582  ;;  %vm14398_vm15 = vmpackc.low %vm12675_vm2, %vm12664_vm9 }
 0x37b   :  { %9481 = vmatprep.mubr.msk.bf16.mxu1 %vm14386_vm14, %v12641_v17  ;;  %6970 = vmatpush1.bf16.msra.mxu1 %v10495_v12  ;;  %v4678_v17 = vand.u32 8388607, %v4614_v40  ;;  %v12887_v12 = vxor.u32 %v4222_v46, %v4158_v51  ;;  %v4638_v10 = vxor.u32 %v4574_v27, %v4510_v5  ;;  %v4591_v15 = vshrl.u32 %v4527_v43, 16  ;;  %v10519_v38 = vld [vmem:[#allocation9 + $0x6c8] ss:$16 sps:$4 sm:$0xff]   ;;  %vm9395_vm9 = vmpackc.low %vm12899_vm11, %vm12895_vm13 }
 0x37c   :  { %6971 = vmatprep.subr.bf16.mxu1 %v10503_v63  ;;  %v12872_v4 = vxor.u32 %v4398_v47, %v4334_v58  ;;  %v4518_v58 = vmul.u32 3266489909, %v12870_v19  ;;  %vm12914_vm8 = vcmp.ge.s32.totalorder %v4686_v22, 2516582  ;;  %v4415_v63 = vshrl.u32 %v4351_v48, 13 }
 0x37d   :  { %vm12910_vm4 = vcmp.ge.s32.totalorder %v4678_v17, 2516582  ;;  %v4695_v62 = vand.u32 8388607, %v4631_v13  ;;  %v4703_v50 = vand.u32 8388607, %v4639_v60  ;;  %v12921_v0 = vxor.u32 %v4407_v25, %v4343_v1 }
 0x37e   :  { %v4526_v33 = vmul.u32 3266489909, %v12872_v4  ;;  %v4694_v34 = vand.u32 8388607, %v4630_v39  ;;  %v4350_v20 = vmul.u32 2246822507, %v12887_v12 }
 0x37f   :  { %6972 = vmatpush1.bf16.msra.mxu1 %v10501_v9  ;;  %v4702_v51 = vand.u32 8388607, %v4638_v10  ;;  %v12926_v9 = vxor.u32 %v4591_v15, %v4527_v43  ;;  %v4582_v40 = vshrl.u32 %v4518_v58, 16  ;;  %v4535_v42 = vmul.u32 3266489909, %v12921_v0 }
 0x380   :  { %6973 = vmatprep.subr.bf16.mxu1 %v10509_v44  ;;  %v4590_v2 = vshrl.u32 %v4526_v33, 16  ;;  %v4414_v53 = vshrl.u32 %v4350_v20, 13  ;;  %v10525_v28 = vld [vmem:[#allocation9 + $0x6e8] ss:$16 sps:$4 sm:$0xff]   ;;  %vm12941_vm10 = vcmp.ge.s32.totalorder %v4695_v62, 2516582 }
 0x381   :  { %vm12945_vm12 = vcmp.ge.s32.totalorder %v4703_v50, 2516582  ;;  %v12949_v27 = vxor.u32 %v4582_v40, %v4518_v58  ;;  %vm12951_vm6 = vcmp.ge.s32.totalorder %v4694_v34, 2516582  ;;  %vm12955_vm2 = vcmp.ge.s32.totalorder %v4702_v51, 2516582 }
 0x382   :  { %9484 = vmatmul.mubr.msk.bf16.gmra.mrb[56].mxu1 %vm14388_vm1, %v12635_v61  ;;  %v12918_v61 = vxor.u32 %v4583_v45, %v4519_v11  ;;  %v12930_v11 = vxor.u32 %v4415_v63, %v4351_v48  ;;  %v14404_v21 = vsel %vm12951_vm6, 4294967295, %v14403_v21  ;;  %v4719_v4 = vand.u32 8388607, %v12926_v9  ;;  %vm14094_vm1 = vmpackc.low %vm12914_vm8, %vm12910_vm4  ;;  %v10533_v15 = vld [vmem:[#allocation9 + $0x72c] ss:$16 sps:$4 sm:$0xff]  }
 0x383   :  { %9487 = vmatprep.mubr.msk.bf16.mxu1 %vm14393_vm3, %v12686_v37  ;;  %6974 = vmatpush1.bf16.msra.mxu1 %v10507_v6  ;;  %v4342_v37 = vmul.u32 2246822507, %v12875_v49  ;;  %v3772_v59 = vpop.f32.mrb[32].mxu1  ;;  %v10528_v49 = vld [vmem:[#allocation9 + $0x708] ss:$16 sps:$4 sm:$0xff]   ;;  %v12973_v39 = vxor.u32 %v4414_v53, %v4350_v20 }
 0x384   :  { %6975 = vmatprep.subr.bf16.mxu1 %v10515_v29  ;;  %v9796_v32 = vadd.f32 %v3772_v59, %v12880_v16  ;;  %v3774_v30 = vpop.f32.mrb[33].mxu1  ;;  %v4711_v44 = vand.u32 8388607, %v12918_v61  ;;  %v4543_v19 = vmul.u32 3266489909, %v12930_v11 }
 0x385   :  { %v9797_v5 = vadd.f32 %v3774_v30, %v12885_v24  ;;  %v3776_v35 = vpop.f32.mrb[34].mxu1  ;;  %v4406_v1 = vshrl.u32 %v4342_v37, 13  ;;  %v4710_v58 = vand.u32 8388607, %v12949_v27  ;;  %v10552_v63 = vld [vmem:[#allocation12] ss:$8 sps:$4 sm:$0xff]  }
 0x386   :  { %v3881_v47 = vmul.f32 0.2, %v9796_v32  ;;  %v9798_v56 = vadd.f32 %v3776_v35, %v12880_v16  ;;  %v3778_v57 = vpop.f32.mrb[35].mxu1  ;;  %vm3817_vm5 = vcmp.ge.f32.partialorder %v9796_v32, 0.0  ;;  %v4607_v59 = vshrl.u32 %v4543_v19, 16 }
 0x387   :  { %6976 = vmatpush1.bf16.msra.mxu1 %v10513_v52  ;;  %v3882_v3 = vmul.f32 0.2, %v9797_v5  ;;  %v9799_v6 = vadd.f32 %v3778_v57, %v12885_v24  ;;  %vm3818_vm7 = vcmp.ge.f32.partialorder %v9797_v5, 0.0  ;;  %v12964_v48 = vxor.u32 %v4406_v1, %v4342_v37  ;;  %v10530_v52 = vld [vmem:[#allocation9 + $0x70c] ss:$16 sps:$4 sm:$0xff]  }
 0x388   :  { %6977 = vmatprep.subr.bf16.mxu1 %v10521_v7  ;;  %vm3825_vm0 = vcmp.ge.f32.partialorder %v9798_v56, 0.0  ;;  %v3889_v23 = vmul.f32 0.2, %v9798_v56  ;;  %v3945_v22 = vsel %vm3817_vm5, %v9796_v32, %v3881_v47  ;;  %v10557_v34 = vld [vmem:[#allocation12 + $0x14] ss:$8 sps:$4 sm:$0xff]   ;;  %v14409_v35 = vmov 0 }
 0x389   :  { %vm3826_vm14 = vcmp.ge.f32.partialorder %v9799_v6, 0.0  ;;  %v3890_v43 = vmul.f32 0.2, %v9799_v6  ;;  %v3946_v29 = vsel %vm3818_vm7, %v9797_v5, %v3882_v3  ;;  %v10531_v40 = vld [vmem:[#allocation9 + $0x728] ss:$16 sps:$4 sm:$0xff]   ;;  %v14407_v5 = vmov 0 }
 0x38a   :  { %9490 = vmatmul.mubr.msk.bf16.gmra.mrb[60].mxu1 %vm14398_vm15, %v12680_v14  ;;  %v12959_v14 = vxor.u32 %v4590_v2, %v4526_v33  ;;  %v3953_v45 = vsel %vm3825_vm0, %v9798_v56, %v3889_v23  ;;  %v4599_v33 = vshrl.u32 %v4535_v42, 16  ;;  %v4542_v31 = vmul.u32 3266489909, %v12973_v39  ;;  %v10560_v61 = vld [vmem:[#allocation12 + $0x24] ss:$8 sps:$4 sm:$0xff]  }
 0x38b   :  { %6978 = vmatpush1.bf16.msra.mxu1 %v10519_v38  ;;  %v12967_v13 = vpack.c.bf16 %v3953_v45, %v3945_v22  ;;  %v3954_v60 = vsel %vm3826_vm14, %v9799_v6, %v3890_v43  ;;  %v4534_v38 = vmul.u32 3266489909, %v12964_v48  ;;  %vm13007_vm11 = vcmp.ge.s32.totalorder %v4711_v44, 2516582  ;;  %v10536_v57 = vld [vmem:[#allocation9 + $0x74c] ss:$16 sps:$4 sm:$0xff]   ;;  %vm14092_vm14 = vmpackc.low %vm12945_vm12, %vm12941_vm10 }
 0x38c   :  { %6979 = vmatprep.subr.bf16.mxu1 %v10527_v26  ;;  %v3782_v25 = vpop.f32.mrb[36].mxu1  ;;  %v9396_v12 = vpack.c.bf16 %v3954_v60, %v3946_v29  ;;  %v4718_v37 = vand.u32 8388607, %v12959_v14  ;;  %v14408_v5 = vsel %vm13007_vm11, 4294967295, %v14407_v5  ;;  %vm13011_vm7 = vcmp.ge.s32.totalorder %v4719_v4, 2516582 }
 0x38d   :  { %v9800_v7 = vadd.f32 %v3782_v25, %v12880_v16  ;;  %v3784_v10 = vpop.f32.mrb[37].mxu1  ;;  %v14410_v35 = vsel %vm13011_vm7, 4294967295, %v14409_v35  ;;  %v10555_v26 = vld [vmem:[#allocation12 + $0x10] ss:$8 sps:$4 sm:$0xff]   ;;  %v13017_v11 = vxor.u32 %v4599_v33, %v4535_v42  ;;  %v13019_v47 = vxor.u32 %v4607_v59, %v4543_v19  ;;  %v10534_v23 = vld [vmem:[#allocation9 + $0x748] ss:$16 sps:$4 sm:$0xff]  }
 0x38e   :  { %v9801_v62 = vadd.f32 %v3784_v10, %v12885_v24  ;;  %v3786_v50 = vpop.f32.mrb[38].mxu1  ;;  %9397 = vmatprep.mubr.msk.bf16.mxu0 %vm9395_vm9, %v9396_v12  ;;  %9493 = vmatprep.mubr.msk.bf16.mxu1 %vm9395_vm9, %v9396_v12  ;;  %vm13022_vm15 = vcmp.ge.s32.totalorder %v4710_v58, 2516582  ;;  %v14411_v1 = vmov 0  ;;  %v4598_v3 = vshrl.u32 %v4534_v38, 16  ;;  %vm14093_vm9 = vmpackc.low %vm12955_vm2, %vm12951_vm6 }
 0x38f   :  { %6980 = vmatpush1.bf16.msra.mxu1 %v10525_v28  ;;  %v3897_v20 = vmul.f32 0.2, %v9800_v7  ;;  %v9802_v32 = vadd.f32 %v3786_v50, %v12880_v16  ;;  %v3788_v30 = vpop.f32.mrb[39].mxu1  ;;  %vm3833_vm3 = vcmp.ge.f32.partialorder %v9800_v7, 0.0  ;;  %9400 = vmatmul.mubr.msk.bf16.vlgmr.msra.gmra.mrb[32].mxu0 %vm14094_vm1, %v12967_v13  ;;  %v14412_v1 = vsel %vm13022_vm15, 4294967295, %v14411_v1 }
 0x390   :  { %v3898_v51 = vmul.f32 0.2, %v9801_v62  ;;  %v9803_v9 = vadd.f32 %v3788_v30, %v12885_v24  ;;  %6981 = vmatprep.subr.bf16.mxu1 %v10530_v52  ;;  %vm3834_vm5 = vcmp.ge.f32.partialorder %v9801_v62, 0.0  ;;  %7974 = vmatpush1.bf16.msra.mxu0 %v10552_v63  ;;  %v4606_v28 = vshrl.u32 %v4542_v31, 16  ;;  %v10539_v19 = vld [vmem:[#allocation9 + $0x76c] ss:$16 sps:$4 sm:$0xff]  }
 0x391   :  { %vm3841_vm13 = vcmp.ge.f32.partialorder %v9802_v32, 0.0  ;;  %v3905_v8 = vmul.f32 0.2, %v9802_v32  ;;  %7975 = vmatprep.subr.bf16.mxu0 %v10557_v34  ;;  %v3961_v44 = vsel %vm3833_vm3, %v9800_v7, %v3897_v20  ;;  %vm13040_vm3 = vcmp.ge.s32.totalorder %v4718_v37, 2516582 }
 0x392   :  { %vm3842_vm0 = vcmp.ge.f32.partialorder %v9803_v9, 0.0  ;;  %v3906_v2 = vmul.f32 0.2, %v9803_v9  ;;  %v3962_v6 = vsel %vm3834_vm5, %v9801_v62, %v3898_v51  ;;  %v10558_v45 = vld [vmem:[#allocation12 + $0x20] ss:$8 sps:$4 sm:$0xff]   ;;  %v4662_v12 = vxor.u32 %v4598_v3, %v4534_v38 }
 0x393   :  { %6982 = vmatpush1.bf16.msra.mxu1 %v10528_v49  ;;  %v3969_v56 = vsel %vm3841_vm13, %v9802_v32, %v3905_v8  ;;  %v4727_v29 = vand.u32 8388607, %v13017_v11  ;;  %v10563_v60 = vld [vmem:[#allocation12 + $0x34] ss:$8 sps:$4 sm:$0xff]   ;;  %v4735_v39 = vand.u32 8388607, %v13019_v47  ;;  %v4670_v58 = vxor.u32 %v4606_v28, %v4542_v31 }
 0x394   :  { %6983 = vmatprep.subr.bf16.mxu1 %v10533_v15  ;;  %v13027_v53 = vpack.c.bf16 %v3969_v56, %v3961_v44  ;;  %v3970_v0 = vsel %vm3842_vm0, %v9803_v9, %v3906_v2  ;;  %7976 = vmatpush1.bf16.msra.mxu0 %v10555_v26  ;;  %v10537_v15 = vld [vmem:[#allocation9 + $0x768] ss:$16 sps:$4 sm:$0xff]   ;;  %v10561_v63 = vld [vmem:[#allocation12 + $0x30] ss:$8 sps:$4 sm:$0xff]   ;;  %v4726_v20 = vand.u32 8388607, %v4662_v12 }
 0x395   :  { %v3792_v42 = vpop.f32.mrb[40].mxu1  ;;  %v13033_v27 = vpack.c.bf16 %v3970_v0, %v3962_v6  ;;  %7977 = vmatprep.subr.bf16.mxu0 %v10560_v61  ;;  %v10566_v50 = vld [vmem:[#allocation12 + $0x44] ss:$8 sps:$4 sm:$0xff]   ;;  %v10542_v34 = vld [vmem:[#allocation9 + $0x78c] ss:$16 sps:$4 sm:$0xff]  }
 0x396   :  { %v9804_v43 = vadd.f32 %v3792_v42, %v12880_v16  ;;  %v3794_v14 = vpop.f32.mrb[41].mxu1  ;;  %v10540_v9 = vld [vmem:[#allocation9 + $0x788] ss:$16 sps:$4 sm:$0xff]   ;;  %v10545_v2 = vld [vmem:[#allocation9 + $0x7ac] ss:$16 sps:$4 sm:$0xff]  }
 0x397   :  { %v9805_v4 = vadd.f32 %v3794_v14, %v12885_v24  ;;  %6984 = vmatpush1.bf16.msra.mxu1 %v10531_v40  ;;  %v3796_v48 = vpop.f32.mrb[42].mxu1  ;;  %9403 = vmatprep.mubr.msk.bf16.mxu0 %vm14092_vm14, %v13033_v27  ;;  %v4734_v40 = vand.u32 8388607, %v4670_v58  ;;  %v10564_v47 = vld [vmem:[#allocation12 + $0x40] ss:$8 sps:$4 sm:$0xff]  }
 0x398   :  { %v3913_v25 = vmul.f32 0.2, %v9804_v43  ;;  %v9806_v49 = vadd.f32 %v3796_v48, %v12880_v16  ;;  %v3798_v52 = vpop.f32.mrb[43].mxu1  ;;  %6985 = vmatprep.subr.bf16.mxu1 %v10536_v57  ;;  %vm3849_vm5 = vcmp.ge.f32.partialorder %v9804_v43, 0.0  ;;  %9406 = vmatmul.mubr.msk.bf16.gmra.mrb[36].mxu0 %vm14093_vm9, %v13027_v53  ;;  %vm14096_vm9 = vmpackc.low %vm13011_vm7, %vm13007_vm11  ;;  %v10569_v57 = vld [vmem:[#allocation12 + $0x54] ss:$8 sps:$4 sm:$0xff]  }
 0x399   :  { %v3914_v7 = vmul.f32 0.2, %v9805_v4  ;;  %v9807_v10 = vadd.f32 %v3798_v52, %v12885_v24  ;;  %vm3850_vm13 = vcmp.ge.f32.partialorder %v9805_v4, 0.0  ;;  %7978 = vmatpush1.bf16.msra.mxu0 %v10558_v45  ;;  %vm13102_vm6 = vcmp.ge.s32.totalorder %v4734_v40, 2516582 }
 0x39a   :  { %vm3857_vm0 = vcmp.ge.f32.partialorder %v9806_v49, 0.0  ;;  %v3921_v33 = vmul.f32 0.2, %v9806_v49  ;;  %7979 = vmatprep.subr.bf16.mxu0 %v10563_v60  ;;  %v3977_v37 = vsel %vm3849_vm5, %v9804_v43, %v3913_v25  ;;  %vm14099_vm5 = vmpackc.low %vm13040_vm3, %vm13022_vm15  ;;  %v10546_v12 = vld [vmem:[#allocation9 + $0x7c8] ss:$16 sps:$4 sm:$0xff]  }
 0x39b   :  { %vm3858_vm14 = vcmp.ge.f32.partialorder %v9807_v10, 0.0  ;;  %v3922_v62 = vmul.f32 0.2, %v9807_v10  ;;  %6986 = vmatpush1.bf16.msra.mxu1 %v10534_v23  ;;  %v3978_v32 = vsel %vm3850_vm13, %v9805_v4, %v3914_v7  ;;  %vm13080_vm13 = vcmp.ge.s32.totalorder %v4735_v39, 2516582 }
 0x39c   :  { %v3985_v59 = vsel %vm3857_vm0, %v9806_v49, %v3921_v33  ;;  %6987 = vmatprep.subr.bf16.mxu1 %v10539_v19  ;;  %vm13091_vm0 = vcmp.ge.s32.totalorder %v4726_v20, 2516582  ;;  %v10567_v19 = vld [vmem:[#allocation12 + $0x50] ss:$8 sps:$4 sm:$0xff]   ;;  %v10570_v39 = vld [vmem:[#allocation12 + $0x60] ss:$8 sps:$4 sm:$0xff]  }
 0x39d   :  { %v13062_v30 = vpack.c.bf16 %v3985_v59, %v3977_v37  ;;  %v3986_v38 = vsel %vm3858_vm14, %v9807_v10, %v3922_v62  ;;  %v3802_v51 = vpop.f32.mrb[44].mxu1  ;;  %vm13075_vm14 = vcmp.ge.s32.totalorder %v4727_v29, 2516582  ;;  %7980 = vmatpush1.bf16.msra.mxu0 %v10561_v63  ;;  %v10548_v29 = vld [vmem:[#allocation9 + $0x7cc] ss:$16 sps:$4 sm:$0xff]   ;;  %vm9416_vm15 = vmpackc.low %vm13102_vm6, %vm13091_vm0  ;;  %v14434_v20 = vld [vmem:[#allocation24_spill] sm:$0xff] }
 0x39e   :  { %v13068_v31 = vpack.c.bf16 %v3986_v38, %v3978_v32  ;;  %v9808_v8 = vadd.f32 %v3802_v51, %v12880_v16  ;;  %v3804_v26 = vpop.f32.mrb[45].mxu1  ;;  %7981 = vmatprep.subr.bf16.mxu0 %v10566_v50  ;;  %v10575_v7 = vld [vmem:[#allocation12 + $0x74] ss:$8 sps:$4 sm:$0xff]   ;;  %v10551_v10 = vld [vmem:[#allocation9 + $0x7ec] ss:$16 sps:$4 sm:$0xff]   ;;  %v13178_v38 = vstv %s7175_s14 }
 0x39f   :  { %v9809_v61 = vadd.f32 %v3804_v26, %v12885_v24  ;;  %6988 = vmatpush1.bf16.msra.mxu1 %v10537_v15  ;;  %v3806_v44 = vpop.f32.mrb[46].mxu1  ;;  %v10573_v15 = vld [vmem:[#allocation12 + $0x70] ss:$8 sps:$4 sm:$0xff]   ;;  %v10549_v58 = vld [vmem:[#allocation9 + $0x7e8] ss:$16 sps:$4 sm:$0xff]  }
 0x3a0   :  { %v3929_v3 = vmul.f32 0.2, %v9808_v8  ;;  %v9810_v6 = vadd.f32 %v3806_v44, %v12880_v16  ;;  %v3808_v0 = vpop.f32.mrb[47].mxu1  ;;  %9409 = vmatprep.mubr.msk.bf16.mxu0 %vm14096_vm9, %v13068_v31  ;;  %6989 = vmatprep.subr.bf16.mxu1 %v10542_v34  ;;  %v10543_v16 = vld [vmem:[#allocation9 + $0x7a8] ss:$16 sps:$4 sm:$0xff]   ;;  %vm14423_vm7 = vcmp.ge.f32.partialorder %v9808_v8, 0.0 }
 0x3a1   :  { %v3930_v23 = vmul.f32 0.2, %v9809_v61  ;;  %v9811_v28 = vadd.f32 %v3808_v0, %v12885_v24  ;;  %9412 = vmatmul.mubr.msk.bf16.gmra.mrb[40].mxu0 %vm14099_vm5, %v13062_v30  ;;  %vm3866_vm9 = vcmp.ge.f32.partialorder %v9809_v61, 0.0  ;;  %v10572_v24 = vld [vmem:[#allocation12 + $0x64] ss:$8 sps:$4 sm:$0xff]   ;;  %vm9413_vm5 = vmpackc.low %vm13080_vm13, %vm13075_vm14 }
 0x3a2   :  { %vm3873_vm11 = vcmp.ge.f32.partialorder %v9810_v6, 0.0  ;;  %v3937_v14 = vmul.f32 0.2, %v9810_v6  ;;  %7982 = vmatpush1.bf16.msra.mxu0 %v10564_v47  ;;  %v3993_v4 = vsel %vm14423_vm7, %v9808_v8, %v3929_v3  ;;  %v10578_v33 = vld [vmem:[#allocation12 + $0x84] ss:$8 sps:$4 sm:$0xff]   ;;  %vm14428_vm7 = vnez %v14410_v35 }
 0x3a3   :  { %vm3874_vm1 = vcmp.ge.f32.partialorder %v9811_v28, 0.0  ;;  %v3938_v45 = vmul.f32 0.2, %v9811_v28  ;;  %6990 = vmatpush1.bf16.msra.mxu1 %v10540_v9  ;;  %7983 = vmatprep.subr.bf16.mxu0 %v10569_v57  ;;  %v3994_v60 = vsel %vm3866_vm9, %v9809_v61, %v3930_v23  ;;  %v10576_v63 = vld [vmem:[#allocation12 + $0x80] ss:$8 sps:$4 sm:$0xff]   ;;  %v14435_v8 = vld [vmem:[#allocation44_spill] sm:$0xff] }
 0x3a4   :  { %v4001_v48 = vsel %vm3873_vm11, %v9810_v6, %v3937_v14  ;;  %6991 = vmatprep.subr.bf16.mxu1 %v10545_v2  ;;  %v10581_v62 = vld [vmem:[#allocation12 + $0x94] ss:$8 sps:$4 sm:$0xff]   ;;  %v10579_v50 = vld [vmem:[#allocation12 + $0x90] ss:$8 sps:$4 sm:$0xff]   ;;  %vm14425_vm11 = vmpackc.low %vm12945_vm12, %vm12941_vm10  ;;  %vm14429_vm10 = vnez %v14408_v5  ;;  %v13183_v26 = vmul.u32 512, %v14435_v8 }
 0x3a5   :  { %v9417_v25 = vpack.c.bf16 %v4001_v48, %v3993_v4  ;;  %v4002_v49 = vsel %vm3874_vm1, %v9811_v28, %v3938_v45  ;;  %vm14424_vm1 = vmpackc.low %vm12914_vm8, %vm12910_vm4  ;;  %v10584_v37 = vld [vmem:[#allocation12 + $0xa4] ss:$8 sps:$4 sm:$0xff]   ;;  %v10582_v59 = vld [vmem:[#allocation12 + $0xa0] ss:$8 sps:$4 sm:$0xff]   ;;  %vm14426_vm4 = vnez %v14404_v21 }
 0x3a6   :  { %v9414_v52 = vpack.c.bf16 %v4002_v49, %v3994_v60  ;;  %7984 = vmatpush1.bf16.msra.mxu0 %v10567_v19  ;;  %v10587_v34 = vld [vmem:[#allocation12 + $0xb4] ss:$8 sps:$4 sm:$0xff]   ;;  %vm14427_vm8 = vmpackc.low %vm12955_vm2, %vm14426_vm4  ;;  %v10588_v46 = vld [vmem:[#allocation12 + $0xc0] ss:$8 sps:$4 sm:$0xff]   ;;  %vm14431_vm2 = vnez %v14412_v1  ;;  %v7152_v57 = vadd.s32 %v13183_v26, %v14434_v20 }
 0x3a7   :  { %6992 = vmatpush1.bf16.msra.mxu1 %v10543_v16  ;;  %7985 = vmatprep.subr.bf16.mxu0 %v10572_v24  ;;  %vm14430_vm12 = vmpackc.low %vm14428_vm7, %vm14429_vm10  ;;  %v10593_v17 = vld [vmem:[#allocation12 + $0xd4] ss:$8 sps:$4 sm:$0xff]   ;;  %v10591_v21 = vld [vmem:[#allocation12 + $0xd0] ss:$8 sps:$4 sm:$0xff]  }
 0x3a8   :  { %9415 = vmatprep.mubr.msk.bf16.mxu0 %vm9413_vm5, %v9414_v52  ;;  %6993 = vmatprep.subr.bf16.mxu1 %v10548_v29  ;;  %vm14432_vm9 = vmpackc.low %vm13040_vm3, %vm14431_vm2  ;;  %v10599_v5 = vld [vmem:[#allocation12 + $0xf4] ss:$8 sps:$4 sm:$0xff]   ;;  %v10597_v35 = vld [vmem:[#allocation12 + $0xf0] ss:$8 sps:$4 sm:$0xff]   ;;  %v7187_v42 = vxor.u32 %v13178_v38, %v7152_v57 }
 0x3a9   :  { %9418 = vmatmul.mubr.msk.bf16.gmra.mrb[44].mxu0 %vm9416_vm15, %v9417_v25  ;;  %v10602_v1 = vld [vmem:[#allocation12 + $0x104] ss:$8 sps:$4 sm:$0xff]   ;;  %v14436_v2 = vld [vmem:[#allocation46_spill] sm:$0xff] }
 0x3aa   :  { %7986 = vmatpush1.bf16.msra.mxu0 %v10570_v39  ;;  %v13186_v11 = vmul.u32 512, %v14436_v2  ;;  %v7219_v43 = vshrl.u32 %v7187_v42, 16  ;;  %v14437_v48 = vld [vmem:[#allocation50_spill] sm:$0xff]  ;;  %v14438_v39 = vld [vmem:[#allocation51_spill] sm:$0xff] }
 0x3ab   :  { %6994 = vmatpush1.bf16.msra.mxu1 %v10546_v12  ;;  %7987 = vmatprep.subr.bf16.mxu0 %v10575_v7  ;;  %v13195_v29 = vmul.u32 512, %v14437_v48  ;;  %v13198_v12 = vmul.u32 512, %v14438_v39  ;;  %v5152_v48 = vld [vmem:[#allocation11] sm:$0xf] }
 0x3ac   :  { %6995 = vmatprep.subr.bf16.mxu1 %v10551_v10  ;;  %v7156_v3 = vadd.s32 %v13186_v11, %v14434_v20  ;;  %v7251_v24 = vxor.u32 %v7219_v43, %v7187_v42 }
 0x3ae   :  { %7988 = vmatpush1.bf16.msra.mxu0 %v10573_v15  ;;  %v7191_v23 = vxor.u32 %v13178_v38, %v7156_v3  ;;  %v7283_v49 = vmul.u32 2246822507, %v7251_v24 }
 0x3af   :  { %6996 = vmatpush1.bf16.msra.mxu1 %v10549_v58  ;;  %7989 = vmatprep.subr.bf16.mxu0 %v10578_v33  ;;  %v7160_v33 = vadd.s32 %v13195_v29, %v14434_v20 }
 0x3b0   :  { %v7223_v14 = vshrl.u32 %v7191_v23, 16  ;;  %v7315_v15 = vshrl.u32 %v7283_v49, 13 }
 0x3b2   :  { %9496 = vmatmul.mubr.msk.bf16.vlgmr.msra.gmra.mrb[48].mxu1 %vm14424_vm1, %v12967_v13  ;;  %7990 = vmatpush1.bf16.msra.mxu0 %v10576_v63  ;;  %v10594_v13 = vld [vmem:[#allocation12 + $0xe0] ss:$8 sps:$4 sm:$0xff]   ;;  %v7255_v4 = vxor.u32 %v7223_v14, %v7191_v23  ;;  %v14444_v14 = vmov 0 }
 0x3b3   :  { %9499 = vmatprep.mubr.msk.bf16.mxu1 %vm14425_vm11, %v13033_v27  ;;  %7991 = vmatprep.subr.bf16.mxu0 %v10581_v62  ;;  %v14433_v27 = vld [vmem:[#allocation37_spill] sm:$0xff] }
 0x3b4   :  { %v13172_v22 = vmul.u32 512, %v14433_v27 }
 0x3b6   :  { %7992 = vmatpush1.bf16.msra.mxu0 %v10579_v50  ;;  %v7164_v50 = vadd.s32 %v13198_v12, %v14434_v20 }
 0x3b7   :  { %7993 = vmatprep.subr.bf16.mxu0 %v10584_v37  ;;  %v7347_v37 = vxor.u32 %v7315_v15, %v7283_v49 }
 0x3ba   :  { %9502 = vmatmul.mubr.msk.bf16.gmra.mrb[52].mxu1 %vm14427_vm8, %v13027_v53  ;;  %7994 = vmatpush1.bf16.msra.mxu0 %v10582_v59  ;;  %v13169_v53 = vmul.u32 512, %v11286_v36 }
 0x3bb   :  { %9505 = vmatprep.mubr.msk.bf16.mxu1 %vm14430_vm12, %v13068_v31  ;;  %7995 = vmatprep.subr.bf16.mxu0 %v10587_v34  ;;  %v14439_v34 = vld [vmem:[#allocation38_spill] sm:$0xff] }
 0x3bc   :  { %v7144_v32 = vadd.s32 %v13169_v53, %v14434_v20  ;;  %v7151_v43 = vadd.s32 %v13183_v26, %v14439_v34 }
 0x3be   :  { %7996 = vmatpush1.bf16.msra.mxu0 %v10585_v18  ;;  %v7179_v51 = vxor.u32 %v13178_v38, %v7144_v32  ;;  %v7143_v18 = vadd.s32 %v13169_v53, %v14439_v34 }
 0x3bf   :  { %7997 = vmatprep.subr.bf16.mxu0 %v10590_v54 }
 0x3c0   :  { %v7211_v40 = vshrl.u32 %v7179_v51, 16 }
 0x3c2   :  { %9508 = vmatmul.mubr.msk.bf16.gmra.mrb[56].mxu1 %vm14432_vm9, %v13062_v30  ;;  %7998 = vmatpush1.bf16.msra.mxu0 %v10588_v46  ;;  %v7148_v30 = vadd.s32 %v13172_v22, %v14434_v20  ;;  %v7243_v47 = vxor.u32 %v7211_v40, %v7179_v51  ;;  %v7146_v51 = vadd.s32 %v13172_v22, %v14369_v55 }
 0x3c3   :  { %9511 = vmatprep.mubr.msk.bf16.mxu1 %vm9413_vm5, %v9414_v52  ;;  %7999 = vmatprep.subr.bf16.mxu0 %v10593_v17  ;;  %v7287_v52 = vmul.u32 2246822507, %v7255_v4  ;;  %v7147_v17 = vadd.s32 %v13172_v22, %v14439_v34 }
 0x3c4   :  { %v7183_v9 = vxor.u32 %v13178_v38, %v7148_v30  ;;  %v7275_v44 = vmul.u32 2246822507, %v7243_v47  ;;  %v7178_v30 = vxor.u32 %v13178_v38, %v7143_v18  ;;  %v7181_v42 = vxor.u32 %v13178_v38, %v7146_v51 }
 0x3c5   :  { %v7319_v58 = vshrl.u32 %v7287_v52, 13 }
 0x3c6   :  { %8000 = vmatpush1.bf16.msra.mxu0 %v10591_v21  ;;  %v7215_v31 = vshrl.u32 %v7183_v9, 16  ;;  %v7307_v6 = vshrl.u32 %v7275_v44, 13  ;;  %v7379_v21 = vmul.u32 3266489909, %v7347_v37 }
 0x3c7   :  { %8001 = vmatprep.subr.bf16.mxu0 %v10596_v41  ;;  %v7351_v59 = vxor.u32 %v7319_v58, %v7287_v52  ;;  %v7195_v41 = vxor.u32 %v13178_v38, %v7160_v33  ;;  %v7186_v33 = vxor.u32 %v13178_v38, %v7151_v43 }
 0x3c8   :  { %v7247_v61 = vxor.u32 %v7215_v31, %v7183_v9  ;;  %v7339_v28 = vxor.u32 %v7307_v6, %v7275_v44  ;;  %v7182_v31 = vxor.u32 %v13178_v38, %v7147_v17  ;;  %v7163_v17 = vadd.s32 %v13198_v12, %v14439_v34 }
 0x3c9   :  { %v7227_v32 = vshrl.u32 %v7195_v41, 16 }
 0x3ca   :  { %9514 = vmatmul.mubr.msk.bf16.gmra.mrb[60].mxu1 %vm9416_vm15, %v9417_v25  ;;  %8002 = vmatpush1.bf16.msra.mxu0 %v10594_v13  ;;  %v7279_v56 = vmul.u32 2246822507, %v7247_v61  ;;  %v7371_v19 = vmul.u32 3266489909, %v7339_v28 }
 0x3cb   :  { %8003 = vmatprep.subr.bf16.mxu0 %v10599_v5  ;;  %v7383_v13 = vmul.u32 3266489909, %v7351_v59  ;;  %v7199_v5 = vxor.u32 %v13178_v38, %v7164_v50  ;;  %v7259_v61 = vxor.u32 %v7227_v32, %v7195_v41  ;;  %v7159_v50 = vadd.s32 %v13195_v29, %v14439_v34 }
 0x3cc   :  { %v7311_v0 = vshrl.u32 %v7279_v56, 13  ;;  %v7403_v60 = vshrl.u32 %v7371_v19, 16  ;;  %v7218_v32 = vshrl.u32 %v7186_v33, 16 }
 0x3cd   :  { %v7415_v9 = vshrl.u32 %v7383_v13, 16  ;;  %v7231_v40 = vshrl.u32 %v7199_v5, 16  ;;  %v7291_v6 = vmul.u32 2246822507, %v7259_v61 }
 0x3ce   :  { %8004 = vmatpush1.bf16.msra.mxu0 %v10597_v35  ;;  %v7343_v16 = vxor.u32 %v7311_v0, %v7279_v56  ;;  %v7435_v7 = vxor.u32 %v7403_v60, %v7371_v19  ;;  %v7142_v35 = vadd.s32 %v13169_v53, %v14369_v55  ;;  %v7210_v0 = vshrl.u32 %v7178_v30, 16 }
 0x3cf   :  { %8046 = vmatprep.subr.bf16.mxu0 %v10602_v1  ;;  %v7411_v1 = vshrl.u32 %v7379_v21, 16  ;;  %v7447_v44 = vxor.u32 %v7415_v9, %v7383_v13  ;;  %v7263_v56 = vxor.u32 %v7231_v40, %v7199_v5  ;;  %v7323_v19 = vshrl.u32 %v7291_v6, 13 }
 0x3d0   :  { %v7375_v45 = vmul.u32 3266489909, %v7343_v16  ;;  %v7467_v63 = vand.u32 8388607, %v7435_v7  ;;  %v7177_v57 = vxor.u32 %v13178_v38, %v7142_v35  ;;  %v7214_v16 = vshrl.u32 %v7182_v31, 16 }
 0x3d1   :  { %v7443_v47 = vxor.u32 %v7411_v1, %v7379_v21  ;;  %v7479_v23 = vand.u32 8388607, %v7447_v44  ;;  %v7295_v28 = vmul.u32 2246822507, %v7263_v56  ;;  %v7355_v49 = vxor.u32 %v7323_v19, %v7291_v6 }
 0x3d2   :  { %v7407_v25 = vshrl.u32 %v7375_v45, 16  ;;  %vm13206_vm6 = vcmp.ge.s32.totalorder %v7467_v63, 2516582  ;;  %v7209_v60 = vshrl.u32 %v7177_v57, 16  ;;  %v7242_v52 = vxor.u32 %v7210_v0, %v7178_v30 }
 0x3d3   :  { %v7475_v3 = vand.u32 8388607, %v7443_v47  ;;  %vm13238_vm14 = vcmp.ge.s32.totalorder %v7479_v23, 2516582  ;;  %v7327_v4 = vshrl.u32 %v7295_v28, 13  ;;  %v7213_v7 = vshrl.u32 %v7181_v42, 16 }
 0x3d4   :  { %v7439_v10 = vxor.u32 %v7407_v25, %v7375_v45  ;;  %v7155_v45 = vadd.s32 %v13186_v11, %v14439_v34  ;;  %v7150_v25 = vadd.s32 %v13183_v26, %v14369_v55  ;;  %v7246_v58 = vxor.u32 %v7214_v16, %v7182_v31 }
 0x3d5   :  { %vm13232_vm5 = vcmp.ge.s32.totalorder %v7475_v3, 2516582  ;;  %v7359_v15 = vxor.u32 %v7327_v4, %v7295_v28  ;;  %v7387_v63 = vmul.u32 3266489909, %v7355_v49  ;;  %v7241_v59 = vxor.u32 %v7209_v60, %v7177_v57 }
 0x3d6   :  { %v7471_v62 = vand.u32 8388607, %v7439_v10  ;;  %v14445_v14 = vsel %vm13232_vm5, 4294967295, %v14444_v14  ;;  %v7154_v10 = vadd.s32 %v13186_v11, %v14369_v55  ;;  %v7185_v18 = vxor.u32 %v13178_v38, %v7150_v25 }
 0x3d7   :  { %v7391_v37 = vmul.u32 3266489909, %v7359_v15  ;;  %v7419_v21 = vshrl.u32 %v7387_v63, 16  ;;  %v7274_v41 = vmul.u32 2246822507, %v7242_v52  ;;  %v7245_v13 = vxor.u32 %v7213_v7, %v7181_v42  ;;  %v14452_v52 = vld [vmem:[#allocation56_spill] sm:$0xff] }
 0x3d8   :  { %vm13210_vm15 = vcmp.ge.s32.totalorder %v7471_v62, 2516582  ;;  %v7190_v62 = vxor.u32 %v13178_v38, %v7155_v45  ;;  %v7189_v5 = vxor.u32 %v13178_v38, %v7154_v10  ;;  %v7278_v1 = vmul.u32 2246822507, %v7246_v58 }
 0x3d9   :  { %v7423_v35 = vshrl.u32 %v7391_v37, 16  ;;  %v7451_v30 = vxor.u32 %v7419_v21, %v7387_v63  ;;  %v7194_v9 = vxor.u32 %v13178_v38, %v7159_v50  ;;  %v7158_v40 = vadd.s32 %v13195_v29, %v14369_v55  ;;  %v10648_v50 = vld [vmem:[#allocation15 + $0x40] sm:$0xff]  }
 0x3da   :  { %v7222_v51 = vshrl.u32 %v7190_v62, 16  ;;  %v7273_v47 = vmul.u32 2246822507, %v7241_v59  ;;  %v7217_v61 = vshrl.u32 %v7185_v18, 16  ;;  %v7198_v44 = vxor.u32 %v13178_v38, %v7163_v17  ;;  %v14453_v17 = vld [vmem:[#allocation57_spill] sm:$0xff]  ;;  %9716 = vmatprep.subr.bf16.mxu1 %v10648_v50 }
 0x3db   :  { %v7455_v31 = vxor.u32 %v7423_v35, %v7391_v37  ;;  %v7483_v56 = vand.u32 8388607, %v7451_v30  ;;  %v7306_v57 = vshrl.u32 %v7274_v41, 13  ;;  %v7277_v3 = vmul.u32 2246822507, %v7245_v13  ;;  %v10649_v13 = vld [vmem:[#allocation15] sm:$0xff]  }
 0x3dc   :  { %v7221_v6 = vshrl.u32 %v7189_v5, 16  ;;  %v7310_v42 = vshrl.u32 %v7278_v1, 13  ;;  %v7250_v23 = vxor.u32 %v7218_v32, %v7186_v33  ;;  %v7162_v28 = vadd.s32 %v13198_v12, %v14369_v55  ;;  %9724 = vmatpush3.bf16.msra.mxu1 %v10649_v13 }
 0x3dd   :  { %v7487_v0 = vand.u32 8388607, %v7455_v31  ;;  %vm13264_vm0 = vcmp.ge.s32.totalorder %v7483_v56, 2516582  ;;  %v14448_v16 = vmov 0  ;;  %v7254_v43 = vxor.u32 %v7222_v51, %v7190_v62  ;;  %v10650_v51 = vld [vmem:[#allocation15 + $0x48] sm:$0xff]  }
 0x3de   :  { %v14449_v16 = vsel %vm13264_vm0, 4294967295, %v14448_v16  ;;  %v7226_v19 = vshrl.u32 %v7194_v9, 16  ;;  %v7193_v45 = vxor.u32 %v13178_v38, %v7158_v40  ;;  %v14450_v4 = vmov 0  ;;  %9717 = vmatprep.subr.bf16.mxu1 %v10650_v51 }
 0x3df   :  { %vm13269_vm1 = vcmp.ge.s32.totalorder %v7487_v0, 2516582  ;;  %v7305_v60 = vshrl.u32 %v7273_v47, 13  ;;  %v7249_v25 = vxor.u32 %v7217_v61, %v7185_v18  ;;  %v7230_v49 = vshrl.u32 %v7198_v44, 16 }
 0x3e0   :  { %v14451_v4 = vsel %vm13269_vm1, 4294967295, %v14450_v4  ;;  %v13274_v7 = vmul.u32 512, %v14452_v52  ;;  %v7338_v10 = vxor.u32 %v7306_v57, %v7274_v41  ;;  %v7309_v15 = vshrl.u32 %v7277_v3, 13  ;;  %v13311_v52 = vld [vmem:[#allocation15 + $0x60] sm:$0xff]  }
 0x3e1   :  { %v7253_v58 = vxor.u32 %v7221_v6, %v7189_v5  ;;  %v7342_v33 = vxor.u32 %v7310_v42, %v7278_v1  ;;  %v7282_v63 = vmul.u32 2246822507, %v7250_v23  ;;  %v7197_v62 = vxor.u32 %v13178_v38, %v7162_v28 }
 0x3e2   :  { %v7286_v37 = vmul.u32 2246822507, %v7254_v43  ;;  %v7258_v59 = vxor.u32 %v7226_v19, %v7194_v9  ;;  %v7225_v18 = vshrl.u32 %v7193_v45, 16  ;;  %v13282_v21 = vmul.u32 512, %v14453_v17 }
 0x3e3   :  { %v7337_v35 = vxor.u32 %v7305_v60, %v7273_v47  ;;  %v7281_v32 = vmul.u32 2246822507, %v7249_v25  ;;  %v7262_v30 = vxor.u32 %v7230_v49, %v7198_v44  ;;  %v7167_v41 = vadd.s32 %v13274_v7, %v14439_v34  ;;  %v13288_v44 = vld [vmem:[#allocation15 + $0x8] sm:$0xff]  }
 0x3e4   :  { %v7370_v5 = vmul.u32 3266489909, %v7338_v10  ;;  %v7341_v1 = vxor.u32 %v7309_v15, %v7277_v3  ;;  %v7285_v40 = vmul.u32 2246822507, %v7253_v58  ;;  %v7314_v61 = vshrl.u32 %v7282_v63, 13  ;;  %v13291_v3 = vld [vmem:[#allocation15 + $0x50] sm:$0xff]   ;;  %9725 = vmatpush3.bf16.msra.mxu1 %v13288_v44 }
 0x3e5   :  { %v7374_v31 = vmul.u32 3266489909, %v7342_v33  ;;  %v7229_v9 = vshrl.u32 %v7197_v62, 16  ;;  %v7318_v56 = vshrl.u32 %v7286_v37, 13  ;;  %v7290_v57 = vmul.u32 2246822507, %v7258_v59  ;;  %9718 = vmatprep.subr.bf16.mxu1 %v13291_v3 }
 0x3e6   :  { %v7257_v6 = vxor.u32 %v7225_v18, %v7193_v45  ;;  %v7171_v47 = vadd.s32 %v13282_v21, %v14439_v34  ;;  %v7369_v0 = vmul.u32 3266489909, %v7337_v35  ;;  %v7313_v42 = vshrl.u32 %v7281_v32, 13  ;;  %v13298_v59 = vld [vmem:[#allocation15 + $0x10] sm:$0xff]  }
 0x3e7   :  { %v7294_v23 = vmul.u32 2246822507, %v7262_v30  ;;  %v7202_v28 = vxor.u32 %v13178_v38, %v7167_v41  ;;  %v7402_v43 = vshrl.u32 %v7370_v5, 16  ;;  %v7373_v19 = vmul.u32 3266489909, %v7341_v1  ;;  %v13300_v41 = vld [vmem:[#allocation15 + $0x58] sm:$0xff]  }
 0x3e8   :  { %v7317_v60 = vshrl.u32 %v7285_v40, 13  ;;  %v7406_v25 = vshrl.u32 %v7374_v31, 16  ;;  %v7346_v49 = vxor.u32 %v7314_v61, %v7282_v63  ;;  %v7261_v45 = vxor.u32 %v7229_v9, %v7197_v62  ;;  %9726 = vmatpush3.bf16.msra.mxu1 %v13298_v59  ;;  %v14456_v34 = vld [vmem:[#allocation41_spill] sm:$0xff] }
 0x3e9   :  { %v7166_v10 = vadd.s32 %v13274_v7, %v14369_v55  ;;  %v7350_v15 = vxor.u32 %v7318_v56, %v7286_v37  ;;  %v7322_v58 = vshrl.u32 %v7290_v57, 13  ;;  %v7289_v33 = vmul.u32 2246822507, %v7257_v6  ;;  %9719 = vmatprep.subr.bf16.mxu1 %v13300_v41 }
 0x3ea   :  { %v7206_v50 = vxor.u32 %v13178_v38, %v7171_v47  ;;  %v7401_v18 = vshrl.u32 %v7369_v0, 16  ;;  %v7345_v13 = vxor.u32 %v7313_v42, %v7281_v32  ;;  %v7326_v35 = vshrl.u32 %v7294_v23, 13 }
 0x3eb   :  { %v7234_v30 = vshrl.u32 %v7202_v28, 16  ;;  %v13302_v63 = vxor.u32 %v7402_v43, %v7370_v5  ;;  %v7405_v62 = vshrl.u32 %v7373_v19, 16  ;;  %v7349_v51 = vxor.u32 %v7317_v60, %v7285_v40  ;;  %v13309_v5 = vld [vmem:[#allocation15 + $0x18] sm:$0xff]  }
 0x3ec   :  { %v7170_v1 = vadd.s32 %v13282_v21, %v14369_v55  ;;  %v7438_v37 = vxor.u32 %v7406_v25, %v7374_v31  ;;  %v7378_v61 = vmul.u32 3266489909, %v7346_v49  ;;  %v7293_v9 = vmul.u32 2246822507, %v7261_v45  ;;  %9727 = vmatpush3.bf16.msra.mxu1 %v13309_v5 }
 0x3ed   :  { %v7201_v56 = vxor.u32 %v13178_v38, %v7166_v10  ;;  %v7382_v32 = vmul.u32 3266489909, %v7350_v15  ;;  %v7354_v6 = vxor.u32 %v7322_v58, %v7290_v57  ;;  %v7321_v47 = vshrl.u32 %v7289_v33, 13  ;;  %9720 = vmatprep.subr.bf16.mxu1 %v13311_v52 }
 0x3ee   :  { %v7238_v42 = vshrl.u32 %v7206_v50, 16  ;;  %v7433_v43 = vxor.u32 %v7401_v18, %v7369_v0  ;;  %v7377_v40 = vmul.u32 3266489909, %v7345_v13  ;;  %v7358_v60 = vxor.u32 %v7326_v35, %v7294_v23  ;;  %v13317_v13 = vld [vmem:[#allocation15 + $0x20] sm:$0xff]  }
 0x3ef   :  { %v7266_v17 = vxor.u32 %v7234_v30, %v7202_v28  ;;  %v7466_v31 = vand.u32 8388607, %v13302_v63  ;;  %v7437_v25 = vxor.u32 %v7405_v62, %v7373_v19  ;;  %v7381_v49 = vmul.u32 3266489909, %v7349_v51  ;;  %14454 = vst [vmem:[#allocation34_spill] sm:$0xff] %v13317_v13  ;;  %v14455_v63 = vld [vmem:[#allocation23_spill] sm:$0xff] }
 0x3f0   :  { %v7205_v45 = vxor.u32 %v13178_v38, %v7170_v1  ;;  %v7470_v10 = vand.u32 8388607, %v7438_v37  ;;  %v7410_v57 = vshrl.u32 %v7378_v61, 16  ;;  %v7325_v15 = vshrl.u32 %v7293_v9, 13  ;;  %9728 = vmatpush3.bf16.msra.mxu1 %v13317_v13 }
 0x3f1   :  { %v7233_v58 = vshrl.u32 %v7201_v56, 16  ;;  %v7414_v0 = vshrl.u32 %v7382_v32, 16  ;;  %v7386_v18 = vmul.u32 3266489909, %v7354_v6  ;;  %v7353_v23 = vxor.u32 %v7321_v47, %v7289_v33 }
 0x3f2   :  { %v7270_v28 = vxor.u32 %v7238_v42, %v7206_v50  ;;  %v7409_v35 = vshrl.u32 %v7377_v40, 16  ;;  %v7390_v30 = vmul.u32 3266489909, %v7358_v60  ;;  %v7298_v19 = vmul.u32 2246822507, %v7266_v17 }
 0x3f3   :  { %v7145_v62 = vadd.s32 %v13169_v53, %v14455_v63  ;;  %v7465_v51 = vand.u32 8388607, %v7433_v43  ;;  %v7413_v1 = vshrl.u32 %v7381_v49, 16  ;;  %v7237_v37 = vshrl.u32 %v7205_v45, 16 }
 0x3f4   :  { %v7149_v39 = vadd.s32 %v13172_v22, %v14455_v63  ;;  %v7469_v6 = vand.u32 8388607, %v7437_v25  ;;  %v7442_v33 = vxor.u32 %v7410_v57, %v7378_v61  ;;  %v13324_v50 = vxor.u32 %v7325_v15, %v7293_v9  ;;  %v14457_v61 = vld [vmem:[#allocation42_spill] sm:$0xff] }
 0x3f5   :  { %v7265_v47 = vxor.u32 %v7233_v58, %v7201_v56  ;;  %v7446_v42 = vxor.u32 %v7414_v0, %v7382_v32  ;;  %v7418_v60 = vshrl.u32 %v7386_v18, 16  ;;  %v7385_v17 = vmul.u32 3266489909, %v7353_v23 }
 0x3f6   :  { %v7302_v2 = vmul.u32 2246822507, %v7270_v28  ;;  %v7441_v8 = vxor.u32 %v7409_v35, %v7377_v40  ;;  %v7422_v53 = vshrl.u32 %v7390_v30, 16  ;;  %v7330_v43 = vshrl.u32 %v7298_v19, 13  ;;  %v10603_v40 = vld [vmem:[#allocation12 + $0x110] ss:$8 sps:$4 sm:$0xff]  }
 0x3f7   :  { %v7180_v55 = vxor.u32 %v13178_v38, %v7145_v62  ;;  %v13328_v27 = vrot.slane %v5152_v48, %v14456_v34  ;;  %v7445_v22 = vxor.u32 %v7413_v1, %v7381_v49  ;;  %v7269_v13 = vxor.u32 %v7237_v37, %v7205_v45 }
 0x3f8   :  { %v7184_v25 = vxor.u32 %v13178_v38, %v7149_v39  ;;  %v13332_v9 = vrot.slane %v5152_v48, %v14457_v61  ;;  %v7474_v56 = vand.u32 8388607, %v7442_v33  ;;  %v7389_v32 = vmul.u32 3266489909, %v13324_v50 }
 0x3f9   :  { %v7297_v57 = vmul.u32 2246822507, %v7265_v47  ;;  %vm13335_vm4 = vcmp.ge.s32.totalorder %v7466_v31, 2516582  ;;  %vm13339_vm8 = vcmp.ge.s32.totalorder %v7470_v10, 2516582  ;;  %v13343_v49 = vxor.u32 %v7418_v60, %v7386_v18 }
 0x3fa   :  { %v7478_v58 = vand.u32 8388607, %v7446_v42  ;;  %v7417_v45 = vshrl.u32 %v7385_v17, 16  ;;  %v7334_v39 = vshrl.u32 %v7302_v2, 13  ;;  %vm13345_vm7 = vcmp.ge.s32.totalorder %v7465_v51, 2516582  ;;  %vm9579_vm5 = vmpackc.low %vm13339_vm8, %vm13335_vm4 }
 0x3fb   :  { %vm13349_vm10 = vcmp.ge.s32.totalorder %v7469_v6, 2516582  ;;  %v7473_v31 = vand.u32 8388607, %v7441_v8  ;;  %v13353_v28 = vxor.u32 %v7422_v53, %v7390_v30  ;;  %v13355_v10 = vxor.u32 %v7330_v43, %v7298_v19 }
 0x3fc   :  { %v7212_v35 = vshrl.u32 %v7180_v55, 16  ;;  %v7477_v62 = vand.u32 8388607, %v7445_v22  ;;  %v7301_v1 = vmul.u32 2246822507, %v7269_v13  ;;  %v7216_v18 = vshrl.u32 %v7184_v25, 16 }
 0x3fd   :  { %v7421_v33 = vshrl.u32 %v7389_v32, 16  ;;  %v14466_v51 = vsub.s32 2, %v11286_v36  ;;  %v14467_v6 = vsub.s32 3, %v11286_v36  ;;  %v7329_v42 = vshrl.u32 %v7297_v57, 13 }
 0x3fe   :  { %v13367_v60 = vxor.u32 %v7417_v45, %v7385_v17  ;;  %v13369_v13 = vxor.u32 %v7334_v39, %v7302_v2  ;;  %v13374_v61 = vxor.u32 %v7212_v35, %v7180_v55  ;;  %v7333_v34 = vshrl.u32 %v7301_v1, 13 }
 0x3ff   :  { %v13359_v50 = vrot.slane %v5152_v48, %v14466_v51  ;;  %v13363_v47 = vrot.slane %v5152_v48, %v14467_v6  ;;  %v13377_v36 = vxor.u32 %v7216_v18, %v7184_v25  ;;  %v13380_v45 = vxor.u32 %v7329_v42, %v7297_v57 }
 0x400   :  { %vm13382_vm11 = vcmp.ge.s32.totalorder %v7474_v56, 2516582  ;;  %vm13386_vm13 = vcmp.ge.s32.totalorder %v7478_v58, 2516582  ;;  %v7398_v25 = vmul.u32 3266489909, %v13369_v13  ;;  %v13399_v56 = vxor.u32 %v7421_v33, %v7389_v32 }
 0x401   :  { %vm13391_vm12 = vcmp.ge.s32.totalorder %v7473_v31, 2516582  ;;  %vm13395_vm0 = vcmp.ge.s32.totalorder %v7477_v62, 2516582  ;;  %v7276_v42 = vmul.u32 2246822507, %v13374_v61 }
 0x402   :  { %v7280_v13 = vmul.u32 2246822507, %v13377_v36  ;;  %v10600_v32 = vld [vmem:[#allocation12 + $0x100] ss:$8 sps:$4 sm:$0xff]   ;;  %v7393_v61 = vmul.u32 3266489909, %v13380_v45 }
 0x403   :  { %v10605_v36 = vld [vmem:[#allocation12 + $0x114] ss:$8 sps:$4 sm:$0xff]  }
 0x462   :  { %v6707_v37 = vpop.f32.mrb[32].mxu0 }
 0x463   :  { %v9812_v8 = vadd.f32 %v6707_v37, %v13328_v27  ;;  %v6709_v30 = vpop.f32.mrb[33].mxu0 }
 0x464   :  { %v9813_v53 = vadd.f32 %v6709_v30, %v13332_v9  ;;  %v6711_v43 = vpop.f32.mrb[34].mxu0  ;;  %v10609_v30 = vld [vmem:[#allocation12 + $0x130] ss:$8 sps:$4 sm:$0xff]  }
 0x465   :  { %v7070_v48 = vmul.f32 0.2, %v9812_v8  ;;  %v9814_v6 = vadd.f32 %v6711_v43, %v13328_v27  ;;  %v6713_v37 = vpop.f32.mrb[35].mxu0  ;;  %vm14476_vm2 = vcmp.ge.f32.partialorder %v9812_v8, 0.0 }
 0x466   :  { %v7071_v17 = vmul.f32 0.2, %v9813_v53  ;;  %v9815_v2 = vadd.f32 %v6713_v37, %v13332_v9  ;;  %v13403_v37 = vxor.u32 %v7333_v34, %v7301_v1  ;;  %vm14477_vm1 = vcmp.ge.f32.partialorder %v9813_v53, 0.0 }
 0x467   :  { %vm7042_vm9 = vcmp.ge.f32.partialorder %v9814_v6, 0.0  ;;  %v7074_v39 = vmul.f32 0.2, %v9814_v6  ;;  %v7102_v58 = vsel %vm14476_vm2, %v9812_v8, %v7070_v48  ;;  %v7481_v1 = vand.u32 8388607, %v13367_v60 }
 0x468   :  { %vm7043_vm3 = vcmp.ge.f32.partialorder %v9815_v2, 0.0  ;;  %v7075_v35 = vmul.f32 0.2, %v9815_v2  ;;  %v7103_v31 = vsel %vm14477_vm1, %v9813_v53, %v7071_v17  ;;  %vm9582_vm1 = vmpackc.low %vm13349_vm10, %vm13345_vm7  ;;  %v14478_v8 = vmul.u32 3266489909, %v13355_v10 }
 0x469   :  { %v7106_v43 = vsel %vm7042_vm9, %v9814_v6, %v7074_v39  ;;  %v7485_v17 = vand.u32 8388607, %v13399_v56  ;;  %v7397_v60 = vmul.u32 3266489909, %v13403_v37  ;;  %v7425_v56 = vshrl.u32 %v7393_v61, 16  ;;  %vm9585_vm10 = vmpackc.low %vm13386_vm13, %vm13382_vm11 }
 0x46a   :  { %v9583_v22 = vpack.c.bf16 %v7106_v43, %v7102_v58  ;;  %v7107_v19 = vsel %vm7043_vm3, %v9815_v2, %v7075_v35  ;;  %v7426_v53 = vshrl.u32 %v14478_v8, 16  ;;  %v7308_v2 = vshrl.u32 %v7276_v42, 13 }
 0x46b   :  { %v6717_v51 = vpop.f32.mrb[36].mxu0  ;;  %v9580_v62 = vpack.c.bf16 %v7107_v19, %v7103_v31  ;;  %v7430_v19 = vshrl.u32 %v7398_v25, 16  ;;  %v7312_v35 = vshrl.u32 %v7280_v13, 13  ;;  %v14479_v31 = vand.u32 8388607, %v13343_v49 }
 0x46c   :  { %v9816_v33 = vadd.f32 %v6717_v51, %v13328_v27  ;;  %v6719_v34 = vpop.f32.mrb[37].mxu0  ;;  %v14485_v0 = vmov %v14478_v8  ;;  %vm13451_vm7 = vcmp.ge.s32.totalorder %v7481_v1, 2516582  ;;  %v10611_v1 = vld [vmem:[#allocation12 + $0x134] ss:$8 sps:$4 sm:$0xff]   ;;  %v7161_v37 = vadd.s32 %v13195_v29, %v14455_v63 }
 0x46d   :  { %v9817_v48 = vadd.f32 %v6719_v34, %v13332_v9  ;;  %v6721_v6 = vpop.f32.mrb[38].mxu0  ;;  %9581 = vmatprep.mubr.msk.bf16.mxu0 %vm9579_vm5, %v9580_v62  ;;  %vm13437_vm5 = vcmp.ge.s32.totalorder %v14479_v31, 2516582  ;;  %v14482_v62 = vand.u32 8388607, %v13353_v28  ;;  %v13455_v8 = vxor.u32 %v7430_v19, %v7398_v25 }
 0x46e   :  { %v7078_v51 = vmul.f32 0.2, %v9816_v33  ;;  %v9818_v45 = vadd.f32 %v6721_v6, %v13328_v27  ;;  %v6723_v39 = vpop.f32.mrb[39].mxu0  ;;  %vm7046_vm3 = vcmp.ge.f32.partialorder %v9816_v33, 0.0  ;;  %9584 = vmatmul.mubr.msk.bf16.vlgmr.msra.gmra.mrb[48].mxu0 %vm9582_vm1, %v9583_v22  ;;  %v13449_v22 = vxor.u32 %v7426_v53, %v14485_v0  ;;  %v10606_v25 = vld [vmem:[#allocation12 + $0x120] ss:$8 sps:$4 sm:$0xff]   ;;  %vm9588_vm1 = vmpackc.low %vm13395_vm0, %vm13391_vm12 }
 0x46f   :  { %v7079_v58 = vmul.f32 0.2, %v9817_v48  ;;  %v9819_v43 = vadd.f32 %v6723_v39, %v13332_v9  ;;  %vm7047_vm2 = vcmp.ge.f32.partialorder %v9817_v48, 0.0  ;;  %8047 = vmatpush1.bf16.msra.mxu0 %v10600_v32  ;;  %vm13443_vm4 = vcmp.ge.s32.totalorder %v14482_v62, 2516582 }
 0x470   :  { %vm7050_vm9 = vcmp.ge.f32.partialorder %v9818_v45, 0.0  ;;  %v7082_v15 = vmul.f32 0.2, %v9818_v45  ;;  %8048 = vmatprep.subr.bf16.mxu0 %v10605_v36  ;;  %v10608_v32 = vld [vmem:[#allocation12 + $0x124] ss:$8 sps:$4 sm:$0xff]   ;;  %v13457_v6 = vxor.u32 %v7308_v2, %v7276_v42  ;;  %v7110_v28 = vsel %vm7046_vm3, %v9816_v33, %v7078_v51  ;;  %vm9591_vm0 = vmpackc.low %vm13443_vm4, %vm13437_vm5 }
 0x471   :  { %vm7051_vm8 = vcmp.ge.f32.partialorder %v9819_v43, 0.0  ;;  %v7083_v34 = vmul.f32 0.2, %v9819_v43  ;;  %v7429_v31 = vshrl.u32 %v7397_v60, 16  ;;  %v13460_v62 = vxor.u32 %v7312_v35, %v7280_v13 }
 0x472   :  { %v7114_v39 = vsel %vm7050_vm9, %v9818_v45, %v7082_v15  ;;  %v7111_v10 = vsel %vm7047_vm2, %v9817_v48, %v7079_v58  ;;  %v7457_v42 = vxor.u32 %v7425_v56, %v7393_v61  ;;  %vm13472_vm3 = vcmp.ge.s32.totalorder %v7485_v17, 2516582 }
 0x473   :  { %v9589_v53 = vpack.c.bf16 %v7114_v39, %v7110_v28  ;;  %v7115_v0 = vsel %vm7051_vm8, %v9819_v43, %v7083_v34  ;;  %8049 = vmatpush1.bf16.msra.mxu0 %v10603_v40  ;;  %v7490_v48 = vand.u32 8388607, %v13449_v22  ;;  %v7494_v61 = vand.u32 8388607, %v13455_v8  ;;  %v10614_v8 = vld [vmem:[#allocation12 + $0x144] ss:$8 sps:$4 sm:$0xff]   ;;  %vm9594_vm12 = vmpackc.low %vm13472_vm3, %vm13451_vm7 }
 0x474   :  { %v6727_v36 = vpop.f32.mrb[40].mxu0  ;;  %v9586_v19 = vpack.c.bf16 %v7115_v0, %v7111_v10  ;;  %8050 = vmatprep.subr.bf16.mxu0 %v10608_v32  ;;  %v7372_v35 = vmul.u32 3266489909, %v13457_v6  ;;  %v7153_v58 = vadd.s32 %v13183_v26, %v14455_v63  ;;  %v7461_v15 = vxor.u32 %v7429_v31, %v7397_v60 }
 0x475   :  { %v9820_v33 = vadd.f32 %v6727_v36, %v13328_v27  ;;  %v6729_v2 = vpop.f32.mrb[41].mxu0  ;;  %v7376_v40 = vmul.u32 3266489909, %v13460_v62  ;;  %v7489_v26 = vand.u32 8388607, %v7457_v42  ;;  %v7157_v60 = vadd.s32 %v13186_v11, %v14455_v63 }
 0x476   :  { %v9821_v51 = vadd.f32 %v6729_v2, %v13332_v9  ;;  %v6731_v45 = vpop.f32.mrb[42].mxu0  ;;  %9587 = vmatprep.mubr.msk.bf16.mxu0 %vm9585_vm10, %v9586_v19  ;;  %v7404_v6 = vshrl.u32 %v7372_v35, 16  ;;  %v7188_v57 = vxor.u32 %v13178_v38, %v7153_v58  ;;  %v7493_v39 = vand.u32 8388607, %v7461_v15  ;;  %v10612_v42 = vld [vmem:[#allocation12 + $0x140] ss:$8 sps:$4 sm:$0xff]  }
 0x477   :  { %v7086_v43 = vmul.f32 0.2, %v9820_v33  ;;  %v9822_v56 = vadd.f32 %v6731_v45, %v13328_v27  ;;  %v6733_v17 = vpop.f32.mrb[43].mxu0  ;;  %vm7054_vm2 = vcmp.ge.f32.partialorder %v9820_v33, 0.0  ;;  %9590 = vmatmul.mubr.msk.bf16.gmra.mrb[52].mxu0 %vm9588_vm1, %v9589_v53  ;;  %v7408_v31 = vshrl.u32 %v7376_v40, 16 }
 0x478   :  { %v7087_v22 = vmul.f32 0.2, %v9821_v51  ;;  %v9823_v34 = vadd.f32 %v6733_v17, %v13332_v9  ;;  %vm7055_vm9 = vcmp.ge.f32.partialorder %v9821_v51, 0.0  ;;  %8051 = vmatpush1.bf16.msra.mxu0 %v10606_v25  ;;  %vm13504_vm11 = vcmp.ge.s32.totalorder %v7490_v48, 2516582 }
 0x479   :  { %vm7058_vm8 = vcmp.ge.f32.partialorder %v9822_v56, 0.0  ;;  %v7090_v55 = vmul.f32 0.2, %v9822_v56  ;;  %8052 = vmatprep.subr.bf16.mxu0 %v10611_v1  ;;  %v7118_v18 = vsel %vm7054_vm2, %v9820_v33, %v7086_v43  ;;  %vm13513_vm10 = vcmp.ge.s32.totalorder %v7494_v61, 2516582 }
 0x47a   :  { %vm7059_vm13 = vcmp.ge.f32.partialorder %v9823_v34, 0.0  ;;  %v7091_v32 = vmul.f32 0.2, %v9823_v34  ;;  %v7119_v62 = vsel %vm7055_vm9, %v9821_v51, %v7087_v22  ;;  %v7192_v33 = vxor.u32 %v13178_v38, %v7157_v60  ;;  %v10617_v51 = vld [vmem:[#allocation12 + $0x154] ss:$8 sps:$4 sm:$0xff]   ;;  %vm9597_vm7 = vmpackc.low %vm13513_vm10, %vm13504_vm11 }
 0x47b   :  { %v7122_v28 = vsel %vm7058_vm8, %v9822_v56, %v7090_v55  ;;  %vm13519_vm1 = vcmp.ge.s32.totalorder %v7489_v26, 2516582  ;;  %v7436_v58 = vxor.u32 %v7404_v6, %v7372_v35  ;;  %v7220_v43 = vshrl.u32 %v7188_v57, 16  ;;  %v10615_v15 = vld [vmem:[#allocation12 + $0x150] ss:$8 sps:$4 sm:$0xff]  }
 0x47c   :  { %v9595_v10 = vpack.c.bf16 %v7122_v28, %v7118_v18  ;;  %v7123_v53 = vsel %vm7059_vm13, %v9823_v34, %v7091_v32  ;;  %v6737_v0 = vpop.f32.mrb[44].mxu0  ;;  %8053 = vmatpush1.bf16.msra.mxu0 %v10609_v30  ;;  %vm13529_vm2 = vcmp.ge.s32.totalorder %v7493_v39, 2516582  ;;  %v7440_v34 = vxor.u32 %v7408_v31, %v7376_v40  ;;  %v10618_v39 = vld [vmem:[#allocation12 + $0x160] ss:$8 sps:$4 sm:$0xff]  }
 0x47d   :  { %v9592_v36 = vpack.c.bf16 %v7123_v53, %v7119_v62  ;;  %v9824_v25 = vadd.f32 %v6737_v0, %v13328_v27  ;;  %v6739_v1 = vpop.f32.mrb[45].mxu0  ;;  %8054 = vmatprep.subr.bf16.mxu0 %v10614_v8  ;;  %v7224_v55 = vshrl.u32 %v7192_v33, 16  ;;  %v7468_v30 = vand.u32 8388607, %v7436_v58  ;;  %vm9600_vm3 = vmpackc.low %vm13529_vm2, %vm13519_vm1 }
 0x47e   :  { %v9825_v2 = vadd.f32 %v6739_v1, %v13332_v9  ;;  %v6741_v48 = vpop.f32.mrb[46].mxu0  ;;  %v7472_v60 = vand.u32 8388607, %v7440_v34  ;;  %v7165_v32 = vadd.s32 %v13198_v12, %v14455_v63  ;;  %v7196_v18 = vxor.u32 %v13178_v38, %v7161_v37 }
 0x47f   :  { %v7094_v56 = vmul.f32 0.2, %v9824_v25  ;;  %v9826_v17 = vadd.f32 %v6741_v48, %v13328_v27  ;;  %v6743_v61 = vpop.f32.mrb[47].mxu0  ;;  %9593 = vmatprep.mubr.msk.bf16.mxu0 %vm9591_vm0, %v9592_v36  ;;  %vm7062_vm9 = vcmp.ge.f32.partialorder %v9824_v25, 0.0  ;;  %v10620_v27 = vld [vmem:[#allocation12 + $0x164] ss:$8 sps:$4 sm:$0xff]   ;;  %v13555_v12 = vxor.u32 %v7224_v55, %v7192_v33 }
 0x480   :  { %v7095_v26 = vmul.f32 0.2, %v9825_v2  ;;  %v9827_v35 = vadd.f32 %v6743_v61, %v13332_v9  ;;  %9596 = vmatmul.mubr.msk.bf16.gmra.mrb[56].mxu0 %vm9594_vm12, %v9595_v10  ;;  %vm7063_vm5 = vcmp.ge.f32.partialorder %v9825_v2, 0.0  ;;  %v13541_v9 = vxor.u32 %v7220_v43, %v7188_v57  ;;  %v10623_v10 = vld [vmem:[#allocation12 + $0x174] ss:$8 sps:$4 sm:$0xff]  }
 0x481   :  { %vm7066_vm4 = vcmp.ge.f32.partialorder %v9826_v17, 0.0  ;;  %v7098_v23 = vmul.f32 0.2, %v9826_v17  ;;  %8055 = vmatpush1.bf16.msra.mxu0 %v10612_v42  ;;  %v7126_v13 = vsel %vm7062_vm9, %v9824_v25, %v7094_v56  ;;  %v10621_v36 = vld [vmem:[#allocation12 + $0x170] ss:$8 sps:$4 sm:$0xff]   ;;  %v7200_v48 = vxor.u32 %v13178_v38, %v7165_v32 }
 0x482   :  { %vm7067_vm8 = vcmp.ge.f32.partialorder %v9827_v35, 0.0  ;;  %v7099_v40 = vmul.f32 0.2, %v9827_v35  ;;  %8056 = vmatprep.subr.bf16.mxu0 %v10617_v51  ;;  %v7127_v8 = vsel %vm7063_vm5, %v9825_v2, %v7095_v26  ;;  %v7284_v53 = vmul.u32 2246822507, %v13541_v9 }
 0x483   :  { %v7130_v49 = vsel %vm7066_vm4, %v9826_v17, %v7098_v23  ;;  %vm13560_vm13 = vcmp.ge.s32.totalorder %v7468_v30, 2516582  ;;  %vm13564_vm0 = vcmp.ge.s32.totalorder %v7472_v60, 2516582  ;;  %v10626_v2 = vld [vmem:[#allocation12 + $0x184] ss:$8 sps:$4 sm:$0xff]  }
 0x484   :  { %v9601_v29 = vpack.c.bf16 %v7130_v49, %v7126_v13  ;;  %v7131_v6 = vsel %vm7067_vm8, %v9827_v35, %v7099_v40  ;;  %v7228_v51 = vshrl.u32 %v7196_v18, 16  ;;  %v7288_v56 = vmul.u32 2246822507, %v13555_v12  ;;  %v10624_v55 = vld [vmem:[#allocation12 + $0x180] ss:$8 sps:$4 sm:$0xff]   ;;  %vm9603_vm1 = vmpackc.low %vm13564_vm0, %vm13560_vm13 }
 0x485   :  { %v9598_v28 = vpack.c.bf16 %v7131_v6, %v7127_v8  ;;  %v6999_v57 = vpop.f32.mrb[48].mxu1  ;;  %8057 = vmatpush1.bf16.msra.mxu0 %v10615_v15  ;;  %v7316_v61 = vshrl.u32 %v7284_v53, 13  ;;  %v7232_v34 = vshrl.u32 %v7200_v48, 16  ;;  %v10629_v49 = vld [vmem:[#allocation12 + $0x194] ss:$8 sps:$4 sm:$0xff]   ;;  %v7169_v6 = vadd.s32 %v13274_v7, %v14455_v63 }
 0x486   :  { %v9828_v31 = vadd.f32 %v6999_v57, %v13359_v50  ;;  %v7001_v62 = vpop.f32.mrb[49].mxu1  ;;  %8058 = vmatprep.subr.bf16.mxu0 %v10620_v27  ;;  %v13581_v26 = vxor.u32 %v7228_v51, %v7196_v18  ;;  %v7320_v40 = vshrl.u32 %v7288_v56, 13  ;;  %v7173_v18 = vadd.s32 %v13282_v21, %v14455_v63  ;;  %v10632_v63 = vld [vmem:[#allocation12 + $0x1a4] ss:$8 sps:$4 sm:$0xff]  }
 0x487   :  { %v9829_v0 = vadd.f32 %v7001_v62, %v13363_v47  ;;  %v7003_v11 = vpop.f32.mrb[50].mxu1  ;;  %9599 = vmatprep.mubr.msk.bf16.mxu0 %vm9597_vm7, %v9598_v28  ;;  %v13590_v60 = vxor.u32 %v7316_v61, %v7284_v53  ;;  %v13603_v12 = vxor.u32 %v7232_v34, %v7200_v48  ;;  %v7204_v25 = vxor.u32 %v13178_v38, %v7169_v6 }
 0x488   :  { %v7072_v42 = vmul.f32 0.2, %v9828_v31  ;;  %v9830_v19 = vadd.f32 %v7003_v11, %v13359_v50  ;;  %v7005_v33 = vpop.f32.mrb[51].mxu1  ;;  %9602 = vmatmul.mubr.msk.bf16.gmra.mrb[60].mxu0 %vm9600_vm3, %v9601_v29  ;;  %vm7040_vm11 = vcmp.ge.f32.partialorder %v9828_v31, 0.0  ;;  %v10627_v29 = vld [vmem:[#allocation12 + $0x190] ss:$8 sps:$4 sm:$0xff]   ;;  %v13607_v53 = vxor.u32 %v7320_v40, %v7288_v56 }
 0x489   :  { %v7073_v58 = vmul.f32 0.2, %v9829_v0  ;;  %v9831_v43 = vadd.f32 %v7005_v33, %v13363_v47  ;;  %8059 = vmatpush1.bf16.msra.mxu0 %v10618_v39  ;;  %vm7041_vm12 = vcmp.ge.f32.partialorder %v9829_v0, 0.0  ;;  %v7380_v11 = vmul.u32 3266489909, %v13590_v60 }
 0x48a   :  { %vm7044_vm10 = vcmp.ge.f32.partialorder %v9830_v19, 0.0  ;;  %v7076_v17 = vmul.f32 0.2, %v9830_v19  ;;  %8060 = vmatprep.subr.bf16.mxu0 %v10623_v10  ;;  %v13577_v15 = vsel %vm7040_vm11, %v9828_v31, %v7072_v42  ;;  %v7292_v31 = vmul.u32 2246822507, %v13581_v26 }
 0x48b   :  { %vm7045_vm9 = vcmp.ge.f32.partialorder %v9831_v43, 0.0  ;;  %v7077_v45 = vmul.f32 0.2, %v9831_v43  ;;  %v7105_v35 = vsel %vm7041_vm12, %v9829_v0, %v7073_v58  ;;  %v7208_v1 = vxor.u32 %v13178_v38, %v7173_v18  ;;  %v10630_v56 = vld [vmem:[#allocation12 + $0x1a0] ss:$8 sps:$4 sm:$0xff]  }
 0x48c   :  { %v13579_v22 = vsel %vm7044_vm10, %v9830_v19, %v7076_v17  ;;  %v7296_v33 = vmul.u32 2246822507, %v13603_v12  ;;  %v7168_v17 = vadd.s32 %v13274_v7, %v14434_v20  ;;  %v10635_v26 = vld [vmem:[#allocation12 + $0x1b4] ss:$8 sps:$4 sm:$0xff]   ;;  %v7412_v40 = vshrl.u32 %v7380_v11, 16 }
 0x48d   :  { %v9607_v27 = vpack.c.bf16 %v13579_v22, %v13577_v15  ;;  %v7109_v37 = vsel %vm7045_vm9, %v9831_v43, %v7077_v45  ;;  %v7009_v23 = vpop.f32.mrb[52].mxu1  ;;  %8061 = vmatpush1.bf16.msra.mxu0 %v10621_v36  ;;  %v7236_v7 = vshrl.u32 %v7204_v25, 16 }
 0x48e   :  { %v9604_v30 = vpack.c.bf16 %v7109_v37, %v7105_v35  ;;  %v9832_v9 = vadd.f32 %v7009_v23, %v13359_v50  ;;  %v7011_v13 = vpop.f32.mrb[53].mxu1  ;;  %8062 = vmatprep.subr.bf16.mxu0 %v10626_v2  ;;  %v7324_v2 = vshrl.u32 %v7292_v31, 13  ;;  %v7384_v35 = vmul.u32 3266489909, %v13607_v53 }
 0x48f   :  { %v9833_v32 = vadd.f32 %v7011_v13, %v13363_v47  ;;  %v7013_v8 = vpop.f32.mrb[54].mxu1  ;;  %v7172_v37 = vadd.s32 %v13282_v21, %v14434_v20  ;;  %v10633_v20 = vld [vmem:[#allocation12 + $0x1b0] ss:$8 sps:$4 sm:$0xff]   ;;  %v7203_v21 = vxor.u32 %v13178_v38, %v7168_v17  ;;  %v13640_v12 = vxor.u32 %v7236_v7, %v7204_v25  ;;  %v10636_v25 = vld [vmem:[#allocation12 + $0x1c0] ss:$8 sps:$4 sm:$0xff]  }
 0x490   :  { %v7080_v28 = vmul.f32 0.2, %v9832_v9  ;;  %v9834_v57 = vadd.f32 %v7013_v8, %v13359_v50  ;;  %v7015_v39 = vpop.f32.mrb[55].mxu1  ;;  %9605 = vmatprep.mubr.msk.bf16.mxu0 %vm9603_vm1, %v9604_v30  ;;  %vm7048_vm2 = vcmp.ge.f32.partialorder %v9832_v9, 0.0  ;;  %v7240_v30 = vshrl.u32 %v7208_v1, 16 }
 0x491   :  { %v7081_v62 = vmul.f32 0.2, %v9833_v32  ;;  %v9835_v10 = vadd.f32 %v7015_v39, %v13363_v47  ;;  %8063 = vmatpush1.bf16.msra.mxu0 %v10624_v55  ;;  %vm7049_vm5 = vcmp.ge.f32.partialorder %v9833_v32, 0.0  ;;  %v13635_v8 = vxor.u32 %v7324_v2, %v7292_v31 }
 0x492   :  { %vm7052_vm4 = vcmp.ge.f32.partialorder %v9834_v57, 0.0  ;;  %v7084_v0 = vmul.f32 0.2, %v9834_v57  ;;  %8064 = vmatprep.subr.bf16.mxu0 %v10629_v49  ;;  %v13612_v42 = vsel %vm7048_vm2, %v9832_v9, %v7080_v28  ;;  %v10638_v28 = vld [vmem:[#allocation12 + $0x1c4] ss:$8 sps:$4 sm:$0xff]   ;;  %v13642_v31 = vxor.u32 %v7240_v30, %v7208_v1 }
 0x493   :  { %vm7053_vm8 = vcmp.ge.f32.partialorder %v9835_v10, 0.0  ;;  %v7085_v36 = vmul.f32 0.2, %v9835_v10  ;;  %v13617_v48 = vsel %vm7049_vm5, %v9833_v32, %v7081_v62  ;;  %v7328_v32 = vshrl.u32 %v7296_v33, 13 }
 0x494   :  { %v13614_v19 = vsel %vm7052_vm4, %v9834_v57, %v7084_v0  ;;  %v7207_v57 = vxor.u32 %v13178_v38, %v7172_v37  ;;  %v7235_v1 = vshrl.u32 %v7203_v21, 16  ;;  %v7304_v7 = vmul.u32 2246822507, %v13642_v31  ;;  %v10642_v31 = vld [vmem:[#allocation12 + $0x1e0] ss:$8 sps:$4 sm:$0xff]   ;;  %vm14506_vm4 = vmpackc.low %vm13210_vm15, %vm13206_vm6 }
 0x495   :  { %v9613_v51 = vpack.c.bf16 %v13614_v19, %v13612_v42  ;;  %v13621_v58 = vsel %vm7053_vm8, %v9835_v10, %v7085_v36  ;;  %v7019_v43 = vpop.f32.mrb[56].mxu1  ;;  %8065 = vmatpush1.bf16.msra.mxu0 %v10627_v29  ;;  %v13649_v53 = vxor.u32 %v7328_v32, %v7296_v33  ;;  %v10641_v33 = vld [vmem:[#allocation12 + $0x1d4] ss:$8 sps:$4 sm:$0xff]   ;;  %vm14507_vm6 = vnez %v14445_v14  ;;  %v14513_v42 = vld [vmem:[#allocation35_spill] sm:$0xff] }
 0x496   :  { %v9610_v61 = vpack.c.bf16 %v13621_v58, %v13617_v48  ;;  %v9836_v45 = vadd.f32 %v7019_v43, %v13359_v50  ;;  %v7021_v34 = vpop.f32.mrb[57].mxu1  ;;  %8066 = vmatprep.subr.bf16.mxu0 %v10632_v63  ;;  %v7416_v63 = vshrl.u32 %v7384_v35, 16  ;;  %vm14508_vm15 = vmpackc.low %vm13238_vm14, %vm14507_vm6  ;;  %vm14509_vm14 = vnez %v14451_v4  ;;  %v14512_v14 = vld [vmem:[#allocation34_spill] sm:$0xff]  ;;  %v10661_v4 = vld [vmem:[#allocation15 + $0x30] sm:$0xff]  }
 0x497   :  { %v9837_v23 = vadd.f32 %v7021_v34, %v13363_v47  ;;  %v7023_v55 = vpop.f32.mrb[58].mxu1  ;;  %v7239_v34 = vshrl.u32 %v7207_v57, 16  ;;  %v7392_v32 = vmul.u32 3266489909, %v13649_v53  ;;  %v8167_v19 = vmul.u32 256, %v14513_v42 }
 0x498   :  { %v7088_v9 = vmul.f32 0.2, %v9836_v45  ;;  %v9838_v13 = vadd.f32 %v7023_v55, %v13359_v50  ;;  %v7025_v49 = vpop.f32.mrb[59].mxu1  ;;  %vm7056_vm7 = vcmp.ge.f32.partialorder %v9836_v45, 0.0  ;;  %v7300_v55 = vmul.u32 2246822507, %v13640_v12 }
 0x499   :  { %v7089_v29 = vmul.f32 0.2, %v9837_v23  ;;  %v9839_v6 = vadd.f32 %v7025_v49, %v13363_v47  ;;  %8067 = vmatpush1.bf16.msra.mxu0 %v10630_v56  ;;  %vm7057_vm3 = vcmp.ge.f32.partialorder %v9837_v23, 0.0  ;;  %v7448_v49 = vxor.u32 %v7416_v63, %v7384_v35  ;;  %v10647_v63 = vld [vmem:[#allocation12 + $0x1f4] ss:$8 sps:$4 sm:$0xff]  }
 0x49a   :  { %vm7060_vm13 = vcmp.ge.f32.partialorder %v9838_v13, 0.0  ;;  %v7092_v18 = vmul.f32 0.2, %v9838_v13  ;;  %8068 = vmatprep.subr.bf16.mxu0 %v10635_v26  ;;  %v13645_v62 = vsel %vm7056_vm7, %v9836_v45, %v7088_v9  ;;  %v7388_v45 = vmul.u32 3266489909, %v13635_v8 }
 0x49b   :  { %vm7061_vm0 = vcmp.ge.f32.partialorder %v9839_v6, 0.0  ;;  %v7093_v39 = vmul.f32 0.2, %v9839_v6  ;;  %v13651_v0 = vsel %vm7057_vm3, %v9837_v23, %v7089_v29  ;;  %v7444_v23 = vxor.u32 %v7412_v40, %v7380_v11  ;;  %v10644_v11 = vld [vmem:[#allocation12 + $0x1e4] ss:$8 sps:$4 sm:$0xff]  }
 0x49c   :  { %v13647_v10 = vsel %vm7060_vm13, %v9838_v13, %v7092_v18  ;;  %v7271_v40 = vxor.u32 %v7239_v34, %v7207_v57 }
 0x49d   :  { %v9619_v36 = vpack.c.bf16 %v13647_v10, %v13645_v62  ;;  %v13655_v38 = vsel %vm7061_vm0, %v9839_v6, %v7093_v39  ;;  %v7029_v2 = vpop.f32.mrb[60].mxu1  ;;  %8069 = vmatpush1.bf16.msra.mxu0 %v10633_v20  ;;  %v10639_v6 = vld [vmem:[#allocation12 + $0x1d0] ss:$8 sps:$4 sm:$0xff]   ;;  %v7267_v20 = vxor.u32 %v7235_v1, %v7203_v21  ;;  %v7476_v57 = vand.u32 8388607, %v7444_v23 }
 0x49e   :  { %v9616_v43 = vpack.c.bf16 %v13655_v38, %v13651_v0  ;;  %v9840_v56 = vadd.f32 %v7029_v2, %v13359_v50  ;;  %v7031_v17 = vpop.f32.mrb[61].mxu1  ;;  %8070 = vmatprep.subr.bf16.mxu0 %v10638_v28  ;;  %v7336_v28 = vshrl.u32 %v7304_v7, 13  ;;  %v7480_v2 = vand.u32 8388607, %v7448_v49 }
 0x49f   :  { %v9841_v26 = vadd.f32 %v7031_v17, %v13363_v47  ;;  %v7033_v37 = vpop.f32.mrb[62].mxu1  ;;  %v7303_v1 = vmul.u32 2246822507, %v7271_v40  ;;  %v7424_v17 = vshrl.u32 %v7392_v32, 16  ;;  %vm13682_vm1 = vcmp.ge.s32.totalorder %v7476_v57, 2516582 }
 0x4a0   :  { %v7096_v30 = vmul.f32 0.2, %v9840_v56  ;;  %v9842_v9 = vadd.f32 %v7033_v37, %v13359_v50  ;;  %v7035_v13 = vpop.f32.mrb[63].mxu1  ;;  %vm7064_vm11 = vcmp.ge.f32.partialorder %v9840_v56, 0.0  ;;  %v7332_v50 = vshrl.u32 %v7300_v55, 13 }
 0x4a1   :  { %v7097_v8 = vmul.f32 0.2, %v9841_v26  ;;  %v9843_v29 = vadd.f32 %v7035_v13, %v13363_v47  ;;  %8071 = vmatpush1.bf16.msra.mxu0 %v10636_v25  ;;  %vm7065_vm12 = vcmp.ge.f32.partialorder %v9841_v26, 0.0  ;;  %v7299_v25 = vmul.u32 2246822507, %v7267_v20 }
 0x4a2   :  { %vm7068_vm10 = vcmp.ge.f32.partialorder %v9842_v9, 0.0  ;;  %v7100_v60 = vmul.f32 0.2, %v9842_v9  ;;  %8072 = vmatprep.subr.bf16.mxu0 %v10641_v33  ;;  %v13670_v35 = vsel %vm7064_vm11, %v9840_v56, %v7096_v30  ;;  %v7420_v56 = vshrl.u32 %v7388_v45, 16 }
 0x4a3   :  { %vm7069_vm9 = vcmp.ge.f32.partialorder %v9843_v29, 0.0  ;;  %v7101_v18 = vmul.f32 0.2, %v9843_v29  ;;  %v13674_v12 = vsel %vm7065_vm12, %v9841_v26, %v7097_v8  ;;  %v7364_v33 = vxor.u32 %v7332_v50, %v7300_v55  ;;  %v10645_v26 = vld [vmem:[#allocation12 + $0x1f0] ss:$8 sps:$4 sm:$0xff]  }
 0x4a4   :  { %v13672_v39 = vsel %vm7068_vm10, %v9842_v9, %v7100_v60  ;;  %v7368_v34 = vxor.u32 %v7336_v28, %v7304_v7  ;;  %vm13686_vm2 = vcmp.ge.s32.totalorder %v7480_v2, 2516582  ;;  %v7331_v30 = vshrl.u32 %v7299_v25, 13  ;;  %v10700_v50 = vld [vmem:[#allocation15 + $0x48] sm:$0xff]  }
 0x4a5   :  { %v9625_v47 = vpack.c.bf16 %v13672_v39, %v13670_v35  ;;  %v13678_v21 = vsel %vm7069_vm9, %v9843_v29, %v7101_v18  ;;  %8073 = vmatpush1.bf16.msra.mxu0 %v10639_v6  ;;  %v7335_v9 = vshrl.u32 %v7303_v1, 13  ;;  %v7452_v13 = vxor.u32 %v7420_v56, %v7388_v45  ;;  %vm9609_vm5 = vmpackc.low %vm13686_vm2, %vm13682_vm1  ;;  %v10698_v6 = vld [vmem:[#allocation15 + $0x40] sm:$0xff]   ;;  %v14517_v39 = vld [vmem:[#allocation44_spill] sm:$0xff] }
 0x4a6   :  { %v9622_v53 = vpack.c.bf16 %v13678_v21, %v13674_v12  ;;  %8074 = vmatprep.subr.bf16.mxu0 %v10644_v11  ;;  %v7456_v49 = vxor.u32 %v7424_v17, %v7392_v32  ;;  %v7396_v8 = vmul.u32 3266489909, %v7364_v33  ;;  %v7400_v29 = vmul.u32 3266489909, %v7368_v34  ;;  %v10699_v45 = vld [vmem:[#allocation15] sm:$0xff]  }
 0x4a7   :  { %v7363_v55 = vxor.u32 %v7331_v30, %v7299_v25  ;;  %v7367_v7 = vxor.u32 %v7335_v9, %v7303_v1  ;;  %v7484_v20 = vand.u32 8388607, %v7452_v13  ;;  %vm14510_vm12 = vnez %v14449_v16  ;;  %v10660_v16 = vld [vmem:[#allocation15 + $0x70] sm:$0xff]  }
 0x4a8   :  { %v7488_v60 = vand.u32 8388607, %v7456_v49  ;;  %v7428_v11 = vshrl.u32 %v7396_v8, 16  ;;  %v7432_v40 = vshrl.u32 %v7400_v29, 16  ;;  %vm14511_vm10 = vmpackc.low %vm14509_vm14, %vm14510_vm12  ;;  %v13744_v0 = vstv %s8192_s6  ;;  %v14519_v49 = vld [vmem:[#allocation50_spill] sm:$0xff] }
 0x4a9   :  { %8075 = vmatpush1.bf16.msra.mxu0 %v10642_v31  ;;  %v7395_v32 = vmul.u32 3266489909, %v7363_v55  ;;  %v7399_v18 = vmul.u32 3266489909, %v7367_v7  ;;  %vm7516_vm8 = vcmp.ge.s32.totalorder %v7484_v20, 2516582 }
 0x4aa   :  { %8076 = vmatprep.subr.bf16.mxu0 %v10647_v63  ;;  %vm7520_vm7 = vcmp.ge.s32.totalorder %v7488_v60, 2516582  ;;  %v7460_v28 = vxor.u32 %v7428_v11, %v7396_v8  ;;  %v7464_v15 = vxor.u32 %v7432_v40, %v7400_v29  ;;  %v8169_v12 = vmul.u32 256, %v14517_v39  ;;  %v14520_v11 = vld [vmem:[#allocation51_spill] sm:$0xff] }
 0x4ab   :  { %vm9615_vm3 = vmpackc.low %vm7520_vm7, %vm7516_vm8  ;;  %v7427_v54 = vshrl.u32 %v7395_v32, 16  ;;  %v7431_v46 = vshrl.u32 %v7399_v18, 16  ;;  %v8171_v8 = vmul.u32 256, %v14519_v49  ;;  %v8172_v40 = vmul.u32 256, %v14520_v11 }
 0x4ac   :  { %v7492_v22 = vand.u32 8388607, %v7460_v28 }
 0x4ad   :  { %8077 = vmatpush1.bf16.msra.mxu0 %v10645_v26  ;;  %v7463_v48 = vxor.u32 %v7431_v46, %v7399_v18 }
 0x4ae   :  { %9676 = vmatprep.subr.bf16.mxu0 %v10698_v6  ;;  %vm7524_vm13 = vcmp.ge.s32.totalorder %v7492_v22, 2516582 }
 0x4b0   :  { %9608 = vmatmul.mubr.msk.bf16.vlgmr.msra.gmra.mrb[48].mxu0 %vm14506_vm4, %v9607_v27  ;;  %v7496_v27 = vand.u32 8388607, %v7464_v15 }
 0x4b1   :  { %9611 = vmatprep.mubr.msk.bf16.mxu0 %vm9609_vm5, %v9610_v61  ;;  %9677 = vmatpush3.bf16.msra.mxu0 %v10699_v45  ;;  %v14515_v61 = vld [vmem:[#allocation38_spill] sm:$0xff] }
 0x4b2   :  { %9678 = vmatprep.subr.bf16.mxu0 %v10700_v50  ;;  %vm7528_vm0 = vcmp.ge.s32.totalorder %v7496_v27, 2516582  ;;  %v8176_v62 = vadd.s32 %v8167_v19, %v14515_v61  ;;  %v8180_v2 = vadd.s32 %v8169_v12, %v14515_v61  ;;  %v8184_v18 = vadd.s32 %v8171_v8, %v14515_v61 }
 0x4b3   :  { %vm9621_vm11 = vmpackc.low %vm7528_vm0, %vm7524_vm13 }
 0x4b4   :  { %v8195_v35 = vxor.u32 %v13744_v0, %v8176_v62  ;;  %v8199_v37 = vxor.u32 %v13744_v0, %v8180_v2  ;;  %v14521_v2 = vld [vmem:[#allocation56_spill] sm:$0xff] }
 0x4b5   :  { %9679 = vmatpush3.bf16.msra.mxu0 %v13288_v44  ;;  %v7459_v44 = vxor.u32 %v7427_v54, %v7395_v32 }
 0x4b6   :  { %9680 = vmatprep.subr.bf16.mxu0 %v13291_v3  ;;  %v7495_v3 = vand.u32 8388607, %v7463_v48  ;;  %v8215_v6 = vshrl.u32 %v8199_v37, 16 }
 0x4b7   :  { %v7491_v24 = vand.u32 8388607, %v7459_v44  ;;  %v8186_v44 = vadd.s32 %v8172_v40, %v14515_v61 }
 0x4b8   :  { %9614 = vmatmul.mubr.msk.bf16.gmra.mrb[52].mxu0 %vm14508_vm15, %v9613_v51  ;;  %vm7527_vm1 = vcmp.ge.s32.totalorder %v7495_v3, 2516582  ;;  %v14514_v51 = vld [vmem:[#allocation37_spill] sm:$0xff]  ;;  %v8231_v15 = vxor.u32 %v8215_v6, %v8199_v37  ;;  %v8203_v3 = vxor.u32 %v13744_v0, %v8184_v18 }
 0x4b9   :  { %9617 = vmatprep.mubr.msk.bf16.mxu0 %vm9615_vm3, %v9616_v43  ;;  %9681 = vmatpush3.bf16.msra.mxu0 %v13298_v59  ;;  %vm7523_vm9 = vcmp.ge.s32.totalorder %v7491_v24, 2516582  ;;  %v10659_v59 = vld [vmem:[#allocation15 + $0x28] sm:$0xff]   ;;  %v8168_v58 = vmul.u32 256, %v14514_v51  ;;  %v8205_v42 = vxor.u32 %v13744_v0, %v8186_v44 }
 0x4ba   :  { %9682 = vmatprep.subr.bf16.mxu0 %v13300_v41  ;;  %vm9624_vm2 = vmpackc.low %vm7527_vm1, %vm7523_vm9  ;;  %v10662_v41 = vld [vmem:[#allocation15 + $0x78] sm:$0xff]   ;;  %v8219_v62 = vshrl.u32 %v8203_v3, 16 }
 0x4bb   :  { %v8178_v10 = vadd.s32 %v8168_v58, %v14515_v61 }
 0x4bd   :  { %9683 = vmatpush3.bf16.msra.mxu0 %v13309_v5  ;;  %v10663_v5 = vld [vmem:[#allocation15 + $0x38] sm:$0xff]   ;;  %v8197_v31 = vxor.u32 %v13744_v0, %v8178_v10 }
 0x4be   :  { %9684 = vmatprep.subr.bf16.mxu0 %v13311_v52  ;;  %v10658_v52 = vld [vmem:[#allocation15 + $0x68] sm:$0xff]  }
 0x4bf   :  { %9721 = vmatprep.subr.bf16.mxu1 %v10658_v52  ;;  %v8213_v1 = vshrl.u32 %v8197_v31, 16 }
 0x4c0   :  { %9620 = vmatmul.mubr.msk.bf16.gmra.mrb[56].mxu0 %vm14511_vm10, %v9619_v36  ;;  %9729 = vmatpush3.bf16.msra.mxu1 %v10659_v59  ;;  %v14516_v36 = vld [vmem:[#allocation36_spill] sm:$0xff] }
 0x4c1   :  { %9623 = vmatprep.mubr.msk.bf16.mxu0 %vm9621_vm11, %v9622_v53  ;;  %9685 = vmatpush3.bf16.msra.mxu0 %v14512_v14  ;;  %v8175_v38 = vadd.s32 %v8167_v19, %v14516_v36  ;;  %v8177_v43 = vadd.s32 %v8168_v58, %v14516_v36  ;;  %v8211_v53 = vshrl.u32 %v8195_v35, 16  ;;  %v8179_v17 = vadd.s32 %v8169_v12, %v14516_v36 }
 0x4c2   :  { %9686 = vmatprep.subr.bf16.mxu0 %v10658_v52  ;;  %9722 = vmatprep.subr.bf16.mxu1 %v10660_v16  ;;  %v8229_v30 = vxor.u32 %v8213_v1, %v8197_v31  ;;  %v8183_v27 = vadd.s32 %v8171_v8, %v14516_v36 }
 0x4c3   :  { %v8194_v63 = vxor.u32 %v13744_v0, %v8175_v38  ;;  %v8196_v57 = vxor.u32 %v13744_v0, %v8177_v43  ;;  %v8227_v26 = vxor.u32 %v8211_v53, %v8195_v35  ;;  %v8198_v13 = vxor.u32 %v13744_v0, %v8179_v17  ;;  %v14522_v17 = vld [vmem:[#allocation57_spill] sm:$0xff] }
 0x4c4   :  { %9730 = vmatpush3.bf16.msra.mxu1 %v10661_v4  ;;  %v8245_v60 = vmul.u32 2246822507, %v8229_v30  ;;  %v8202_v19 = vxor.u32 %v13744_v0, %v8183_v27  ;;  %v8235_v53 = vxor.u32 %v8219_v62, %v8203_v3 }
 0x4c5   :  { %9687 = vmatpush3.bf16.msra.mxu0 %v10659_v59  ;;  %9723 = vmatprep.subr.bf16.mxu1 %v10662_v41  ;;  %v8210_v56 = vshrl.u32 %v8194_v63, 16  ;;  %v8212_v33 = vshrl.u32 %v8196_v57, 16  ;;  %v8243_v7 = vmul.u32 2246822507, %v8227_v26  ;;  %v8214_v32 = vshrl.u32 %v8198_v13, 16 }
 0x4c6   :  { %9688 = vmatprep.subr.bf16.mxu0 %v10660_v16  ;;  %v8261_v22 = vshrl.u32 %v8245_v60, 13  ;;  %v8247_v59 = vmul.u32 2246822507, %v8231_v15  ;;  %v8218_v31 = vshrl.u32 %v8202_v19, 16  ;;  %v8251_v8 = vmul.u32 2246822507, %v8235_v53 }
 0x4c7   :  { %v8226_v9 = vxor.u32 %v8210_v56, %v8194_v63  ;;  %v8228_v29 = vxor.u32 %v8212_v33, %v8196_v57  ;;  %v8259_v46 = vshrl.u32 %v8243_v7, 13  ;;  %v8230_v24 = vxor.u32 %v8214_v32, %v8198_v13  ;;  %v14523_v53 = vld [vmem:[#allocation41_spill] sm:$0xff] }
 0x4c8   :  { %9626 = vmatmul.mubr.msk.bf16.gmra.mrb[60].mxu0 %vm9624_vm2, %v9625_v47  ;;  %9731 = vmatpush3.bf16.msra.mxu1 %v10663_v5  ;;  %v14518_v47 = vld [vmem:[#allocation46_spill] sm:$0xff]  ;;  %v8263_v43 = vshrl.u32 %v8247_v59, 13  ;;  %v8174_v33 = vmul.u32 256, %v14522_v17 }
 0x4c9   :  { %9689 = vmatpush3.bf16.msra.mxu0 %v10661_v4  ;;  %v8170_v21 = vmul.u32 256, %v14518_v47  ;;  %v8242_v45 = vmul.u32 2246822507, %v8226_v9  ;;  %v8185_v4 = vadd.s32 %v8172_v40, %v14516_v36  ;;  %v8234_v9 = vxor.u32 %v8218_v31, %v8202_v19 }
 0x4ca   :  { %9690 = vmatprep.subr.bf16.mxu0 %v10662_v41  ;;  %v8244_v50 = vmul.u32 2246822507, %v8228_v29  ;;  %v8275_v41 = vxor.u32 %v8259_v46, %v8243_v7  ;;  %v8246_v58 = vmul.u32 2246822507, %v8230_v24 }
 0x4cb   :  { %v8182_v25 = vadd.s32 %v8170_v21, %v14515_v61  ;;  %v8181_v34 = vadd.s32 %v8170_v21, %v14516_v36  ;;  %v8258_v48 = vshrl.u32 %v8242_v45, 13  ;;  %v8204_v39 = vxor.u32 %v13744_v0, %v8185_v4 }
 0x4cc   :  { %v8260_v14 = vshrl.u32 %v8244_v50, 13  ;;  %v8291_v12 = vmul.u32 3266489909, %v8275_v41  ;;  %v8221_v21 = vshrl.u32 %v8205_v42, 16  ;;  %v8262_v57 = vshrl.u32 %v8246_v58, 13 }
 0x4cd   :  { %9691 = vmatpush3.bf16.msra.mxu0 %v10663_v5  ;;  %v8201_v23 = vxor.u32 %v13744_v0, %v8182_v25  ;;  %v8200_v55 = vxor.u32 %v13744_v0, %v8181_v34  ;;  %v8277_v5 = vxor.u32 %v8261_v22, %v8245_v60  ;;  %v8274_v51 = vxor.u32 %v8258_v48, %v8242_v45 }
 0x4ce   :  { %v8276_v10 = vxor.u32 %v8260_v14, %v8244_v50  ;;  %v8173_v25 = vmul.u32 256, %v14521_v2  ;;  %v8279_v34 = vxor.u32 %v8263_v43, %v8247_v59  ;;  %v8220_v37 = vshrl.u32 %v8204_v39, 16 }
 0x4cf   :  { %v8217_v20 = vshrl.u32 %v8201_v23, 16  ;;  %v8216_v28 = vshrl.u32 %v8200_v55, 16  ;;  %v8293_v47 = vmul.u32 3266489909, %v8277_v5  ;;  %v8290_v63 = vmul.u32 3266489909, %v8274_v51 }
 0x4d0   :  { %v8292_v1 = vmul.u32 3266489909, %v8276_v10  ;;  %v8237_v30 = vxor.u32 %v8221_v21, %v8205_v42  ;;  %v8278_v49 = vxor.u32 %v8262_v57, %v8246_v58  ;;  %v8188_v29 = vadd.s32 %v8173_v25, %v14515_v61  ;;  %v7641_v10 = vld [vmem:[#allocation14] sm:$0x3] }
 0x4d1   :  { %v8233_v54 = vxor.u32 %v8217_v20, %v8201_v23  ;;  %v8232_v52 = vxor.u32 %v8216_v28, %v8200_v55  ;;  %v8307_v23 = vshrl.u32 %v8291_v12, 16  ;;  %v8309_v13 = vshrl.u32 %v8293_v47, 16 }
 0x4d2   :  { %v8306_v55 = vshrl.u32 %v8290_v63, 16  ;;  %v8308_v7 = vshrl.u32 %v8292_v1, 16  ;;  %v8190_v20 = vadd.s32 %v8174_v33, %v14515_v61  ;;  %v8295_v60 = vmul.u32 3266489909, %v8279_v34 }
 0x4d3   :  { %v8249_v16 = vmul.u32 2246822507, %v8233_v54  ;;  %v8248_v38 = vmul.u32 2246822507, %v8232_v52  ;;  %v8236_v40 = vxor.u32 %v8220_v37, %v8204_v39  ;;  %v8187_v45 = vadd.s32 %v8173_v25, %v14516_v36  ;;  %v14524_v25 = vld [vmem:[#allocation42_spill] sm:$0xff] }
 0x4d4   :  { %v8253_v32 = vmul.u32 2246822507, %v8237_v30  ;;  %v8250_v18 = vmul.u32 2246822507, %v8234_v9  ;;  %v8189_v50 = vadd.s32 %v8174_v33, %v14516_v36  ;;  %v8323_v28 = vxor.u32 %v8307_v23, %v8291_v12 }
 0x4d5   :  { %v8265_v35 = vshrl.u32 %v8249_v16, 13  ;;  %v8264_v56 = vshrl.u32 %v8248_v38, 13  ;;  %v8294_v15 = vmul.u32 3266489909, %v8278_v49  ;;  %v8267_v54 = vshrl.u32 %v8251_v8, 13 }
 0x4d6   :  { %v8207_v46 = vxor.u32 %v13744_v0, %v8188_v29  ;;  %v8325_v22 = vxor.u32 %v8309_v13, %v8293_v47  ;;  %v8322_v27 = vxor.u32 %v8306_v55, %v8290_v63  ;;  %v8209_v48 = vxor.u32 %v13744_v0, %v8190_v20 }
 0x4d7   :  { %v8281_v26 = vxor.u32 %v8265_v35, %v8249_v16  ;;  %v8280_v6 = vxor.u32 %v8264_v56, %v8248_v38  ;;  %v8324_v61 = vxor.u32 %v8308_v7, %v8292_v1  ;;  %v8311_v24 = vshrl.u32 %v8295_v60, 16 }
 0x4d8   :  { %v8252_v3 = vmul.u32 2246822507, %v8236_v40  ;;  %v8206_v14 = vxor.u32 %v13744_v0, %v8187_v45  ;;  %v8269_v59 = vshrl.u32 %v8253_v32, 13  ;;  %v8266_v16 = vshrl.u32 %v8250_v18, 13 }
 0x4d9   :  { %v8297_v11 = vmul.u32 3266489909, %v8281_v26  ;;  %v8296_v44 = vmul.u32 3266489909, %v8280_v6  ;;  %v8208_v36 = vxor.u32 %v13744_v0, %v8189_v50  ;;  %v8339_v4 = vand.u32 8388607, %v8323_v28 }
 0x4da   :  { %v8310_v41 = vshrl.u32 %v8294_v15, 16  ;;  %v8283_v5 = vxor.u32 %v8267_v54, %v8251_v8  ;;  %v8223_v42 = vshrl.u32 %v8207_v46, 16  ;;  %v8341_v19 = vand.u32 8388607, %v8325_v22 }
 0x4db   :  { %v8313_v52 = vshrl.u32 %v8297_v11, 16  ;;  %v8338_v51 = vand.u32 8388607, %v8322_v27  ;;  %v8312_v58 = vshrl.u32 %v8296_v44, 16  ;;  %v8225_v62 = vshrl.u32 %v8209_v48, 16 }
 0x4dc   :  { %v8340_v38 = vand.u32 8388607, %v8324_v61  ;;  %v8327_v43 = vxor.u32 %v8311_v24, %v8295_v60  ;;  %v8268_v35 = vshrl.u32 %v8252_v3, 13  ;;  %v8222_v39 = vshrl.u32 %v8206_v14, 16 }
 0x4dd   :  { %v8329_v12 = vxor.u32 %v8313_v52, %v8297_v11  ;;  %v13782_v47 = vxor.u32 %v8269_v59, %v8253_v32  ;;  %v8282_v21 = vxor.u32 %v8266_v16, %v8250_v18  ;;  %v8224_v31 = vshrl.u32 %v8208_v36, 16 }
 0x4de   :  { %v8326_v63 = vxor.u32 %v8310_v41, %v8294_v15  ;;  %v8299_v0 = vmul.u32 3266489909, %v8283_v5  ;;  %v8239_v57 = vxor.u32 %v8223_v42, %v8207_v46  ;;  %v13785_v2 = vrot.slane %v7641_v10, %v14523_v53 }
 0x4df   :  { %v13788_v1 = vrot.slane %v7641_v10, %v14524_v25  ;;  %v8328_v56 = vxor.u32 %v8312_v58, %v8296_v44  ;;  %v8241_v17 = vxor.u32 %v8225_v62, %v8209_v48  ;;  %vm13790_vm5 = vcmp.ge.s32.totalorder %v8339_v4, 2516582 }
 0x4e0   :  { %vm13794_vm4 = vcmp.ge.s32.totalorder %v8341_v19, 2516582  ;;  %v8343_v26 = vand.u32 8388607, %v8327_v43  ;;  %v13798_v37 = vxor.u32 %v8268_v35, %v8252_v3  ;;  %v8238_v23 = vxor.u32 %v8222_v39, %v8206_v14 }
 0x4e1   :  { %vm13800_vm8 = vcmp.ge.s32.totalorder %v8338_v51, 2516582  ;;  %vm13804_vm7 = vcmp.ge.s32.totalorder %v8340_v38, 2516582  ;;  %v8345_v13 = vand.u32 8388607, %v8329_v12  ;;  %v8240_v29 = vxor.u32 %v8224_v31, %v8208_v36  ;;  %vm9644_vm10 = vmpackc.low %vm13794_vm4, %vm13790_vm5 }
 0x4e2   :  { %v8301_v49 = vmul.u32 3266489909, %v13782_v47  ;;  %v8298_v8 = vmul.u32 3266489909, %v8282_v21  ;;  %v8342_v55 = vand.u32 8388607, %v8326_v63  ;;  %vm9647_vm9 = vmpackc.low %vm13804_vm7, %vm13800_vm8 }
 0x4e3   :  { %v8315_v7 = vshrl.u32 %v8299_v0, 16  ;;  %v8255_v6 = vmul.u32 2246822507, %v8239_v57  ;;  %v8344_v60 = vand.u32 8388607, %v8328_v56 }
 0x4e4   :  { %v8257_v11 = vmul.u32 2246822507, %v8241_v17  ;;  %v8300_v32 = vmul.u32 3266489909, %v13798_v37  ;;  %v8317_v15 = vshrl.u32 %v8301_v49, 16  ;;  %v8314_v54 = vshrl.u32 %v8298_v8, 16 }
 0x4e5   :  { %v8254_v18 = vmul.u32 2246822507, %v8238_v23  ;;  %v8256_v46 = vmul.u32 2246822507, %v8240_v29  ;;  %v13813_v48 = vxor.u32 %v8315_v7, %v8299_v0  ;;  %v8271_v61 = vshrl.u32 %v8255_v6, 13 }
 0x4e6   :  { %v8273_v14 = vshrl.u32 %v8257_v11, 13  ;;  %vm13816_vm13 = vcmp.ge.s32.totalorder %v8343_v26, 2516582  ;;  %vm13820_vm0 = vcmp.ge.s32.totalorder %v8345_v13, 2516582  ;;  %v8330_v42 = vxor.u32 %v8314_v54, %v8298_v8 }
 0x4e7   :  { %v8270_v36 = vshrl.u32 %v8254_v18, 13  ;;  %vm13824_vm14 = vcmp.ge.s32.totalorder %v8342_v55, 2516582  ;;  %vm13828_vm12 = vcmp.ge.s32.totalorder %v8344_v60, 2516582  ;;  %v8272_v19 = vshrl.u32 %v8256_v46, 13  ;;  %vm9650_vm4 = vmpackc.low %vm13820_vm0, %vm13816_vm13 }
 0x4e8   :  { %v8316_v62 = vshrl.u32 %v8300_v32, 16  ;;  %v13833_v10 = vxor.u32 %v8271_v61, %v8255_v6  ;;  %v8289_v12 = vxor.u32 %v8273_v14, %v8257_v11  ;;  %v8333_v63 = vxor.u32 %v8317_v15, %v8301_v49  ;;  %vm9653_vm8 = vmpackc.low %vm13828_vm12, %vm13824_vm14 }
 0x4e9   :  { %v8286_v0 = vxor.u32 %v8270_v36, %v8254_v18  ;;  %v8347_v25 = vand.u32 8388607, %v13813_v48  ;;  %v8346_v56 = vand.u32 8388607, %v8330_v42  ;;  %v8288_v17 = vxor.u32 %v8272_v19, %v8256_v46 }
 0x4ea   :  { %v8332_v13 = vxor.u32 %v8316_v62, %v8300_v32  ;;  %v8303_v49 = vmul.u32 3266489909, %v13833_v10  ;;  %v8305_v55 = vmul.u32 3266489909, %v8289_v12  ;;  %v8349_v11 = vand.u32 8388607, %v8333_v63 }
 0x4eb   :  { %v8302_v33 = vmul.u32 3266489909, %v8286_v0  ;;  %v8304_v6 = vmul.u32 3266489909, %v8288_v17  ;;  %vm13870_vm7 = vcmp.ge.s32.totalorder %v8347_v25, 2516582 }
 0x4ec   :  { %v8321_v30 = vshrl.u32 %v8305_v55, 16  ;;  %v8348_v54 = vand.u32 8388607, %v8332_v13 }
 0x4ed   :  { %v8318_v46 = vshrl.u32 %v8302_v33, 16  ;;  %v8320_v61 = vshrl.u32 %v8304_v6, 16 }
 0x4ee   :  { %v8337_v16 = vxor.u32 %v8321_v30, %v8305_v55  ;;  %vm13894_vm0 = vcmp.ge.s32.totalorder %v8348_v54, 2516582 }
 0x4ef   :  { %v8334_v19 = vxor.u32 %v8318_v46, %v8302_v33  ;;  %v8336_v62 = vxor.u32 %v8320_v61, %v8304_v6  ;;  %v9627_v6 = vld [vmem:[#allocation17] ss:$0 sm:$0xff] }
 0x4f0   :  { %v8353_v12 = vand.u32 8388607, %v8337_v16 }
 0x4f1   :  { %v8350_v63 = vand.u32 8388607, %v8334_v19 }
 0x583   :  { %v8080_v20 = vpop.f32.mrb[48].mxu0 }
 0x584   :  { %v9844_v40 = vadd.f32 %v8080_v20, %v13785_v2  ;;  %v8082_v45 = vpop.f32.mrb[49].mxu0 }
 0x585   :  { %v9845_v50 = vadd.f32 %v8082_v45, %v13788_v1  ;;  %v8084_v28 = vpop.f32.mrb[50].mxu0 }
 0x586   :  { %v8135_v22 = vmul.f32 0.2, %v9844_v40  ;;  %v9846_v27 = vadd.f32 %v8084_v28, %v13785_v2  ;;  %v8086_v44 = vpop.f32.mrb[51].mxu0  ;;  %vm8119_vm3 = vcmp.ge.f32.partialorder %v9844_v40, 0.0 }
 0x587   :  { %v8136_v24 = vmul.f32 0.2, %v9845_v50  ;;  %v9847_v3 = vadd.f32 %v8086_v44, %v13788_v1  ;;  %vm8120_vm6 = vcmp.ge.f32.partialorder %v9845_v50, 0.0 }
 0x588   :  { %vm8121_vm15 = vcmp.ge.f32.partialorder %v9846_v27, 0.0  ;;  %v8137_v52 = vmul.f32 0.2, %v9846_v27  ;;  %v8151_v51 = vsel %vm8119_vm3, %v9844_v40, %v8135_v22  ;;  %v8319_v40 = vshrl.u32 %v8303_v49, 16 }
 0x589   :  { %vm8122_vm11 = vcmp.ge.f32.partialorder %v9847_v3, 0.0  ;;  %v8138_v4 = vmul.f32 0.2, %v9847_v3  ;;  %v8152_v38 = vsel %vm8120_vm6, %v9845_v50, %v8136_v24  ;;  %vm13874_vm6 = vcmp.ge.s32.totalorder %v8346_v56, 2516582 }
 0x58a   :  { %v8153_v58 = vsel %vm8121_vm15, %v9846_v27, %v8137_v52  ;;  %vm13884_vm15 = vcmp.ge.s32.totalorder %v8349_v11, 2516582  ;;  %v8335_v36 = vxor.u32 %v8319_v40, %v8303_v49  ;;  %vm9659_vm12 = vmpackc.low %vm13894_vm0, %vm13874_vm6 }
 0x58b   :  { %v9648_v43 = vpack.c.bf16 %v8153_v58, %v8151_v51  ;;  %v8154_v35 = vsel %vm8122_vm11, %v9847_v3, %v8138_v4  ;;  %v8090_v39 = vpop.f32.mrb[52].mxu0  ;;  %vm9656_vm14 = vmpackc.low %vm13884_vm15, %vm13870_vm7 }
 0x58c   :  { %v9645_v47 = vpack.c.bf16 %v8154_v35, %v8152_v38  ;;  %v9848_v21 = vadd.f32 %v8090_v39, %v13785_v2  ;;  %v8092_v31 = vpop.f32.mrb[53].mxu0 }
 0x58d   :  { %v9849_v57 = vadd.f32 %v8092_v31, %v13788_v1  ;;  %v8094_v53 = vpop.f32.mrb[54].mxu0 }
 0x58e   :  { %v8139_v26 = vmul.f32 0.2, %v9848_v21  ;;  %v9850_v37 = vadd.f32 %v8094_v53, %v13785_v2  ;;  %v8096_v23 = vpop.f32.mrb[55].mxu0  ;;  %9646 = vmatprep.mubr.msk.bf16.mxu0 %vm9644_vm10, %v9645_v47  ;;  %vm8123_vm1 = vcmp.ge.f32.partialorder %v9848_v21, 0.0  ;;  %v8352_v53 = vand.u32 8388607, %v8336_v62 }
 0x58f   :  { %v8140_v8 = vmul.f32 0.2, %v9849_v57  ;;  %v9851_v29 = vadd.f32 %v8096_v23, %v13788_v1  ;;  %9649 = vmatmul.mubr.msk.bf16.vlgmr.msra.gmra.mrb[64].mxu0 %vm9647_vm9, %v9648_v43  ;;  %vm8124_vm2 = vcmp.ge.f32.partialorder %v9849_v57, 0.0  ;;  %v8351_v43 = vand.u32 8388607, %v8335_v36 }
 0x590   :  { %vm8125_vm3 = vcmp.ge.f32.partialorder %v9850_v37, 0.0  ;;  %v8141_v34 = vmul.f32 0.2, %v9850_v37  ;;  %v8155_v20 = vsel %vm8123_vm1, %v9848_v21, %v8139_v26  ;;  %vm8368_vm6 = vcmp.ge.s32.totalorder %v8352_v53, 2516582 }
 0x591   :  { %vm8126_vm5 = vcmp.ge.f32.partialorder %v9851_v29, 0.0  ;;  %v8142_v7 = vmul.f32 0.2, %v9851_v29  ;;  %v8156_v45 = vsel %vm8124_vm2, %v9849_v57, %v8140_v8  ;;  %vm13909_vm1 = vcmp.ge.s32.totalorder %v8351_v43, 2516582 }
 0x592   :  { %v8157_v60 = vsel %vm8125_vm3, %v9850_v37, %v8141_v34  ;;  %vm13914_vm3 = vcmp.ge.s32.totalorder %v8353_v12, 2516582 }
 0x593   :  { %v9654_v32 = vpack.c.bf16 %v8157_v60, %v8155_v20  ;;  %v8158_v18 = vsel %vm8126_vm5, %v9851_v29, %v8142_v7  ;;  %v8100_v9 = vpop.f32.mrb[56].mxu0  ;;  %vm9662_vm15 = vmpackc.low %vm13914_vm3, %vm13909_vm1 }
 0x594   :  { %v9651_v50 = vpack.c.bf16 %v8158_v18, %v8156_v45  ;;  %v9852_v28 = vadd.f32 %v8100_v9, %v13785_v2  ;;  %v8102_v15 = vpop.f32.mrb[57].mxu0 }
 0x595   :  { %v9853_v22 = vadd.f32 %v8102_v15, %v13788_v1  ;;  %v8104_v27 = vpop.f32.mrb[58].mxu0 }
 0x596   :  { %v8143_v24 = vmul.f32 0.2, %v9852_v28  ;;  %v9854_v3 = vadd.f32 %v8104_v27, %v13785_v2  ;;  %v8106_v14 = vpop.f32.mrb[59].mxu0  ;;  %9652 = vmatprep.mubr.msk.bf16.mxu0 %vm9650_vm4, %v9651_v50  ;;  %vm8127_vm11 = vcmp.ge.f32.partialorder %v9852_v28, 0.0 }
 0x597   :  { %v8144_v4 = vmul.f32 0.2, %v9853_v22  ;;  %v9855_v42 = vadd.f32 %v8106_v14, %v13788_v1  ;;  %9655 = vmatmul.mubr.msk.bf16.gmra.mrb[68].mxu0 %vm9653_vm8, %v9654_v32  ;;  %vm8128_vm10 = vcmp.ge.f32.partialorder %v9853_v22, 0.0  ;;  %vm8366_vm8 = vcmp.ge.s32.totalorder %v8350_v63, 2516582 }
 0x598   :  { %vm8129_vm9 = vcmp.ge.f32.partialorder %v9854_v3, 0.0  ;;  %v8145_v59 = vmul.f32 0.2, %v9854_v3  ;;  %v8159_v10 = vsel %vm8127_vm11, %v9852_v28, %v8143_v24  ;;  %vm9665_vm11 = vmpackc.low %vm8368_vm6, %vm8366_vm8 }
 0x599   :  { %vm8130_vm13 = vcmp.ge.f32.partialorder %v9855_v42, 0.0  ;;  %v8146_v51 = vmul.f32 0.2, %v9855_v42  ;;  %v8160_v5 = vsel %vm8128_vm10, %v9853_v22, %v8144_v4 }
 0x59a   :  { %v8161_v38 = vsel %vm8129_vm9, %v9854_v3, %v8145_v59 }
 0x59b   :  { %v9660_v35 = vpack.c.bf16 %v8161_v38, %v8159_v10  ;;  %v8162_v41 = vsel %vm8130_vm13, %v9855_v42, %v8146_v51  ;;  %v8110_v39 = vpop.f32.mrb[60].mxu0 }
 0x59c   :  { %v9657_v47 = vpack.c.bf16 %v8162_v41, %v8160_v5  ;;  %v9856_v21 = vadd.f32 %v8110_v39, %v13785_v2  ;;  %v8112_v31 = vpop.f32.mrb[61].mxu0 }
 0x59d   :  { %v9857_v0 = vadd.f32 %v8112_v31, %v13788_v1  ;;  %v8114_v57 = vpop.f32.mrb[62].mxu0 }
 0x59e   :  { %v8147_v25 = vmul.f32 0.2, %v9856_v21  ;;  %v9858_v56 = vadd.f32 %v8114_v57, %v13785_v2  ;;  %v8116_v17 = vpop.f32.mrb[63].mxu0  ;;  %9658 = vmatprep.mubr.msk.bf16.mxu1 %vm9656_vm14, %v9657_v47  ;;  %vm8131_vm2 = vcmp.ge.f32.partialorder %v9856_v21, 0.0 }
 0x59f   :  { %v8148_v37 = vmul.f32 0.2, %v9857_v0  ;;  %v9859_v23 = vadd.f32 %v8116_v17, %v13788_v1  ;;  %9661 = vmatmul.mubr.msk.bf16.vlgmr.msra.gmra.mrb[64].mxu1 %vm9659_vm12, %v9660_v35  ;;  %vm8132_vm5 = vcmp.ge.f32.partialorder %v9857_v0, 0.0 }
 0x5a0   :  { %vm8133_vm4 = vcmp.ge.f32.partialorder %v9858_v56, 0.0  ;;  %v8149_v49 = vmul.f32 0.2, %v9858_v56  ;;  %v8163_v8 = vsel %vm8131_vm2, %v9856_v21, %v8147_v25 }
 0x5a1   :  { %vm8134_vm7 = vcmp.ge.f32.partialorder %v9859_v23, 0.0  ;;  %v8150_v2 = vmul.f32 0.2, %v9859_v23  ;;  %v8164_v55 = vsel %vm8132_vm5, %v9857_v0, %v8148_v37 }
 0x5a2   :  { %v8165_v29 = vsel %vm8133_vm4, %v9858_v56, %v8149_v49 }
 0x5a3   :  { %v9666_v34 = vpack.c.bf16 %v8165_v29, %v8163_v8  ;;  %v8166_v33 = vsel %vm8134_vm7, %v9859_v23, %v8150_v2 }
 0x5a4   :  { %v9663_v1 = vpack.c.bf16 %v8166_v33, %v8164_v55 }
 0x5a6   :  { %9664 = vmatprep.mubr.msk.bf16.mxu1 %vm9662_vm15, %v9663_v1 }
 0x5a7   :  { %9667 = vmatmul.mubr.msk.bf16.gmra.mrb[68].mxu1 %vm9665_vm11, %v9666_v34 }
 0x662   :  { %v9692_v7 = vpop.f32.mrb[64].mxu0 }
 0x663   :  { %v9693_v20 = vpop.f32.mrb[65].mxu0 }
 0x664   :  { %v9694_v60 = vadd.f32 %v9693_v20, %v9692_v7  ;;  %v9695_v11 = vpop.f32.mrb[66].mxu0 }
 0x665   :  { %v9696_v40 = vpop.f32.mrb[67].mxu0 }
 0x666   :  { %v8564_v45 = vadd.f32 %v9694_v60, %v9627_v6  ;;  %v9697_v32 = vadd.f32 %v9696_v40, %v9695_v11 }
 0x668   :  { %v9668_v18 = vmul.f32 -1.442695, %v8564_v45  ;;  %v8567_v9 = vadd.f32 %v9697_v32, %v9627_v6 }
 0x66a   :  { %10664 = vpow2.f32 %v9668_v18  ;;  %v9669_v30 = vmul.f32 -1.442695, %v8567_v9  ;;  %v9698_v50 = vpop.f32.mrb[68].mxu0 }
 0x66b   :  { %v9699_v28 = vpop.f32.mrb[69].mxu0 }
 0x66c   :  { %10666 = vpow2.f32 %v9669_v30  ;;  %v9700_v15 = vadd.f32 %v9699_v28, %v9698_v50  ;;  %v9701_v54 = vpop.f32.mrb[70].mxu0 }
 0x66d   :  { %v9702_v46 = vpop.f32.mrb[71].mxu0 }
 0x66e   :  { %v8572_v22 = vadd.f32 %v9700_v15, %v9627_v6  ;;  %v9703_v27 = vadd.f32 %v9702_v46, %v9701_v54 }
 0x670   :  { %v9670_v44 = vmul.f32 -1.442695, %v8572_v22  ;;  %v8575_v48 = vadd.f32 %v9703_v27, %v9627_v6 }
 0x672   :  { %10668 = vpow2.f32 %v9670_v44  ;;  %v9671_v61 = vmul.f32 -1.442695, %v8575_v48  ;;  %v9704_v24 = vpop.f32.mrb[64].mxu1 }
 0x673   :  { %v9705_v3 = vpop.f32.mrb[65].mxu1 }
 0x674   :  { %v10665_v14 = vpop.eup %10664  ;;  %10670 = vpow2.f32 %v9671_v61  ;;  %v9706_v52 = vadd.f32 %v9705_v3, %v9704_v24  ;;  %v9707_v36 = vpop.f32.mrb[66].mxu1 }
 0x675   :  { %v8618_v4 = vadd.f32 1.0, %v10665_v14  ;;  %v9708_v42 = vpop.f32.mrb[67].mxu1 }
 0x676   :  { %v10667_v16 = vpop.eup %10666  ;;  %v8580_v59 = vadd.f32 %v9706_v52, %v9627_v6  ;;  %v9709_v19 = vadd.f32 %v9708_v42, %v9707_v36 }
 0x677   :  { %10672 = vrcp.f32 %v8618_v4  ;;  %v8619_v51 = vadd.f32 1.0, %v10667_v16 }
 0x678   :  { %v9672_v58 = vmul.f32 -1.442695, %v8580_v59  ;;  %v8583_v62 = vadd.f32 %v9709_v19, %v9627_v6 }
 0x679   :  { %10674 = vrcp.f32 %v8619_v51 }
 0x67a   :  { %10676 = vpow2.f32 %v9672_v58  ;;  %v9673_v10 = vmul.f32 -1.442695, %v8583_v62  ;;  %v9710_v38 = vpop.f32.mrb[68].mxu1 }
 0x67b   :  { %v9711_v43 = vpop.f32.mrb[69].mxu1 }
 0x67c   :  { %v10669_v5 = vpop.eup %10668  ;;  %10678 = vpow2.f32 %v9673_v10  ;;  %v9712_v35 = vadd.f32 %v9711_v43, %v9710_v38  ;;  %v9713_v41 = vpop.f32.mrb[70].mxu1 }
 0x67d   :  { %v8620_v39 = vadd.f32 1.0, %v10669_v5  ;;  %v9714_v12 = vpop.f32.mrb[71].mxu1 }
 0x67e   :  { %v10671_v47 = vpop.eup %10670  ;;  %v8588_v21 = vadd.f32 %v9712_v35, %v9627_v6  ;;  %v9715_v31 = vadd.f32 %v9714_v12, %v9713_v41 }
 0x67f   :  { %10680 = vrcp.f32 %v8620_v39  ;;  %v8621_v63 = vadd.f32 1.0, %v10671_v47 }
 0x680   :  { %v9674_v0 = vmul.f32 -1.442695, %v8588_v21  ;;  %v8591_v57 = vadd.f32 %v9715_v31, %v9627_v6 }
 0x681   :  { %v10673_v53 = vpop.eup %10672  ;;  %10682 = vrcp.f32 %v8621_v63 }
 0x682   :  { %8642 = vst [vmem:[%s13956_s10] sm:$0xff] %v10673_v53  ;;  %10684 = vpow2.f32 %v9674_v0  ;;  %v9675_v25 = vmul.f32 -1.442695, %v8591_v57 }
 0x683   :  { %v10675_v56 = vpop.eup %10674 }
 0x684   :  { %v10677_v17 = vpop.eup %10676  ;;  %8643 = vst [vmem:[%s13956_s10 + $0x8] sm:$0xff] %v10675_v56  ;;  %10686 = vpow2.f32 %v9675_v25 }
 0x685   :  { %v8622_v26 = vadd.f32 1.0, %v10677_v17 }
 0x686   :  { %v10679_v37 = vpop.eup %10678 }
 0x687   :  { %10688 = vrcp.f32 %v8622_v26  ;;  %v8623_v23 = vadd.f32 1.0, %v10679_v37 }
 0x689   :  { %v10681_v13 = vpop.eup %10680  ;;  %10690 = vrcp.f32 %v8623_v23 }
 0x68a   :  { %8644 = vst [vmem:[%s13956_s10 + $0x10] sm:$0xff] %v10681_v13 }
 0x68b   :  { %v10683_v49 = vpop.eup %10682 }
 0x68c   :  { %v10685_v2 = vpop.eup %10684  ;;  %8645 = vst [vmem:[%s13956_s10 + $0x18] sm:$0xff] %v10683_v49 }
 0x68d   :  { %v8624_v8 = vadd.f32 1.0, %v10685_v2 }
 0x68e   :  { %v10687_v29 = vpop.eup %10686 }
 0x68f   :  { %10692 = vrcp.f32 %v8624_v8  ;;  %v8625_v55 = vadd.f32 1.0, %v10687_v29 }
 0x691   :  { %v10689_v34 = vpop.eup %10688  ;;  %10694 = vrcp.f32 %v8625_v55 }
 0x692   :  { %8646 = vst [vmem:[%s13956_s10 + $0x20] sm:$0xff] %v10689_v34 }
 0x693   :  { %v10691_v33 = vpop.eup %10690 }
 0x694   :  { %8647 = vst [vmem:[%s13956_s10 + $0x28] sm:$0xff] %v10691_v33 }
 0x699   :  { %v10693_v1 = vpop.eup %10692 }
 0x69a   :  { %8648 = vst [vmem:[%s13956_s10 + $0x30] sm:$0xff] %v10693_v1 }
 0x69b   :  { %v10695_v7 = vpop.eup %10694 }
 0x69c   :  { %8649 = vst [vmem:[%s13956_s10 + $0x38] sm:$0xff] %v10695_v7 }
 0x69d   :  { %8654 = vsyncpa [#allocation5], 1 }
 0x69e   :  { %8655 = vsyncpa [#allocation7], 1 }
 0x69f   :  { %8656 = vsyncpa [#allocation10], 1 }
 0x6a0   :  { %8657 = vsyncpa [#allocation13], 1 }
 0x6a1   :  { %8658 = vsyncpa [#allocation16], 1 }

</bundles_post_ra>
